<compile_context>
chip_gen: v5e
topology: v5e:2x2
jax: 0.10.0
libtpu: 0.0.40
codegen_flags: <defaults>
</compile_context>

<pallas_src>
import jax
import jax.numpy as jnp
from jax.experimental import pallas as pl
from jax.experimental.pallas import tpu as pltpu

# small shapes consistent with the module (embed_hidden, mlp_hidden shrunk)
BATCH = 2
SEQ   = 8
EMBED = 32    # embed_hidden
HID   = 64    # mlp_hidden (logical)
NOBJ  = 16    # number of image regions K
HP    = 128   # padded per-gate / per-direction hidden width (one full vreg lane dim)

# --- packed-slab row layout (all starts sublane-8 / lane-128 aligned) ---
# slab A (LSTM), width 8*HP = 1024 lanes:
A_BIAS_ROW = EMBED                               # row holding (b_ih+b_hh) for both dirs
A_WHH_ROW  = ((EMBED + 1 + 7) // 8) * 8          # whh block start (8-row aligned)
A_ROWS     = A_WHH_ROW + HP                      # 168
# slab B (proj + attention), width HP = 128 lanes:
B_WPF, B_WPB, B_WV, B_WQ, B_VEC = 0, HP, 2 * HP, 3 * HP, 4 * HP
B_ROWS = 4 * HP + 8                              # 520 (last 8-row tile holds bp/bnl/wlin)


# ----------------------------- fused kernel -----------------------------

def topdown_kernel(q_ref, img_ref, slab_a_ref, slab_b_ref, out_ref, xg_ref):
    TB, E = q_ref.shape            # time-major flattened question: row t*B + b
    B, K, VP = img_ref.shape       # img pre-padded to VP == HP lanes (features in [HID, 2*HID))
    T = TB // B
    G = 4 * HP                     # per-direction gate block (lane aligned)

    # ---- BiLSTM: hoisted input projection for BOTH directions, into time-major scratch ----
    xg_ref[...] = (jnp.dot(q_ref[...], slab_a_ref[0:E, :],
                           preferred_element_type=jnp.float32)
                   + slab_a_ref[A_BIAS_ROW:A_BIAS_ROW + 1, :])

    # recurrent weights stay as ref views; loaded per step (bounds live ranges, no spills)
    whh_f_view = slab_a_ref.at[A_WHH_ROW:A_WHH_ROW + HP, 0:G]
    whh_b_view = slab_a_ref.at[A_WHH_ROW:A_WHH_ROW + HP, G:2 * G]

    def cell(pre, h, c, whh_view):
        # PyTorch gate order i, f, g, o; (b_ih + b_hh) already folded into `pre`.
        gates = pre + jnp.dot(h, whh_view[...], preferred_element_type=jnp.float32)
        i = jax.nn.sigmoid(gates[:, 0 * HP:1 * HP])     # 128-lane aligned slices
        f = jax.nn.sigmoid(gates[:, 1 * HP:2 * HP])
        g = jnp.tanh(gates[:, 2 * HP:3 * HP])
        o = jax.nn.sigmoid(gates[:, 3 * HP:4 * HP])
        c_new = f * c + i * g
        return o * jnp.tanh(c_new), c_new

    h_f = jnp.zeros((B, HP), jnp.float32)
    c_f = jnp.zeros((B, HP), jnp.float32)
    h_b = jnp.zeros((B, HP), jnp.float32)
    c_b = jnp.zeros((B, HP), jnp.float32)

    # interleaved, fully unrolled recurrence: two independent chains -> 2x ILP.
    # per-step inputs are static ref slices of the time-major scratch (no value gathers).
    for t in range(T):
        pre_f = xg_ref[t * B:(t + 1) * B, 0:G]
        pre_b = xg_ref[(T - 1 - t) * B:(T - t) * B, G:2 * G]
        h_f, c_f = cell(pre_f, h_f, c_f, whh_f_view)
        h_b, c_b = cell(pre_b, h_b, c_b, whh_b_view)

    # ---- lstm_proj with pre-placed output lanes: q_emb lives in lanes [0, HID) ----
    # padded lanes of h are exactly zero (zero-padded wih/b gate cols + whh rows/cols),
    # and wp rows/cols beyond HID are zero, so this equals the logical H=64 math.
    q_slab = (jnp.dot(h_f, slab_b_ref[B_WPF:B_WPF + HP, :],
                      preferred_element_type=jnp.float32)
              + jnp.dot(h_b, slab_b_ref[B_WPB:B_WPB + HP, :],
                        preferred_element_type=jnp.float32)
              + slab_b_ref[B_VEC + 0:B_VEC + 1, :])                       # (B, HP)

    # ---- top-down attention ----
    img = img_ref[...]                                                    # (B, K, HP)

    # FCNet nonlinear: ReLU(concat(img, q) @ W + b) == ReLU(img @ Wv + q @ Wq + b)
    proj_v = jnp.dot(img.reshape(B * K, VP), slab_b_ref[B_WV:B_WV + HP, :],
                     preferred_element_type=jnp.float32).reshape(B, K, HP)
    proj_q = jnp.dot(q_slab, slab_b_ref[B_WQ:B_WQ + HP, :],
                     preferred_element_type=jnp.float32)                  # (B, HP)
    joint = jnp.maximum(proj_v + proj_q[:, None, :]
                        + slab_b_ref[B_VEC + 1:B_VEC + 2, :], 0.0)

    # logits via VPU multiply + lane reduce (avoid a width-1 MXU matmul).
    # The final linear's scalar bias is a constant shift -> no-op under softmax -> dropped.
    wlin = slab_b_ref[B_VEC + 2:B_VEC + 3, :]
    logits = jnp.sum(joint * wlin.reshape(1, 1, HP), axis=-1)             # (B, K)

    # softmax over the K regions (dim=1 in torch)
    m = jnp.max(logits, axis=1, keepdims=True)
    e = jnp.exp(logits - m)
    att = e * pl.reciprocal(jnp.sum(e, axis=1, keepdims=True), approx=True)   # (B, K)

    # v_emb = (att * img).sum(1); lands in lanes [HID, 2*HID) because img is pre-placed there
    v_slab = jnp.sum(att[:, :, None] * img, axis=1)                       # (B, HP)

    # single lane-dense 128-wide output slab: [q_emb | v_emb] via one VPU add (no concat)
    out_ref[...] = q_slab + v_slab


# ----------------------------- parameter packing for the kernel -----------------------------

def _pad_gate_cols(w, h, hp):
    # (rows, 4*h) -> (rows, 4*hp): each of the 4 gates zero-padded to hp lanes
    r = w.shape[0]
    return jnp.pad(w.reshape(r, 4, h), ((0, 0), (0, 0), (0, hp - h))).reshape(r, 4 * hp)


def prepare_kernel_params(p):
    """Pack all 13 weights/biases into two VMEM slabs (one DMA each).

    Invariant (required for correctness of the HP=128 gate padding): every padded
    gate column of wih/b, every padded row AND column of whh, and every padded
    row/column of wp_* must be exactly zero, so the padded h/c lanes stay zero and
    never leak into q_emb.  jnp.pad with zeros below guarantees this.
    """
    assert HP == 2 * HID, "output-lane pre-placement assumes 2*HID == HP"
    G = 4 * HP
    pad_rows = lambda w: jnp.pad(w, ((0, HP - HID), (0, 0)))

    # --- slab A: [ wih (fwd|bwd) ; bias row ; whh (fwd|bwd) ] -> (A_ROWS, 2*G) ---
    wih = jnp.concatenate([_pad_gate_cols(p['wih_f'], HID, HP),
                           _pad_gate_cols(p['wih_b'], HID, HP)], axis=1)        # (E, 2G)
    b = jnp.concatenate([_pad_gate_cols(p['b_f'], HID, HP),
                         _pad_gate_cols(p['b_b'], HID, HP)], axis=1)            # (1, 2G)
    whh = jnp.concatenate([pad_rows(_pad_gate_cols(p['whh_f'], HID, HP)),
                           pad_rows(_pad_gate_cols(p['whh_b'], HID, HP))], axis=1)  # (HP, 2G)
    slab_a = jnp.zeros((A_ROWS, 2 * G), jnp.float32)
    slab_a = slab_a.at[0:EMBED, :].set(wih)
    slab_a = slab_a.at[A_BIAS_ROW, :].set(b[0])
    slab_a = slab_a.at[A_WHH_ROW:A_WHH_ROW + HP, :].set(whh)

    # --- slab B: [ wp_f ; wp_b ; wv ; wq ; (bp, bnl, wlin) rows ] -> (B_ROWS, HP) ---
    # wp_*: rows padded for the HP-wide h, cols padded so q_emb occupies lanes [0, HID)
    wp_f = jnp.pad(p['wp_f'], ((0, HP - HID), (0, HP - HID)))
    wp_b = jnp.pad(p['wp_b'], ((0, HP - HID), (0, HP - HID)))
    # wv: img features are pre-placed in lanes [HID, 2*HID) -> top rows are zero
    wv = jnp.pad(p['wv'], ((HID, 0), (0, HP - HID)))
    # wq: q_emb real lanes are [0, HID) -> bottom rows are zero
    wq = jnp.pad(p['wq'], ((0, HP - HID), (0, HP - HID)))
    bp   = jnp.pad(p['bp'],  ((0, 0), (0, HP - HID)))
    bnl  = jnp.pad(p['bnl'], ((0, 0), (0, HP - HID)))
    wlin = jnp.pad(p['wlin'].reshape(1, HID), ((0, 0), (0, HP - HID)))

    slab_b = jnp.zeros((B_ROWS, HP), jnp.float32)
    slab_b = slab_b.at[B_WPF:B_WPF + HP, :].set(wp_f)
    slab_b = slab_b.at[B_WPB:B_WPB + HP, :].set(wp_b)
    slab_b = slab_b.at[B_WV:B_WV + HP, :].set(wv)
    slab_b = slab_b.at[B_WQ:B_WQ + HP, :].set(wq)
    slab_b = slab_b.at[B_VEC + 0, :].set(bp[0])
    slab_b = slab_b.at[B_VEC + 1, :].set(bnl[0])
    slab_b = slab_b.at[B_VEC + 2, :].set(wlin[0])

    return dict(slab_a=slab_a, slab_b=slab_b)


# ----------------------------- wrapper -----------------------------

def top_down_forward(img, q, kp):
    B, T, E = q.shape
    # time-major flatten for the hoisted input projection (row t*B + b == q[b, t])
    q_tm = jnp.transpose(q, (1, 0, 2)).reshape(T * B, E)
    # pre-place img features in lanes [HID, 2*HID) so v_emb lands in the output slab directly
    img_pad = jnp.pad(img, ((0, 0), (0, 0), (HID, 0)))

    vmem = pl.BlockSpec(memory_space=pltpu.MemorySpace.VMEM)
    out = pl.pallas_call(
        topdown_kernel,
        out_shape=jax.ShapeDtypeStruct((B, 2 * HID), jnp.float32),
        in_specs=[vmem] * 4,
        out_specs=vmem,
        scratch_shapes=[pltpu.VMEM((T * B, 8 * HP), jnp.float32)],   # time-major xg
    )(q_tm, img_pad, kp['slab_a'], kp['slab_b'])

    return out[:, :HID], out[:, HID:]


# ----------------------------- pure-JAX reference (same math, logical shapes) -----------------------------

def reference(img, q, p):
    B, T, E = q.shape
    H = HID

    def cell(x, h, c, wih, whh, b):
        gates = x @ wih + h @ whh + b
        i = jax.nn.sigmoid(gates[:, :H]); f = jax.nn.sigmoid(gates[:, H:2 * H])
        g = jnp.tanh(gates[:, 2 * H:3 * H]); o = jax.nn.sigmoid(gates[:, 3 * H:])
        c = f * c + i * g
        return o * jnp.tanh(c), c

    h = c = jnp.zeros((B, H))
    for t in range(T):
        h, c = cell(q[:, t], h, c, p['wih_f'], p['whh_f'], p['b_f'])
    hf = h
    h = c = jnp.zeros((B, H))
    for t in range(T - 1, -1, -1):
        h, c = cell(q[:, t], h, c, p['wih_b'], p['whh_b'], p['b_b'])
    hb = h
    q_emb = hf @ p['wp_f'] + hb @ p['wp_b'] + p['bp']

    joint = jax.nn.relu(img @ p['wv'] + (q_emb @ p['wq'])[:, None, :] + p['bnl'])
    logits = (joint @ p['wlin'])[..., 0] + p['blin'][0, 0]
    att = jax.nn.softmax(logits, axis=1)
    v_emb = jnp.sum(att[:, :, None] * img, axis=1)
    return q_emb, v_emb


# ----------------------------- params / main -----------------------------

def init_params(key):
    ks = jax.random.split(key, 14)

    def init(k, shape, scale=0.1):
        return (scale * jax.random.normal(k, shape)).astype(jnp.float32)

    return dict(
        # bidirectional LSTM (input->gates weights stored pre-transposed (E,4H)/(H,4H))
        wih_f=init(ks[0], (EMBED, 4 * HID)), whh_f=init(ks[1], (HID, 4 * HID)),
        b_f=init(ks[2], (1, 4 * HID)),
        wih_b=init(ks[3], (EMBED, 4 * HID)), whh_b=init(ks[4], (HID, 4 * HID)),
        b_b=init(ks[5], (1, 4 * HID)),
        # lstm_proj: Linear(2H -> H), split into the two concat halves
        wp_f=init(ks[6], (HID, HID)), wp_b=init(ks[7], (HID, HID)),
        bp=init(ks[8], (1, HID)),
        # Attention: FCNet([V+Q, H]) split into Wv / Wq, then Linear(H -> 1)
        wv=init(ks[9], (HID, HID)), wq=init(ks[10], (HID, HID)),
        bnl=init(ks[11], (1, HID)),
        wlin=init(ks[12], (HID, 1)), blin=init(ks[13], (1, 1)),
    )


if __name__ == "__main__":
    key = jax.random.PRNGKey(0)
    k_img, k_q, k_p = jax.random.split(key, 3)

    img = jax.random.normal(k_img, (BATCH, NOBJ, HID), jnp.float32)
    q = jax.random.normal(k_q, (BATCH, SEQ, EMBED), jnp.float32)
    params = init_params(k_p)
    kparams = prepare_kernel_params(params)   # one-time packing into two VMEM slabs

    q_emb, v_emb = jax.block_until_ready(top_down_forward(img, q, kparams))

    q_ref_out, v_ref_out = reference(img, q, params)
    assert q_emb.shape == (BATCH, HID) and v_emb.shape == (BATCH, HID)
    assert jnp.allclose(q_emb, q_ref_out, rtol=1e-3, atol=1e-3)
    assert jnp.allclose(v_emb, v_ref_out, rtol=1e-3, atol=1e-3)

    print("KERNEL_OK")
</pallas_src>

<mosaic_0001>
module attributes {stable_mosaic.version = 11 : i64} {
  func.func @topdown_kernel(%arg0: memref<16x32xf32, #tpu.memory_space<vmem>>, %arg1: memref<2x16x128xf32, #tpu.memory_space<vmem>>, %arg2: memref<168x1024xf32, #tpu.memory_space<vmem>>, %arg3: memref<520x128xf32, #tpu.memory_space<vmem>>, %arg4: memref<2x128xf32, #tpu.memory_space<vmem>>, %arg5: memref<16x1024xf32, #tpu.memory_space<vmem>>) attributes {dimension_semantics = [], scalar_prefetch = 0 : i64, scratch_operands = 1 : i64, tpu.core_type = #tpu.core_type<tc>} {
    %c0 = arith.constant 0 : index
    %c0_0 = arith.constant 0 : index
    %0 = vector.load %arg0[%c0, %c0_0] : memref<16x32xf32, #tpu.memory_space<vmem>>, vector<16x32xf32>
    %c0_1 = arith.constant 0 : index
    %c0_2 = arith.constant 0 : index
    %1 = vector.load %arg2[%c0_1, %c0_2] : memref<168x1024xf32, #tpu.memory_space<vmem>>, vector<32x1024xf32>
    %cst = arith.constant dense<0.000000e+00> : vector<16x1024xf32>
    %2 = tpu.matmul %0, %1, %cst {dimension_numbers = #tpu.dot_dimension_numbers<[1], [0], [0], [1], [0, 0, 1, 1], [], []>} : vector<16x32xf32>, vector<32x1024xf32>, vector<16x1024xf32> -> vector<16x1024xf32>
    %c32 = arith.constant 32 : index
    %c0_3 = arith.constant 0 : index
    %3 = vector.load %arg2[%c32, %c0_3] : memref<168x1024xf32, #tpu.memory_space<vmem>>, vector<1x1024xf32>
    %4 = vector.broadcast %3 : vector<1x1024xf32> to vector<16x1024xf32>
    %5 = arith.addf %2, %4 : vector<16x1024xf32>
    %c0_4 = arith.constant 0 : index
    %c0_5 = arith.constant 0 : index
    %6 = vector.load %arg5[%c0_4, %c0_5] : memref<16x1024xf32, #tpu.memory_space<vmem>>, vector<16x1024xf32>
    tpu.vector_store %arg5[%c0_4, %c0_5], %5 {strides = array<i32>} : memref<16x1024xf32, #tpu.memory_space<vmem>>, vector<16x1024xf32>,
    %cst_6 = arith.constant 0.000000e+00 : f32
    %7 = vector.broadcast %cst_6 : f32 to vector<2x128xf32>
    %cst_7 = arith.constant 0.000000e+00 : f32
    %8 = vector.broadcast %cst_7 : f32 to vector<2x128xf32>
    %cst_8 = arith.constant 0.000000e+00 : f32
    %9 = vector.broadcast %cst_8 : f32 to vector<2x128xf32>
    %cst_9 = arith.constant 0.000000e+00 : f32
    %10 = vector.broadcast %cst_9 : f32 to vector<2x128xf32>
    %c0_10 = arith.constant 0 : index
    %c0_11 = arith.constant 0 : index
    %11 = vector.load %arg5[%c0_10, %c0_11] : memref<16x1024xf32, #tpu.memory_space<vmem>>, vector<2x512xf32>
    %c14 = arith.constant 14 : index
    %c512 = arith.constant 512 : index
    %12 = vector.load %arg5[%c14, %c512] : memref<16x1024xf32, #tpu.memory_space<vmem>>, vector<2x512xf32>
    %c40 = arith.constant 40 : index
    %c0_12 = arith.constant 0 : index
    %13 = vector.load %arg2[%c40, %c0_12] : memref<168x1024xf32, #tpu.memory_space<vmem>>, vector<128x512xf32>
    %cst_13 = arith.constant dense<0.000000e+00> : vector<2x512xf32>
    %14 = tpu.matmul %7, %13, %cst_13 {dimension_numbers = #tpu.dot_dimension_numbers<[1], [0], [0], [1], [0, 0, 1, 1], [], []>} : vector<2x128xf32>, vector<128x512xf32>, vector<2x512xf32> -> vector<2x512xf32>
    %15 = arith.addf %11, %14 : vector<2x512xf32>
    %16 = vector.extract_strided_slice %15 {offsets = [0, 0], sizes = [2, 128], strides = [1, 1]} : vector<2x512xf32> to vector<2x128xf32>
    %17 = arith.negf %16 : vector<2x128xf32>
    %18 = math.exp %17 : vector<2x128xf32>
    %cst_14 = arith.constant 1.000000e+00 : f32
    %19 = vector.broadcast %cst_14 : f32 to vector<2x128xf32>
    %20 = arith.addf %19, %18 : vector<2x128xf32>
    %21 = arith.divf %19, %20 : vector<2x128xf32>
    %22 = vector.extract_strided_slice %15 {offsets = [0, 128], sizes = [2, 128], strides = [1, 1]} : vector<2x512xf32> to vector<2x128xf32>
    %23 = arith.negf %22 : vector<2x128xf32>
    %24 = math.exp %23 : vector<2x128xf32>
    %cst_15 = arith.constant 1.000000e+00 : f32
    %25 = vector.broadcast %cst_15 : f32 to vector<2x128xf32>
    %26 = arith.addf %25, %24 : vector<2x128xf32>
    %27 = arith.divf %25, %26 : vector<2x128xf32>
    %28 = vector.extract_strided_slice %15 {offsets = [0, 256], sizes = [2, 128], strides = [1, 1]} : vector<2x512xf32> to vector<2x128xf32>
    %29 = math.tanh %28 : vector<2x128xf32>
    %30 = vector.extract_strided_slice %15 {offsets = [0, 384], sizes = [2, 128], strides = [1, 1]} : vector<2x512xf32> to vector<2x128xf32>
    %31 = arith.negf %30 : vector<2x128xf32>
    %32 = math.exp %31 : vector<2x128xf32>
    %cst_16 = arith.constant 1.000000e+00 : f32
    %33 = vector.broadcast %cst_16 : f32 to vector<2x128xf32>
    %34 = arith.addf %33, %32 : vector<2x128xf32>
    %35 = arith.divf %33, %34 : vector<2x128xf32>
    %36 = arith.mulf %27, %8 : vector<2x128xf32>
    %37 = arith.mulf %21, %29 : vector<2x128xf32>
    %38 = arith.addf %36, %37 : vector<2x128xf32>
    %39 = math.tanh %38 : vector<2x128xf32>
    %40 = arith.mulf %35, %39 : vector<2x128xf32>
    %c40_17 = arith.constant 40 : index
    %c512_18 = arith.constant 512 : index
    %41 = vector.load %arg2[%c40_17, %c512_18] : memref<168x1024xf32, #tpu.memory_space<vmem>>, vector<128x512xf32>
    %cst_19 = arith.constant dense<0.000000e+00> : vector<2x512xf32>
    %42 = tpu.matmul %9, %41, %cst_19 {dimension_numbers = #tpu.dot_dimension_numbers<[1], [0], [0], [1], [0, 0, 1, 1], [], []>} : vector<2x128xf32>, vector<128x512xf32>, vector<2x512xf32> -> vector<2x512xf32>
    %43 = arith.addf %12, %42 : vector<2x512xf32>
    %44 = vector.extract_strided_slice %43 {offsets = [0, 0], sizes = [2, 128], strides = [1, 1]} : vector<2x512xf32> to vector<2x128xf32>
    %45 = arith.negf %44 : vector<2x128xf32>
    %46 = math.exp %45 : vector<2x128xf32>
    %cst_20 = arith.constant 1.000000e+00 : f32
    %47 = vector.broadcast %cst_20 : f32 to vector<2x128xf32>
    %48 = arith.addf %47, %46 : vector<2x128xf32>
    %49 = arith.divf %47, %48 : vector<2x128xf32>
    %50 = vector.extract_strided_slice %43 {offsets = [0, 128], sizes = [2, 128], strides = [1, 1]} : vector<2x512xf32> to vector<2x128xf32>
    %51 = arith.negf %50 : vector<2x128xf32>
    %52 = math.exp %51 : vector<2x128xf32>
    %cst_21 = arith.constant 1.000000e+00 : f32
    %53 = vector.broadcast %cst_21 : f32 to vector<2x128xf32>
    %54 = arith.addf %53, %52 : vector<2x128xf32>
    %55 = arith.divf %53, %54 : vector<2x128xf32>
    %56 = vector.extract_strided_slice %43 {offsets = [0, 256], sizes = [2, 128], strides = [1, 1]} : vector<2x512xf32> to vector<2x128xf32>
    %57 = math.tanh %56 : vector<2x128xf32>
    %58 = vector.extract_strided_slice %43 {offsets = [0, 384], sizes = [2, 128], strides = [1, 1]} : vector<2x512xf32> to vector<2x128xf32>
    %59 = arith.negf %58 : vector<2x128xf32>
    %60 = math.exp %59 : vector<2x128xf32>
    %cst_22 = arith.constant 1.000000e+00 : f32
    %61 = vector.broadcast %cst_22 : f32 to vector<2x128xf32>
    %62 = arith.addf %61, %60 : vector<2x128xf32>
    %63 = arith.divf %61, %62 : vector<2x128xf32>
    %64 = arith.mulf %55, %10 : vector<2x128xf32>
    %65 = arith.mulf %49, %57 : vector<2x128xf32>
    %66 = arith.addf %64, %65 : vector<2x128xf32>
    %67 = math.tanh %66 : vector<2x128xf32>
    %68 = arith.mulf %63, %67 : vector<2x128xf32>
    %c2 = arith.constant 2 : index
    %c0_23 = arith.constant 0 : index
    %69 = vector.load %arg5[%c2, %c0_23] : memref<16x1024xf32, #tpu.memory_space<vmem>>, vector<2x512xf32>
    %c12 = arith.constant 12 : index
    %c512_24 = arith.constant 512 : index
    %70 = vector.load %arg5[%c12, %c512_24] : memref<16x1024xf32, #tpu.memory_space<vmem>>, vector<2x512xf32>
    %c40_25 = arith.constant 40 : index
    %c0_26 = arith.constant 0 : index
    %71 = vector.load %arg2[%c40_25, %c0_26] : memref<168x1024xf32, #tpu.memory_space<vmem>>, vector<128x512xf32>
    %cst_27 = arith.constant dense<0.000000e+00> : vector<2x512xf32>
    %72 = tpu.matmul %40, %71, %cst_27 {dimension_numbers = #tpu.dot_dimension_numbers<[1], [0], [0], [1], [0, 0, 1, 1], [], []>} : vector<2x128xf32>, vector<128x512xf32>, vector<2x512xf32> -> vector<2x512xf32>
    %73 = arith.addf %69, %72 : vector<2x512xf32>
    %74 = vector.extract_strided_slice %73 {offsets = [0, 0], sizes = [2, 128], strides = [1, 1]} : vector<2x512xf32> to vector<2x128xf32>
    %75 = arith.negf %74 : vector<2x128xf32>
    %76 = math.exp %75 : vector<2x128xf32>
    %cst_28 = arith.constant 1.000000e+00 : f32
    %77 = vector.broadcast %cst_28 : f32 to vector<2x128xf32>
    %78 = arith.addf %77, %76 : vector<2x128xf32>
    %79 = arith.divf %77, %78 : vector<2x128xf32>
    %80 = vector.extract_strided_slice %73 {offsets = [0, 128], sizes = [2, 128], strides = [1, 1]} : vector<2x512xf32> to vector<2x128xf32>
    %81 = arith.negf %80 : vector<2x128xf32>
    %82 = math.exp %81 : vector<2x128xf32>
    %cst_29 = arith.constant 1.000000e+00 : f32
    %83 = vector.broadcast %cst_29 : f32 to vector<2x128xf32>
    %84 = arith.addf %83, %82 : vector<2x128xf32>
    %85 = arith.divf %83, %84 : vector<2x128xf32>
    %86 = vector.extract_strided_slice %73 {offsets = [0, 256], sizes = [2, 128], strides = [1, 1]} : vector<2x512xf32> to vector<2x128xf32>
    %87 = math.tanh %86 : vector<2x128xf32>
    %88 = vector.extract_strided_slice %73 {offsets = [0, 384], sizes = [2, 128], strides = [1, 1]} : vector<2x512xf32> to vector<2x128xf32>
    %89 = arith.negf %88 : vector<2x128xf32>
    %90 = math.exp %89 : vector<2x128xf32>
    %cst_30 = arith.constant 1.000000e+00 : f32
    %91 = vector.broadcast %cst_30 : f32 to vector<2x128xf32>
    %92 = arith.addf %91, %90 : vector<2x128xf32>
    %93 = arith.divf %91, %92 : vector<2x128xf32>
    %94 = arith.mulf %85, %38 : vector<2x128xf32>
    %95 = arith.mulf %79, %87 : vector<2x128xf32>
    %96 = arith.addf %94, %95 : vector<2x128xf32>
    %97 = math.tanh %96 : vector<2x128xf32>
    %98 = arith.mulf %93, %97 : vector<2x128xf32>
    %c40_31 = arith.constant 40 : index
    %c512_32 = arith.constant 512 : index
    %99 = vector.load %arg2[%c40_31, %c512_32] : memref<168x1024xf32, #tpu.memory_space<vmem>>, vector<128x512xf32>
    %cst_33 = arith.constant dense<0.000000e+00> : vector<2x512xf32>
    %100 = tpu.matmul %68, %99, %cst_33 {dimension_numbers = #tpu.dot_dimension_numbers<[1], [0], [0], [1], [0, 0, 1, 1], [], []>} : vector<2x128xf32>, vector<128x512xf32>, vector<2x512xf32> -> vector<2x512xf32>
    %101 = arith.addf %70, %100 : vector<2x512xf32>
    %102 = vector.extract_strided_slice %101 {offsets = [0, 0], sizes = [2, 128], strides = [1, 1]} : vector<2x512xf32> to vector<2x128xf32>
    %103 = arith.negf %102 : vector<2x128xf32>
    %104 = math.exp %103 : vector<2x128xf32>
    %cst_34 = arith.constant 1.000000e+00 : f32
    %105 = vector.broadcast %cst_34 : f32 to vector<2x128xf32>
    %106 = arith.addf %105, %104 : vector<2x128xf32>
    %107 = arith.divf %105, %106 : vector<2x128xf32>
    %108 = vector.extract_strided_slice %101 {offsets = [0, 128], sizes = [2, 128], strides = [1, 1]} : vector<2x512xf32> to vector<2x128xf32>
    %109 = arith.negf %108 : vector<2x128xf32>
    %110 = math.exp %109 : vector<2x128xf32>
    %cst_35 = arith.constant 1.000000e+00 : f32
    %111 = vector.broadcast %cst_35 : f32 to vector<2x128xf32>
    %112 = arith.addf %111, %110 : vector<2x128xf32>
    %113 = arith.divf %111, %112 : vector<2x128xf32>
    %114 = vector.extract_strided_slice %101 {offsets = [0, 256], sizes = [2, 128], strides = [1, 1]} : vector<2x512xf32> to vector<2x128xf32>
    %115 = math.tanh %114 : vector<2x128xf32>
    %116 = vector.extract_strided_slice %101 {offsets = [0, 384], sizes = [2, 128], strides = [1, 1]} : vector<2x512xf32> to vector<2x128xf32>
    %117 = arith.negf %116 : vector<2x128xf32>
    %118 = math.exp %117 : vector<2x128xf32>
    %cst_36 = arith.constant 1.000000e+00 : f32
    %119 = vector.broadcast %cst_36 : f32 to vector<2x128xf32>
    %120 = arith.addf %119, %118 : vector<2x128xf32>
    %121 = arith.divf %119, %120 : vector<2x128xf32>
    %122 = arith.mulf %113, %66 : vector<2x128xf32>
    %123 = arith.mulf %107, %115 : vector<2x128xf32>
    %124 = arith.addf %122, %123 : vector<2x128xf32>
    %125 = math.tanh %124 : vector<2x128xf32>
    %126 = arith.mulf %121, %125 : vector<2x128xf32>
    %c4 = arith.constant 4 : index
    %c0_37 = arith.constant 0 : index
    %127 = vector.load %arg5[%c4, %c0_37] : memref<16x1024xf32, #tpu.memory_space<vmem>>, vector<2x512xf32>
    %c10 = arith.constant 10 : index
    %c512_38 = arith.constant 512 : index
    %128 = vector.load %arg5[%c10, %c512_38] : memref<16x1024xf32, #tpu.memory_space<vmem>>, vector<2x512xf32>
    %c40_39 = arith.constant 40 : index
    %c0_40 = arith.constant 0 : index
    %129 = vector.load %arg2[%c40_39, %c0_40] : memref<168x1024xf32, #tpu.memory_space<vmem>>, vector<128x512xf32>
    %cst_41 = arith.constant dense<0.000000e+00> : vector<2x512xf32>
    %130 = tpu.matmul %98, %129, %cst_41 {dimension_numbers = #tpu.dot_dimension_numbers<[1], [0], [0], [1], [0, 0, 1, 1], [], []>} : vector<2x128xf32>, vector<128x512xf32>, vector<2x512xf32> -> vector<2x512xf32>
    %131 = arith.addf %127, %130 : vector<2x512xf32>
    %132 = vector.extract_strided_slice %131 {offsets = [0, 0], sizes = [2, 128], strides = [1, 1]} : vector<2x512xf32> to vector<2x128xf32>
    %133 = arith.negf %132 : vector<2x128xf32>
    %134 = math.exp %133 : vector<2x128xf32>
    %cst_42 = arith.constant 1.000000e+00 : f32
    %135 = vector.broadcast %cst_42 : f32 to vector<2x128xf32>
    %136 = arith.addf %135, %134 : vector<2x128xf32>
    %137 = arith.divf %135, %136 : vector<2x128xf32>
    %138 = vector.extract_strided_slice %131 {offsets = [0, 128], sizes = [2, 128], strides = [1, 1]} : vector<2x512xf32> to vector<2x128xf32>
    %139 = arith.negf %138 : vector<2x128xf32>
    %140 = math.exp %139 : vector<2x128xf32>
    %cst_43 = arith.constant 1.000000e+00 : f32
    %141 = vector.broadcast %cst_43 : f32 to vector<2x128xf32>
    %142 = arith.addf %141, %140 : vector<2x128xf32>
    %143 = arith.divf %141, %142 : vector<2x128xf32>
    %144 = vector.extract_strided_slice %131 {offsets = [0, 256], sizes = [2, 128], strides = [1, 1]} : vector<2x512xf32> to vector<2x128xf32>
    %145 = math.tanh %144 : vector<2x128xf32>
    %146 = vector.extract_strided_slice %131 {offsets = [0, 384], sizes = [2, 128], strides = [1, 1]} : vector<2x512xf32> to vector<2x128xf32>
    %147 = arith.negf %146 : vector<2x128xf32>
    %148 = math.exp %147 : vector<2x128xf32>
    %cst_44 = arith.constant 1.000000e+00 : f32
    %149 = vector.broadcast %cst_44 : f32 to vector<2x128xf32>
    %150 = arith.addf %149, %148 : vector<2x128xf32>
    %151 = arith.divf %149, %150 : vector<2x128xf32>
    %152 = arith.mulf %143, %96 : vector<2x128xf32>
    %153 = arith.mulf %137, %145 : vector<2x128xf32>
    %154 = arith.addf %152, %153 : vector<2x128xf32>
    %155 = math.tanh %154 : vector<2x128xf32>
    %156 = arith.mulf %151, %155 : vector<2x128xf32>
    %c40_45 = arith.constant 40 : index
    %c512_46 = arith.constant 512 : index
    %157 = vector.load %arg2[%c40_45, %c512_46] : memref<168x1024xf32, #tpu.memory_space<vmem>>, vector<128x512xf32>
    %cst_47 = arith.constant dense<0.000000e+00> : vector<2x512xf32>
    %158 = tpu.matmul %126, %157, %cst_47 {dimension_numbers = #tpu.dot_dimension_numbers<[1], [0], [0], [1], [0, 0, 1, 1], [], []>} : vector<2x128xf32>, vector<128x512xf32>, vector<2x512xf32> -> vector<2x512xf32>
    %159 = arith.addf %128, %158 : vector<2x512xf32>
    %160 = vector.extract_strided_slice %159 {offsets = [0, 0], sizes = [2, 128], strides = [1, 1]} : vector<2x512xf32> to vector<2x128xf32>
    %161 = arith.negf %160 : vector<2x128xf32>
    %162 = math.exp %161 : vector<2x128xf32>
    %cst_48 = arith.constant 1.000000e+00 : f32
    %163 = vector.broadcast %cst_48 : f32 to vector<2x128xf32>
    %164 = arith.addf %163, %162 : vector<2x128xf32>
    %165 = arith.divf %163, %164 : vector<2x128xf32>
    %166 = vector.extract_strided_slice %159 {offsets = [0, 128], sizes = [2, 128], strides = [1, 1]} : vector<2x512xf32> to vector<2x128xf32>
    %167 = arith.negf %166 : vector<2x128xf32>
    %168 = math.exp %167 : vector<2x128xf32>
    %cst_49 = arith.constant 1.000000e+00 : f32
    %169 = vector.broadcast %cst_49 : f32 to vector<2x128xf32>
    %170 = arith.addf %169, %168 : vector<2x128xf32>
    %171 = arith.divf %169, %170 : vector<2x128xf32>
    %172 = vector.extract_strided_slice %159 {offsets = [0, 256], sizes = [2, 128], strides = [1, 1]} : vector<2x512xf32> to vector<2x128xf32>
    %173 = math.tanh %172 : vector<2x128xf32>
    %174 = vector.extract_strided_slice %159 {offsets = [0, 384], sizes = [2, 128], strides = [1, 1]} : vector<2x512xf32> to vector<2x128xf32>
    %175 = arith.negf %174 : vector<2x128xf32>
    %176 = math.exp %175 : vector<2x128xf32>
    %cst_50 = arith.constant 1.000000e+00 : f32
    %177 = vector.broadcast %cst_50 : f32 to vector<2x128xf32>
    %178 = arith.addf %177, %176 : vector<2x128xf32>
    %179 = arith.divf %177, %178 : vector<2x128xf32>
    %180 = arith.mulf %171, %124 : vector<2x128xf32>
    %181 = arith.mulf %165, %173 : vector<2x128xf32>
    %182 = arith.addf %180, %181 : vector<2x128xf32>
    %183 = math.tanh %182 : vector<2x128xf32>
    %184 = arith.mulf %179, %183 : vector<2x128xf32>
    %c6 = arith.constant 6 : index
    %c0_51 = arith.constant 0 : index
    %185 = vector.load %arg5[%c6, %c0_51] : memref<16x1024xf32, #tpu.memory_space<vmem>>, vector<2x512xf32>
    %c8 = arith.constant 8 : index
    %c512_52 = arith.constant 512 : index
    %186 = vector.load %arg5[%c8, %c512_52] : memref<16x1024xf32, #tpu.memory_space<vmem>>, vector<2x512xf32>
    %c40_53 = arith.constant 40 : index
    %c0_54 = arith.constant 0 : index
    %187 = vector.load %arg2[%c40_53, %c0_54] : memref<168x1024xf32, #tpu.memory_space<vmem>>, vector<128x512xf32>
    %cst_55 = arith.constant dense<0.000000e+00> : vector<2x512xf32>
    %188 = tpu.matmul %156, %187, %cst_55 {dimension_numbers = #tpu.dot_dimension_numbers<[1], [0], [0], [1], [0, 0, 1, 1], [], []>} : vector<2x128xf32>, vector<128x512xf32>, vector<2x512xf32> -> vector<2x512xf32>
    %189 = arith.addf %185, %188 : vector<2x512xf32>
    %190 = vector.extract_strided_slice %189 {offsets = [0, 0], sizes = [2, 128], strides = [1, 1]} : vector<2x512xf32> to vector<2x128xf32>
    %191 = arith.negf %190 : vector<2x128xf32>
    %192 = math.exp %191 : vector<2x128xf32>
    %cst_56 = arith.constant 1.000000e+00 : f32
    %193 = vector.broadcast %cst_56 : f32 to vector<2x128xf32>
    %194 = arith.addf %193, %192 : vector<2x128xf32>
    %195 = arith.divf %193, %194 : vector<2x128xf32>
    %196 = vector.extract_strided_slice %189 {offsets = [0, 128], sizes = [2, 128], strides = [1, 1]} : vector<2x512xf32> to vector<2x128xf32>
    %197 = arith.negf %196 : vector<2x128xf32>
    %198 = math.exp %197 : vector<2x128xf32>
    %cst_57 = arith.constant 1.000000e+00 : f32
    %199 = vector.broadcast %cst_57 : f32 to vector<2x128xf32>
    %200 = arith.addf %199, %198 : vector<2x128xf32>
    %201 = arith.divf %199, %200 : vector<2x128xf32>
    %202 = vector.extract_strided_slice %189 {offsets = [0, 256], sizes = [2, 128], strides = [1, 1]} : vector<2x512xf32> to vector<2x128xf32>
    %203 = math.tanh %202 : vector<2x128xf32>
    %204 = vector.extract_strided_slice %189 {offsets = [0, 384], sizes = [2, 128], strides = [1, 1]} : vector<2x512xf32> to vector<2x128xf32>
    %205 = arith.negf %204 : vector<2x128xf32>
    %206 = math.exp %205 : vector<2x128xf32>
    %cst_58 = arith.constant 1.000000e+00 : f32
    %207 = vector.broadcast %cst_58 : f32 to vector<2x128xf32>
    %208 = arith.addf %207, %206 : vector<2x128xf32>
    %209 = arith.divf %207, %208 : vector<2x128xf32>
    %210 = arith.mulf %201, %154 : vector<2x128xf32>
    %211 = arith.mulf %195, %203 : vector<2x128xf32>
    %212 = arith.addf %210, %211 : vector<2x128xf32>
    %213 = math.tanh %212 : vector<2x128xf32>
    %214 = arith.mulf %209, %213 : vector<2x128xf32>
    %c40_59 = arith.constant 40 : index
    %c512_60 = arith.constant 512 : index
    %215 = vector.load %arg2[%c40_59, %c512_60] : memref<168x1024xf32, #tpu.memory_space<vmem>>, vector<128x512xf32>
    %cst_61 = arith.constant dense<0.000000e+00> : vector<2x512xf32>
    %216 = tpu.matmul %184, %215, %cst_61 {dimension_numbers = #tpu.dot_dimension_numbers<[1], [0], [0], [1], [0, 0, 1, 1], [], []>} : vector<2x128xf32>, vector<128x512xf32>, vector<2x512xf32> -> vector<2x512xf32>
    %217 = arith.addf %186, %216 : vector<2x512xf32>
    %218 = vector.extract_strided_slice %217 {offsets = [0, 0], sizes = [2, 128], strides = [1, 1]} : vector<2x512xf32> to vector<2x128xf32>
    %219 = arith.negf %218 : vector<2x128xf32>
    %220 = math.exp %219 : vector<2x128xf32>
    %cst_62 = arith.constant 1.000000e+00 : f32
    %221 = vector.broadcast %cst_62 : f32 to vector<2x128xf32>
    %222 = arith.addf %221, %220 : vector<2x128xf32>
    %223 = arith.divf %221, %222 : vector<2x128xf32>
    %224 = vector.extract_strided_slice %217 {offsets = [0, 128], sizes = [2, 128], strides = [1, 1]} : vector<2x512xf32> to vector<2x128xf32>
    %225 = arith.negf %224 : vector<2x128xf32>
    %226 = math.exp %225 : vector<2x128xf32>
    %cst_63 = arith.constant 1.000000e+00 : f32
    %227 = vector.broadcast %cst_63 : f32 to vector<2x128xf32>
    %228 = arith.addf %227, %226 : vector<2x128xf32>
    %229 = arith.divf %227, %228 : vector<2x128xf32>
    %230 = vector.extract_strided_slice %217 {offsets = [0, 256], sizes = [2, 128], strides = [1, 1]} : vector<2x512xf32> to vector<2x128xf32>
    %231 = math.tanh %230 : vector<2x128xf32>
    %232 = vector.extract_strided_slice %217 {offsets = [0, 384], sizes = [2, 128], strides = [1, 1]} : vector<2x512xf32> to vector<2x128xf32>
    %233 = arith.negf %232 : vector<2x128xf32>
    %234 = math.exp %233 : vector<2x128xf32>
    %cst_64 = arith.constant 1.000000e+00 : f32
    %235 = vector.broadcast %cst_64 : f32 to vector<2x128xf32>
    %236 = arith.addf %235, %234 : vector<2x128xf32>
    %237 = arith.divf %235, %236 : vector<2x128xf32>
    %238 = arith.mulf %229, %182 : vector<2x128xf32>
    %239 = arith.mulf %223, %231 : vector<2x128xf32>
    %240 = arith.addf %238, %239 : vector<2x128xf32>
    %241 = math.tanh %240 : vector<2x128xf32>
    %242 = arith.mulf %237, %241 : vector<2x128xf32>
    %c8_65 = arith.constant 8 : index
    %c0_66 = arith.constant 0 : index
    %243 = vector.load %arg5[%c8_65, %c0_66] : memref<16x1024xf32, #tpu.memory_space<vmem>>, vector<2x512xf32>
    %c6_67 = arith.constant 6 : index
    %c512_68 = arith.constant 512 : index
    %244 = vector.load %arg5[%c6_67, %c512_68] : memref<16x1024xf32, #tpu.memory_space<vmem>>, vector<2x512xf32>
    %c40_69 = arith.constant 40 : index
    %c0_70 = arith.constant 0 : index
    %245 = vector.load %arg2[%c40_69, %c0_70] : memref<168x1024xf32, #tpu.memory_space<vmem>>, vector<128x512xf32>
    %cst_71 = arith.constant dense<0.000000e+00> : vector<2x512xf32>
    %246 = tpu.matmul %214, %245, %cst_71 {dimension_numbers = #tpu.dot_dimension_numbers<[1], [0], [0], [1], [0, 0, 1, 1], [], []>} : vector<2x128xf32>, vector<128x512xf32>, vector<2x512xf32> -> vector<2x512xf32>
    %247 = arith.addf %243, %246 : vector<2x512xf32>
    %248 = vector.extract_strided_slice %247 {offsets = [0, 0], sizes = [2, 128], strides = [1, 1]} : vector<2x512xf32> to vector<2x128xf32>
    %249 = arith.negf %248 : vector<2x128xf32>
    %250 = math.exp %249 : vector<2x128xf32>
    %cst_72 = arith.constant 1.000000e+00 : f32
    %251 = vector.broadcast %cst_72 : f32 to vector<2x128xf32>
    %252 = arith.addf %251, %250 : vector<2x128xf32>
    %253 = arith.divf %251, %252 : vector<2x128xf32>
    %254 = vector.extract_strided_slice %247 {offsets = [0, 128], sizes = [2, 128], strides = [1, 1]} : vector<2x512xf32> to vector<2x128xf32>
    %255 = arith.negf %254 : vector<2x128xf32>
    %256 = math.exp %255 : vector<2x128xf32>
    %cst_73 = arith.constant 1.000000e+00 : f32
    %257 = vector.broadcast %cst_73 : f32 to vector<2x128xf32>
    %258 = arith.addf %257, %256 : vector<2x128xf32>
    %259 = arith.divf %257, %258 : vector<2x128xf32>
    %260 = vector.extract_strided_slice %247 {offsets = [0, 256], sizes = [2, 128], strides = [1, 1]} : vector<2x512xf32> to vector<2x128xf32>
    %261 = math.tanh %260 : vector<2x128xf32>
    %262 = vector.extract_strided_slice %247 {offsets = [0, 384], sizes = [2, 128], strides = [1, 1]} : vector<2x512xf32> to vector<2x128xf32>
    %263 = arith.negf %262 : vector<2x128xf32>
    %264 = math.exp %263 : vector<2x128xf32>
    %cst_74 = arith.constant 1.000000e+00 : f32
    %265 = vector.broadcast %cst_74 : f32 to vector<2x128xf32>
    %266 = arith.addf %265, %264 : vector<2x128xf32>
    %267 = arith.divf %265, %266 : vector<2x128xf32>
    %268 = arith.mulf %259, %212 : vector<2x128xf32>
    %269 = arith.mulf %253, %261 : vector<2x128xf32>
    %270 = arith.addf %268, %269 : vector<2x128xf32>
    %271 = math.tanh %270 : vector<2x128xf32>
    %272 = arith.mulf %267, %271 : vector<2x128xf32>
    %c40_75 = arith.constant 40 : index
    %c512_76 = arith.constant 512 : index
    %273 = vector.load %arg2[%c40_75, %c512_76] : memref<168x1024xf32, #tpu.memory_space<vmem>>, vector<128x512xf32>
    %cst_77 = arith.constant dense<0.000000e+00> : vector<2x512xf32>
    %274 = tpu.matmul %242, %273, %cst_77 {dimension_numbers = #tpu.dot_dimension_numbers<[1], [0], [0], [1], [0, 0, 1, 1], [], []>} : vector<2x128xf32>, vector<128x512xf32>, vector<2x512xf32> -> vector<2x512xf32>
    %275 = arith.addf %244, %274 : vector<2x512xf32>
    %276 = vector.extract_strided_slice %275 {offsets = [0, 0], sizes = [2, 128], strides = [1, 1]} : vector<2x512xf32> to vector<2x128xf32>
    %277 = arith.negf %276 : vector<2x128xf32>
    %278 = math.exp %277 : vector<2x128xf32>
    %cst_78 = arith.constant 1.000000e+00 : f32
    %279 = vector.broadcast %cst_78 : f32 to vector<2x128xf32>
    %280 = arith.addf %279, %278 : vector<2x128xf32>
    %281 = arith.divf %279, %280 : vector<2x128xf32>
    %282 = vector.extract_strided_slice %275 {offsets = [0, 128], sizes = [2, 128], strides = [1, 1]} : vector<2x512xf32> to vector<2x128xf32>
    %283 = arith.negf %282 : vector<2x128xf32>
    %284 = math.exp %283 : vector<2x128xf32>
    %cst_79 = arith.constant 1.000000e+00 : f32
    %285 = vector.broadcast %cst_79 : f32 to vector<2x128xf32>
    %286 = arith.addf %285, %284 : vector<2x128xf32>
    %287 = arith.divf %285, %286 : vector<2x128xf32>
    %288 = vector.extract_strided_slice %275 {offsets = [0, 256], sizes = [2, 128], strides = [1, 1]} : vector<2x512xf32> to vector<2x128xf32>
    %289 = math.tanh %288 : vector<2x128xf32>
    %290 = vector.extract_strided_slice %275 {offsets = [0, 384], sizes = [2, 128], strides = [1, 1]} : vector<2x512xf32> to vector<2x128xf32>
    %291 = arith.negf %290 : vector<2x128xf32>
    %292 = math.exp %291 : vector<2x128xf32>
    %cst_80 = arith.constant 1.000000e+00 : f32
    %293 = vector.broadcast %cst_80 : f32 to vector<2x128xf32>
    %294 = arith.addf %293, %292 : vector<2x128xf32>
    %295 = arith.divf %293, %294 : vector<2x128xf32>
    %296 = arith.mulf %287, %240 : vector<2x128xf32>
    %297 = arith.mulf %281, %289 : vector<2x128xf32>
    %298 = arith.addf %296, %297 : vector<2x128xf32>
    %299 = math.tanh %298 : vector<2x128xf32>
    %300 = arith.mulf %295, %299 : vector<2x128xf32>
    %c10_81 = arith.constant 10 : index
    %c0_82 = arith.constant 0 : index
    %301 = vector.load %arg5[%c10_81, %c0_82] : memref<16x1024xf32, #tpu.memory_space<vmem>>, vector<2x512xf32>
    %c4_83 = arith.constant 4 : index
    %c512_84 = arith.constant 512 : index
    %302 = vector.load %arg5[%c4_83, %c512_84] : memref<16x1024xf32, #tpu.memory_space<vmem>>, vector<2x512xf32>
    %c40_85 = arith.constant 40 : index
    %c0_86 = arith.constant 0 : index
    %303 = vector.load %arg2[%c40_85, %c0_86] : memref<168x1024xf32, #tpu.memory_space<vmem>>, vector<128x512xf32>
    %cst_87 = arith.constant dense<0.000000e+00> : vector<2x512xf32>
    %304 = tpu.matmul %272, %303, %cst_87 {dimension_numbers = #tpu.dot_dimension_numbers<[1], [0], [0], [1], [0, 0, 1, 1], [], []>} : vector<2x128xf32>, vector<128x512xf32>, vector<2x512xf32> -> vector<2x512xf32>
    %305 = arith.addf %301, %304 : vector<2x512xf32>
    %306 = vector.extract_strided_slice %305 {offsets = [0, 0], sizes = [2, 128], strides = [1, 1]} : vector<2x512xf32> to vector<2x128xf32>
    %307 = arith.negf %306 : vector<2x128xf32>
    %308 = math.exp %307 : vector<2x128xf32>
    %cst_88 = arith.constant 1.000000e+00 : f32
    %309 = vector.broadcast %cst_88 : f32 to vector<2x128xf32>
    %310 = arith.addf %309, %308 : vector<2x128xf32>
    %311 = arith.divf %309, %310 : vector<2x128xf32>
    %312 = vector.extract_strided_slice %305 {offsets = [0, 128], sizes = [2, 128], strides = [1, 1]} : vector<2x512xf32> to vector<2x128xf32>
    %313 = arith.negf %312 : vector<2x128xf32>
    %314 = math.exp %313 : vector<2x128xf32>
    %cst_89 = arith.constant 1.000000e+00 : f32
    %315 = vector.broadcast %cst_89 : f32 to vector<2x128xf32>
    %316 = arith.addf %315, %314 : vector<2x128xf32>
    %317 = arith.divf %315, %316 : vector<2x128xf32>
    %318 = vector.extract_strided_slice %305 {offsets = [0, 256], sizes = [2, 128], strides = [1, 1]} : vector<2x512xf32> to vector<2x128xf32>
    %319 = math.tanh %318 : vector<2x128xf32>
    %320 = vector.extract_strided_slice %305 {offsets = [0, 384], sizes = [2, 128], strides = [1, 1]} : vector<2x512xf32> to vector<2x128xf32>
    %321 = arith.negf %320 : vector<2x128xf32>
    %322 = math.exp %321 : vector<2x128xf32>
    %cst_90 = arith.constant 1.000000e+00 : f32
    %323 = vector.broadcast %cst_90 : f32 to vector<2x128xf32>
    %324 = arith.addf %323, %322 : vector<2x128xf32>
    %325 = arith.divf %323, %324 : vector<2x128xf32>
    %326 = arith.mulf %317, %270 : vector<2x128xf32>
    %327 = arith.mulf %311, %319 : vector<2x128xf32>
    %328 = arith.addf %326, %327 : vector<2x128xf32>
    %329 = math.tanh %328 : vector<2x128xf32>
    %330 = arith.mulf %325, %329 : vector<2x128xf32>
    %c40_91 = arith.constant 40 : index
    %c512_92 = arith.constant 512 : index
    %331 = vector.load %arg2[%c40_91, %c512_92] : memref<168x1024xf32, #tpu.memory_space<vmem>>, vector<128x512xf32>
    %cst_93 = arith.constant dense<0.000000e+00> : vector<2x512xf32>
    %332 = tpu.matmul %300, %331, %cst_93 {dimension_numbers = #tpu.dot_dimension_numbers<[1], [0], [0], [1], [0, 0, 1, 1], [], []>} : vector<2x128xf32>, vector<128x512xf32>, vector<2x512xf32> -> vector<2x512xf32>
    %333 = arith.addf %302, %332 : vector<2x512xf32>
    %334 = vector.extract_strided_slice %333 {offsets = [0, 0], sizes = [2, 128], strides = [1, 1]} : vector<2x512xf32> to vector<2x128xf32>
    %335 = arith.negf %334 : vector<2x128xf32>
    %336 = math.exp %335 : vector<2x128xf32>
    %cst_94 = arith.constant 1.000000e+00 : f32
    %337 = vector.broadcast %cst_94 : f32 to vector<2x128xf32>
    %338 = arith.addf %337, %336 : vector<2x128xf32>
    %339 = arith.divf %337, %338 : vector<2x128xf32>
    %340 = vector.extract_strided_slice %333 {offsets = [0, 128], sizes = [2, 128], strides = [1, 1]} : vector<2x512xf32> to vector<2x128xf32>
    %341 = arith.negf %340 : vector<2x128xf32>
    %342 = math.exp %341 : vector<2x128xf32>
    %cst_95 = arith.constant 1.000000e+00 : f32
    %343 = vector.broadcast %cst_95 : f32 to vector<2x128xf32>
    %344 = arith.addf %343, %342 : vector<2x128xf32>
    %345 = arith.divf %343, %344 : vector<2x128xf32>
    %346 = vector.extract_strided_slice %333 {offsets = [0, 256], sizes = [2, 128], strides = [1, 1]} : vector<2x512xf32> to vector<2x128xf32>
    %347 = math.tanh %346 : vector<2x128xf32>
    %348 = vector.extract_strided_slice %333 {offsets = [0, 384], sizes = [2, 128], strides = [1, 1]} : vector<2x512xf32> to vector<2x128xf32>
    %349 = arith.negf %348 : vector<2x128xf32>
    %350 = math.exp %349 : vector<2x128xf32>
    %cst_96 = arith.constant 1.000000e+00 : f32
    %351 = vector.broadcast %cst_96 : f32 to vector<2x128xf32>
    %352 = arith.addf %351, %350 : vector<2x128xf32>
    %353 = arith.divf %351, %352 : vector<2x128xf32>
    %354 = arith.mulf %345, %298 : vector<2x128xf32>
    %355 = arith.mulf %339, %347 : vector<2x128xf32>
    %356 = arith.addf %354, %355 : vector<2x128xf32>
    %357 = math.tanh %356 : vector<2x128xf32>
    %358 = arith.mulf %353, %357 : vector<2x128xf32>
    %c12_97 = arith.constant 12 : index
    %c0_98 = arith.constant 0 : index
    %359 = vector.load %arg5[%c12_97, %c0_98] : memref<16x1024xf32, #tpu.memory_space<vmem>>, vector<2x512xf32>
    %c2_99 = arith.constant 2 : index
    %c512_100 = arith.constant 512 : index
    %360 = vector.load %arg5[%c2_99, %c512_100] : memref<16x1024xf32, #tpu.memory_space<vmem>>, vector<2x512xf32>
    %c40_101 = arith.constant 40 : index
    %c0_102 = arith.constant 0 : index
    %361 = vector.load %arg2[%c40_101, %c0_102] : memref<168x1024xf32, #tpu.memory_space<vmem>>, vector<128x512xf32>
    %cst_103 = arith.constant dense<0.000000e+00> : vector<2x512xf32>
    %362 = tpu.matmul %330, %361, %cst_103 {dimension_numbers = #tpu.dot_dimension_numbers<[1], [0], [0], [1], [0, 0, 1, 1], [], []>} : vector<2x128xf32>, vector<128x512xf32>, vector<2x512xf32> -> vector<2x512xf32>
    %363 = arith.addf %359, %362 : vector<2x512xf32>
    %364 = vector.extract_strided_slice %363 {offsets = [0, 0], sizes = [2, 128], strides = [1, 1]} : vector<2x512xf32> to vector<2x128xf32>
    %365 = arith.negf %364 : vector<2x128xf32>
    %366 = math.exp %365 : vector<2x128xf32>
    %cst_104 = arith.constant 1.000000e+00 : f32
    %367 = vector.broadcast %cst_104 : f32 to vector<2x128xf32>
    %368 = arith.addf %367, %366 : vector<2x128xf32>
    %369 = arith.divf %367, %368 : vector<2x128xf32>
    %370 = vector.extract_strided_slice %363 {offsets = [0, 128], sizes = [2, 128], strides = [1, 1]} : vector<2x512xf32> to vector<2x128xf32>
    %371 = arith.negf %370 : vector<2x128xf32>
    %372 = math.exp %371 : vector<2x128xf32>
    %cst_105 = arith.constant 1.000000e+00 : f32
    %373 = vector.broadcast %cst_105 : f32 to vector<2x128xf32>
    %374 = arith.addf %373, %372 : vector<2x128xf32>
    %375 = arith.divf %373, %374 : vector<2x128xf32>
    %376 = vector.extract_strided_slice %363 {offsets = [0, 256], sizes = [2, 128], strides = [1, 1]} : vector<2x512xf32> to vector<2x128xf32>
    %377 = math.tanh %376 : vector<2x128xf32>
    %378 = vector.extract_strided_slice %363 {offsets = [0, 384], sizes = [2, 128], strides = [1, 1]} : vector<2x512xf32> to vector<2x128xf32>
    %379 = arith.negf %378 : vector<2x128xf32>
    %380 = math.exp %379 : vector<2x128xf32>
    %cst_106 = arith.constant 1.000000e+00 : f32
    %381 = vector.broadcast %cst_106 : f32 to vector<2x128xf32>
    %382 = arith.addf %381, %380 : vector<2x128xf32>
    %383 = arith.divf %381, %382 : vector<2x128xf32>
    %384 = arith.mulf %375, %328 : vector<2x128xf32>
    %385 = arith.mulf %369, %377 : vector<2x128xf32>
    %386 = arith.addf %384, %385 : vector<2x128xf32>
    %387 = math.tanh %386 : vector<2x128xf32>
    %388 = arith.mulf %383, %387 : vector<2x128xf32>
    %c40_107 = arith.constant 40 : index
    %c512_108 = arith.constant 512 : index
    %389 = vector.load %arg2[%c40_107, %c512_108] : memref<168x1024xf32, #tpu.memory_space<vmem>>, vector<128x512xf32>
    %cst_109 = arith.constant dense<0.000000e+00> : vector<2x512xf32>
    %390 = tpu.matmul %358, %389, %cst_109 {dimension_numbers = #tpu.dot_dimension_numbers<[1], [0], [0], [1], [0, 0, 1, 1], [], []>} : vector<2x128xf32>, vector<128x512xf32>, vector<2x512xf32> -> vector<2x512xf32>
    %391 = arith.addf %360, %390 : vector<2x512xf32>
    %392 = vector.extract_strided_slice %391 {offsets = [0, 0], sizes = [2, 128], strides = [1, 1]} : vector<2x512xf32> to vector<2x128xf32>
    %393 = arith.negf %392 : vector<2x128xf32>
    %394 = math.exp %393 : vector<2x128xf32>
    %cst_110 = arith.constant 1.000000e+00 : f32
    %395 = vector.broadcast %cst_110 : f32 to vector<2x128xf32>
    %396 = arith.addf %395, %394 : vector<2x128xf32>
    %397 = arith.divf %395, %396 : vector<2x128xf32>
    %398 = vector.extract_strided_slice %391 {offsets = [0, 128], sizes = [2, 128], strides = [1, 1]} : vector<2x512xf32> to vector<2x128xf32>
    %399 = arith.negf %398 : vector<2x128xf32>
    %400 = math.exp %399 : vector<2x128xf32>
    %cst_111 = arith.constant 1.000000e+00 : f32
    %401 = vector.broadcast %cst_111 : f32 to vector<2x128xf32>
    %402 = arith.addf %401, %400 : vector<2x128xf32>
    %403 = arith.divf %401, %402 : vector<2x128xf32>
    %404 = vector.extract_strided_slice %391 {offsets = [0, 256], sizes = [2, 128], strides = [1, 1]} : vector<2x512xf32> to vector<2x128xf32>
    %405 = math.tanh %404 : vector<2x128xf32>
    %406 = vector.extract_strided_slice %391 {offsets = [0, 384], sizes = [2, 128], strides = [1, 1]} : vector<2x512xf32> to vector<2x128xf32>
    %407 = arith.negf %406 : vector<2x128xf32>
    %408 = math.exp %407 : vector<2x128xf32>
    %cst_112 = arith.constant 1.000000e+00 : f32
    %409 = vector.broadcast %cst_112 : f32 to vector<2x128xf32>
    %410 = arith.addf %409, %408 : vector<2x128xf32>
    %411 = arith.divf %409, %410 : vector<2x128xf32>
    %412 = arith.mulf %403, %356 : vector<2x128xf32>
    %413 = arith.mulf %397, %405 : vector<2x128xf32>
    %414 = arith.addf %412, %413 : vector<2x128xf32>
    %415 = math.tanh %414 : vector<2x128xf32>
    %416 = arith.mulf %411, %415 : vector<2x128xf32>
    %c14_113 = arith.constant 14 : index
    %c0_114 = arith.constant 0 : index
    %417 = vector.load %arg5[%c14_113, %c0_114] : memref<16x1024xf32, #tpu.memory_space<vmem>>, vector<2x512xf32>
    %c0_115 = arith.constant 0 : index
    %c512_116 = arith.constant 512 : index
    %418 = vector.load %arg5[%c0_115, %c512_116] : memref<16x1024xf32, #tpu.memory_space<vmem>>, vector<2x512xf32>
    %c40_117 = arith.constant 40 : index
    %c0_118 = arith.constant 0 : index
    %419 = vector.load %arg2[%c40_117, %c0_118] : memref<168x1024xf32, #tpu.memory_space<vmem>>, vector<128x512xf32>
    %cst_119 = arith.constant dense<0.000000e+00> : vector<2x512xf32>
    %420 = tpu.matmul %388, %419, %cst_119 {dimension_numbers = #tpu.dot_dimension_numbers<[1], [0], [0], [1], [0, 0, 1, 1], [], []>} : vector<2x128xf32>, vector<128x512xf32>, vector<2x512xf32> -> vector<2x512xf32>
    %421 = arith.addf %417, %420 : vector<2x512xf32>
    %422 = vector.extract_strided_slice %421 {offsets = [0, 0], sizes = [2, 128], strides = [1, 1]} : vector<2x512xf32> to vector<2x128xf32>
    %423 = arith.negf %422 : vector<2x128xf32>
    %424 = math.exp %423 : vector<2x128xf32>
    %cst_120 = arith.constant 1.000000e+00 : f32
    %425 = vector.broadcast %cst_120 : f32 to vector<2x128xf32>
    %426 = arith.addf %425, %424 : vector<2x128xf32>
    %427 = arith.divf %425, %426 : vector<2x128xf32>
    %428 = vector.extract_strided_slice %421 {offsets = [0, 128], sizes = [2, 128], strides = [1, 1]} : vector<2x512xf32> to vector<2x128xf32>
    %429 = arith.negf %428 : vector<2x128xf32>
    %430 = math.exp %429 : vector<2x128xf32>
    %cst_121 = arith.constant 1.000000e+00 : f32
    %431 = vector.broadcast %cst_121 : f32 to vector<2x128xf32>
    %432 = arith.addf %431, %430 : vector<2x128xf32>
    %433 = arith.divf %431, %432 : vector<2x128xf32>
    %434 = vector.extract_strided_slice %421 {offsets = [0, 256], sizes = [2, 128], strides = [1, 1]} : vector<2x512xf32> to vector<2x128xf32>
    %435 = math.tanh %434 : vector<2x128xf32>
    %436 = vector.extract_strided_slice %421 {offsets = [0, 384], sizes = [2, 128], strides = [1, 1]} : vector<2x512xf32> to vector<2x128xf32>
    %437 = arith.negf %436 : vector<2x128xf32>
    %438 = math.exp %437 : vector<2x128xf32>
    %cst_122 = arith.constant 1.000000e+00 : f32
    %439 = vector.broadcast %cst_122 : f32 to vector<2x128xf32>
    %440 = arith.addf %439, %438 : vector<2x128xf32>
    %441 = arith.divf %439, %440 : vector<2x128xf32>
    %442 = arith.mulf %433, %386 : vector<2x128xf32>
    %443 = arith.mulf %427, %435 : vector<2x128xf32>
    %444 = arith.addf %442, %443 : vector<2x128xf32>
    %445 = math.tanh %444 : vector<2x128xf32>
    %446 = arith.mulf %441, %445 : vector<2x128xf32>
    %c40_123 = arith.constant 40 : index
    %c512_124 = arith.constant 512 : index
    %447 = vector.load %arg2[%c40_123, %c512_124] : memref<168x1024xf32, #tpu.memory_space<vmem>>, vector<128x512xf32>
    %cst_125 = arith.constant dense<0.000000e+00> : vector<2x512xf32>
    %448 = tpu.matmul %416, %447, %cst_125 {dimension_numbers = #tpu.dot_dimension_numbers<[1], [0], [0], [1], [0, 0, 1, 1], [], []>} : vector<2x128xf32>, vector<128x512xf32>, vector<2x512xf32> -> vector<2x512xf32>
    %449 = arith.addf %418, %448 : vector<2x512xf32>
    %450 = vector.extract_strided_slice %449 {offsets = [0, 0], sizes = [2, 128], strides = [1, 1]} : vector<2x512xf32> to vector<2x128xf32>
    %451 = arith.negf %450 : vector<2x128xf32>
    %452 = math.exp %451 : vector<2x128xf32>
    %cst_126 = arith.constant 1.000000e+00 : f32
    %453 = vector.broadcast %cst_126 : f32 to vector<2x128xf32>
    %454 = arith.addf %453, %452 : vector<2x128xf32>
    %455 = arith.divf %453, %454 : vector<2x128xf32>
    %456 = vector.extract_strided_slice %449 {offsets = [0, 128], sizes = [2, 128], strides = [1, 1]} : vector<2x512xf32> to vector<2x128xf32>
    %457 = arith.negf %456 : vector<2x128xf32>
    %458 = math.exp %457 : vector<2x128xf32>
    %cst_127 = arith.constant 1.000000e+00 : f32
    %459 = vector.broadcast %cst_127 : f32 to vector<2x128xf32>
    %460 = arith.addf %459, %458 : vector<2x128xf32>
    %461 = arith.divf %459, %460 : vector<2x128xf32>
    %462 = vector.extract_strided_slice %449 {offsets = [0, 256], sizes = [2, 128], strides = [1, 1]} : vector<2x512xf32> to vector<2x128xf32>
    %463 = math.tanh %462 : vector<2x128xf32>
    %464 = vector.extract_strided_slice %449 {offsets = [0, 384], sizes = [2, 128], strides = [1, 1]} : vector<2x512xf32> to vector<2x128xf32>
    %465 = arith.negf %464 : vector<2x128xf32>
    %466 = math.exp %465 : vector<2x128xf32>
    %cst_128 = arith.constant 1.000000e+00 : f32
    %467 = vector.broadcast %cst_128 : f32 to vector<2x128xf32>
    %468 = arith.addf %467, %466 : vector<2x128xf32>
    %469 = arith.divf %467, %468 : vector<2x128xf32>
    %470 = arith.mulf %461, %414 : vector<2x128xf32>
    %471 = arith.mulf %455, %463 : vector<2x128xf32>
    %472 = arith.addf %470, %471 : vector<2x128xf32>
    %473 = math.tanh %472 : vector<2x128xf32>
    %474 = arith.mulf %469, %473 : vector<2x128xf32>
    %c0_129 = arith.constant 0 : index
    %c0_130 = arith.constant 0 : index
    %475 = vector.load %arg3[%c0_129, %c0_130] : memref<520x128xf32, #tpu.memory_space<vmem>>, vector<128x128xf32>
    %cst_131 = arith.constant dense<0.000000e+00> : vector<2x128xf32>
    %476 = tpu.matmul %446, %475, %cst_131 {dimension_numbers = #tpu.dot_dimension_numbers<[1], [0], [0], [1], [0, 0, 1, 1], [], []>} : vector<2x128xf32>, vector<128x128xf32>, vector<2x128xf32> -> vector<2x128xf32>
    %c128 = arith.constant 128 : index
    %c0_132 = arith.constant 0 : index
    %477 = vector.load %arg3[%c128, %c0_132] : memref<520x128xf32, #tpu.memory_space<vmem>>, vector<128x128xf32>
    %cst_133 = arith.constant dense<0.000000e+00> : vector<2x128xf32>
    %478 = tpu.matmul %474, %477, %cst_133 {dimension_numbers = #tpu.dot_dimension_numbers<[1], [0], [0], [1], [0, 0, 1, 1], [], []>} : vector<2x128xf32>, vector<128x128xf32>, vector<2x128xf32> -> vector<2x128xf32>
    %479 = arith.addf %476, %478 : vector<2x128xf32>
    %c512_134 = arith.constant 512 : index
    %c0_135 = arith.constant 0 : index
    %480 = vector.load %arg3[%c512_134, %c0_135] : memref<520x128xf32, #tpu.memory_space<vmem>>, vector<1x128xf32>
    %481 = vector.broadcast %480 : vector<1x128xf32> to vector<2x128xf32>
    %482 = arith.addf %479, %481 : vector<2x128xf32>
    %c0_136 = arith.constant 0 : index
    %c0_137 = arith.constant 0 : index
    %c0_138 = arith.constant 0 : index
    %483 = vector.load %arg1[%c0_136, %c0_137, %c0_138] : memref<2x16x128xf32, #tpu.memory_space<vmem>>, vector<2x16x128xf32>
    %484 = vector.shape_cast %483 : vector<2x16x128xf32> to vector<32x128xf32>
    %c256 = arith.constant 256 : index
    %c0_139 = arith.constant 0 : index
    %485 = vector.load %arg3[%c256, %c0_139] : memref<520x128xf32, #tpu.memory_space<vmem>>, vector<128x128xf32>
    %cst_140 = arith.constant dense<0.000000e+00> : vector<32x128xf32>
    %486 = tpu.matmul %484, %485, %cst_140 {dimension_numbers = #tpu.dot_dimension_numbers<[1], [0], [0], [1], [0, 0, 1, 1], [], []>} : vector<32x128xf32>, vector<128x128xf32>, vector<32x128xf32> -> vector<32x128xf32>
    %487 = vector.shape_cast %486 : vector<32x128xf32> to vector<2x16x128xf32>
    %c384 = arith.constant 384 : index
    %c0_141 = arith.constant 0 : index
    %488 = vector.load %arg3[%c384, %c0_141] : memref<520x128xf32, #tpu.memory_space<vmem>>, vector<128x128xf32>
    %cst_142 = arith.constant dense<0.000000e+00> : vector<2x128xf32>
    %489 = tpu.matmul %482, %488, %cst_142 {dimension_numbers = #tpu.dot_dimension_numbers<[1], [0], [0], [1], [0, 0, 1, 1], [], []>} : vector<2x128xf32>, vector<128x128xf32>, vector<2x128xf32> -> vector<2x128xf32>
    %490 = vector.shape_cast %489 : vector<2x128xf32> to vector<2x1x128xf32>
    %491 = vector.broadcast %490 : vector<2x1x128xf32> to vector<2x16x128xf32>
    %492 = arith.addf %487, %491 : vector<2x16x128xf32>
    %c513 = arith.constant 513 : index
    %c0_143 = arith.constant 0 : index
    %493 = vector.load %arg3[%c513, %c0_143] : memref<520x128xf32, #tpu.memory_space<vmem>>, vector<1x128xf32>
    %494 = vector.shape_cast %493 : vector<1x128xf32> to vector<1x1x128xf32>
    %495 = vector.broadcast %494 : vector<1x1x128xf32> to vector<2x16x128xf32>
    %496 = arith.addf %492, %495 : vector<2x16x128xf32>
    %cst_144 = arith.constant 0.000000e+00 : f32
    %497 = vector.broadcast %cst_144 : f32 to vector<2x16x128xf32>
    %498 = arith.maximumf %496, %497 : vector<2x16x128xf32>
    %c514 = arith.constant 514 : index
    %c0_145 = arith.constant 0 : index
    %499 = vector.load %arg3[%c514, %c0_145] : memref<520x128xf32, #tpu.memory_space<vmem>>, vector<1x128xf32>
    %500 = vector.shape_cast %499 : vector<1x128xf32> to vector<1x1x128xf32>
    %501 = vector.broadcast %500 : vector<1x1x128xf32> to vector<2x16x128xf32>
    %502 = arith.mulf %498, %501 : vector<2x16x128xf32>
    %cst_146 = arith.constant dense<0.000000e+00> : vector<2x16xf32>
    %503 = vector.multi_reduction <add>, %502, %cst_146 [2] : vector<2x16x128xf32> to vector<2x16xf32>
    %cst_147 = arith.constant dense<0xFF800000> : vector<2xf32>
    %504 = vector.multi_reduction <maximumf>, %503, %cst_147 [1] : vector<2x16xf32> to vector<2xf32>
    %505 = vector.shape_cast %504 : vector<2xf32> to vector<2x1xf32>
    %506 = vector.broadcast %505 : vector<2x1xf32> to vector<2x16xf32>
    %507 = arith.subf %503, %506 : vector<2x16xf32>
    %508 = math.exp %507 : vector<2x16xf32>
    %cst_148 = arith.constant dense<0.000000e+00> : vector<2xf32>
    %509 = vector.multi_reduction <add>, %508, %cst_148 [1] : vector<2x16xf32> to vector<2xf32>
    %510 = vector.shape_cast %509 : vector<2xf32> to vector<2x1xf32>
    %511 = tpu.reciprocal %510 {approx = true} : vector<2x1xf32> -> vector<2x1xf32>
    %512 = vector.broadcast %511 : vector<2x1xf32> to vector<2x16xf32>
    %513 = arith.mulf %508, %512 : vector<2x16xf32>
    %514 = vector.shape_cast %513 : vector<2x16xf32> to vector<2x16x1xf32>
    %515 = vector.broadcast %514 : vector<2x16x1xf32> to vector<2x16x128xf32>
    %516 = arith.mulf %515, %483 : vector<2x16x128xf32>
    %cst_149 = arith.constant dense<0.000000e+00> : vector<2x128xf32>
    %517 = vector.multi_reduction <add>, %516, %cst_149 [1] : vector<2x16x128xf32> to vector<2x128xf32>
    %518 = arith.addf %482, %517 : vector<2x128xf32>
    %c0_150 = arith.constant 0 : index
    %c0_151 = arith.constant 0 : index
    %519 = vector.load %arg4[%c0_150, %c0_151] : memref<2x128xf32, #tpu.memory_space<vmem>>, vector<2x128xf32>
    tpu.vector_store %arg4[%c0_150, %c0_151], %518 {strides = array<i32>} : memref<2x128xf32, #tpu.memory_space<vmem>>, vector<2x128xf32>,
    return
  }
}

</mosaic_0001>

<bundles_post_ra>
// kernel: tpu_custom_call.1
= control target key start
LH: loop header
LB: loop body
LE: loop exit
PB: predicated region body
PF: predicated region fallthrough
CT: control target
= control target key end

     0   :  { %9 = vsyncpa [#allocation4], 0  ;;  %s6796_s0 = inlined_call_operand.hbm [shape: f32[16,32], index: 0, kind: input, shape index: {}]   ;;  %s6797_s1 = inlined_call_operand.hbm [shape: f32[2,16,128], index: 1, kind: input, shape index: {}]   ;;  %s6798_s2 = inlined_call_operand.hbm [shape: f32[168,1024], index: 2, kind: input, shape index: {}]   ;;  %s6799_s3 = inlined_call_operand.hbm [shape: f32[520,128], index: 3, kind: input, shape index: {}]   ;;  %s6800_s4 = inlined_call_operand.hbm [shape: f32[2,128], index: 4, kind: output, shape index: {}]  }
   0x1   :  { %10 = vsyncpa [#allocation7], 0 }
   0x2   :  { %11 = vsyncpa [#allocation10], 0 }
   0x3   :  { %12 = vsyncpa [#allocation5], 0  ;;  %s30_s17 = sshll.u32 %s6797_s1, 4  ;;  %s4304_s18 = smov [#allocation6]   ;;  %s31_s17 = int_to_ptr.hbm [resolvable:$true] %s30_s17 }
   0x4   :  { %s32_s19 = sshll.u32 %s4304_s18, 4  ;;  %s17_s22 = sshll.u32 %s6796_s0, 4  ;;  %s33_s19 = int_to_ptr.vmem [resolvable:$true] %s32_s19  ;;  %s18_s22 = int_to_ptr.hbm [resolvable:$true] %s17_s22 }
   0x5   :  { %s4305_s23 = smov 128   ;;  %s4306_s24 = smov 8  }
   0x6   :  { %38 = dma.hbm_to_vmem [thread:$0]  %s31_s17, 512, %s33_s19, [#allocation7], %s4305_s23, %s4305_s23, %s4306_s24  }
   0x7   :  { %s4307_s25 = smov [#allocation3]   ;;  %s43_s29 = sshll.u32 %s6798_s2, 4  ;;  %s44_s29 = int_to_ptr.hbm [resolvable:$true] %s43_s29 }
   0x8   :  { %s19_s26 = sshll.u32 %s4307_s25, 4  ;;  %s4308_s1 = smov [#allocation8]   ;;  %s20_s26 = int_to_ptr.vmem [resolvable:$true] %s19_s26 }
   0x9   :  { %25 = dma.hbm_to_vmem [thread:$0]  %s18_s22, 256, %s20_s26, [#allocation4], %s4305_s23, %s4305_s23, %s4306_s24  }
   0xa   :  { %s45_s30 = sshll.u32 %s4308_s1, 4  ;;  %s56_s0 = sshll.u32 %s6799_s3, 4  ;;  %s46_s30 = int_to_ptr.vmem [resolvable:$true] %s45_s30  ;;  %s57_s0 = int_to_ptr.hbm [resolvable:$true] %s56_s0 }
   0xb   :  { %s4309_s7 = smov 1024   ;;  %s4310_s8 = smov 64  }
   0xc   :  { %51 = dma.hbm_to_vmem [thread:$0]  %s44_s29, 21504, %s46_s30, [#allocation7], %s4309_s7, %s4309_s7, %s4310_s8  }
   0xd   :  { %s4311_s9 = smov [#allocation9]  }
   0xe   :  { %s58_s10 = sshll.u32 %s4311_s9, 4  ;;  %s59_s10 = int_to_ptr.vmem [resolvable:$true] %s58_s10 }
   0xf   :  { %64 = dma.hbm_to_vmem [thread:$0]  %s57_s0, 8320, %s59_s10, [#allocation10], %s4305_s23, %s4305_s23, %s4306_s24  }
  0x10   :  { %4296 = dma.done.wait [#allocation4], 256  }
  0x11   :  { %4297 = vsyncadd [#allocation4], 4294967040 }
  0x12   :  { %4298 = dma.done.wait [#allocation7], 22016  }
  0x13   :  { %4299 = vsyncadd [#allocation7], 4294945280 }
  0x14   :  { %4300 = dma.done.wait [#allocation10], 8320  }
  0x15   :  { %4301 = vsyncadd [#allocation10], 4294958976  ;;  %v107_v0 = vld [vmem:[#allocation8 + $0xc0] sm:$0xff]  ;;  %v110_v1 = vld [vmem:[#allocation8 + $0xd8] sm:$0xff]  ;;  %vm136_vm0 = vcmask 261120   ;;  %s4314_s2 = smov [#allocation11]  }
  0x16   :  { %v113_v2 = vld [vmem:[#allocation8 + $0xf0] sm:$0xff]  ;;  %155 = vmatpush.msra.mxu0 %v107_v0  ;;  %3505 = vmatpush.msra.mxu1 %v107_v0  ;;  %v99_v3 = vld [vmem:[#allocation8 + $0x80] sm:$0xff]  ;;  %v102_v4 = vld [vmem:[#allocation8 + $0x98] sm:$0xff]  ;;  %s3427_s3 = sshll.u32 %s4314_s2, 4  ;;  %s3429_s13 = sshll.u32 %s6800_s4, 4  ;;  %s3428_s3 = int_to_ptr.vmem [resolvable:$true] %s3427_s3  ;;  %s3430_s13 = int_to_ptr.hbm [resolvable:$true] %s3429_s13 }
  0x17   :  { %v105_v5 = vld [vmem:[#allocation8 + $0xb0] sm:$0xff]  ;;  %224 = vmatpush.msra.mxu3 %v110_v1  ;;  %293 = vmatpush.msra.mxu2 %v113_v2  ;;  %v91_v6 = vld [vmem:[#allocation8 + $0x40] sm:$0xff]  ;;  %v94_v7 = vld [vmem:[#allocation8 + $0x58] sm:$0xff] }
  0x18   :  { %156 = vmatpush.msra.mxu0 %v99_v3  ;;  %3506 = vmatpush.msra.mxu1 %v99_v3  ;;  %v97_v8 = vld [vmem:[#allocation8 + $0x70] sm:$0xff]  ;;  %v83_v9 = vld [vmem:[#allocation8] sm:$0xff]  ;;  %v86_v10 = vld [vmem:[#allocation8 + $0x18] sm:$0xff] }
  0x19   :  { %225 = vmatpush.msra.mxu3 %v102_v4  ;;  %294 = vmatpush.msra.mxu2 %v105_v5  ;;  %v89_v11 = vld [vmem:[#allocation8 + $0x30] sm:$0xff]  ;;  %v108_v12 = vld [vmem:[#allocation8 + $0xc8] sm:$0xff]  ;;  %v114_v14 = vld [vmem:[#allocation8 + $0xf8] sm:$0xff] }
  0x1a   :  { %157 = vmatpush.msra.mxu0 %v91_v6  ;;  %3507 = vmatpush.msra.mxu1 %v91_v6  ;;  %v109_v13 = vld [vmem:[#allocation8 + $0xd0] sm:$0xff]  ;;  %v100_v16 = vld [vmem:[#allocation8 + $0x88] sm:$0xff]  ;;  %v106_v18 = vld [vmem:[#allocation8 + $0xb8] sm:$0xff] }
  0x1b   :  { %226 = vmatpush.msra.mxu3 %v94_v7  ;;  %295 = vmatpush.msra.mxu2 %v97_v8  ;;  %v4352_v15 = vld [vmem:[#allocation8 + $0x510] sm:$0xff]  ;;  %v92_v20 = vld [vmem:[#allocation8 + $0x48] sm:$0xff]  ;;  %v98_v22 = vld [vmem:[#allocation8 + $0x78] sm:$0xff] }
  0x1c   :  { %158 = vmatpush.msra.mxu0 %v83_v9  ;;  %3508 = vmatpush.msra.mxu1 %v83_v9  ;;  %v101_v17 = vld [vmem:[#allocation8 + $0x90] sm:$0xff]  ;;  %v4362_v25 = vld [vmem:[#allocation3 + $0x8] sm:$0xff]  ;;  %v84_v26 = vld [vmem:[#allocation8 + $0x8] sm:$0xff] }
  0x1d   :  { %227 = vmatpush.msra.mxu3 %v86_v10  ;;  %296 = vmatpush.msra.mxu2 %v89_v11  ;;  %v4354_v19 = vld [vmem:[#allocation8 + $0x4d0] sm:$0xff]  ;;  %v90_v29 = vld [vmem:[#allocation8 + $0x38] sm:$0xff]  ;;  %v111_v30 = vld [vmem:[#allocation8 + $0xe0] sm:$0xff] }
  0x1e   :  { %178 = vmatpush.msrb.mxu1 %v108_v12  ;;  %201 = vmatpush.msrb.mxu0 %v109_v13  ;;  %v93_v21 = vld [vmem:[#allocation8 + $0x50] sm:$0xff]  ;;  %v112_v31 = vld [vmem:[#allocation8 + $0xe8] sm:$0xff]  ;;  %v4371_v32 = vld [vmem:[#allocation8 + $0x518] sm:$0xff] }
  0x1f   :  { %316 = vmatpush.msrb.mxu3 %v114_v14  ;;  %455 = vmatpush.msrb.mxu2 %v4352_v15  ;;  %v4357_v23 = vld [vmem:[#allocation8 + $0x490] sm:$0xff]  ;;  %v103_v34 = vld [vmem:[#allocation8 + $0xa0] sm:$0xff]  ;;  %v104_v35 = vld [vmem:[#allocation8 + $0xa8] sm:$0xff] }
  0x20   :  { %179 = vmatpush.msrb.mxu1 %v100_v16  ;;  %202 = vmatpush.msrb.mxu0 %v101_v17  ;;  %v4360_v24 = vld [vmem:[#allocation3] sm:$0xff]  ;;  %v4378_v36 = vld [vmem:[#allocation8 + $0x4d8] sm:$0xff]  ;;  %v95_v38 = vld [vmem:[#allocation8 + $0x60] sm:$0xff] }
  0x21   :  { %317 = vmatpush.msrb.mxu3 %v106_v18  ;;  %456 = vmatpush.msrb.mxu2 %v4354_v19  ;;  %v85_v27 = vld [vmem:[#allocation8 + $0x10] sm:$0xff]  ;;  %v96_v39 = vld [vmem:[#allocation8 + $0x68] sm:$0xff]  ;;  %v4384_v40 = vld [vmem:[#allocation8 + $0x498] sm:$0xff] }
  0x22   :  { %180 = vmatpush.msrb.mxu1 %v92_v20  ;;  %203 = vmatpush.msrb.mxu0 %v93_v21  ;;  %v4365_v28 = vld [vmem:[#allocation8 + $0x450] sm:$0xff]  ;;  %v88_v42 = vld [vmem:[#allocation8 + $0x28] sm:$0xff]  ;;  %v87_v43 = vld [vmem:[#allocation8 + $0x20] sm:$0xff] }
  0x23   :  { %318 = vmatpush.msrb.mxu3 %v98_v22  ;;  %457 = vmatpush.msrb.mxu2 %v4357_v23  ;;  %v4376_v33 = vld [vmem:[#allocation8 + $0x410] sm:$0xff]  ;;  %v4391_v44 = vld [vmem:[#allocation8 + $0x458] sm:$0xff]  ;;  %v4396_v45 = vld [vmem:[#allocation8 + $0x500] sm:$0xff] }
  0x24   :  { %3441 = vmatmul.msk.f32.vlgmr.msra.gmra.mxu0 %vm136_vm0, %v4360_v24  ;;  %3442 = vmatmul.msk.f32.vlgmr.msra.gmra.mxu1 %vm136_vm0, %v4362_v25  ;;  %v4381_v37 = vld [vmem:[#allocation8 + $0x3d0] sm:$0xff]  ;;  %v4400_v46 = vld [vmem:[#allocation8 + $0x508] sm:$0xff]  ;;  %v4405_v48 = vld [vmem:[#allocation8 + $0x418] sm:$0xff] }
  0x25   :  { %181 = vmatpush.msrb.mxu1 %v84_v26  ;;  %204 = vmatpush.msrb.mxu0 %v85_v27  ;;  %v4387_v41 = vld [vmem:[#allocation8 + $0x390] sm:$0xff]  ;;  %v4410_v49 = vld [vmem:[#allocation8 + $0x4c0] sm:$0xff]  ;;  %v4412_v50 = vld [vmem:[#allocation8 + $0x4c8] sm:$0xff] }
  0x26   :  { %3447 = vmatmul.msk.f32.vlgmr.msra.gmra.mxu3 %vm136_vm0, %v4360_v24  ;;  %458 = vmatpush.msrb.mxu2 %v4365_v28  ;;  %v4402_v47 = vld [vmem:[#allocation8 + $0x350] sm:$0xff]  ;;  %v4418_v52 = vld [vmem:[#allocation8 + $0x3d8] sm:$0xff]  ;;  %v4423_v53 = vld [vmem:[#allocation8 + $0x480] sm:$0xff] }
  0x27   :  { %319 = vmatpush.msrb.mxu3 %v90_v29  ;;  %247 = vmatpush.msra.mxu0 %v111_v30  ;;  %v4416_v51 = vld [vmem:[#allocation8 + $0x310] sm:$0xff]  ;;  %v4425_v54 = vld [vmem:[#allocation8 + $0x488] sm:$0xff]  ;;  %v4431_v56 = vld [vmem:[#allocation8 + $0x398] sm:$0xff] }
  0x28   :  { %270 = vmatpush.msra.mxu1 %v112_v31  ;;  %459 = vmatpush.msrb.mxu2 %v4376_v33  ;;  %v4429_v55 = vld [vmem:[#allocation8 + $0x2d0] sm:$0xff]  ;;  %v4435_v57 = vld [vmem:[#allocation8 + $0x440] sm:$0xff]  ;;  %v4437_v58 = vld [vmem:[#allocation8 + $0x448] sm:$0xff] }
  0x29   :  { %475 = vmatpush.msra.mxu3 %v4371_v32  ;;  %248 = vmatpush.msra.mxu0 %v103_v34  ;;  %v4441_v59 = vld [vmem:[#allocation8 + $0x290] sm:$0xff]  ;;  %v4445_v60 = vld [vmem:[#allocation8 + $0x358] sm:$0xff]  ;;  %v4449_v61 = vld [vmem:[#allocation8 + $0x400] sm:$0xff] }
  0x2a   :  { %271 = vmatpush.msra.mxu1 %v104_v35  ;;  %460 = vmatpush.msrb.mxu2 %v4381_v37  ;;  %v4454_v62 = vld [vmem:[#allocation8 + $0x408] sm:$0xff]  ;;  %v4456_v63 = vld [vmem:[#allocation8 + $0x250] sm:$0xff]  ;;  %v4461_v0 = vld [vmem:[#allocation8 + $0x318] sm:$0xff] }
  0x2b   :  { %476 = vmatpush.msra.mxu3 %v4378_v36  ;;  %249 = vmatpush.msra.mxu0 %v95_v38  ;;  %v4463_v1 = vld [vmem:[#allocation8 + $0x3c0] sm:$0xff]  ;;  %v4468_v2 = vld [vmem:[#allocation8 + $0x3c8] sm:$0xff]  ;;  %v4472_v3 = vld [vmem:[#allocation8 + $0x210] sm:$0xff] }
  0x2c   :  { %272 = vmatpush.msra.mxu1 %v96_v39  ;;  %461 = vmatpush.msrb.mxu2 %v4387_v41  ;;  %v4474_v4 = vld [vmem:[#allocation8 + $0x2d8] sm:$0xff]  ;;  %v4479_v5 = vld [vmem:[#allocation8 + $0x380] sm:$0xff]  ;;  %v4481_v6 = vld [vmem:[#allocation8 + $0x388] sm:$0xff] }
  0x2d   :  { %477 = vmatpush.msra.mxu3 %v4384_v40  ;;  %3443 = vmatmul.msk.f32.vlgmr.msrb.gmra.mxu1 %vm136_vm0, %v4360_v24  ;;  %v4485_v7 = vld [vmem:[#allocation8 + $0x1d0] sm:$0xff]  ;;  %v4487_v8 = vld [vmem:[#allocation8 + $0x298] sm:$0xff]  ;;  %v4491_v9 = vld [vmem:[#allocation8 + $0x340] sm:$0xff] }
  0x2e   :  { %3445 = vmatmul.msk.f32.vlgmr.msrb.gmra.mxu0 %vm136_vm0, %v4360_v24  ;;  %273 = vmatpush.msra.mxu1 %v88_v42  ;;  %v4493_v10 = vld [vmem:[#allocation8 + $0x348] sm:$0xff]  ;;  %v4497_v11 = vld [vmem:[#allocation8 + $0x190] sm:$0xff]  ;;  %v4501_v12 = vld [vmem:[#allocation8 + $0x258] sm:$0xff] }
  0x2f   :  { %250 = vmatpush.msra.mxu0 %v87_v43  ;;  %478 = vmatpush.msra.mxu3 %v4391_v44  ;;  %7091 = vst [vmem:[#allocation16_spill] sm:$0xff] %v4497_v11  ;;  %v4505_v13 = vld [vmem:[#allocation8 + $0x300] sm:$0xff]  ;;  %v4510_v14 = vld [vmem:[#allocation8 + $0x308] sm:$0xff]  ;;  %v4512_v16 = vld [vmem:[#allocation8 + $0x150] sm:$0xff] }
  0x30   :  { %3448 = vmatmul.msk.f32.gmra.mxu3 %vm136_vm0, %v4362_v25  ;;  %435 = vmatpush.msrb.mxu1 %v4400_v46  ;;  %7092 = vst [vmem:[#allocation17_spill] sm:$0xff] %v4512_v16  ;;  %v4517_v17 = vld [vmem:[#allocation8 + $0x218] sm:$0xff]  ;;  %v4522_v18 = vld [vmem:[#allocation8 + $0x2c0] sm:$0xff]  ;;  %v4524_v20 = vld [vmem:[#allocation8 + $0x2c8] sm:$0xff] }
  0x31   :  { %415 = vmatpush.msrb.mxu0 %v4396_v45  ;;  %462 = vmatpush.msrb.mxu2 %v4402_v47  ;;  %v4528_v21 = vld [vmem:[#allocation8 + $0x1d8] sm:$0xff]  ;;  %v4530_v22 = vld [vmem:[#allocation8 + $0x530] sm:$0xff]  ;;  %v4534_v26 = vld [vmem:[#allocation8 + $0x280] sm:$0xff] }
  0x32   :  { %3453 = vmatmul.msk.f32.vlgmr.msra.gmra.mxu2 %vm136_vm0, %v4360_v24  ;;  %479 = vmatpush.msra.mxu3 %v4405_v48  ;;  %7093 = vst [vmem:[#allocation18_spill] sm:$0xff] %v4528_v21  ;;  %v4536_v27 = vld [vmem:[#allocation8 + $0x288] sm:$0xff]  ;;  %v4540_v29 = vld [vmem:[#allocation8 + $0x198] sm:$0xff]  ;;  %v4543_v30 = vld [vmem:[#allocation8 + $0x240] sm:$0xff] }
  0x33   :  { %416 = vmatpush.msrb.mxu0 %v4410_v49  ;;  %436 = vmatpush.msrb.mxu1 %v4412_v50  ;;  %7094 = vst [vmem:[#allocation19_spill] sm:$0xff] %v4530_v22  ;;  %v4545_v31 = vld [vmem:[#allocation8 + $0x248] sm:$0xff]  ;;  %v4550_v34 = vld [vmem:[#allocation8 + $0x158] sm:$0xff]  ;;  %v4555_v35 = vld [vmem:[#allocation8 + $0x200] sm:$0xff] }
  0x34   :  { %463 = vmatpush.msrb.mxu2 %v4416_v51  ;;  %480 = vmatpush.msra.mxu3 %v4418_v52  ;;  %7095 = vst [vmem:[#allocation20_spill] sm:$0xff] %v4540_v29  ;;  %v4557_v38 = vld [vmem:[#allocation8 + $0x208] sm:$0xff]  ;;  %v4561_v39 = vld [vmem:[#allocation8 + $0x4f0] sm:$0xff]  ;;  %v4566_v42 = vld [vmem:[#allocation8 + $0x538] sm:$0xff] }
  0x35   :  { %417 = vmatpush.msrb.mxu0 %v4423_v53  ;;  %437 = vmatpush.msrb.mxu1 %v4425_v54  ;;  %7096 = vst [vmem:[#allocation21_spill] sm:$0xff] %v4550_v34  ;;  %v4568_v43 = vld [vmem:[#allocation8 + $0x1c0] sm:$0xff] }
  0x36   :  { %464 = vmatpush.msrb.mxu2 %v4429_v55  ;;  %481 = vmatpush.msra.mxu3 %v4431_v56  ;;  %7097 = vst [vmem:[#allocation22_spill] sm:$0xff] %v4555_v35 }
  0x37   :  { %418 = vmatpush.msrb.mxu0 %v4435_v57  ;;  %438 = vmatpush.msrb.mxu1 %v4437_v58  ;;  %7098 = vst [vmem:[#allocation23_spill] sm:$0xff] %v4557_v38 }
  0x38   :  { %465 = vmatpush.msrb.mxu2 %v4441_v59  ;;  %3444 = vmatmul.msk.f32.gmra.mxu1 %vm136_vm0, %v4362_v25  ;;  %7099 = vst [vmem:[#allocation24_spill] sm:$0xff] %v4561_v39 }
  0x39   :  { %3446 = vmatmul.msk.f32.gmra.mxu0 %vm136_vm0, %v4362_v25  ;;  %482 = vmatpush.msra.mxu3 %v4445_v60  ;;  %7100 = vst [vmem:[#allocation25_spill] sm:$0xff] %v4566_v42 }
  0x3a   :  { %3455 = vmatmul.msk.f32.vlgmr.msrb.gmra.mxu3 %vm136_vm0, %v4360_v24  ;;  %419 = vmatpush.msrb.mxu0 %v4449_v61  ;;  %7101 = vst [vmem:[#allocation26_spill] sm:$0xff] %v4568_v43 }
  0x3b   :  { %439 = vmatpush.msrb.mxu1 %v4454_v62  ;;  %466 = vmatpush.msrb.mxu2 %v4456_v63 }
  0x3c   :  { %3454 = vmatmul.msk.f32.gmra.mxu2 %vm136_vm0, %v4362_v25  ;;  %483 = vmatpush.msra.mxu3 %v4461_v0 }
  0x3d   :  { %420 = vmatpush.msrb.mxu0 %v4463_v1  ;;  %440 = vmatpush.msrb.mxu1 %v4468_v2 }
  0x3e   :  { %467 = vmatpush.msrb.mxu2 %v4472_v3  ;;  %484 = vmatpush.msra.mxu3 %v4474_v4 }
  0x3f   :  { %421 = vmatpush.msrb.mxu0 %v4479_v5  ;;  %441 = vmatpush.msrb.mxu1 %v4481_v6 }
  0x40   :  { %468 = vmatpush.msrb.mxu2 %v4485_v7  ;;  %485 = vmatpush.msra.mxu3 %v4487_v8 }
  0x41   :  { %422 = vmatpush.msrb.mxu0 %v4491_v9  ;;  %442 = vmatpush.msrb.mxu1 %v4493_v10 }
  0x42   :  { %469 = vmatpush.msrb.mxu2 %v4497_v11  ;;  %3449 = vmatmul.msk.f32.vlgmr.msra.gmra.mxu0 %vm136_vm0, %v4360_v24  ;;  %v4579_v11 = vld [vmem:[#allocation8 + $0x180] sm:$0xff] }
  0x43   :  { %3451 = vmatmul.msk.f32.vlgmr.msra.gmra.mxu1 %vm136_vm0, %v4360_v24  ;;  %486 = vmatpush.msra.mxu3 %v4501_v12  ;;  %v6801_v24 = vmov 0.0   ;;  %7106 = vst [vmem:[#allocation30_spill] sm:$0xff] %v4579_v11 }
  0x44   :  { %3456 = vmatmul.msk.f32.gmra.mxu3 %vm136_vm0, %v4362_v25  ;;  %423 = vmatpush.msrb.mxu0 %v4505_v13 }
  0x45   :  { %443 = vmatpush.msrb.mxu1 %v4510_v14  ;;  %470 = vmatpush.msrb.mxu2 %v4512_v16  ;;  %v7104_v16 = vmov 0.0  }
  0x46   :  { %471 = vmatmul.f32.vlgmr.msrb.gmra.mxu2 %v6801_v24  ;;  %487 = vmatpush.msra.mxu3 %v4517_v17  ;;  %v4572_v24 = vld [vmem:[#allocation8 + $0x1c8] sm:$0xff] }
  0x47   :  { %424 = vmatpush.msrb.mxu0 %v4522_v18  ;;  %444 = vmatpush.msrb.mxu1 %v4524_v20  ;;  %7102 = vst [vmem:[#allocation27_spill] sm:$0xff] %v4572_v24 }
  0x48   :  { %488 = vmatpush.msra.mxu3 %v4528_v21  ;;  %666 = vmatpush.msra.mxu2 %v4530_v22  ;;  %v4574_v22 = vld [vmem:[#allocation8 + $0x4b0] sm:$0xff]  ;;  %v4641_v21 = vld [vmem:[#allocation8 + $0x468] sm:$0xff] }
  0x49   :  { %425 = vmatpush.msrb.mxu0 %v4534_v26  ;;  %445 = vmatpush.msrb.mxu1 %v4536_v27  ;;  %7103 = vst [vmem:[#allocation28_spill] sm:$0xff] %v4574_v22 }
  0x4a   :  { %489 = vmatpush.msra.mxu3 %v4540_v29  ;;  %3450 = vmatmul.msk.f32.gmra.mxu0 %vm136_vm0, %v4362_v25  ;;  %v4577_v29 = vld [vmem:[#allocation8 + $0x4f8] sm:$0xff]  ;;  %7126 = vst [vmem:[#allocation50_spill] sm:$0xff] %v4641_v21 }
  0x4b   :  { %426 = vmatpush.msrb.mxu0 %v4543_v30  ;;  %446 = vmatpush.msrb.mxu1 %v4545_v31  ;;  %7105 = vst [vmem:[#allocation29_spill] sm:$0xff] %v4577_v29 }
  0x4c   :  { %3452 = vmatmul.msk.f32.gmra.mxu1 %vm136_vm0, %v4362_v25  ;;  %490 = vmatpush.msra.mxu3 %v4550_v34  ;;  %v4584_v25 = vld [vmem:[#allocation8 + $0x188] sm:$0xff]  ;;  %v4586_v34 = vld [vmem:[#allocation8 + $0x470] sm:$0xff] }
  0x4d   :  { %427 = vmatpush.msrb.mxu0 %v4555_v35  ;;  %447 = vmatpush.msrb.mxu1 %v4557_v38  ;;  %7107 = vst [vmem:[#allocation31_spill] sm:$0xff] %v4584_v25  ;;  %v4589_v38 = vld [vmem:[#allocation8 + $0x4b8] sm:$0xff]  ;;  %v4591_v35 = vld [vmem:[#allocation8 + $0x140] sm:$0xff] }
  0x4e   :  { %491 = vmatmul.f32.vlgmr.msra.gmra.mxu3 %v7104_v16  ;;  %667 = vmatpush.msra.mxu2 %v4561_v39  ;;  %7108 = vst [vmem:[#allocation32_spill] sm:$0xff] %v4586_v34  ;;  %v4596_v39 = vld [vmem:[#allocation8 + $0x148] sm:$0xff] }
  0x4f   :  { %686 = vmatpush.msrb.mxu3 %v4566_v42  ;;  %428 = vmatpush.msrb.mxu0 %v4568_v43  ;;  %7109 = vst [vmem:[#allocation33_spill] sm:$0xff] %v4589_v38  ;;  %v4599_v42 = vld [vmem:[#allocation8 + $0x478] sm:$0xff]  ;;  %v4606_v43 = vld [vmem:[#allocation8 + $0x528] sm:$0xff] }
  0x50   :  { %448 = vmatpush.msrb.mxu1 %v4572_v24  ;;  %7110 = vst [vmem:[#allocation34_spill] sm:$0xff] %v4591_v35  ;;  %668 = vmatpush.msra.mxu2 %v4574_v22  ;;  %v4604_v24 = vld [vmem:[#allocation8 + $0x520] sm:$0xff]  ;;  %v4610_v22 = vld [vmem:[#allocation8 + $0x438] sm:$0xff] }
  0x51   :  { %687 = vmatpush.msrb.mxu3 %v4577_v29  ;;  %429 = vmatpush.msrb.mxu0 %v4579_v11  ;;  %7111 = vst [vmem:[#allocation35_spill] sm:$0xff] %v4596_v39  ;;  %v4612_v29 = vld [vmem:[#allocation8 + $0x430] sm:$0xff]  ;;  %v4629_v11 = vld [vmem:[#allocation8 + $0x4a8] sm:$0xff] }
  0x52   :  { %449 = vmatpush.msrb.mxu1 %v4584_v25  ;;  %7112 = vst [vmem:[#allocation36_spill] sm:$0xff] %v4599_v42  ;;  %669 = vmatpush.msra.mxu2 %v4586_v34  ;;  %v4616_v34 = vld [vmem:[#allocation8 + $0x4e0] sm:$0xff] }
  0x53   :  { %688 = vmatpush.msrb.mxu3 %v4589_v38  ;;  %430 = vmatpush.msrb.mxu0 %v4591_v35  ;;  %7113 = vst [vmem:[#allocation37_spill] sm:$0xff] %v4604_v24  ;;  %v4618_v38 = vld [vmem:[#allocation8 + $0x4e8] sm:$0xff]  ;;  %v4622_v35 = vld [vmem:[#allocation8 + $0x3f8] sm:$0xff]  ;;  %v4627_v25 = vld [vmem:[#allocation8 + $0x4a0] sm:$0xff] }
  0x54   :  { %7114 = vst [vmem:[#allocation38_spill] sm:$0xff] %v4606_v43  ;;  %450 = vmatpush.msrb.mxu1 %v4596_v39  ;;  %431 = vmatmul.f32.vlgmr.msrb.gmra.mxu0 %v7104_v16  ;;  %v4624_v39 = vld [vmem:[#allocation8 + $0x3f0] sm:$0xff] }
  0x55   :  { %7115 = vst [vmem:[#allocation39_spill] sm:$0xff] %v4610_v22  ;;  %689 = vmatpush.msrb.mxu3 %v4599_v42  ;;  %451 = vmatmul.f32.vlgmr.msrb.gmra.mxu1 %v7104_v16  ;;  %v4634_v42 = vld [vmem:[#allocation8 + $0x3b8] sm:$0xff] }
  0x56   :  { %7116 = vst [vmem:[#allocation40_spill] sm:$0xff] %v4612_v29  ;;  %626 = vmatpush.msra.mxu0 %v4604_v24  ;;  %646 = vmatpush.msra.mxu1 %v4606_v43  ;;  %v4636_v24 = vld [vmem:[#allocation8 + $0x3b0] sm:$0xff]  ;;  %v4639_v43 = vld [vmem:[#allocation8 + $0x460] sm:$0xff] }
  0x57   :  { %7117 = vst [vmem:[#allocation41_spill] sm:$0xff] %v4616_v34  ;;  %690 = vmatpush.msrb.mxu3 %v4610_v22  ;;  %670 = vmatpush.msra.mxu2 %v4612_v29  ;;  %v4646_v22 = vld [vmem:[#allocation8 + $0x378] sm:$0xff]  ;;  %v4648_v29 = vld [vmem:[#allocation8 + $0x370] sm:$0xff] }
  0x58   :  { %7118 = vst [vmem:[#allocation42_spill] sm:$0xff] %v4618_v38  ;;  %627 = vmatpush.msra.mxu0 %v4616_v34  ;;  %647 = vmatpush.msra.mxu1 %v4618_v38  ;;  %v4651_v38 = vld [vmem:[#allocation8 + $0x420] sm:$0xff]  ;;  %v4653_v34 = vld [vmem:[#allocation8 + $0x428] sm:$0xff] }
  0x59   :  { %7119 = vst [vmem:[#allocation43_spill] sm:$0xff] %v4622_v35  ;;  %691 = vmatpush.msrb.mxu3 %v4622_v35  ;;  %671 = vmatpush.msra.mxu2 %v4624_v39  ;;  %v4658_v35 = vld [vmem:[#allocation8 + $0x338] sm:$0xff] }
  0x5a   :  { %7120 = vst [vmem:[#allocation44_spill] sm:$0xff] %v4624_v39  ;;  %628 = vmatpush.msra.mxu0 %v4627_v25  ;;  %648 = vmatpush.msra.mxu1 %v4629_v11  ;;  %v4660_v39 = vld [vmem:[#allocation8 + $0x330] sm:$0xff] }
  0x5b   :  { %7121 = vst [vmem:[#allocation45_spill] sm:$0xff] %v4627_v25  ;;  %692 = vmatpush.msrb.mxu3 %v4634_v42  ;;  %672 = vmatpush.msra.mxu2 %v4636_v24  ;;  %v4665_v25 = vld [vmem:[#allocation8 + $0x3e8] sm:$0xff] }
  0x5c   :  { %7122 = vst [vmem:[#allocation46_spill] sm:$0xff] %v4629_v11  ;;  %629 = vmatpush.msra.mxu0 %v4639_v43  ;;  %649 = vmatpush.msra.mxu1 %v4641_v21  ;;  %v4663_v11 = vld [vmem:[#allocation8 + $0x3e0] sm:$0xff] }
  0x5d   :  { %7123 = vst [vmem:[#allocation47_spill] sm:$0xff] %v4634_v42  ;;  %693 = vmatpush.msrb.mxu3 %v4646_v22  ;;  %673 = vmatpush.msra.mxu2 %v4648_v29  ;;  %v4670_v42 = vld [vmem:[#allocation8 + $0x2f8] sm:$0xff]  ;;  %v4675_v21 = vld [vmem:[#allocation8 + $0x3a0] sm:$0xff] }
  0x5e   :  { %7124 = vst [vmem:[#allocation48_spill] sm:$0xff] %v4636_v24  ;;  %630 = vmatpush.msra.mxu0 %v4651_v38  ;;  %650 = vmatpush.msra.mxu1 %v4653_v34  ;;  %v4672_v24 = vld [vmem:[#allocation8 + $0x2f0] sm:$0xff] }
  0x5f   :  { %7125 = vst [vmem:[#allocation49_spill] sm:$0xff] %v4639_v43  ;;  %694 = vmatpush.msrb.mxu3 %v4658_v35  ;;  %v4677_v43 = vld [vmem:[#allocation8 + $0x3a8] sm:$0xff]  ;;  %674 = vmatpush.msra.mxu2 %v4660_v39 }
  0x60   :  { %7127 = vst [vmem:[#allocation51_spill] sm:$0xff] %v4646_v22  ;;  %631 = vmatpush.msra.mxu0 %v4663_v11  ;;  %651 = vmatpush.msra.mxu1 %v4665_v25  ;;  %v4682_v22 = vld [vmem:[#allocation8 + $0x2b8] sm:$0xff] }
  0x61   :  { %7128 = vst [vmem:[#allocation52_spill] sm:$0xff] %v4648_v29  ;;  %v4684_v29 = vld [vmem:[#allocation8 + $0x2b0] sm:$0xff]  ;;  %695 = vmatpush.msrb.mxu3 %v4670_v42  ;;  %675 = vmatpush.msra.mxu2 %v4672_v24 }
  0x62   :  { %7129 = vst [vmem:[#allocation53_spill] sm:$0xff] %v4651_v38  ;;  %v4689_v38 = vld [vmem:[#allocation8 + $0x368] sm:$0xff]  ;;  %632 = vmatpush.msra.mxu0 %v4675_v21  ;;  %652 = vmatpush.msra.mxu1 %v4677_v43 }
  0x63   :  { %7130 = vst [vmem:[#allocation54_spill] sm:$0xff] %v4653_v34  ;;  %v4687_v34 = vld [vmem:[#allocation8 + $0x360] sm:$0xff]  ;;  %696 = vmatpush.msrb.mxu3 %v4682_v22  ;;  %676 = vmatpush.msra.mxu2 %v4684_v29 }
  0x64   :  { %7131 = vst [vmem:[#allocation55_spill] sm:$0xff] %v4658_v35  ;;  %v4694_v35 = vld [vmem:[#allocation8 + $0x278] sm:$0xff]  ;;  %633 = vmatpush.msra.mxu0 %v4687_v34  ;;  %653 = vmatpush.msra.mxu1 %v4689_v38 }
  0x65   :  { %7132 = vst [vmem:[#allocation56_spill] sm:$0xff] %v4660_v39  ;;  %v4696_v39 = vld [vmem:[#allocation8 + $0x270] sm:$0xff]  ;;  %697 = vmatpush.msrb.mxu3 %v4694_v35 }
  0x66   :  { %7133 = vst [vmem:[#allocation57_spill] sm:$0xff] %v4663_v11  ;;  %v4701_v11 = vld [vmem:[#allocation8 + $0x328] sm:$0xff]  ;;  %677 = vmatpush.msra.mxu2 %v4696_v39 }
  0x67   :  { %7134 = vst [vmem:[#allocation58_spill] sm:$0xff] %v4665_v25  ;;  %v4699_v25 = vld [vmem:[#allocation8 + $0x320] sm:$0xff]  ;;  %654 = vmatpush.msra.mxu1 %v4701_v11 }
  0x68   :  { %7135 = vst [vmem:[#allocation59_spill] sm:$0xff] %v4670_v42  ;;  %v4706_v42 = vld [vmem:[#allocation8 + $0x238] sm:$0xff]  ;;  %634 = vmatpush.msra.mxu0 %v4699_v25 }
  0x69   :  { %7136 = vst [vmem:[#allocation60_spill] sm:$0xff] %v4672_v24  ;;  %v4708_v24 = vld [vmem:[#allocation8 + $0x230] sm:$0xff]  ;;  %698 = vmatpush.msrb.mxu3 %v4706_v42 }
  0x6a   :  { %7137 = vst [vmem:[#allocation61_spill] sm:$0xff] %v4675_v21  ;;  %v4713_v21 = vld [vmem:[#allocation8 + $0x2e8] sm:$0xff]  ;;  %678 = vmatpush.msra.mxu2 %v4708_v24 }
  0x6b   :  { %7138 = vst [vmem:[#allocation62_spill] sm:$0xff] %v4677_v43  ;;  %v4711_v43 = vld [vmem:[#allocation8 + $0x2e0] sm:$0xff]  ;;  %655 = vmatpush.msra.mxu1 %v4713_v21 }
  0x6c   :  { %7139 = vst [vmem:[#allocation63_spill] sm:$0xff] %v4682_v22  ;;  %v4718_v22 = vld [vmem:[#allocation8 + $0x1f8] sm:$0xff]  ;;  %635 = vmatpush.msra.mxu0 %v4711_v43 }
  0x6d   :  { %7140 = vst [vmem:[#allocation64_spill] sm:$0xff] %v4684_v29  ;;  %v4720_v29 = vld [vmem:[#allocation8 + $0x1f0] sm:$0xff]  ;;  %699 = vmatpush.msrb.mxu3 %v4718_v22 }
  0x6e   :  { %7141 = vst [vmem:[#allocation65_spill] sm:$0xff] %v4687_v34  ;;  %v4725_v34 = vld [vmem:[#allocation8 + $0x2a8] sm:$0xff]  ;;  %679 = vmatpush.msra.mxu2 %v4720_v29 }
  0x6f   :  { %7142 = vst [vmem:[#allocation66_spill] sm:$0xff] %v4689_v38  ;;  %v4723_v38 = vld [vmem:[#allocation8 + $0x2a0] sm:$0xff]  ;;  %656 = vmatpush.msra.mxu1 %v4725_v34 }
  0x70   :  { %7143 = vst [vmem:[#allocation67_spill] sm:$0xff] %v4694_v35  ;;  %v4730_v35 = vld [vmem:[#allocation8 + $0x1b8] sm:$0xff]  ;;  %636 = vmatpush.msra.mxu0 %v4723_v38 }
  0x71   :  { %7144 = vst [vmem:[#allocation68_spill] sm:$0xff] %v4696_v39  ;;  %v4732_v39 = vld [vmem:[#allocation8 + $0x1b0] sm:$0xff]  ;;  %700 = vmatpush.msrb.mxu3 %v4730_v35 }
  0x72   :  { %7145 = vst [vmem:[#allocation69_spill] sm:$0xff] %v4699_v25  ;;  %v4737_v25 = vld [vmem:[#allocation8 + $0x268] sm:$0xff]  ;;  %680 = vmatpush.msra.mxu2 %v4732_v39 }
  0x73   :  { %7146 = vst [vmem:[#allocation70_spill] sm:$0xff] %v4701_v11  ;;  %v4735_v11 = vld [vmem:[#allocation8 + $0x260] sm:$0xff]  ;;  %657 = vmatpush.msra.mxu1 %v4737_v25 }
  0x74   :  { %7147 = vst [vmem:[#allocation71_spill] sm:$0xff] %v4706_v42  ;;  %v4742_v42 = vld [vmem:[#allocation8 + $0x178] sm:$0xff]  ;;  %637 = vmatpush.msra.mxu0 %v4735_v11 }
  0x75   :  { %7148 = vst [vmem:[#allocation72_spill] sm:$0xff] %v4708_v24  ;;  %v4744_v24 = vld [vmem:[#allocation8 + $0x170] sm:$0xff]  ;;  %701 = vmatpush.msrb.mxu3 %v4742_v42 }
  0x76   :  { %7149 = vst [vmem:[#allocation73_spill] sm:$0xff] %v4711_v43  ;;  %v4749_v43 = vld [vmem:[#allocation8 + $0x228] sm:$0xff]  ;;  %681 = vmatpush.msra.mxu2 %v4744_v24  ;;  %702 = vmatmul.f32.vlgmr.msrb.gmra.mxu3 %v7104_v16 }
  0x77   :  { %7150 = vst [vmem:[#allocation74_spill] sm:$0xff] %v4713_v21  ;;  %v4747_v21 = vld [vmem:[#allocation8 + $0x220] sm:$0xff]  ;;  %658 = vmatpush.msra.mxu1 %v4749_v43  ;;  %682 = vmatmul.f32.vlgmr.msra.gmra.mxu2 %v7104_v16 }
  0x78   :  { %7151 = vst [vmem:[#allocation75_spill] sm:$0xff] %v4718_v22  ;;  %v4755_v22 = vld [vmem:[#allocation8 + $0x1e0] sm:$0xff]  ;;  %638 = vmatpush.msra.mxu0 %v4747_v21  ;;  %833 = vmatpush.msrb.mxu2 %v4352_v15 }
  0x79   :  { %7152 = vst [vmem:[#allocation76_spill] sm:$0xff] %v4720_v29  ;;  %v4757_v29 = vld [vmem:[#allocation8 + $0x1e8] sm:$0xff]  ;;  %853 = vmatpush.msra.mxu3 %v4371_v32  ;;  %v7157_v15 = vld [vmem:[#allocation18_spill] sm:$0xff] }
  0x7a   :  { %7153 = vst [vmem:[#allocation77_spill] sm:$0xff] %v4730_v35  ;;  %v4763_v35 = vld [vmem:[#allocation8 + $0x1a0] sm:$0xff]  ;;  %639 = vmatpush.msra.mxu0 %v4755_v22  ;;  %659 = vmatpush.msra.mxu1 %v4757_v29  ;;  %v7161_v32 = vld [vmem:[#allocation20_spill] sm:$0xff] }
  0x7b   :  { %7154 = vst [vmem:[#allocation78_spill] sm:$0xff] %v4732_v39  ;;  %v4765_v39 = vld [vmem:[#allocation8 + $0x1a8] sm:$0xff]  ;;  %834 = vmatpush.msrb.mxu2 %v4354_v19  ;;  %854 = vmatpush.msra.mxu3 %v4378_v36  ;;  %v7158_v19 = vld [vmem:[#allocation22_spill] sm:$0xff] }
  0x7c   :  { %7155 = vst [vmem:[#allocation79_spill] sm:$0xff] %v4737_v25  ;;  %v4772_v25 = vld [vmem:[#allocation8 + $0x168] sm:$0xff]  ;;  %640 = vmatpush.msra.mxu0 %v4763_v35  ;;  %660 = vmatpush.msra.mxu1 %v4765_v39 }
  0x7d   :  { %7156 = vst [vmem:[#allocation80_spill] sm:$0xff] %v4742_v42  ;;  %v4770_v42 = vld [vmem:[#allocation8 + $0x160] sm:$0xff]  ;;  %835 = vmatpush.msrb.mxu2 %v4357_v23  ;;  %855 = vmatpush.msra.mxu3 %v4384_v40  ;;  %v7165_v40 = vld [vmem:[#allocation21_spill] sm:$0xff] }
  0x7e   :  { %641 = vmatpush.msra.mxu0 %v4770_v42  ;;  %661 = vmatpush.msra.mxu1 %v4772_v25  ;;  %v7159_v23 = vld [vmem:[#allocation23_spill] sm:$0xff] }
  0x7f   :  { %642 = vmatmul.f32.vlgmr.msra.gmra.mxu0 %v7104_v16  ;;  %662 = vmatmul.f32.vlgmr.msra.gmra.mxu1 %v7104_v16  ;;  %v7163_v36 = vld [vmem:[#allocation27_spill] sm:$0xff] }
  0x80   :  { %793 = vmatpush.msrb.mxu0 %v4396_v45  ;;  %813 = vmatpush.msrb.mxu1 %v4400_v46  ;;  %v7168_v45 = vld [vmem:[#allocation19_spill] sm:$0xff]  ;;  %v7169_v46 = vld [vmem:[#allocation25_spill] sm:$0xff] }
  0x81   :  { %836 = vmatpush.msrb.mxu2 %v4365_v28  ;;  %856 = vmatpush.msra.mxu3 %v4391_v44  ;;  %v7160_v28 = vld [vmem:[#allocation16_spill] sm:$0xff]  ;;  %v7167_v44 = vld [vmem:[#allocation31_spill] sm:$0xff] }
  0x82   :  { %794 = vmatpush.msrb.mxu0 %v4410_v49  ;;  %814 = vmatpush.msrb.mxu1 %v4412_v50  ;;  %v7172_v49 = vld [vmem:[#allocation37_spill] sm:$0xff]  ;;  %v7173_v50 = vld [vmem:[#allocation38_spill] sm:$0xff] }
  0x83   :  { %837 = vmatpush.msrb.mxu2 %v4376_v33  ;;  %857 = vmatpush.msra.mxu3 %v4405_v48  ;;  %v7162_v33 = vld [vmem:[#allocation26_spill] sm:$0xff]  ;;  %v7171_v48 = vld [vmem:[#allocation35_spill] sm:$0xff] }
  0x84   :  { %795 = vmatpush.msrb.mxu0 %v4423_v53  ;;  %815 = vmatpush.msrb.mxu1 %v4425_v54  ;;  %v116_v53 = vld [vmem:[#allocation8 + $0x100] ss:$8 sm:$0xf] }
  0x85   :  { %838 = vmatpush.msrb.mxu2 %v4381_v37  ;;  %858 = vmatpush.msra.mxu3 %v4418_v52  ;;  %v7164_v37 = vld [vmem:[#allocation17_spill] sm:$0xff] }
  0x86   :  { %796 = vmatpush.msrb.mxu0 %v4435_v57  ;;  %816 = vmatpush.msrb.mxu1 %v4437_v58  ;;  %v7175_v52 = vld [vmem:[#allocation29_spill] sm:$0xff]  ;;  %v7178_v57 = vld [vmem:[#allocation28_spill] sm:$0xff] }
  0x87   :  { %839 = vmatpush.msrb.mxu2 %v4387_v41  ;;  %859 = vmatpush.msra.mxu3 %v4431_v56  ;;  %v7166_v41 = vld [vmem:[#allocation30_spill] sm:$0xff]  ;;  %v7179_v58 = vld [vmem:[#allocation33_spill] sm:$0xff] }
  0x88   :  { %797 = vmatpush.msrb.mxu0 %v4449_v61  ;;  %817 = vmatpush.msrb.mxu1 %v4454_v62  ;;  %v117_v54 = vld [vmem:[#allocation8 + $0x100] ss:$8 sm:$0xf0] }
  0x89   :  { %840 = vmatpush.msrb.mxu2 %v4402_v47  ;;  %860 = vmatpush.msra.mxu3 %v4445_v60  ;;  %v7170_v47 = vld [vmem:[#allocation34_spill] sm:$0xff]  ;;  %v4856_v61 = vor.u32 %v117_v54, %v116_v53  ;;  %v7182_v62 = vld [vmem:[#allocation32_spill] sm:$0xff] }
  0x8a   :  { %798 = vmatpush.msrb.mxu0 %v4463_v1  ;;  %818 = vmatpush.msrb.mxu1 %v4468_v2  ;;  %v7177_v56 = vld [vmem:[#allocation42_spill] sm:$0xff]  ;;  %v7186_v2 = vld [vmem:[#allocation40_spill] sm:$0xff] }
  0x8b   :  { %841 = vmatpush.msrb.mxu2 %v4416_v51  ;;  %861 = vmatpush.msra.mxu3 %v4461_v0  ;;  %v7174_v51 = vld [vmem:[#allocation24_spill] sm:$0xff]  ;;  %v7181_v60 = vld [vmem:[#allocation46_spill] sm:$0xff]  ;;  %v7184_v0 = vld [vmem:[#allocation49_spill] sm:$0xff] }
  0x8c   :  { %799 = vmatpush.msrb.mxu0 %v4479_v5  ;;  %819 = vmatpush.msrb.mxu1 %v4481_v6  ;;  %v7185_v1 = vld [vmem:[#allocation50_spill] sm:$0xff]  ;;  %v120_v6 = vperm.slane %v4856_v61, 0 }
  0x8d   :  { %842 = vmatpush.msrb.mxu2 %v4429_v55  ;;  %862 = vmatpush.msra.mxu3 %v4474_v4  ;;  %v7176_v55 = vld [vmem:[#allocation41_spill] sm:$0xff]  ;;  %v7189_v5 = vld [vmem:[#allocation54_spill] sm:$0xff] }
  0x8e   :  { %800 = vmatpush.msrb.mxu0 %v4491_v9  ;;  %820 = vmatpush.msrb.mxu1 %v4493_v10  ;;  %v7188_v4 = vld [vmem:[#allocation53_spill] sm:$0xff]  ;;  %v7193_v10 = vld [vmem:[#allocation58_spill] sm:$0xff] }
  0x8f   :  { %843 = vmatpush.msrb.mxu2 %v4441_v59  ;;  %863 = vmatpush.msra.mxu3 %v4487_v8  ;;  %v7180_v59 = vld [vmem:[#allocation45_spill] sm:$0xff]  ;;  %v7191_v8 = vld [vmem:[#allocation43_spill] sm:$0xff] }
  0x90   :  { %801 = vmatpush.msrb.mxu0 %v4505_v13  ;;  %821 = vmatpush.msrb.mxu1 %v4510_v14  ;;  %v7192_v9 = vld [vmem:[#allocation57_spill] sm:$0xff]  ;;  %v7195_v13 = vld [vmem:[#allocation47_spill] sm:$0xff] }
  0x91   :  { %844 = vmatpush.msrb.mxu2 %v4456_v63  ;;  %864 = vmatpush.msra.mxu3 %v4501_v12  ;;  %v7183_v63 = vld [vmem:[#allocation36_spill] sm:$0xff] }
  0x92   :  { %802 = vmatpush.msrb.mxu0 %v4522_v18  ;;  %822 = vmatpush.msrb.mxu1 %v4524_v20  ;;  %v7194_v12 = vld [vmem:[#allocation48_spill] sm:$0xff]  ;;  %v7197_v18 = vld [vmem:[#allocation62_spill] sm:$0xff] }
  0x93   :  { %845 = vmatpush.msrb.mxu2 %v4472_v3  ;;  %865 = vmatpush.msra.mxu3 %v4517_v17  ;;  %v7187_v3 = vld [vmem:[#allocation39_spill] sm:$0xff]  ;;  %v7196_v17 = vld [vmem:[#allocation61_spill] sm:$0xff] }
  0x94   :  { %803 = vmatpush.msrb.mxu0 %v4534_v26  ;;  %823 = vmatpush.msrb.mxu1 %v4536_v27  ;;  %v7198_v27 = vld [vmem:[#allocation52_spill] sm:$0xff] }
  0x95   :  { %846 = vmatpush.msrb.mxu2 %v4485_v7  ;;  %866 = vmatpush.msra.mxu3 %v7157_v15  ;;  %v7190_v7 = vld [vmem:[#allocation44_spill] sm:$0xff]  ;;  %v7201_v15 = vld [vmem:[#allocation66_spill] sm:$0xff] }
  0x96   :  { %804 = vmatpush.msrb.mxu0 %v4543_v30  ;;  %824 = vmatpush.msrb.mxu1 %v4545_v31  ;;  %v7199_v30 = vld [vmem:[#allocation51_spill] sm:$0xff]  ;;  %v7200_v31 = vld [vmem:[#allocation65_spill] sm:$0xff] }
  0x97   :  { %847 = vmatpush.msrb.mxu2 %v7160_v28  ;;  %867 = vmatpush.msra.mxu3 %v7161_v32  ;;  %v7204_v28 = vld [vmem:[#allocation69_spill] sm:$0xff]  ;;  %v7205_v32 = vld [vmem:[#allocation70_spill] sm:$0xff] }
  0x98   :  { %805 = vmatpush.msrb.mxu0 %v7158_v19  ;;  %825 = vmatpush.msrb.mxu1 %v7159_v23  ;;  %v7202_v19 = vld [vmem:[#allocation56_spill] sm:$0xff]  ;;  %v7203_v23 = vld [vmem:[#allocation55_spill] sm:$0xff] }
  0x99   :  { %848 = vmatpush.msrb.mxu2 %v7164_v37  ;;  %868 = vmatpush.msra.mxu3 %v7165_v40  ;;  %v7207_v37 = vld [vmem:[#allocation59_spill] sm:$0xff]  ;;  %v121_v40 = vperm.slane %v4856_v61, 1 }
  0x9a   :  { %806 = vmatpush.msrb.mxu0 %v7162_v33  ;;  %826 = vmatpush.msrb.mxu1 %v7163_v36  ;;  %v123_v33 = vperm.slane %v4856_v61, 3  ;;  %v7206_v36 = vld [vmem:[#allocation60_spill] sm:$0xff] }
  0x9b   :  { %998 = vmatpush.msra.mxu2 %v7168_v45  ;;  %1018 = vmatpush.msrb.mxu3 %v7169_v46  ;;  %v122_v45 = vperm.slane %v4856_v61, 2  ;;  %v7210_v46 = vld [vmem:[#allocation64_spill] sm:$0xff] }
  0x9c   :  { %807 = vmatpush.msrb.mxu0 %v7166_v41  ;;  %827 = vmatpush.msrb.mxu1 %v7167_v44  ;;  %v7208_v41 = vld [vmem:[#allocation73_spill] sm:$0xff]  ;;  %v7209_v44 = vld [vmem:[#allocation74_spill] sm:$0xff] }
  0x9d   :  { %999 = vmatpush.msra.mxu2 %v7174_v51  ;;  %1019 = vmatpush.msrb.mxu3 %v7175_v52  ;;  %v7212_v51 = vld [vmem:[#allocation68_spill] sm:$0xff]  ;;  %v7213_v52 = vld [vmem:[#allocation67_spill] sm:$0xff] }
  0x9e   :  { %808 = vmatpush.msrb.mxu0 %v7170_v47  ;;  %828 = vmatpush.msrb.mxu1 %v7171_v48  ;;  %v7211_v47 = vld [vmem:[#allocation63_spill] sm:$0xff] }
  0x9f   :  { %1000 = vmatpush.msra.mxu2 %v7178_v57  ;;  %1020 = vmatpush.msrb.mxu3 %v7179_v58  ;;  %v7215_v57 = vld [vmem:[#allocation72_spill] sm:$0xff]  ;;  %v7216_v58 = vld [vmem:[#allocation71_spill] sm:$0xff] }
  0xa0   :  { %958 = vmatpush.msra.mxu0 %v7172_v49  ;;  %978 = vmatpush.msra.mxu1 %v7173_v50 }
  0xa1   :  { %1001 = vmatpush.msra.mxu2 %v7182_v62  ;;  %1021 = vmatpush.msrb.mxu3 %v7183_v63  ;;  %v160_v14 = vpop.f32.mrf.mxu0  ;;  %v163_v16 = vpop.f32.mrf.mxu1  ;;  %v7219_v62 = vld [vmem:[#allocation78_spill] sm:$0xff]  ;;  %v7220_v63 = vld [vmem:[#allocation77_spill] sm:$0xff] }
  0xa2   :  { %959 = vmatpush.msra.mxu0 %v7176_v55  ;;  %979 = vmatpush.msra.mxu1 %v7177_v56  ;;  %v161_v20 = vadd.f32 %v160_v14, %v120_v6  ;;  %v164_v26 = vadd.f32 %v163_v16, %v120_v6  ;;  %v7214_v55 = vld [vmem:[#allocation79_spill] sm:$0xff]  ;;  %v125_v14 = vperm.slane %v4856_v61, 5 }
  0xa3   :  { %1002 = vmatpush.msra.mxu2 %v7186_v2  ;;  %1022 = vmatpush.msrb.mxu3 %v7187_v3 }
  0xa4   :  { %960 = vmatpush.msra.mxu0 %v7180_v59  ;;  %980 = vmatpush.msra.mxu1 %v7181_v60  ;;  %327 = vst [vmem:[#allocation2 + $0x30] sm:$0xff] %v161_v20  ;;  %v7217_v59 = vld [vmem:[#allocation76_spill] sm:$0xff]  ;;  %v7218_v60 = vld [vmem:[#allocation75_spill] sm:$0xff] }
  0xa5   :  { %1003 = vmatpush.msra.mxu2 %v7190_v7  ;;  %1023 = vmatpush.msrb.mxu3 %v7191_v8  ;;  %335 = vst [vmem:[#allocation2 + $0x40] sm:$0xff] %v164_v26 }
  0xa6   :  { %961 = vmatpush.msra.mxu0 %v7184_v0  ;;  %981 = vmatpush.msra.mxu1 %v7185_v1  ;;  %v126_v0 = vperm.slane %v4856_v61, 6  ;;  %v7221_v1 = vld [vmem:[#allocation80_spill] sm:$0xff] }
  0xa7   :  { %1004 = vmatpush.msra.mxu2 %v7194_v12  ;;  %1024 = vmatpush.msrb.mxu3 %v7195_v13  ;;  %v124_v12 = vperm.slane %v4856_v61, 4 }
  0xa8   :  { %962 = vmatpush.msra.mxu0 %v7188_v4  ;;  %982 = vmatpush.msra.mxu1 %v7189_v5 }
  0xa9   :  { %1005 = vmatpush.msra.mxu2 %v7198_v27  ;;  %1025 = vmatpush.msrb.mxu3 %v7199_v30  ;;  %v229_v48 = vpop.f32.mrf.mxu3 }
  0xaa   :  { %963 = vmatpush.msra.mxu0 %v7192_v9  ;;  %983 = vmatpush.msra.mxu1 %v7193_v10  ;;  %v230_v49 = vadd.f32 %v229_v48, %v123_v33  ;;  %v183_v50 = vpop.f32.mrf.mxu1  ;;  %v127_v10 = vperm.slane %v4856_v61, 7 }
  0xab   :  { %1006 = vmatpush.msra.mxu2 %v7202_v19  ;;  %1026 = vmatpush.msrb.mxu3 %v7203_v23  ;;  %v184_v53 = vadd.f32 %v183_v50, %v121_v40  ;;  %v206_v54 = vpop.f32.mrf.mxu0 }
  0xac   :  { %964 = vmatpush.msra.mxu0 %v7196_v17  ;;  %984 = vmatpush.msra.mxu1 %v7197_v18  ;;  %330 = vst [vmem:[#allocation2 + $0x18] sm:$0xff] %v230_v49  ;;  %v207_v56 = vadd.f32 %v206_v54, %v122_v45 }
  0xad   :  { %1007 = vmatpush.msra.mxu2 %v7206_v36  ;;  %1027 = vmatpush.msrb.mxu3 %v7207_v37  ;;  %328 = vst [vmem:[#allocation2] sm:$0xff] %v184_v53 }
  0xae   :  { %965 = vmatpush.msra.mxu0 %v7200_v31  ;;  %985 = vmatpush.msra.mxu1 %v7201_v15  ;;  %329 = vst [vmem:[#allocation2 + $0x58] sm:$0xff] %v207_v56 }
  0xaf   :  { %1008 = vmatpush.msra.mxu2 %v7210_v46  ;;  %1028 = vmatpush.msrb.mxu3 %v7211_v47  ;;  %v343_v46 = vld [vmem:[#allocation2 + $0x30] sm:$0x3] }
  0xb0   :  { %966 = vmatpush.msra.mxu0 %v7204_v28  ;;  %986 = vmatpush.msra.mxu1 %v7205_v32 }
  0xb1   :  { %1009 = vmatpush.msra.mxu2 %v7212_v51  ;;  %1029 = vmatpush.msrb.mxu3 %v7213_v52 }
  0xb2   :  { %967 = vmatpush.msra.mxu0 %v7208_v41  ;;  %987 = vmatpush.msra.mxu1 %v7209_v44 }
  0xb3   :  { %1010 = vmatpush.msra.mxu2 %v7215_v57  ;;  %1030 = vmatpush.msrb.mxu3 %v7216_v58  ;;  %v232_v2 = vpop.f32.mrf.mxu3  ;;  %v346_v61 = vld [vmem:[#allocation2 + $0x18] sm:$0x3] }
  0xb4   :  { %968 = vmatpush.msra.mxu0 %v4723_v38  ;;  %988 = vmatpush.msra.mxu1 %v4725_v34  ;;  %v233_v3 = vadd.f32 %v232_v2, %v123_v33  ;;  %v344_v50 = vld [vmem:[#allocation2] sm:$0x3] }
  0xb5   :  { %1011 = vmatpush.msra.mxu2 %v7217_v59  ;;  %1031 = vmatpush.msrb.mxu3 %v7218_v60  ;;  %v186_v4 = vpop.f32.mrf.mxu1  ;;  %v298_v5 = vpop.f32.mrf.mxu2 }
  0xb6   :  { %969 = vmatpush.msra.mxu0 %v4735_v11  ;;  %989 = vmatpush.msra.mxu1 %v7214_v55  ;;  %338 = vst [vmem:[#allocation2 + $0x38] sm:$0xff] %v233_v3  ;;  %v187_v6 = vadd.f32 %v186_v4, %v121_v40  ;;  %v209_v7 = vpop.f32.mrf.mxu0  ;;  %v299_v8 = vadd.f32 %v298_v5, %v126_v0  ;;  %v345_v4 = vld [vmem:[#allocation2 + $0x58] sm:$0x3] }
  0xb7   :  { %1012 = vmatpush.msra.mxu2 %v7219_v62  ;;  %1032 = vmatpush.msrb.mxu3 %v7220_v63  ;;  %v210_v9 = vadd.f32 %v209_v7, %v122_v45 }
  0xb8   :  { %970 = vmatpush.msra.mxu0 %v4747_v21  ;;  %990 = vmatpush.msra.mxu1 %v4749_v43  ;;  %336 = vst [vmem:[#allocation2 + $0x20] sm:$0xff] %v187_v6 }
  0xb9   :  { %1013 = vmatpush.msra.mxu2 %v4744_v24  ;;  %1033 = vmatpush.msrb.mxu3 %v7221_v1  ;;  %337 = vst [vmem:[#allocation2 + $0x10] sm:$0xff] %v210_v9 }
  0xba   :  { %971 = vmatpush.msra.mxu0 %v4755_v22  ;;  %991 = vmatpush.msra.mxu1 %v4757_v29  ;;  %333 = vst [vmem:[#allocation2 + $0x8] sm:$0xff] %v299_v8 }
  0xbc   :  { %972 = vmatpush.msra.mxu0 %v4763_v35  ;;  %992 = vmatpush.msra.mxu1 %v4765_v39 }
  0xbd   :  { %v321_v13 = vpop.f32.mrf.mxu3 }
  0xbe   :  { %973 = vmatpush.msra.mxu0 %v4770_v42  ;;  %993 = vmatpush.msra.mxu1 %v4772_v25  ;;  %v322_v16 = vadd.f32 %v321_v13, %v127_v10 }
  0xbf   :  { %v252_v17 = vpop.f32.mrf.mxu0  ;;  %v301_v18 = vpop.f32.mrf.mxu2 }
  0xc0   :  { %334 = vst [vmem:[#allocation2 + $0x48] sm:$0xff] %v322_v16  ;;  %v253_v20 = vadd.f32 %v252_v17, %v124_v12  ;;  %v275_v26 = vpop.f32.mrf.mxu1  ;;  %v302_v27 = vadd.f32 %v301_v18, %v126_v0 }
  0xc1   :  { %v276_v30 = vadd.f32 %v275_v26, %v125_v14 }
  0xc2   :  { %331 = vst [vmem:[#allocation2 + $0x50] sm:$0xff] %v253_v20 }
  0xc3   :  { %332 = vst [vmem:[#allocation2 + $0x68] sm:$0xff] %v276_v30 }
  0xc4   :  { %341 = vst [vmem:[#allocation2 + $0x78] sm:$0xff] %v302_v27 }
  0xc7   :  { %v324_v19 = vpop.f32.mrf.mxu3  ;;  %v255_v23 = vpop.f32.mrf.mxu0 }
  0xc8   :  { %v325_v33 = vadd.f32 %v324_v19, %v127_v10  ;;  %v256_v36 = vadd.f32 %v255_v23, %v124_v12 }
  0xc9   :  { %v278_v37 = vpop.f32.mrf.mxu1  ;;  %v472_v2 = vpop.f32.mrf.mxu2 }
  0xca   :  { %342 = vst [vmem:[#allocation2 + $0x28] sm:$0xff] %v325_v33  ;;  %v279_v40 = vadd.f32 %v278_v37, %v125_v14  ;;  %v497_v6 = vadd.f32 %v472_v2, %v345_v4 }
  0xcb   :  { %339 = vst [vmem:[#allocation2 + $0x60] sm:$0xff] %v256_v36 }
  0xcc   :  { %340 = vst [vmem:[#allocation2 + $0x70] sm:$0xff] %v279_v40 }
  0xd1   :  { %v492_v45 = vpop.f32.mrf.mxu3  ;;  %v432_v47 = vpop.f32.mrf.mxu0 }
  0xd2   :  { %v498_v48 = vadd.f32 %v492_v45, %v346_v61  ;;  %v495_v49 = vadd.f32 %v432_v47, %v343_v46  ;;  %v452_v51 = vpop.f32.mrf.mxu1 }
  0xd3   :  { %v496_v52 = vadd.f32 %v452_v51, %v344_v50 }
  0xd4   :  { %v3459_v53 = vmul.f32 -1.442695, %v498_v48  ;;  %v3457_v54 = vmul.f32 -1.442695, %v495_v49  ;;  %v350_v48 = vld [vmem:[#allocation2 + $0x28] sm:$0xc0] }
  0xd5   :  { %v3458_v56 = vmul.f32 -1.442695, %v496_v52 }
  0xd6   :  { %3526 = vpow2.f32 %v3459_v53 }
  0xd7   :  { %3528 = vpow2.f32 %v3457_v54 }
  0xd8   :  { %3530 = vpow2.f32 %v3458_v56  ;;  %v347_v56 = vld [vmem:[#allocation2 + $0x60] sm:$0xc0] }
  0xdc   :  { %v3527_v57 = vpop.eup %3526 }
  0xdd   :  { %v3529_v58 = vpop.eup %3528  ;;  %v4918_v59 = vadd.f32 1.0, %v3527_v57 }
  0xde   :  { %v3531_v60 = vpop.eup %3530  ;;  %v502_v63 = vadd.f32 1.0, %v3529_v58 }
  0xdf   :  { %3532 = vrcp.f32 %v4918_v59  ;;  %v521_v0 = vadd.f32 1.0, %v3531_v60  ;;  %vm547_vm10 = vweird.f32 %v4918_v59 }
  0xe0   :  { %3534 = vrcp.f32 %v502_v63  ;;  %v514_v13 = vand.u32 2147483648, %v502_v63  ;;  %v512_v17 = vand.u32 2147483647, %v502_v63  ;;  %vm508_vm3 = vweird.f32 %v502_v63 }
  0xe1   :  { %3536 = vrcp.f32 %v521_v0  ;;  %v533_v18 = vand.u32 2147483648, %v521_v0  ;;  %v531_v26 = vand.u32 2147483647, %v521_v0  ;;  %vm527_vm5 = vweird.f32 %v521_v0 }
  0xe2   :  { %3538 = vtanh.f32 %v497_v6  ;;  %v515_v19 = vor.u32 1.1754944e-38, %v514_v13  ;;  %vm513_vm6 = vcmp.eq.f32.partialorder %v512_v17, 8.507059e+37 }
  0xe3   :  { %v534_v36 = vor.u32 1.1754944e-38, %v533_v18  ;;  %vm532_vm8 = vcmp.eq.f32.partialorder %v531_v26, 8.507059e+37 }
  0xe5   :  { %v4921_v3 = vpop.eup %3532 }
  0xe6   :  { %v3535_v5 = vpop.eup %3534  ;;  %v543_v10 = vmul.f32 %v4921_v3, %v4918_v59  ;;  %vm548_vm9 = vweird.f32 %v4921_v3 }
  0xe7   :  { %v3537_v7 = vpop.eup %3536  ;;  %v504_v8 = vmul.f32 %v3535_v5, %v502_v63  ;;  %vm509_vm1 = vweird.f32 %v3535_v5  ;;  %vm549_vm11 = vmor %vm547_vm10, %vm548_vm9 }
  0xe8   :  { %v523_v9 = vmul.f32 %v3537_v7, %v521_v0  ;;  %vm528_vm2 = vweird.f32 %v3537_v7  ;;  %v544_v27 = vsub.f32 1.0, %v543_v10  ;;  %vm510_vm4 = vmor %vm508_vm3, %vm509_vm1  ;;  %v3539_v37 = vpop.eup %3538  ;;  %v348_v0 = vld [vmem:[#allocation2 + $0x70] sm:$0xc0] }
  0xe9   :  { %v505_v12 = vsub.f32 1.0, %v504_v8  ;;  %vm529_vm7 = vmor %vm527_vm5, %vm528_vm2  ;;  %v551_v8 = vand.u32 2147483647, %v4918_v59 }
  0xea   :  { %v524_v14 = vsub.f32 1.0, %v523_v9  ;;  %v545_v46 = vmul.f32 %v4921_v3, %v544_v27  ;;  %v4939_v27 = vld [vmem:[#allocation8 + $0x500] sm:$0xff] }
  0xeb   :  { %v506_v16 = vmul.f32 %v3535_v5, %v505_v12  ;;  %vm552_vm12 = vcmp.eq.f32.partialorder %v551_v8, 8.507059e+37  ;;  %v5014_v8 = vld [vmem:[#allocation8 + $0x3c0] sm:$0xff] }
  0xec   :  { %v525_v20 = vmul.f32 %v3537_v7, %v524_v14  ;;  %v546_v2 = vadd.f32 %v4921_v3, %v545_v46  ;;  %v4968_v46 = vld [vmem:[#allocation8 + $0x480] sm:$0xff] }
  0xed   :  { %v507_v30 = vadd.f32 %v3535_v5, %v506_v16 }
  0xee   :  { %v526_v23 = vadd.f32 %v3537_v7, %v525_v20  ;;  %v550_v10 = vsel %vm549_vm11, %v4921_v3, %v546_v2  ;;  %v4942_v3 = vld [vmem:[#allocation8 + $0x508] sm:$0xff] }
  0xef   :  { %v511_v33 = vsel %vm510_vm4, %v3535_v5, %v507_v30  ;;  %v553_v5 = vand.u32 2147483648, %v4918_v59 }
  0xf0   :  { %v516_v40 = vsel %vm513_vm6, %v515_v19, %v511_v33  ;;  %v530_v61 = vsel %vm529_vm7, %v3537_v7, %v526_v23  ;;  %v4948_v23 = vld [vmem:[#allocation8 + $0x510] sm:$0xff]  ;;  %v4951_v33 = vld [vmem:[#allocation8 + $0x518] sm:$0xff] }
  0xf1   :  { %v535_v45 = vsel %vm532_vm8, %v534_v36, %v530_v61  ;;  %v558_v47 = vmul.f32 %v3539_v37, %v516_v40  ;;  %v554_v12 = vor.u32 1.1754944e-38, %v553_v5  ;;  %v4955_v36 = vld [vmem:[#allocation8 + $0x4c0] sm:$0xff]  ;;  %v4958_v37 = vld [vmem:[#allocation8 + $0x4c8] sm:$0xff]  ;;  %v4962_v40 = vld [vmem:[#allocation8 + $0x4d0] sm:$0xff] }
  0xf2   :  { %v557_v51 = vmul.f32 0.0, %v535_v45  ;;  %v4965_v61 = vld [vmem:[#allocation8 + $0x4d8] sm:$0xff]  ;;  %v5006_v5 = vld [vmem:[#allocation8 + $0x410] sm:$0xff] }
  0xf3   :  { %v555_v14 = vsel %vm552_vm12, %v554_v12, %v550_v10 }
  0xf4   :  { %v4926_v58 = vadd.f32 %v558_v47, %v557_v51  ;;  %v4971_v47 = vld [vmem:[#allocation8 + $0x488] sm:$0xff]  ;;  %v4980_v51 = vld [vmem:[#allocation8 + $0x440] sm:$0xff] }
  0xf6   :  { %3540 = vtanh.f32 %v4926_v58 }
  0xf9   :  { %v703_v49 = vpop.f32.mrf.mxu3 }
  0xfa   :  { %v713_v52 = vrot.slane %v703_v49, 2  ;;  %v683_v19 = vpop.f32.mrf.mxu2  ;;  %v4974_v49 = vld [vmem:[#allocation8 + $0x490] sm:$0xff] }
  0xfb   :  { %v712_v45 = vrot.slane %v683_v19, 2 }
  0xfc   :  { %v643_v50 = vpop.f32.mrf.mxu0  ;;  %v663_v54 = vpop.f32.mrf.mxu1  ;;  %v721_v60 = vadd.f32 %v713_v52, %v350_v48  ;;  %v349_v48 = vld [vmem:[#allocation2 + $0x78] sm:$0xc0] }
  0xfd   :  { %v710_v53 = vrot.slane %v643_v50, 2  ;;  %v711_v57 = vrot.slane %v663_v54, 2  ;;  %v3541_v13 = vpop.eup %3540  ;;  %v4977_v50 = vld [vmem:[#allocation8 + $0x498] sm:$0xff]  ;;  %v4983_v52 = vld [vmem:[#allocation8 + $0x448] sm:$0xff]  ;;  %v4988_v54 = vld [vmem:[#allocation8 + $0x450] sm:$0xff] }
  0xfe   :  { %v3462_v6 = vmul.f32 -1.442695, %v721_v60  ;;  %v561_v16 = vmul.f32 %v3541_v13, %v555_v14  ;;  %v720_v60 = vadd.f32 %v712_v45, %v349_v48  ;;  %v5022_v13 = vld [vmem:[#allocation8 + $0x3d0] sm:$0xff]  ;;  %v5025_v14 = vld [vmem:[#allocation8 + $0x3d8] sm:$0xff] }
  0xff   :  { %v718_v63 = vadd.f32 %v710_v53, %v347_v56  ;;  %v719_v4 = vadd.f32 %v711_v57, %v348_v0  ;;  %v4991_v56 = vld [vmem:[#allocation8 + $0x458] sm:$0xff]  ;;  %v4999_v0 = vld [vmem:[#allocation8 + $0x408] sm:$0xff]  ;;  %7222 = vst [vmem:[#allocation18_spill] sm:$0xff] %v5025_v14 }
 0x100   :  { %3542 = vpow2.f32 %v3462_v6  ;;  %809 = vmatmul.f32.vlgmr.msrb.gmra.mxu0 %v561_v16  ;;  %829 = vmatmul.f32.vlgmr.msrb.gmra.mxu1 %v561_v16  ;;  %v5009_v6 = vld [vmem:[#allocation8 + $0x418] sm:$0xff] }
 0x101   :  { %v3460_v7 = vmul.f32 -1.442695, %v718_v63  ;;  %v3461_v9 = vmul.f32 -1.442695, %v719_v4  ;;  %849 = vmatmul.f32.vlgmr.msrb.gmra.mxu2 %v561_v16  ;;  %869 = vmatmul.f32.vlgmr.msra.gmra.mxu3 %v561_v16  ;;  %v4996_v63 = vld [vmem:[#allocation8 + $0x400] sm:$0xff] }
 0x102   :  { %1131 = vmatpush.msrb.mxu0 %v4939_v27  ;;  %1151 = vmatpush.msrb.mxu1 %v4942_v3 }
 0x103   :  { %3544 = vpow2.f32 %v3460_v7  ;;  %1171 = vmatpush.msrb.mxu2 %v4948_v23  ;;  %1191 = vmatpush.msra.mxu3 %v4951_v33 }
 0x104   :  { %3546 = vpow2.f32 %v3461_v9  ;;  %1132 = vmatpush.msrb.mxu0 %v4955_v36  ;;  %1152 = vmatpush.msrb.mxu1 %v4958_v37  ;;  %v5017_v9 = vld [vmem:[#allocation8 + $0x3c8] sm:$0xff] }
 0x105   :  { %1172 = vmatpush.msrb.mxu2 %v4962_v40  ;;  %1192 = vmatpush.msra.mxu3 %v4965_v61 }
 0x106   :  { %v3543_v17 = vpop.eup %3542  ;;  %1133 = vmatpush.msrb.mxu0 %v4968_v46  ;;  %1153 = vmatpush.msrb.mxu1 %v4971_v47 }
 0x107   :  { %v4935_v20 = vadd.f32 1.0, %v3543_v17  ;;  %1173 = vmatpush.msrb.mxu2 %v4974_v49  ;;  %1193 = vmatpush.msra.mxu3 %v4977_v50 }
 0x108   :  { %1134 = vmatpush.msrb.mxu0 %v4980_v51  ;;  %1154 = vmatpush.msrb.mxu1 %v4983_v52 }
 0x109   :  { %v3545_v18 = vpop.eup %3544  ;;  %3548 = vrcp.f32 %v4935_v20  ;;  %1174 = vmatpush.msrb.mxu2 %v4988_v54  ;;  %1194 = vmatpush.msra.mxu3 %v4991_v56  ;;  %vm770_vm6 = vweird.f32 %v4935_v20 }
 0x10a   :  { %v3547_v59 = vpop.eup %3546  ;;  %v4937_v26 = vadd.f32 1.0, %v3545_v18  ;;  %1135 = vmatpush.msrb.mxu0 %v4996_v63  ;;  %1155 = vmatpush.msrb.mxu1 %v4999_v0  ;;  %v5029_v18 = vld [vmem:[#allocation8 + $0x380] sm:$0xff] }
 0x10b   :  { %v4946_v30 = vadd.f32 1.0, %v3547_v59  ;;  %1175 = vmatpush.msrb.mxu2 %v5006_v5  ;;  %1195 = vmatpush.msra.mxu3 %v5009_v6  ;;  %7223 = vst [vmem:[#allocation22_spill] sm:$0xff] %v5029_v18  ;;  %v5032_v59 = vld [vmem:[#allocation8 + $0x388] sm:$0xff] }
 0x10c   :  { %3550 = vrcp.f32 %v4937_v26  ;;  %1136 = vmatpush.msrb.mxu0 %v5014_v8  ;;  %1156 = vmatpush.msrb.mxu1 %v5017_v9  ;;  %v737_v17 = vand.u32 2147483648, %v4937_v26  ;;  %7224 = vst [vmem:[#allocation23_spill] sm:$0xff] %v5032_v59  ;;  %v735_v48 = vand.u32 2147483647, %v4937_v26  ;;  %vm731_vm15 = vweird.f32 %v4937_v26 }
 0x10d   :  { %3552 = vrcp.f32 %v4946_v30  ;;  %1176 = vmatpush.msrb.mxu2 %v5022_v13  ;;  %1196 = vmatpush.msra.mxu3 %v5025_v14  ;;  %v756_v19 = vand.u32 2147483648, %v4946_v30  ;;  %vm750_vm0 = vweird.f32 %v4946_v30 }
 0x10e   :  { %3554 = vtanh.f32 %v720_v60  ;;  %1137 = vmatpush.msrb.mxu0 %v5029_v18  ;;  %1157 = vmatpush.msrb.mxu1 %v5032_v59  ;;  %v5042_v60 = vld [vmem:[#allocation8 + $0x398] sm:$0xff]  ;;  %v754_v59 = vand.u32 2147483647, %v4946_v30  ;;  %v5048_v18 = vld [vmem:[#allocation8 + $0x340] sm:$0xff]  ;;  %vm736_vm2 = vcmp.eq.f32.partialorder %v735_v48, 8.507059e+37 }
 0x10f   :  { %v4986_v53 = vpop.eup %3548  ;;  %7226 = vst [vmem:[#allocation20_spill] sm:$0xff] %v5042_v60  ;;  %1197 = vmatpush.msra.mxu3 %v5042_v60  ;;  %v5056_v60 = vld [vmem:[#allocation8 + $0x350] sm:$0xff] }
 0x110   :  { %v766_v10 = vmul.f32 %v4986_v53, %v4935_v20  ;;  %7227 = vst [vmem:[#allocation26_spill] sm:$0xff] %v5048_v18  ;;  %1138 = vmatpush.msrb.mxu0 %v5048_v18  ;;  %vm755_vm4 = vcmp.eq.f32.partialorder %v754_v59, 8.507059e+37  ;;  %v5101_v59 = vld [vmem:[#allocation8 + $0x280] sm:$0xff]  ;;  %vm771_vm5 = vweird.f32 %v4986_v53 }
 0x111   :  { %7229 = vst [vmem:[#allocation17_spill] sm:$0xff] %v5056_v60  ;;  %vm5147_vm7 = vmor %vm770_vm6, %vm771_vm5 }
 0x112   :  { %v4994_v57 = vpop.eup %3550  ;;  %v767_v14 = vsub.f32 1.0, %v766_v10  ;;  %v738_v10 = vor.u32 1.1754944e-38, %v737_v17  ;;  %v5081_v17 = vld [vmem:[#allocation8 + $0x310] sm:$0xff] }
 0x113   :  { %v5002_v2 = vpop.eup %3552  ;;  %v727_v4 = vmul.f32 %v4994_v57, %v4937_v26  ;;  %vm732_vm13 = vweird.f32 %v4994_v57  ;;  %v5070_v26 = vld [vmem:[#allocation8 + $0x300] sm:$0xff]  ;;  %7235 = vst [vmem:[#allocation19_spill] sm:$0xff] %v5081_v17 }
 0x114   :  { %v746_v7 = vmul.f32 %v5002_v2, %v4946_v30  ;;  %vm751_vm14 = vweird.f32 %v5002_v2  ;;  %vm5065_vm1 = vmor %vm731_vm15, %vm732_vm13  ;;  %7233 = vst [vmem:[#allocation30_spill] sm:$0xff] %v5070_v26  ;;  %1139 = vmatpush.msrb.mxu0 %v5070_v26  ;;  %v3555_v26 = vpop.eup %3554 }
 0x115   :  { %v728_v12 = vsub.f32 1.0, %v727_v4  ;;  %v5039_v4 = vld [vmem:[#allocation8 + $0x390] sm:$0xff]  ;;  %vm752_vm3 = vmor %vm750_vm0, %vm751_vm14 }
 0x116   :  { %v747_v16 = vsub.f32 1.0, %v746_v7  ;;  %7225 = vst [vmem:[#allocation16_spill] sm:$0xff] %v5039_v4  ;;  %1177 = vmatpush.msrb.mxu2 %v5039_v4 }
 0x117   :  { %v729_v45 = vmul.f32 %v4994_v57, %v728_v12  ;;  %v5051_v12 = vld [vmem:[#allocation8 + $0x348] sm:$0xff] }
 0x118   :  { %v748_v7 = vmul.f32 %v5002_v2, %v747_v16  ;;  %7228 = vst [vmem:[#allocation27_spill] sm:$0xff] %v5051_v12  ;;  %1158 = vmatpush.msrb.mxu1 %v5051_v12  ;;  %1178 = vmatpush.msrb.mxu2 %v5056_v60  ;;  %v5059_v16 = vld [vmem:[#allocation8 + $0x358] sm:$0xff]  ;;  %v5073_v60 = vld [vmem:[#allocation8 + $0x308] sm:$0xff] }
 0x119   :  { %v730_v4 = vadd.f32 %v4994_v57, %v729_v45  ;;  %7230 = vst [vmem:[#allocation21_spill] sm:$0xff] %v5059_v16  ;;  %1198 = vmatpush.msra.mxu3 %v5059_v16  ;;  %v757_v16 = vor.u32 1.1754944e-38, %v756_v19 }
 0x11a   :  { %v749_v45 = vadd.f32 %v5002_v2, %v748_v7  ;;  %7234 = vst [vmem:[#allocation31_spill] sm:$0xff] %v5073_v60  ;;  %1159 = vmatpush.msrb.mxu1 %v5073_v60  ;;  %1179 = vmatpush.msrb.mxu2 %v5081_v17  ;;  %v5084_v7 = vld [vmem:[#allocation8 + $0x318] sm:$0xff]  ;;  %v5088_v60 = vld [vmem:[#allocation8 + $0x2c0] sm:$0xff]  ;;  %v5095_v17 = vld [vmem:[#allocation8 + $0x2d0] sm:$0xff] }
 0x11b   :  { %v734_v30 = vsel %vm5065_vm1, %v4994_v57, %v730_v4  ;;  %1199 = vmatpush.msra.mxu3 %v5084_v7  ;;  %1140 = vmatpush.msrb.mxu0 %v5088_v60  ;;  %v5091_v57 = vld [vmem:[#allocation8 + $0x2c8] sm:$0xff]  ;;  %v768_v4 = vmul.f32 %v4986_v53, %v767_v14  ;;  %v5110_v14 = vld [vmem:[#allocation8 + $0x298] sm:$0xff] }
 0x11c   :  { %v739_v12 = vsel %vm736_vm2, %v738_v10, %v734_v30  ;;  %v753_v19 = vsel %vm752_vm3, %v5002_v2, %v749_v45  ;;  %1160 = vmatpush.msrb.mxu1 %v5091_v57  ;;  %1180 = vmatpush.msrb.mxu2 %v5095_v17  ;;  %v5098_v10 = vld [vmem:[#allocation8 + $0x2d8] sm:$0xff]  ;;  %v5104_v45 = vld [vmem:[#allocation8 + $0x288] sm:$0xff]  ;;  %7238 = vst [vmem:[#allocation35_spill] sm:$0xff] %v5110_v14 }
 0x11d   :  { %v758_v18 = vsel %vm755_vm4, %v757_v16, %v753_v19  ;;  %v781_v48 = vmul.f32 %v3555_v26, %v739_v12  ;;  %1200 = vmatpush.msra.mxu3 %v5098_v10  ;;  %1141 = vmatpush.msrb.mxu0 %v5101_v59  ;;  %7236 = vst [vmem:[#allocation25_spill] sm:$0xff] %v5104_v45  ;;  %v5107_v12 = vld [vmem:[#allocation8 + $0x290] sm:$0xff]  ;;  %v5115_v26 = vld [vmem:[#allocation8 + $0x240] sm:$0xff]  ;;  %v5118_v30 = vld [vmem:[#allocation8 + $0x248] sm:$0xff] }
 0x11e   :  { %v780_v2 = vmul.f32 0.0, %v758_v18  ;;  %1161 = vmatpush.msrb.mxu1 %v5104_v45  ;;  %7237 = vst [vmem:[#allocation34_spill] sm:$0xff] %v5107_v12  ;;  %1181 = vmatpush.msrb.mxu2 %v5107_v12  ;;  %v769_v19 = vadd.f32 %v4986_v53, %v768_v4  ;;  %v5123_v18 = vld [vmem:[#allocation8 + $0x250] sm:$0xff]  ;;  %v5126_v12 = vld [vmem:[#allocation8 + $0x258] sm:$0xff]  ;;  %v774_v4 = vand.u32 2147483647, %v4935_v20 }
 0x11f   :  { %1201 = vmatpush.msra.mxu3 %v5110_v14  ;;  %7239 = vst [vmem:[#allocation37_spill] sm:$0xff] %v5115_v26  ;;  %1142 = vmatpush.msrb.mxu0 %v5115_v26  ;;  %v5151_v26 = vld [vmem:[#allocation8 + $0x1c0] sm:$0xff] }
 0x120   :  { %v5113_v16 = vadd.f32 %v781_v48, %v780_v2  ;;  %7240 = vst [vmem:[#allocation38_spill] sm:$0xff] %v5118_v30  ;;  %1162 = vmatpush.msrb.mxu1 %v5118_v30  ;;  %1182 = vmatpush.msrb.mxu2 %v5123_v18  ;;  %v776_v48 = vand.u32 2147483648, %v4935_v20  ;;  %v5131_v2 = vld [vmem:[#allocation8 + $0x200] sm:$0xff]  ;;  %v5134_v30 = vld [vmem:[#allocation8 + $0x208] sm:$0xff]  ;;  %v773_v20 = vsel %vm5147_vm7, %v4986_v53, %v769_v19  ;;  %vm775_vm8 = vcmp.eq.f32.partialorder %v774_v4, 8.507059e+37  ;;  %v5175_v53 = vld [vmem:[#allocation8 + $0x198] sm:$0xff] }
 0x121   :  { %7241 = vst [vmem:[#allocation24_spill] sm:$0xff] %v5123_v18  ;;  %1202 = vmatpush.msra.mxu3 %v5126_v12  ;;  %1143 = vmatpush.msrb.mxu0 %v5131_v2  ;;  %v5139_v18 = vld [vmem:[#allocation8 + $0x210] sm:$0xff]  ;;  %v5166_v45 = vld [vmem:[#allocation8 + $0x180] sm:$0xff] }
 0x122   :  { %7242 = vst [vmem:[#allocation29_spill] sm:$0xff] %v5126_v12  ;;  %3556 = vtanh.f32 %v5113_v16  ;;  %1163 = vmatpush.msrb.mxu1 %v5134_v30  ;;  %1183 = vmatpush.msrb.mxu2 %v5139_v18  ;;  %v5142_v12 = vld [vmem:[#allocation8 + $0x218] sm:$0xff]  ;;  %v777_v14 = vor.u32 1.1754944e-38, %v776_v48  ;;  %v5178_v48 = vld [vmem:[#allocation8 + $0x140] sm:$0xff]  ;;  %v5184_v4 = vld [vmem:[#allocation8 + $0x150] sm:$0xff] }
 0x123   :  { %7243 = vst [vmem:[#allocation41_spill] sm:$0xff] %v5131_v2  ;;  %1203 = vmatpush.msra.mxu3 %v5142_v12  ;;  %1144 = vmatpush.msrb.mxu0 %v5151_v26  ;;  %v5172_v2 = vld [vmem:[#allocation8 + $0x190] sm:$0xff] }
 0x124   :  { %7244 = vst [vmem:[#allocation42_spill] sm:$0xff] %v5134_v30  ;;  %v5154_v30 = vld [vmem:[#allocation8 + $0x1c8] sm:$0xff] }
 0x125   :  { %7245 = vst [vmem:[#allocation28_spill] sm:$0xff] %v5139_v18  ;;  %1164 = vmatpush.msrb.mxu1 %v5154_v30  ;;  %v5160_v18 = vld [vmem:[#allocation8 + $0x1d0] sm:$0xff]  ;;  %1145 = vmatpush.msrb.mxu0 %v5166_v45 }
 0x126   :  { %7246 = vst [vmem:[#allocation33_spill] sm:$0xff] %v5142_v12  ;;  %1184 = vmatpush.msrb.mxu2 %v5160_v18  ;;  %v5163_v12 = vld [vmem:[#allocation8 + $0x1d8] sm:$0xff] }
 0x127   :  { %7249 = vst [vmem:[#allocation45_spill] sm:$0xff] %v5151_v26  ;;  %1204 = vmatpush.msra.mxu3 %v5163_v12  ;;  %v5169_v26 = vld [vmem:[#allocation8 + $0x188] sm:$0xff]  ;;  %1146 = vmatpush.msrb.mxu0 %v5178_v48 }
 0x128   :  { %7250 = vst [vmem:[#allocation46_spill] sm:$0xff] %v5163_v12  ;;  %1165 = vmatpush.msrb.mxu1 %v5169_v26  ;;  %1185 = vmatpush.msrb.mxu2 %v5172_v2  ;;  %v3557_v19 = vpop.eup %3556  ;;  %v778_v12 = vsel %vm775_vm8, %v777_v14, %v773_v20  ;;  %v5190_v14 = vld [vmem:[#allocation8 + $0x520] sm:$0xff]  ;;  %v5193_v20 = vld [vmem:[#allocation8 + $0x528] sm:$0xff] }
 0x129   :  { %7251 = vst [vmem:[#allocation32_spill] sm:$0xff] %v5166_v45  ;;  %1205 = vmatpush.msra.mxu3 %v5175_v53  ;;  %v5181_v45 = vld [vmem:[#allocation8 + $0x148] sm:$0xff] }
 0x12a   :  { %7252 = vst [vmem:[#allocation36_spill] sm:$0xff] %v5169_v26  ;;  %1166 = vmatpush.msrb.mxu1 %v5181_v45  ;;  %v784_v26 = vmul.f32 %v3557_v19, %v778_v12  ;;  %1186 = vmatpush.msrb.mxu2 %v5184_v4  ;;  %v5196_v12 = vld [vmem:[#allocation8 + $0x530] sm:$0xff]  ;;  %v5199_v19 = vld [vmem:[#allocation8 + $0x538] sm:$0xff] }
 0x12b   :  { %7253 = vst [vmem:[#allocation49_spill] sm:$0xff] %v5172_v2  ;;  %v5187_v2 = vld [vmem:[#allocation8 + $0x158] sm:$0xff] }
 0x12c   :  { %7254 = vst [vmem:[#allocation50_spill] sm:$0xff] %v5175_v53  ;;  %1206 = vmatpush.msra.mxu3 %v5187_v2  ;;  %v956_v53 = vrot.slane %v784_v26, 6  ;;  %v5202_v26 = vld [vmem:[#allocation8 + $0x4e0] sm:$0xff] }
 0x12d   :  { %7255 = vst [vmem:[#allocation40_spill] sm:$0xff] %v5190_v14 }
 0x12e   :  { %974 = vmatmul.f32.vlgmr.msra.gmra.mxu0 %v956_v53  ;;  %994 = vmatmul.f32.vlgmr.msra.gmra.mxu1 %v956_v53  ;;  %7256 = vst [vmem:[#allocation39_spill] sm:$0xff] %v5193_v20 }
 0x12f   :  { %1014 = vmatmul.f32.vlgmr.msra.gmra.mxu2 %v956_v53  ;;  %1034 = vmatmul.f32.vlgmr.msrb.gmra.mxu3 %v956_v53  ;;  %7257 = vst [vmem:[#allocation53_spill] sm:$0xff] %v5196_v12  ;;  %v5205_v53 = vld [vmem:[#allocation8 + $0x4e8] sm:$0xff] }
 0x130   :  { %1296 = vmatpush.msra.mxu0 %v5190_v14  ;;  %1316 = vmatpush.msra.mxu1 %v5193_v20  ;;  %7258 = vst [vmem:[#allocation54_spill] sm:$0xff] %v5199_v19  ;;  %v5208_v14 = vld [vmem:[#allocation8 + $0x4f0] sm:$0xff]  ;;  %v5211_v20 = vld [vmem:[#allocation8 + $0x4f8] sm:$0xff] }
 0x131   :  { %1336 = vmatpush.msra.mxu2 %v5196_v12  ;;  %1356 = vmatpush.msrb.mxu3 %v5199_v19  ;;  %7259 = vst [vmem:[#allocation44_spill] sm:$0xff] %v5202_v26  ;;  %v5214_v12 = vld [vmem:[#allocation8 + $0x4a0] sm:$0xff]  ;;  %v5217_v19 = vld [vmem:[#allocation8 + $0x4a8] sm:$0xff] }
 0x132   :  { %1297 = vmatpush.msra.mxu0 %v5202_v26  ;;  %7260 = vst [vmem:[#allocation43_spill] sm:$0xff] %v5205_v53  ;;  %1317 = vmatpush.msra.mxu1 %v5205_v53  ;;  %v5220_v26 = vld [vmem:[#allocation8 + $0x4b0] sm:$0xff]  ;;  %v5223_v53 = vld [vmem:[#allocation8 + $0x4b8] sm:$0xff] }
 0x133   :  { %7261 = vst [vmem:[#allocation57_spill] sm:$0xff] %v5208_v14  ;;  %1337 = vmatpush.msra.mxu2 %v5208_v14  ;;  %1357 = vmatpush.msrb.mxu3 %v5211_v20  ;;  %v5226_v14 = vld [vmem:[#allocation8 + $0x460] sm:$0xff] }
 0x134   :  { %7262 = vst [vmem:[#allocation58_spill] sm:$0xff] %v5211_v20  ;;  %1298 = vmatpush.msra.mxu0 %v5214_v12  ;;  %1318 = vmatpush.msra.mxu1 %v5217_v19  ;;  %v5229_v20 = vld [vmem:[#allocation8 + $0x468] sm:$0xff] }
 0x135   :  { %7263 = vst [vmem:[#allocation48_spill] sm:$0xff] %v5214_v12  ;;  %1338 = vmatpush.msra.mxu2 %v5220_v26  ;;  %1358 = vmatpush.msrb.mxu3 %v5223_v53  ;;  %v5232_v12 = vld [vmem:[#allocation8 + $0x470] sm:$0xff] }
 0x136   :  { %7264 = vst [vmem:[#allocation47_spill] sm:$0xff] %v5217_v19  ;;  %1299 = vmatpush.msra.mxu0 %v5226_v14  ;;  %1319 = vmatpush.msra.mxu1 %v5229_v20  ;;  %v5235_v19 = vld [vmem:[#allocation8 + $0x478] sm:$0xff] }
 0x137   :  { %7265 = vst [vmem:[#allocation61_spill] sm:$0xff] %v5220_v26  ;;  %1339 = vmatpush.msra.mxu2 %v5232_v12  ;;  %1359 = vmatpush.msrb.mxu3 %v5235_v19  ;;  %v5238_v26 = vld [vmem:[#allocation8 + $0x420] sm:$0xff] }
 0x138   :  { %7266 = vst [vmem:[#allocation62_spill] sm:$0xff] %v5223_v53  ;;  %1300 = vmatpush.msra.mxu0 %v5238_v26  ;;  %v5241_v53 = vld [vmem:[#allocation8 + $0x428] sm:$0xff] }
 0x139   :  { %7267 = vst [vmem:[#allocation52_spill] sm:$0xff] %v5226_v14  ;;  %1320 = vmatpush.msra.mxu1 %v5241_v53  ;;  %v5244_v14 = vld [vmem:[#allocation8 + $0x430] sm:$0xff] }
 0x13a   :  { %7268 = vst [vmem:[#allocation51_spill] sm:$0xff] %v5229_v20  ;;  %1340 = vmatpush.msra.mxu2 %v5244_v14  ;;  %v5247_v20 = vld [vmem:[#allocation8 + $0x438] sm:$0xff] }
 0x13b   :  { %7269 = vst [vmem:[#allocation65_spill] sm:$0xff] %v5232_v12  ;;  %1360 = vmatpush.msrb.mxu3 %v5247_v20  ;;  %v5250_v12 = vld [vmem:[#allocation8 + $0x3e0] sm:$0xff] }
 0x13c   :  { %7270 = vst [vmem:[#allocation66_spill] sm:$0xff] %v5235_v19  ;;  %1301 = vmatpush.msra.mxu0 %v5250_v12  ;;  %v5253_v19 = vld [vmem:[#allocation8 + $0x3e8] sm:$0xff] }
 0x13d   :  { %7271 = vst [vmem:[#allocation56_spill] sm:$0xff] %v5238_v26  ;;  %1321 = vmatpush.msra.mxu1 %v5253_v19  ;;  %v5256_v26 = vld [vmem:[#allocation8 + $0x3f0] sm:$0xff] }
 0x13e   :  { %7272 = vst [vmem:[#allocation55_spill] sm:$0xff] %v5241_v53  ;;  %1341 = vmatpush.msra.mxu2 %v5256_v26  ;;  %v5259_v53 = vld [vmem:[#allocation8 + $0x3f8] sm:$0xff] }
 0x13f   :  { %7273 = vst [vmem:[#allocation69_spill] sm:$0xff] %v5244_v14  ;;  %1361 = vmatpush.msrb.mxu3 %v5259_v53  ;;  %v5262_v14 = vld [vmem:[#allocation8 + $0x3a0] sm:$0xff] }
 0x140   :  { %7274 = vst [vmem:[#allocation70_spill] sm:$0xff] %v5247_v20  ;;  %1302 = vmatpush.msra.mxu0 %v5262_v14  ;;  %v5265_v20 = vld [vmem:[#allocation8 + $0x3a8] sm:$0xff] }
 0x141   :  { %7275 = vst [vmem:[#allocation60_spill] sm:$0xff] %v5250_v12  ;;  %1322 = vmatpush.msra.mxu1 %v5265_v20  ;;  %v5268_v12 = vld [vmem:[#allocation8 + $0x3b0] sm:$0xff] }
 0x142   :  { %7276 = vst [vmem:[#allocation59_spill] sm:$0xff] %v5253_v19  ;;  %1342 = vmatpush.msra.mxu2 %v5268_v12  ;;  %v5271_v19 = vld [vmem:[#allocation8 + $0x3b8] sm:$0xff]  ;;  %1303 = vmatpush.msra.mxu0 %v7200_v31  ;;  %v5292_v31 = vld [vmem:[#allocation8 + $0x2f0] sm:$0xff] }
 0x143   :  { %7277 = vst [vmem:[#allocation73_spill] sm:$0xff] %v5259_v53  ;;  %1362 = vmatpush.msrb.mxu3 %v5271_v19  ;;  %1323 = vmatpush.msra.mxu1 %v7201_v15  ;;  %v5276_v53 = vld [vmem:[#allocation8 + $0x370] sm:$0xff]  ;;  %v5295_v15 = vld [vmem:[#allocation8 + $0x2f8] sm:$0xff] }
 0x144   :  { %7278 = vst [vmem:[#allocation74_spill] sm:$0xff] %v5262_v14  ;;  %1343 = vmatpush.msra.mxu2 %v5276_v53  ;;  %v5279_v14 = vld [vmem:[#allocation8 + $0x378] sm:$0xff]  ;;  %1304 = vmatpush.msra.mxu0 %v7204_v28  ;;  %v5300_v28 = vld [vmem:[#allocation8 + $0x2b0] sm:$0xff] }
 0x145   :  { %7279 = vst [vmem:[#allocation64_spill] sm:$0xff] %v5265_v20  ;;  %1363 = vmatpush.msrb.mxu3 %v5279_v14  ;;  %1324 = vmatpush.msra.mxu1 %v7205_v32  ;;  %v5303_v32 = vld [vmem:[#allocation8 + $0x2b8] sm:$0xff] }
 0x146   :  { %7280 = vst [vmem:[#allocation63_spill] sm:$0xff] %v5268_v12  ;;  %v5284_v12 = vld [vmem:[#allocation8 + $0x330] sm:$0xff]  ;;  %1305 = vmatpush.msra.mxu0 %v7208_v41 }
 0x147   :  { %7281 = vst [vmem:[#allocation68_spill] sm:$0xff] %v5271_v19  ;;  %1344 = vmatpush.msra.mxu2 %v5284_v12  ;;  %v5287_v19 = vld [vmem:[#allocation8 + $0x338] sm:$0xff]  ;;  %1325 = vmatpush.msra.mxu1 %v7209_v44  ;;  %v5308_v41 = vld [vmem:[#allocation8 + $0x270] sm:$0xff] }
 0x148   :  { %7282 = vst [vmem:[#allocation67_spill] sm:$0xff] %v5276_v53  ;;  %1364 = vmatpush.msrb.mxu3 %v5287_v19  ;;  %1306 = vmatpush.msra.mxu0 %v4723_v38  ;;  %v5311_v44 = vld [vmem:[#allocation8 + $0x278] sm:$0xff] }
 0x149   :  { %7283 = vst [vmem:[#allocation79_spill] sm:$0xff] %v5279_v14  ;;  %1345 = vmatpush.msra.mxu2 %v5292_v31  ;;  %1326 = vmatpush.msra.mxu1 %v4725_v34  ;;  %v5316_v34 = vld [vmem:[#allocation8 + $0x230] sm:$0xff]  ;;  %v5319_v38 = vld [vmem:[#allocation8 + $0x238] sm:$0xff] }
 0x14a   :  { %7284 = vst [vmem:[#allocation72_spill] sm:$0xff] %v5284_v12  ;;  %1365 = vmatpush.msrb.mxu3 %v5295_v15  ;;  %1307 = vmatpush.msra.mxu0 %v4735_v11  ;;  %v5324_v11 = vld [vmem:[#allocation8 + $0x1f0] sm:$0xff] }
 0x14b   :  { %7285 = vst [vmem:[#allocation71_spill] sm:$0xff] %v5287_v19  ;;  %1346 = vmatpush.msra.mxu2 %v5300_v28  ;;  %1327 = vmatpush.msra.mxu1 %v7214_v55  ;;  %v5327_v55 = vld [vmem:[#allocation8 + $0x1f8] sm:$0xff] }
 0x14c   :  { %7286 = vst [vmem:[#allocation76_spill] sm:$0xff] %v5292_v31  ;;  %1366 = vmatpush.msrb.mxu3 %v5303_v32  ;;  %1308 = vmatpush.msra.mxu0 %v4747_v21  ;;  %v5333_v21 = vld [vmem:[#allocation8 + $0x1b8] sm:$0xff] }
 0x14d   :  { %7287 = vst [vmem:[#allocation75_spill] sm:$0xff] %v5295_v15  ;;  %1347 = vmatpush.msra.mxu2 %v5308_v41  ;;  %1328 = vmatpush.msra.mxu1 %v4749_v43 }
 0x14e   :  { %7288 = vst [vmem:[#allocation78_spill] sm:$0xff] %v5300_v28  ;;  %1367 = vmatpush.msrb.mxu3 %v5311_v44  ;;  %1309 = vmatpush.msra.mxu0 %v4755_v22 }
 0x14f   :  { %7289 = vst [vmem:[#allocation77_spill] sm:$0xff] %v5303_v32  ;;  %1348 = vmatpush.msra.mxu2 %v5316_v34  ;;  %1329 = vmatpush.msra.mxu1 %v4757_v29 }
 0x150   :  { %7290 = vst [vmem:[#allocation80_spill] sm:$0xff] %v5308_v41  ;;  %1368 = vmatpush.msrb.mxu3 %v5319_v38  ;;  %1310 = vmatpush.msra.mxu0 %v4763_v35 }
 0x151   :  { %7291 = vst [vmem:[#allocation81_spill] sm:$0xff] %v5311_v44  ;;  %1349 = vmatpush.msra.mxu2 %v5324_v11  ;;  %1330 = vmatpush.msra.mxu1 %v4765_v39  ;;  %v786_v39 = vld [vmem:[#allocation2] sm:$0xc]  ;;  %v788_v44 = vld [vmem:[#allocation2 + $0x18] sm:$0xc] }
 0x152   :  { %7292 = vst [vmem:[#allocation82_spill] sm:$0xff] %v5316_v34  ;;  %1369 = vmatpush.msrb.mxu3 %v5327_v55  ;;  %1311 = vmatpush.msra.mxu0 %v4770_v42 }
 0x153   :  { %7293 = vst [vmem:[#allocation83_spill] sm:$0xff] %v5319_v38  ;;  %1350 = vmatpush.msra.mxu2 %v7219_v62  ;;  %1331 = vmatpush.msra.mxu1 %v4772_v25 }
 0x154   :  { %7294 = vst [vmem:[#allocation84_spill] sm:$0xff] %v5324_v11  ;;  %1370 = vmatpush.msrb.mxu3 %v5333_v21 }
 0x155   :  { %7295 = vst [vmem:[#allocation85_spill] sm:$0xff] %v5327_v55  ;;  %1351 = vmatpush.msra.mxu2 %v4744_v24  ;;  %v785_v55 = vld [vmem:[#allocation2 + $0x30] sm:$0xc] }
 0x156   :  { %7296 = vst [vmem:[#allocation86_spill] sm:$0xff] %v5333_v21  ;;  %1371 = vmatpush.msrb.mxu3 %v7221_v1 }
 0x17d   :  { %v810_v22 = vpop.f32.mrf.mxu0  ;;  %v830_v29 = vpop.f32.mrf.mxu1 }
 0x17e   :  { %v877_v43 = vrot.slane %v810_v22, 6  ;;  %v878_v35 = vrot.slane %v830_v29, 6 }
 0x180   :  { %v885_v11 = vadd.f32 %v877_v43, %v785_v55  ;;  %v886_v62 = vadd.f32 %v878_v35, %v786_v39  ;;  %v787_v43 = vld [vmem:[#allocation2 + $0x58] sm:$0xc] }
 0x182   :  { %v3463_v38 = vmul.f32 -1.442695, %v885_v11  ;;  %v3464_v34 = vmul.f32 -1.442695, %v886_v62 }
 0x184   :  { %3558 = vpow2.f32 %v3463_v38  ;;  %v870_v21 = vpop.f32.mrf.mxu3  ;;  %v850_v22 = vpop.f32.mrf.mxu2 }
 0x185   :  { %3560 = vpow2.f32 %v3464_v34  ;;  %v880_v42 = vrot.slane %v870_v21, 6  ;;  %v879_v29 = vrot.slane %v850_v22, 6 }
 0x187   :  { %v888_v25 = vadd.f32 %v880_v42, %v788_v44  ;;  %v887_v38 = vadd.f32 %v879_v29, %v787_v43 }
 0x189   :  { %v3465_v41 = vmul.f32 -1.442695, %v888_v25 }
 0x18a   :  { %v3559_v24 = vpop.eup %3558 }
 0x18b   :  { %v3561_v32 = vpop.eup %3560  ;;  %v892_v1 = vadd.f32 1.0, %v3559_v24  ;;  %3562 = vpow2.f32 %v3465_v41 }
 0x18c   :  { %v911_v28 = vadd.f32 1.0, %v3561_v32 }
 0x18d   :  { %3564 = vrcp.f32 %v892_v1  ;;  %v904_v42 = vand.u32 2147483648, %v892_v1  ;;  %v902_v32 = vand.u32 2147483647, %v892_v1  ;;  %vm898_vm11 = vweird.f32 %v892_v1 }
 0x18e   :  { %3566 = vrcp.f32 %v911_v28  ;;  %v923_v25 = vand.u32 2147483648, %v911_v28  ;;  %v921_v22 = vand.u32 2147483647, %v911_v28  ;;  %vm917_vm12 = vweird.f32 %v911_v28 }
 0x18f   :  { %v905_v29 = vor.u32 1.1754944e-38, %v904_v42  ;;  %vm903_vm15 = vcmp.eq.f32.partialorder %v902_v32, 8.507059e+37  ;;  %v790_v32 = vld [vmem:[#allocation2 + $0x70] sm:$0x30] }
 0x190   :  { %vm922_vm0 = vcmp.eq.f32.partialorder %v921_v22, 8.507059e+37 }
 0x191   :  { %v3563_v55 = vpop.eup %3562 }
 0x192   :  { %v931_v11 = vadd.f32 1.0, %v3563_v55 }
 0x193   :  { %v3565_v35 = vpop.eup %3564 }
 0x194   :  { %v3567_v39 = vpop.eup %3566  ;;  %v894_v34 = vmul.f32 %v3565_v35, %v892_v1  ;;  %3568 = vrcp.f32 %v931_v11  ;;  %vm899_vm9 = vweird.f32 %v3565_v35  ;;  %vm937_vm2 = vweird.f32 %v931_v11 }
 0x195   :  { %v913_v21 = vmul.f32 %v3567_v39, %v911_v28  ;;  %3570 = vtanh.f32 %v887_v38  ;;  %vm918_vm10 = vweird.f32 %v3567_v39  ;;  %vm900_vm13 = vmor %vm898_vm11, %vm899_vm9  ;;  %v948_v38 = vrot.slane %v4926_v58, 6 }
 0x196   :  { %v895_v44 = vsub.f32 1.0, %v894_v34  ;;  %vm919_vm14 = vmor %vm917_vm12, %vm918_vm10  ;;  %v924_v34 = vor.u32 1.1754944e-38, %v923_v25  ;;  %v943_v58 = vand.u32 2147483648, %v931_v11  ;;  %v789_v25 = vld [vmem:[#allocation2 + $0x60] sm:$0x30] }
 0x197   :  { %v914_v62 = vsub.f32 1.0, %v913_v21 }
 0x198   :  { %v896_v41 = vmul.f32 %v3565_v35, %v895_v44 }
 0x199   :  { %v915_v24 = vmul.f32 %v3567_v39, %v914_v62 }
 0x19a   :  { %v3569_v15 = vpop.eup %3568  ;;  %v897_v31 = vadd.f32 %v3565_v35, %v896_v41 }
 0x19b   :  { %v916_v55 = vadd.f32 %v3567_v39, %v915_v24  ;;  %v933_v43 = vmul.f32 %v3569_v15, %v931_v11  ;;  %v3571_v44 = vpop.eup %3570  ;;  %vm938_vm1 = vweird.f32 %v3569_v15 }
 0x19c   :  { %v901_v21 = vsel %vm900_vm13, %v3565_v35, %v897_v31  ;;  %vm939_vm3 = vmor %vm937_vm2, %vm938_vm1 }
 0x19d   :  { %v906_v19 = vsel %vm903_vm15, %v905_v29, %v901_v21  ;;  %v920_v12 = vsel %vm919_vm14, %v3567_v39, %v916_v55  ;;  %v934_v62 = vsub.f32 1.0, %v933_v43  ;;  %v941_v39 = vand.u32 2147483647, %v931_v11 }
 0x19e   :  { %v925_v14 = vsel %vm922_vm0, %v924_v34, %v920_v12  ;;  %v951_v53 = vmul.f32 %v3571_v44, %v906_v19  ;;  %v944_v29 = vor.u32 1.1754944e-38, %v943_v58  ;;  %v792_v44 = vld [vmem:[#allocation2 + $0x28] sm:$0x30] }
 0x19f   :  { %v950_v41 = vmul.f32 %v948_v38, %v925_v14  ;;  %v935_v1 = vmul.f32 %v3569_v15, %v934_v62  ;;  %vm942_vm4 = vcmp.eq.f32.partialorder %v941_v39, 8.507059e+37 }
 0x1a1   :  { %v5341_v28 = vadd.f32 %v951_v53, %v950_v41  ;;  %v936_v20 = vadd.f32 %v3569_v15, %v935_v1 }
 0x1a3   :  { %3572 = vtanh.f32 %v5341_v28  ;;  %v940_v14 = vsel %vm939_vm3, %v3569_v15, %v936_v20 }
 0x1a4   :  { %v945_v34 = vsel %vm942_vm4, %v944_v29, %v940_v14  ;;  %v7306_v14 = vld [vmem:[#allocation30_spill] sm:$0xff] }
 0x1a9   :  { %v3573_v55 = vpop.eup %3572 }
 0x1aa   :  { %v954_v38 = vmul.f32 %v3573_v55, %v945_v34 }
 0x1ab   :  { %v975_v42 = vpop.f32.mrf.mxu0  ;;  %v995_v24 = vpop.f32.mrf.mxu1 }
 0x1ac   :  { %v1042_v31 = vrot.slane %v975_v42, 4  ;;  %v1043_v35 = vrot.slane %v995_v24, 4  ;;  %v1129_v41 = vrot.slane %v954_v38, 2 }
 0x1ae   :  { %v1050_v22 = vadd.f32 %v1042_v31, %v789_v25  ;;  %v1051_v12 = vadd.f32 %v1043_v35, %v790_v32  ;;  %1147 = vmatmul.f32.vlgmr.msrb.gmra.mxu0 %v1129_v41  ;;  %1167 = vmatmul.f32.vlgmr.msrb.gmra.mxu1 %v1129_v41  ;;  %v7303_v31 = vld [vmem:[#allocation27_spill] sm:$0xff]  ;;  %v7304_v25 = vld [vmem:[#allocation17_spill] sm:$0xff] }
 0x1af   :  { %1187 = vmatmul.f32.vlgmr.msrb.gmra.mxu2 %v1129_v41  ;;  %1207 = vmatmul.f32.vlgmr.msra.gmra.mxu3 %v1129_v41  ;;  %v7305_v32 = vld [vmem:[#allocation21_spill] sm:$0xff] }
 0x1b0   :  { %v3466_v19 = vmul.f32 -1.442695, %v1050_v22  ;;  %v3467_v53 = vmul.f32 -1.442695, %v1051_v12  ;;  %1469 = vmatpush.msrb.mxu0 %v4939_v27  ;;  %1489 = vmatpush.msrb.mxu1 %v4942_v3 }
 0x1b1   :  { %1509 = vmatpush.msrb.mxu2 %v4948_v23  ;;  %1529 = vmatpush.msra.mxu3 %v4951_v33  ;;  %v791_v23 = vld [vmem:[#allocation2 + $0x78] sm:$0x30] }
 0x1b2   :  { %3574 = vpow2.f32 %v3466_v19  ;;  %v1035_v43 = vpop.f32.mrf.mxu3  ;;  %v1015_v24 = vpop.f32.mrf.mxu2  ;;  %1470 = vmatpush.msrb.mxu0 %v4955_v36  ;;  %1490 = vmatpush.msrb.mxu1 %v4958_v37  ;;  %v7307_v19 = vld [vmem:[#allocation31_spill] sm:$0xff] }
 0x1b3   :  { %3576 = vpow2.f32 %v3467_v53  ;;  %v1045_v21 = vrot.slane %v1035_v43, 4  ;;  %1510 = vmatpush.msrb.mxu2 %v4962_v40  ;;  %1530 = vmatpush.msra.mxu3 %v4965_v61  ;;  %v1044_v27 = vrot.slane %v1015_v24, 4  ;;  %v1113_v53 = vrot.slane %v5113_v16, 2  ;;  %v7308_v43 = vld [vmem:[#allocation19_spill] sm:$0xff]  ;;  %v7316_v24 = vld [vmem:[#allocation41_spill] sm:$0xff] }
 0x1b4   :  { %1471 = vmatpush.msrb.mxu0 %v4968_v46  ;;  %1491 = vmatpush.msrb.mxu1 %v4971_v47 }
 0x1b5   :  { %v1053_v62 = vadd.f32 %v1045_v21, %v792_v44  ;;  %1511 = vmatpush.msrb.mxu2 %v4974_v49  ;;  %1531 = vmatpush.msra.mxu3 %v4977_v50  ;;  %v1052_v37 = vadd.f32 %v1044_v27, %v791_v23  ;;  %v7297_v49 = vld [vmem:[#allocation18_spill] sm:$0xff]  ;;  %v7318_v23 = vld [vmem:[#allocation28_spill] sm:$0xff] }
 0x1b6   :  { %1472 = vmatpush.msrb.mxu0 %v4980_v51  ;;  %1492 = vmatpush.msrb.mxu1 %v4983_v52  ;;  %v7298_v52 = vld [vmem:[#allocation22_spill] sm:$0xff] }
 0x1b7   :  { %v3468_v1 = vmul.f32 -1.442695, %v1053_v62  ;;  %1512 = vmatpush.msrb.mxu2 %v4988_v54  ;;  %1532 = vmatpush.msra.mxu3 %v4991_v56  ;;  %v7299_v54 = vld [vmem:[#allocation23_spill] sm:$0xff]  ;;  %v7317_v27 = vld [vmem:[#allocation42_spill] sm:$0xff] }
 0x1b8   :  { %v3575_v11 = vpop.eup %3574  ;;  %1473 = vmatpush.msrb.mxu0 %v4996_v63  ;;  %1493 = vmatpush.msrb.mxu1 %v4999_v0 }
 0x1b9   :  { %v3577_v20 = vpop.eup %3576  ;;  %v5344_v15 = vadd.f32 1.0, %v3575_v11  ;;  %3578 = vpow2.f32 %v3468_v1  ;;  %1513 = vmatpush.msrb.mxu2 %v5006_v5  ;;  %1533 = vmatpush.msra.mxu3 %v5009_v6  ;;  %v7300_v5 = vld [vmem:[#allocation16_spill] sm:$0xff]  ;;  %v7310_v11 = vld [vmem:[#allocation34_spill] sm:$0xff] }
 0x1ba   :  { %v5348_v42 = vadd.f32 1.0, %v3577_v20  ;;  %1474 = vmatpush.msrb.mxu0 %v5014_v8  ;;  %1494 = vmatpush.msrb.mxu1 %v5017_v9  ;;  %v7301_v6 = vld [vmem:[#allocation20_spill] sm:$0xff]  ;;  %v7311_v20 = vld [vmem:[#allocation35_spill] sm:$0xff] }
 0x1bb   :  { %3580 = vrcp.f32 %v5344_v15  ;;  %1514 = vmatpush.msrb.mxu2 %v5022_v13  ;;  %1534 = vmatpush.msra.mxu3 %v7297_v49  ;;  %v1069_v51 = vand.u32 2147483648, %v5344_v15  ;;  %v1067_v0 = vand.u32 2147483647, %v5344_v15  ;;  %v7302_v13 = vld [vmem:[#allocation26_spill] sm:$0xff]  ;;  %vm1063_vm7 = vweird.f32 %v5344_v15  ;;  %v7323_v49 = vld [vmem:[#allocation36_spill] sm:$0xff] }
 0x1bc   :  { %3582 = vrcp.f32 %v5348_v42  ;;  %1475 = vmatpush.msrb.mxu0 %v7298_v52  ;;  %1495 = vmatpush.msrb.mxu1 %v7299_v54  ;;  %v1088_v56 = vand.u32 2147483648, %v5348_v42  ;;  %v1086_v9 = vand.u32 2147483647, %v5348_v42  ;;  %vm1082_vm8 = vweird.f32 %v5348_v42  ;;  %v7326_v54 = vld [vmem:[#allocation40_spill] sm:$0xff] }
 0x1bd   :  { %1515 = vmatpush.msrb.mxu2 %v7300_v5  ;;  %1535 = vmatpush.msra.mxu3 %v7301_v6  ;;  %v1070_v39 = vor.u32 1.1754944e-38, %v1069_v51  ;;  %vm1068_vm11 = vcmp.eq.f32.partialorder %v1067_v0, 8.507059e+37  ;;  %v7329_v0 = vld [vmem:[#allocation54_spill] sm:$0xff]  ;;  %v7334_v5 = vld [vmem:[#allocation48_spill] sm:$0xff]  ;;  %v7335_v6 = vld [vmem:[#allocation47_spill] sm:$0xff] }
 0x1be   :  { %1476 = vmatpush.msrb.mxu0 %v7302_v13  ;;  %1496 = vmatpush.msrb.mxu1 %v7303_v31  ;;  %v1089_v29 = vor.u32 1.1754944e-38, %v1088_v56  ;;  %vm1087_vm12 = vcmp.eq.f32.partialorder %v1086_v9, 8.507059e+37  ;;  %v7327_v56 = vld [vmem:[#allocation39_spill] sm:$0xff]  ;;  %v7337_v9 = vld [vmem:[#allocation62_spill] sm:$0xff]  ;;  %v7338_v13 = vld [vmem:[#allocation52_spill] sm:$0xff] }
 0x1bf   :  { %v3579_v3 = vpop.eup %3578  ;;  %1516 = vmatpush.msrb.mxu2 %v7304_v25  ;;  %1536 = vmatpush.msra.mxu3 %v7305_v32  ;;  %v7339_v31 = vld [vmem:[#allocation51_spill] sm:$0xff]  ;;  %v7342_v25 = vld [vmem:[#allocation56_spill] sm:$0xff] }
 0x1c0   :  { %v5364_v33 = vadd.f32 1.0, %v3579_v3  ;;  %1477 = vmatpush.msrb.mxu0 %v7306_v14  ;;  %1497 = vmatpush.msrb.mxu1 %v7307_v19  ;;  %v7343_v32 = vld [vmem:[#allocation55_spill] sm:$0xff]  ;;  %v7348_v19 = vld [vmem:[#allocation73_spill] sm:$0xff] }
 0x1c1   :  { %v3581_v36 = vpop.eup %3580  ;;  %1517 = vmatpush.msrb.mxu2 %v7308_v43  ;;  %1537 = vmatpush.msra.mxu3 %v5084_v7  ;;  %v7309_v7 = vld [vmem:[#allocation25_spill] sm:$0xff]  ;;  %v7347_v14 = vld [vmem:[#allocation59_spill] sm:$0xff]  ;;  %v7352_v43 = vld [vmem:[#allocation68_spill] sm:$0xff] }
 0x1c2   :  { %v3583_v40 = vpop.eup %3582  ;;  %v1059_v61 = vmul.f32 %v3581_v36, %v5344_v15  ;;  %3584 = vrcp.f32 %v5364_v33  ;;  %vm1064_vm5 = vweird.f32 %v3581_v36  ;;  %1478 = vmatpush.msrb.mxu0 %v5088_v60  ;;  %1498 = vmatpush.msrb.mxu1 %v5091_v57  ;;  %v7312_v57 = vld [vmem:[#allocation37_spill] sm:$0xff]  ;;  %v7313_v15 = vld [vmem:[#allocation38_spill] sm:$0xff]  ;;  %vm1102_vm14 = vweird.f32 %v5364_v33 }
 0x1c3   :  { %v1078_v46 = vmul.f32 %v3583_v40, %v5348_v42  ;;  %3586 = vtanh.f32 %v1052_v37  ;;  %vm1083_vm6 = vweird.f32 %v3583_v40  ;;  %vm1065_vm9 = vmor %vm1063_vm7, %vm1064_vm5  ;;  %1518 = vmatpush.msrb.mxu2 %v5095_v17  ;;  %1538 = vmatpush.msra.mxu3 %v5098_v10  ;;  %v7314_v10 = vld [vmem:[#allocation24_spill] sm:$0xff]  ;;  %v7315_v42 = vld [vmem:[#allocation29_spill] sm:$0xff]  ;;  %v1106_v3 = vand.u32 2147483647, %v5364_v33 }
 0x1c4   :  { %v1060_v47 = vsub.f32 1.0, %v1059_v61  ;;  %vm1084_vm10 = vmor %vm1082_vm8, %vm1083_vm6  ;;  %1479 = vmatpush.msrb.mxu0 %v5101_v59  ;;  %1499 = vmatpush.msrb.mxu1 %v7309_v7  ;;  %v1108_v59 = vand.u32 2147483648, %v5364_v33  ;;  %v7320_v37 = vld [vmem:[#allocation45_spill] sm:$0xff]  ;;  %v7321_v61 = vld [vmem:[#allocation46_spill] sm:$0xff] }
 0x1c5   :  { %v1079_v50 = vsub.f32 1.0, %v1078_v46  ;;  %1519 = vmatpush.msrb.mxu2 %v7310_v11  ;;  %1539 = vmatpush.msra.mxu3 %v7311_v20  ;;  %vm1107_vm0 = vcmp.eq.f32.partialorder %v1106_v3, 8.507059e+37  ;;  %v5489_v7 = vld [vmem:[#allocation8 + $0x2e8] sm:$0xff]  ;;  %v5510_v3 = vld [vmem:[#allocation8 + $0x220] sm:$0xff] }
 0x1c6   :  { %v1061_v63 = vmul.f32 %v3581_v36, %v1060_v47  ;;  %1480 = vmatpush.msrb.mxu0 %v7312_v57  ;;  %1500 = vmatpush.msrb.mxu1 %v7313_v15  ;;  %v1109_v46 = vor.u32 1.1754944e-38, %v1108_v59  ;;  %v7322_v47 = vld [vmem:[#allocation32_spill] sm:$0xff]  ;;  %v7358_v20 = vld [vmem:[#allocation75_spill] sm:$0xff] }
 0x1c7   :  { %v1080_v8 = vmul.f32 %v3583_v40, %v1079_v50  ;;  %1520 = vmatpush.msrb.mxu2 %v7314_v10  ;;  %1540 = vmatpush.msra.mxu3 %v7315_v42  ;;  %v7325_v50 = vld [vmem:[#allocation50_spill] sm:$0xff]  ;;  %v7357_v11 = vld [vmem:[#allocation76_spill] sm:$0xff]  ;;  %v7360_v10 = vld [vmem:[#allocation77_spill] sm:$0xff] }
 0x1c8   :  { %v5389_v35 = vpop.eup %3584  ;;  %v1062_v58 = vadd.f32 %v3581_v36, %v1061_v63  ;;  %1481 = vmatpush.msrb.mxu0 %v7316_v24  ;;  %1501 = vmatpush.msrb.mxu1 %v7317_v27  ;;  %v7328_v63 = vld [vmem:[#allocation53_spill] sm:$0xff]  ;;  %v5494_v57 = vld [vmem:[#allocation8 + $0x2a0] sm:$0xff]  ;;  %v5497_v15 = vld [vmem:[#allocation8 + $0x2a8] sm:$0xff] }
 0x1c9   :  { %v1081_v22 = vadd.f32 %v3583_v40, %v1080_v8  ;;  %v1098_v12 = vmul.f32 %v5389_v35, %v5364_v33  ;;  %v3587_v34 = vpop.eup %3586  ;;  %vm1103_vm13 = vweird.f32 %v5389_v35  ;;  %1521 = vmatpush.msrb.mxu2 %v7318_v23  ;;  %v7324_v33 = vld [vmem:[#allocation49_spill] sm:$0xff]  ;;  %v5502_v42 = vld [vmem:[#allocation8 + $0x260] sm:$0xff]  ;;  %v5505_v59 = vld [vmem:[#allocation8 + $0x268] sm:$0xff] }
 0x1ca   :  { %v1066_v55 = vsel %vm1065_vm9, %v3581_v36, %v1062_v58  ;;  %v7319_v36 = vld [vmem:[#allocation33_spill] sm:$0xff]  ;;  %vm1104_vm15 = vmor %vm1102_vm14, %vm1103_vm13  ;;  %1482 = vmatpush.msrb.mxu0 %v7320_v37  ;;  %1502 = vmatpush.msrb.mxu1 %v5154_v30  ;;  %v7341_v58 = vld [vmem:[#allocation66_spill] sm:$0xff] }
 0x1cb   :  { %v1071_v21 = vsel %vm1068_vm11, %v1070_v39, %v1066_v55  ;;  %v1085_v38 = vsel %vm1084_vm10, %v3583_v40, %v1081_v22  ;;  %v1099_v44 = vsub.f32 1.0, %v1098_v12  ;;  %1541 = vmatpush.msra.mxu3 %v7319_v36  ;;  %1522 = vmatpush.msrb.mxu2 %v5160_v18  ;;  %v7336_v8 = vld [vmem:[#allocation61_spill] sm:$0xff]  ;;  %v7345_v22 = vld [vmem:[#allocation70_spill] sm:$0xff]  ;;  %v7346_v12 = vld [vmem:[#allocation60_spill] sm:$0xff] }
 0x1cc   :  { %v1090_v62 = vsel %vm1087_vm12, %v1089_v29, %v1085_v38  ;;  %v1116_v16 = vmul.f32 %v3587_v34, %v1071_v21  ;;  %1483 = vmatpush.msrb.mxu0 %v7322_v47  ;;  %1503 = vmatpush.msrb.mxu1 %v7323_v49  ;;  %v7344_v39 = vld [vmem:[#allocation69_spill] sm:$0xff]  ;;  %v7350_v29 = vld [vmem:[#allocation64_spill] sm:$0xff]  ;;  %v7351_v55 = vld [vmem:[#allocation63_spill] sm:$0xff] }
 0x1cd   :  { %v1115_v41 = vmul.f32 %v1113_v53, %v1090_v62  ;;  %v1100_v1 = vmul.f32 %v5389_v35, %v1099_v44  ;;  %1542 = vmatpush.msra.mxu3 %v7321_v61  ;;  %1523 = vmatpush.msrb.mxu2 %v7324_v33  ;;  %v7349_v53 = vld [vmem:[#allocation74_spill] sm:$0xff]  ;;  %v5473_v21 = vld [vmem:[#allocation8 + $0x368] sm:$0xff]  ;;  %v7362_v27 = vld [vmem:[#allocation81_spill] sm:$0xff] }
 0x1ce   :  { %1484 = vmatpush.msrb.mxu0 %v5178_v48  ;;  %1504 = vmatpush.msrb.mxu1 %v5181_v45  ;;  %v7330_v48 = vld [vmem:[#allocation44_spill] sm:$0xff]  ;;  %v7331_v45 = vld [vmem:[#allocation43_spill] sm:$0xff]  ;;  %v7363_v36 = vld [vmem:[#allocation82_spill] sm:$0xff] }
 0x1cf   :  { %v5413_v60 = vadd.f32 %v1116_v16, %v1115_v41  ;;  %v1101_v17 = vadd.f32 %v5389_v35, %v1100_v1  ;;  %1543 = vmatpush.msra.mxu3 %v7325_v50  ;;  %1524 = vmatpush.msrb.mxu2 %v5184_v4  ;;  %v7332_v4 = vld [vmem:[#allocation57_spill] sm:$0xff]  ;;  %v5470_v34 = vld [vmem:[#allocation8 + $0x360] sm:$0xff]  ;;  %v5481_v62 = vld [vmem:[#allocation8 + $0x328] sm:$0xff] }
 0x1d0   :  { %v7353_v38 = vld [vmem:[#allocation67_spill] sm:$0xff]  ;;  %v7355_v16 = vld [vmem:[#allocation72_spill] sm:$0xff]  ;;  %v7366_v47 = vld [vmem:[#allocation85_spill] sm:$0xff] }
 0x1d1   :  { %3588 = vtanh.f32 %v5413_v60  ;;  %v1105_v40 = vsel %vm1104_vm15, %v5389_v35, %v1101_v17  ;;  %1544 = vmatpush.msra.mxu3 %v5187_v2  ;;  %v7333_v2 = vld [vmem:[#allocation58_spill] sm:$0xff]  ;;  %v7340_v35 = vld [vmem:[#allocation65_spill] sm:$0xff]  ;;  %v7356_v41 = vld [vmem:[#allocation71_spill] sm:$0xff] }
 0x1d2   :  { %v1110_v52 = vsel %vm1107_vm0, %v1109_v46, %v1105_v40  ;;  %v5478_v44 = vld [vmem:[#allocation8 + $0x320] sm:$0xff]  ;;  %v7361_v24 = vld [vmem:[#allocation80_spill] sm:$0xff] }
 0x1d3   :  { %v5486_v1 = vld [vmem:[#allocation8 + $0x2e0] sm:$0xff]  ;;  %v5513_v23 = vld [vmem:[#allocation8 + $0x228] sm:$0xff]  ;;  %v5532_v50 = vld [vmem:[#allocation8 + $0x1b0] sm:$0xff] }
 0x1d4   :  { %v7359_v17 = vld [vmem:[#allocation78_spill] sm:$0xff]  ;;  %v7364_v37 = vld [vmem:[#allocation83_spill] sm:$0xff]  ;;  %v7365_v46 = vld [vmem:[#allocation84_spill] sm:$0xff] }
 0x1d5   :  { %v5518_v40 = vld [vmem:[#allocation8 + $0x1e0] sm:$0xff]  ;;  %v5521_v61 = vld [vmem:[#allocation8 + $0x1e8] sm:$0xff] }
 0x1d6   :  { %v5526_v49 = vld [vmem:[#allocation8 + $0x1a0] sm:$0xff]  ;;  %v5529_v33 = vld [vmem:[#allocation8 + $0x1a8] sm:$0xff] }
 0x1d7   :  { %v3589_v51 = vpop.eup %3588 }
 0x1d8   :  { %v1119_v30 = vmul.f32 %v3589_v51, %v1110_v52  ;;  %v7367_v51 = vld [vmem:[#allocation86_spill] sm:$0xff] }
 0x1d9   :  { %v5536_v52 = vld [vmem:[#allocation8 + $0x160] sm:$0xff] }
 0x1da   :  { %v1294_v18 = vrot.slane %v1119_v30, 4  ;;  %v5539_v30 = vld [vmem:[#allocation8 + $0x168] sm:$0xff] }
 0x1dc   :  { %1312 = vmatmul.f32.vlgmr.msra.gmra.mxu0 %v1294_v18  ;;  %1332 = vmatmul.f32.vlgmr.msra.gmra.mxu1 %v1294_v18 }
 0x1dd   :  { %1352 = vmatmul.f32.vlgmr.msra.gmra.mxu2 %v1294_v18  ;;  %1372 = vmatmul.f32.vlgmr.msrb.gmra.mxu3 %v1294_v18  ;;  %v5542_v18 = vld [vmem:[#allocation8 + $0x170] sm:$0xff] }
 0x1de   :  { %1634 = vmatpush.msra.mxu0 %v7326_v54  ;;  %1654 = vmatpush.msra.mxu1 %v7327_v56  ;;  %v5545_v54 = vld [vmem:[#allocation8 + $0x178] sm:$0xff] }
 0x1df   :  { %1674 = vmatpush.msra.mxu2 %v7328_v63  ;;  %1694 = vmatpush.msrb.mxu3 %v7329_v0 }
 0x1e0   :  { %1635 = vmatpush.msra.mxu0 %v7330_v48  ;;  %1655 = vmatpush.msra.mxu1 %v7331_v45  ;;  %v1120_v45 = vld [vmem:[#allocation2 + $0x30] sm:$0x30] }
 0x1e1   :  { %1675 = vmatpush.msra.mxu2 %v7332_v4  ;;  %1695 = vmatpush.msrb.mxu3 %v7333_v2  ;;  %v1121_v4 = vld [vmem:[#allocation2] sm:$0x30] }
 0x1e2   :  { %1636 = vmatpush.msra.mxu0 %v7334_v5  ;;  %1656 = vmatpush.msra.mxu1 %v7335_v6 }
 0x1e3   :  { %1676 = vmatpush.msra.mxu2 %v7336_v8  ;;  %1696 = vmatpush.msrb.mxu3 %v7337_v9 }
 0x1e4   :  { %1637 = vmatpush.msra.mxu0 %v7338_v13  ;;  %1657 = vmatpush.msra.mxu1 %v7339_v31  ;;  %v1123_v31 = vld [vmem:[#allocation2 + $0x18] sm:$0x30] }
 0x1e5   :  { %1677 = vmatpush.msra.mxu2 %v7340_v35  ;;  %1697 = vmatpush.msrb.mxu3 %v7341_v58 }
 0x1e6   :  { %1638 = vmatpush.msra.mxu0 %v7342_v25  ;;  %1658 = vmatpush.msra.mxu1 %v7343_v32 }
 0x1e7   :  { %1678 = vmatpush.msra.mxu2 %v7344_v39  ;;  %1698 = vmatpush.msrb.mxu3 %v7345_v22 }
 0x1e8   :  { %1639 = vmatpush.msra.mxu0 %v7346_v12  ;;  %1659 = vmatpush.msra.mxu1 %v7347_v14 }
 0x1e9   :  { %1679 = vmatpush.msra.mxu2 %v5256_v26  ;;  %1699 = vmatpush.msrb.mxu3 %v7348_v19  ;;  %v7354_v26 = vld [vmem:[#allocation79_spill] sm:$0xff] }
 0x1ea   :  { %1640 = vmatpush.msra.mxu0 %v7349_v53  ;;  %1660 = vmatpush.msra.mxu1 %v7350_v29  ;;  %v1122_v53 = vld [vmem:[#allocation2 + $0x58] sm:$0x30] }
 0x1eb   :  { %1680 = vmatpush.msra.mxu2 %v7351_v55  ;;  %1700 = vmatpush.msrb.mxu3 %v7352_v43 }
 0x1ec   :  { %1641 = vmatpush.msra.mxu0 %v5470_v34  ;;  %1661 = vmatpush.msra.mxu1 %v5473_v21 }
 0x1ed   :  { %1681 = vmatpush.msra.mxu2 %v7353_v38  ;;  %1701 = vmatpush.msrb.mxu3 %v7354_v26 }
 0x1ee   :  { %1642 = vmatpush.msra.mxu0 %v5478_v44  ;;  %1662 = vmatpush.msra.mxu1 %v5481_v62 }
 0x1ef   :  { %1682 = vmatpush.msra.mxu2 %v7355_v16  ;;  %1702 = vmatpush.msrb.mxu3 %v7356_v41 }
 0x1f0   :  { %1643 = vmatpush.msra.mxu0 %v5486_v1  ;;  %1663 = vmatpush.msra.mxu1 %v5489_v7 }
 0x1f1   :  { %1683 = vmatpush.msra.mxu2 %v7357_v11  ;;  %1703 = vmatpush.msrb.mxu3 %v7358_v20 }
 0x1f2   :  { %1644 = vmatpush.msra.mxu0 %v5494_v57  ;;  %1664 = vmatpush.msra.mxu1 %v5497_v15 }
 0x1f3   :  { %1684 = vmatpush.msra.mxu2 %v7359_v17  ;;  %1704 = vmatpush.msrb.mxu3 %v7360_v10 }
 0x1f4   :  { %1645 = vmatpush.msra.mxu0 %v5502_v42  ;;  %1665 = vmatpush.msra.mxu1 %v5505_v59 }
 0x1f5   :  { %1685 = vmatpush.msra.mxu2 %v7361_v24  ;;  %1705 = vmatpush.msrb.mxu3 %v7362_v27 }
 0x1f6   :  { %1646 = vmatpush.msra.mxu0 %v5510_v3  ;;  %1666 = vmatpush.msra.mxu1 %v5513_v23 }
 0x1f7   :  { %1686 = vmatpush.msra.mxu2 %v7363_v36  ;;  %1706 = vmatpush.msrb.mxu3 %v7364_v37 }
 0x1f8   :  { %1647 = vmatpush.msra.mxu0 %v5518_v40  ;;  %1667 = vmatpush.msra.mxu1 %v5521_v61 }
 0x1f9   :  { %1687 = vmatpush.msra.mxu2 %v7365_v46  ;;  %1707 = vmatpush.msrb.mxu3 %v7366_v47 }
 0x1fa   :  { %1648 = vmatpush.msra.mxu0 %v5526_v49  ;;  %1668 = vmatpush.msra.mxu1 %v5529_v33 }
 0x1fb   :  { %1688 = vmatpush.msra.mxu2 %v5532_v50  ;;  %1708 = vmatpush.msrb.mxu3 %v7367_v51 }
 0x1fc   :  { %1649 = vmatpush.msra.mxu0 %v5536_v52  ;;  %1669 = vmatpush.msra.mxu1 %v5539_v30 }
 0x1fd   :  { %1689 = vmatpush.msra.mxu2 %v5542_v18  ;;  %1709 = vmatpush.msrb.mxu3 %v5545_v54 }
 0x22b   :  { %v1148_v56 = vpop.f32.mrf.mxu0  ;;  %v1168_v63 = vpop.f32.mrf.mxu1 }
 0x22c   :  { %v1215_v0 = vrot.slane %v1148_v56, 4  ;;  %v1216_v48 = vrot.slane %v1168_v63, 4  ;;  %v1286_v63 = vrot.slane %v5341_v28, 6 }
 0x22e   :  { %v1223_v2 = vadd.f32 %v1215_v0, %v1120_v45  ;;  %v1224_v5 = vadd.f32 %v1216_v48, %v1121_v4 }
 0x230   :  { %v3469_v6 = vmul.f32 -1.442695, %v1223_v2  ;;  %v3470_v8 = vmul.f32 -1.442695, %v1224_v5 }
 0x232   :  { %3590 = vpow2.f32 %v3469_v6  ;;  %v1208_v9 = vpop.f32.mrf.mxu3  ;;  %v1188_v12 = vpop.f32.mrf.mxu2 }
 0x233   :  { %3592 = vpow2.f32 %v3470_v8  ;;  %v1218_v13 = vrot.slane %v1208_v9, 4  ;;  %v1217_v14 = vrot.slane %v1188_v12, 4  ;;  %v1125_v12 = vld [vmem:[#allocation2 + $0x70] sm:$0xc] }
 0x235   :  { %v1226_v35 = vadd.f32 %v1218_v13, %v1123_v31  ;;  %v1225_v43 = vadd.f32 %v1217_v14, %v1122_v53 }
 0x237   :  { %v3471_v58 = vmul.f32 -1.442695, %v1226_v35 }
 0x238   :  { %v3591_v25 = vpop.eup %3590 }
 0x239   :  { %v3593_v32 = vpop.eup %3592  ;;  %v1230_v39 = vadd.f32 1.0, %v3591_v25  ;;  %3594 = vpow2.f32 %v3471_v58 }
 0x23a   :  { %v1249_v22 = vadd.f32 1.0, %v3593_v32 }
 0x23b   :  { %3596 = vrcp.f32 %v1230_v39  ;;  %v1242_v20 = vand.u32 2147483648, %v1230_v39  ;;  %v1240_v24 = vand.u32 2147483647, %v1230_v39  ;;  %vm1236_vm3 = vweird.f32 %v1230_v39 }
 0x23c   :  { %3598 = vrcp.f32 %v1249_v22  ;;  %v1261_v17 = vand.u32 2147483648, %v1249_v22  ;;  %v1259_v36 = vand.u32 2147483647, %v1249_v22  ;;  %vm1255_vm4 = vweird.f32 %v1249_v22 }
 0x23d   :  { %v1243_v47 = vor.u32 1.1754944e-38, %v1242_v20  ;;  %vm1241_vm7 = vcmp.eq.f32.partialorder %v1240_v24, 8.507059e+37 }
 0x23e   :  { %v1262_v0 = vor.u32 1.1754944e-38, %v1261_v17  ;;  %vm1260_vm8 = vcmp.eq.f32.partialorder %v1259_v36, 8.507059e+37 }
 0x23f   :  { %v3595_v19 = vpop.eup %3594 }
 0x240   :  { %v1269_v29 = vadd.f32 1.0, %v3595_v19 }
 0x241   :  { %v3597_v55 = vpop.eup %3596 }
 0x242   :  { %v3599_v38 = vpop.eup %3598  ;;  %v1232_v26 = vmul.f32 %v3597_v55, %v1230_v39  ;;  %3600 = vrcp.f32 %v1269_v29  ;;  %vm1237_vm1 = vweird.f32 %v3597_v55  ;;  %v1281_v39 = vand.u32 2147483648, %v1269_v29 }
 0x243   :  { %v1251_v16 = vmul.f32 %v3599_v38, %v1249_v22  ;;  %3602 = vtanh.f32 %v1225_v43  ;;  %vm1256_vm2 = vweird.f32 %v3599_v38  ;;  %vm1238_vm5 = vmor %vm1236_vm3, %vm1237_vm1  ;;  %v1124_v22 = vld [vmem:[#allocation2 + $0x60] sm:$0xc]  ;;  %vm1275_vm10 = vweird.f32 %v1269_v29 }
 0x244   :  { %v1233_v41 = vsub.f32 1.0, %v1232_v26  ;;  %vm1257_vm6 = vmor %vm1255_vm4, %vm1256_vm2  ;;  %v1279_v14 = vand.u32 2147483647, %v1269_v29  ;;  %v1282_v26 = vor.u32 1.1754944e-38, %v1281_v39 }
 0x245   :  { %v1252_v11 = vsub.f32 1.0, %v1251_v16 }
 0x246   :  { %v1234_v10 = vmul.f32 %v3597_v55, %v1233_v41  ;;  %vm1280_vm12 = vcmp.eq.f32.partialorder %v1279_v14, 8.507059e+37 }
 0x247   :  { %v1253_v27 = vmul.f32 %v3599_v38, %v1252_v11 }
 0x248   :  { %v3601_v37 = vpop.eup %3600  ;;  %v1235_v46 = vadd.f32 %v3597_v55, %v1234_v10  ;;  %v1127_v10 = vld [vmem:[#allocation2 + $0x28] sm:$0xc] }
 0x249   :  { %v1254_v51 = vadd.f32 %v3599_v38, %v1253_v27  ;;  %v1271_v56 = vmul.f32 %v3601_v37, %v1269_v29  ;;  %v3603_v45 = vpop.eup %3602  ;;  %vm1276_vm9 = vweird.f32 %v3601_v37 }
 0x24a   :  { %v1239_v48 = vsel %vm1238_vm5, %v3597_v55, %v1235_v46  ;;  %vm1277_vm11 = vmor %vm1275_vm10, %vm1276_vm9 }
 0x24b   :  { %v1244_v4 = vsel %vm1241_vm7, %v1243_v47, %v1239_v48  ;;  %v1258_v2 = vsel %vm1257_vm6, %v3599_v38, %v1254_v51  ;;  %v1272_v5 = vsub.f32 1.0, %v1271_v56  ;;  %v5554_v47 = vld [vmem:[#allocation8 + $0x500] sm:$0xff]  ;;  %v5557_v51 = vld [vmem:[#allocation8 + $0x508] sm:$0xff]  ;;  %v5565_v48 = vld [vmem:[#allocation8 + $0x518] sm:$0xff] }
 0x24c   :  { %v1263_v6 = vsel %vm1260_vm8, %v1262_v0, %v1258_v2  ;;  %v1289_v8 = vmul.f32 %v3603_v45, %v1244_v4  ;;  %v5562_v0 = vld [vmem:[#allocation8 + $0x510] sm:$0xff]  ;;  %v5569_v45 = vld [vmem:[#allocation8 + $0x4c0] sm:$0xff]  ;;  %v5572_v4 = vld [vmem:[#allocation8 + $0x4c8] sm:$0xff] }
 0x24d   :  { %v1288_v9 = vmul.f32 %v1286_v63, %v1263_v6  ;;  %v1273_v13 = vmul.f32 %v3601_v37, %v1272_v5  ;;  %v5576_v2 = vld [vmem:[#allocation8 + $0x4d0] sm:$0xff]  ;;  %v5579_v5 = vld [vmem:[#allocation8 + $0x4d8] sm:$0xff] }
 0x24f   :  { %v5549_v31 = vadd.f32 %v1289_v8, %v1288_v9  ;;  %v1274_v25 = vadd.f32 %v3601_v37, %v1273_v13  ;;  %v5582_v8 = vld [vmem:[#allocation8 + $0x480] sm:$0xff]  ;;  %v5585_v9 = vld [vmem:[#allocation8 + $0x488] sm:$0xff]  ;;  %v5588_v13 = vld [vmem:[#allocation8 + $0x490] sm:$0xff] }
 0x251   :  { %3604 = vtanh.f32 %v5549_v31  ;;  %v1278_v55 = vsel %vm1277_vm11, %v3601_v37, %v1274_v25  ;;  %v5594_v25 = vld [vmem:[#allocation8 + $0x440] sm:$0xff] }
 0x252   :  { %v1283_v11 = vsel %vm1280_vm12, %v1282_v26, %v1278_v55  ;;  %v5613_v55 = vld [vmem:[#allocation8 + $0x408] sm:$0xff]  ;;  %v5621_v26 = vld [vmem:[#allocation8 + $0x410] sm:$0xff] }
 0x257   :  { %v3605_v16 = vpop.eup %3604 }
 0x258   :  { %v1292_v17 = vmul.f32 %v3605_v16, %v1283_v11  ;;  %v5624_v16 = vld [vmem:[#allocation8 + $0x418] sm:$0xff]  ;;  %v5629_v11 = vld [vmem:[#allocation8 + $0x3c0] sm:$0xff] }
 0x259   :  { %v1313_v35 = vpop.f32.mrf.mxu0  ;;  %v1333_v58 = vpop.f32.mrf.mxu1  ;;  %7368 = vst [vmem:[#allocation18_spill] sm:$0xff] %v5629_v11 }
 0x25a   :  { %v1380_v28 = vrot.slane %v1313_v35, 6  ;;  %v1381_v32 = vrot.slane %v1333_v58, 6  ;;  %v1467_v27 = vrot.slane %v1292_v17, 4  ;;  %v5591_v35 = vld [vmem:[#allocation8 + $0x498] sm:$0xff] }
 0x25c   :  { %v1388_v19 = vadd.f32 %v1380_v28, %v1124_v22  ;;  %v1389_v53 = vadd.f32 %v1381_v32, %v1125_v12  ;;  %1485 = vmatmul.f32.vlgmr.msrb.gmra.mxu0 %v1467_v27  ;;  %1505 = vmatmul.f32.vlgmr.msrb.gmra.mxu1 %v1467_v27  ;;  %v5597_v28 = vld [vmem:[#allocation8 + $0x448] sm:$0xff]  ;;  %v5602_v22 = vld [vmem:[#allocation8 + $0x450] sm:$0xff]  ;;  %v5605_v12 = vld [vmem:[#allocation8 + $0x458] sm:$0xff] }
 0x25d   :  { %1525 = vmatmul.f32.vlgmr.msrb.gmra.mxu2 %v1467_v27  ;;  %1545 = vmatmul.f32.vlgmr.msra.gmra.mxu3 %v1467_v27  ;;  %v1126_v32 = vld [vmem:[#allocation2 + $0x78] sm:$0xc] }
 0x25e   :  { %v3472_v43 = vmul.f32 -1.442695, %v1388_v19  ;;  %v3473_v38 = vmul.f32 -1.442695, %v1389_v53  ;;  %1795 = vmatpush.msrb.mxu0 %v5554_v47  ;;  %1815 = vmatpush.msrb.mxu1 %v5557_v51  ;;  %v5610_v53 = vld [vmem:[#allocation8 + $0x400] sm:$0xff] }
 0x25f   :  { %1835 = vmatpush.msrb.mxu2 %v5562_v0  ;;  %1855 = vmatpush.msra.mxu3 %v5565_v48 }
 0x260   :  { %3606 = vpow2.f32 %v3472_v43  ;;  %v1373_v41 = vpop.f32.mrf.mxu3  ;;  %v1353_v63 = vpop.f32.mrf.mxu2  ;;  %1796 = vmatpush.msrb.mxu0 %v5569_v45  ;;  %1816 = vmatpush.msrb.mxu1 %v5572_v4 }
 0x261   :  { %3608 = vpow2.f32 %v3473_v38  ;;  %v1383_v20 = vrot.slane %v1373_v41, 6  ;;  %1836 = vmatpush.msrb.mxu2 %v5576_v2  ;;  %1856 = vmatpush.msra.mxu3 %v5579_v5  ;;  %v1382_v6 = vrot.slane %v1353_v63, 6 }
 0x262   :  { %1797 = vmatpush.msrb.mxu0 %v5582_v8  ;;  %1817 = vmatpush.msrb.mxu1 %v5585_v9 }
 0x263   :  { %v1391_v24 = vadd.f32 %v1383_v20, %v1127_v10  ;;  %1837 = vmatpush.msrb.mxu2 %v5588_v13  ;;  %1857 = vmatpush.msra.mxu3 %v5591_v35  ;;  %v1390_v19 = vadd.f32 %v1382_v6, %v1126_v32  ;;  %v5632_v20 = vld [vmem:[#allocation8 + $0x3c8] sm:$0xff]  ;;  %v5635_v10 = vld [vmem:[#allocation8 + $0x3d0] sm:$0xff] }
 0x264   :  { %1798 = vmatpush.msrb.mxu0 %v5594_v25  ;;  %1818 = vmatpush.msrb.mxu1 %v5597_v28  ;;  %7369 = vst [vmem:[#allocation22_spill] sm:$0xff] %v5632_v20  ;;  %v5652_v32 = vld [vmem:[#allocation8 + $0x390] sm:$0xff] }
 0x265   :  { %v3474_v36 = vmul.f32 -1.442695, %v1391_v24  ;;  %1838 = vmatpush.msrb.mxu2 %v5602_v22  ;;  %1858 = vmatpush.msra.mxu3 %v5605_v12  ;;  %7370 = vst [vmem:[#allocation23_spill] sm:$0xff] %v5635_v10  ;;  %v5638_v24 = vld [vmem:[#allocation8 + $0x3d8] sm:$0xff] }
 0x266   :  { %v3607_v29 = vpop.eup %3606  ;;  %1799 = vmatpush.msrb.mxu0 %v5610_v53  ;;  %1819 = vmatpush.msrb.mxu1 %v5613_v55  ;;  %7371 = vst [vmem:[#allocation16_spill] sm:$0xff] %v5638_v24 }
 0x267   :  { %v3609_v37 = vpop.eup %3608  ;;  %v5552_v46 = vadd.f32 1.0, %v3607_v29  ;;  %3610 = vpow2.f32 %v3474_v36  ;;  %1839 = vmatpush.msrb.mxu2 %v5621_v26  ;;  %1859 = vmatpush.msra.mxu3 %v5624_v16  ;;  %v5642_v29 = vld [vmem:[#allocation8 + $0x380] sm:$0xff]  ;;  %7374 = vst [vmem:[#allocation27_spill] sm:$0xff] %v5652_v32 }
 0x268   :  { %v5560_v56 = vadd.f32 1.0, %v3609_v37  ;;  %1800 = vmatpush.msrb.mxu0 %v5629_v11  ;;  %1820 = vmatpush.msrb.mxu1 %v5632_v20  ;;  %7372 = vst [vmem:[#allocation20_spill] sm:$0xff] %v5642_v29  ;;  %v5645_v37 = vld [vmem:[#allocation8 + $0x388] sm:$0xff]  ;;  %v5712_v11 = vld [vmem:[#allocation8 + $0x2c0] sm:$0xff] }
 0x269   :  { %3612 = vrcp.f32 %v5552_v46  ;;  %1840 = vmatpush.msrb.mxu2 %v5635_v10  ;;  %1860 = vmatpush.msra.mxu3 %v5638_v24  ;;  %v1407_v36 = vand.u32 2147483648, %v5552_v46  ;;  %7373 = vst [vmem:[#allocation26_spill] sm:$0xff] %v5645_v37  ;;  %vm1401_vm15 = vweird.f32 %v5552_v46  ;;  %v5687_v24 = vld [vmem:[#allocation8 + $0x300] sm:$0xff]  ;;  %v5703_v10 = vld [vmem:[#allocation8 + $0x310] sm:$0xff] }
 0x26a   :  { %3614 = vrcp.f32 %v5560_v56  ;;  %1801 = vmatpush.msrb.mxu0 %v5642_v29  ;;  %1821 = vmatpush.msrb.mxu1 %v5645_v37  ;;  %v1426_v63 = vand.u32 2147483648, %v5560_v56  ;;  %v5661_v37 = vld [vmem:[#allocation8 + $0x340] sm:$0xff]  ;;  %vm1420_vm0 = vweird.f32 %v5560_v56  ;;  %7382 = vst [vmem:[#allocation25_spill] sm:$0xff] %v5687_v24 }
 0x26b   :  { %1841 = vmatpush.msrb.mxu2 %v5652_v32  ;;  %7376 = vst [vmem:[#allocation21_spill] sm:$0xff] %v5661_v37 }
 0x26c   :  { %1802 = vmatpush.msrb.mxu0 %v5661_v37  ;;  %v1408_v37 = vor.u32 1.1754944e-38, %v1407_v36  ;;  %v1427_v36 = vor.u32 1.1754944e-38, %v1426_v63 }
 0x26d   :  { %v3611_v58 = vpop.eup %3610 }
 0x26e   :  { %v5600_v39 = vadd.f32 1.0, %v3611_v58  ;;  %v1405_v58 = vand.u32 2147483647, %v5552_v46  ;;  %1803 = vmatpush.msrb.mxu0 %v5687_v24  ;;  %v5706_v24 = vld [vmem:[#allocation8 + $0x318] sm:$0xff] }
 0x26f   :  { %v5608_v14 = vpop.eup %3612 }
 0x270   :  { %v5616_v43 = vpop.eup %3614  ;;  %v1397_v38 = vmul.f32 %v5608_v14, %v5552_v46  ;;  %3616 = vrcp.f32 %v5600_v39  ;;  %vm1402_vm13 = vweird.f32 %v5608_v14  ;;  %vm1406_vm3 = vcmp.eq.f32.partialorder %v1405_v58, 8.507059e+37  ;;  %1804 = vmatpush.msrb.mxu0 %v5712_v11 }
 0x271   :  { %v1416_v41 = vmul.f32 %v5616_v43, %v5560_v56  ;;  %3618 = vtanh.f32 %v1390_v19  ;;  %v5655_v19 = vld [vmem:[#allocation8 + $0x398] sm:$0xff]  ;;  %vm1421_vm14 = vweird.f32 %v5616_v43  ;;  %vm5680_vm1 = vmor %vm1401_vm15, %vm1402_vm13  ;;  %vm1440_vm6 = vweird.f32 %v5600_v39 }
 0x272   :  { %v1398_v17 = vsub.f32 1.0, %v1397_v38  ;;  %7375 = vst [vmem:[#allocation17_spill] sm:$0xff] %v5655_v19  ;;  %1861 = vmatpush.msra.mxu3 %v5655_v19  ;;  %v5671_v19 = vld [vmem:[#allocation8 + $0x350] sm:$0xff]  ;;  %vm5696_vm2 = vmor %vm1420_vm0, %vm1421_vm14 }
 0x273   :  { %v1417_v27 = vsub.f32 1.0, %v1416_v41  ;;  %v1424_v41 = vand.u32 2147483647, %v5560_v56  ;;  %7378 = vst [vmem:[#allocation31_spill] sm:$0xff] %v5671_v19  ;;  %1842 = vmatpush.msrb.mxu2 %v5671_v19  ;;  %v5690_v19 = vld [vmem:[#allocation8 + $0x308] sm:$0xff]  ;;  %v1451_v56 = vrot.slane %v5413_v60, 2 }
 0x274   :  { %v1399_v6 = vmul.f32 %v5608_v14, %v1398_v17  ;;  %v5664_v17 = vld [vmem:[#allocation8 + $0x348] sm:$0xff]  ;;  %7383 = vst [vmem:[#allocation34_spill] sm:$0xff] %v5690_v19 }
 0x275   :  { %v1418_v38 = vmul.f32 %v5616_v43, %v1417_v27  ;;  %7377 = vst [vmem:[#allocation30_spill] sm:$0xff] %v5664_v17  ;;  %1822 = vmatpush.msrb.mxu1 %v5664_v17  ;;  %v5674_v27 = vld [vmem:[#allocation8 + $0x358] sm:$0xff]  ;;  %1843 = vmatpush.msrb.mxu2 %v5703_v10  ;;  %vm1425_vm4 = vcmp.eq.f32.partialorder %v1424_v41, 8.507059e+37  ;;  %v5718_v17 = vld [vmem:[#allocation8 + $0x2d0] sm:$0xff] }
 0x276   :  { %v5667_v29 = vpop.eup %3616  ;;  %v1400_v32 = vadd.f32 %v5608_v14, %v1399_v6  ;;  %7379 = vst [vmem:[#allocation19_spill] sm:$0xff] %v5674_v27  ;;  %1862 = vmatpush.msra.mxu3 %v5674_v27  ;;  %v5725_v27 = vld [vmem:[#allocation8 + $0x280] sm:$0xff] }
 0x277   :  { %v1419_v6 = vadd.f32 %v5616_v43, %v1418_v38  ;;  %v1436_v46 = vmul.f32 %v5667_v29, %v5600_v39  ;;  %1823 = vmatpush.msrb.mxu1 %v5690_v19  ;;  %v3619_v60 = vpop.eup %3618  ;;  %1844 = vmatpush.msrb.mxu2 %v5718_v17  ;;  %vm1441_vm5 = vweird.f32 %v5667_v29 }
 0x278   :  { %v1404_v38 = vsel %vm5680_vm1, %v5608_v14, %v1400_v32  ;;  %1863 = vmatpush.msra.mxu3 %v5706_v24  ;;  %v5715_v14 = vld [vmem:[#allocation8 + $0x2c8] sm:$0xff]  ;;  %1805 = vmatpush.msrb.mxu0 %v5725_v27  ;;  %vm5771_vm7 = vmor %vm1440_vm6, %vm1441_vm5 }
 0x279   :  { %v1409_v19 = vsel %vm1406_vm3, %v1408_v37, %v1404_v38  ;;  %v1423_v20 = vsel %vm5696_vm2, %v5616_v43, %v1419_v6  ;;  %v1437_v63 = vsub.f32 1.0, %v1436_v46  ;;  %1824 = vmatpush.msrb.mxu1 %v5715_v14  ;;  %v5721_v37 = vld [vmem:[#allocation8 + $0x2d8] sm:$0xff]  ;;  %v5728_v6 = vld [vmem:[#allocation8 + $0x288] sm:$0xff] }
 0x27a   :  { %v1428_v58 = vsel %vm1425_vm4, %v1427_v36, %v1423_v20  ;;  %v1454_v32 = vmul.f32 %v3619_v60, %v1409_v19  ;;  %1864 = vmatpush.msra.mxu3 %v5721_v37  ;;  %v5731_v20 = vld [vmem:[#allocation8 + $0x290] sm:$0xff]  ;;  %v5734_v19 = vld [vmem:[#allocation8 + $0x298] sm:$0xff]  ;;  %v5742_v36 = vld [vmem:[#allocation8 + $0x248] sm:$0xff] }
 0x27b   :  { %v1453_v43 = vmul.f32 %v1451_v56, %v1428_v58  ;;  %v1438_v41 = vmul.f32 %v5667_v29, %v1437_v63  ;;  %1825 = vmatpush.msrb.mxu1 %v5728_v6  ;;  %1845 = vmatpush.msrb.mxu2 %v5731_v20  ;;  %7386 = vst [vmem:[#allocation35_spill] sm:$0xff] %v5734_v19  ;;  %v5739_v56 = vld [vmem:[#allocation8 + $0x240] sm:$0xff]  ;;  %v5747_v60 = vld [vmem:[#allocation8 + $0x250] sm:$0xff]  ;;  %v5750_v63 = vld [vmem:[#allocation8 + $0x258] sm:$0xff]  ;;  %v1446_v58 = vand.u32 2147483648, %v5600_v39 }
 0x27c   :  { %1865 = vmatpush.msra.mxu3 %v5734_v19  ;;  %7387 = vst [vmem:[#allocation37_spill] sm:$0xff] %v5739_v56  ;;  %1806 = vmatpush.msrb.mxu0 %v5739_v56  ;;  %v5790_v19 = vld [vmem:[#allocation8 + $0x180] sm:$0xff] }
 0x27d   :  { %v5737_v46 = vadd.f32 %v1454_v32, %v1453_v43  ;;  %7388 = vst [vmem:[#allocation38_spill] sm:$0xff] %v5742_v36  ;;  %1826 = vmatpush.msrb.mxu1 %v5742_v36  ;;  %v1439_v38 = vadd.f32 %v5667_v29, %v1438_v41  ;;  %1846 = vmatpush.msrb.mxu2 %v5747_v60  ;;  %v5755_v32 = vld [vmem:[#allocation8 + $0x200] sm:$0xff]  ;;  %v5758_v43 = vld [vmem:[#allocation8 + $0x208] sm:$0xff]  ;;  %v1444_v41 = vand.u32 2147483647, %v5600_v39  ;;  %v1447_v56 = vor.u32 1.1754944e-38, %v1446_v58 }
 0x27e   :  { %7389 = vst [vmem:[#allocation24_spill] sm:$0xff] %v5747_v60  ;;  %1866 = vmatpush.msra.mxu3 %v5750_v63  ;;  %1807 = vmatpush.msrb.mxu0 %v5755_v32  ;;  %v5763_v60 = vld [vmem:[#allocation8 + $0x210] sm:$0xff]  ;;  %v5775_v36 = vld [vmem:[#allocation8 + $0x1c0] sm:$0xff] }
 0x27f   :  { %7390 = vst [vmem:[#allocation29_spill] sm:$0xff] %v5750_v63  ;;  %3620 = vtanh.f32 %v5737_v46  ;;  %1827 = vmatpush.msrb.mxu1 %v5758_v43  ;;  %1847 = vmatpush.msrb.mxu2 %v5763_v60  ;;  %v5766_v63 = vld [vmem:[#allocation8 + $0x218] sm:$0xff]  ;;  %v1443_v39 = vsel %vm5771_vm7, %v5667_v29, %v1439_v38  ;;  %vm1445_vm8 = vcmp.eq.f32.partialorder %v1444_v41, 8.507059e+37  ;;  %v5802_v58 = vld [vmem:[#allocation8 + $0x140] sm:$0xff]  ;;  %v5808_v41 = vld [vmem:[#allocation8 + $0x150] sm:$0xff] }
 0x280   :  { %7391 = vst [vmem:[#allocation41_spill] sm:$0xff] %v5755_v32  ;;  %1867 = vmatpush.msra.mxu3 %v5766_v63  ;;  %1808 = vmatpush.msrb.mxu0 %v5775_v36  ;;  %v5796_v32 = vld [vmem:[#allocation8 + $0x190] sm:$0xff]  ;;  %v5799_v29 = vld [vmem:[#allocation8 + $0x198] sm:$0xff] }
 0x281   :  { %7392 = vst [vmem:[#allocation42_spill] sm:$0xff] %v5758_v43  ;;  %v5778_v43 = vld [vmem:[#allocation8 + $0x1c8] sm:$0xff] }
 0x282   :  { %7393 = vst [vmem:[#allocation28_spill] sm:$0xff] %v5763_v60  ;;  %1828 = vmatpush.msrb.mxu1 %v5778_v43  ;;  %v5784_v60 = vld [vmem:[#allocation8 + $0x1d0] sm:$0xff]  ;;  %1809 = vmatpush.msrb.mxu0 %v5790_v19 }
 0x283   :  { %7394 = vst [vmem:[#allocation33_spill] sm:$0xff] %v5766_v63  ;;  %1848 = vmatpush.msrb.mxu2 %v5784_v60  ;;  %v5787_v63 = vld [vmem:[#allocation8 + $0x1d8] sm:$0xff] }
 0x284   :  { %7397 = vst [vmem:[#allocation45_spill] sm:$0xff] %v5775_v36  ;;  %1868 = vmatpush.msra.mxu3 %v5787_v63  ;;  %v5793_v36 = vld [vmem:[#allocation8 + $0x188] sm:$0xff]  ;;  %1810 = vmatpush.msrb.mxu0 %v5802_v58 }
 0x285   :  { %7398 = vst [vmem:[#allocation46_spill] sm:$0xff] %v5787_v63  ;;  %1829 = vmatpush.msrb.mxu1 %v5793_v36  ;;  %1849 = vmatpush.msrb.mxu2 %v5796_v32  ;;  %v3621_v38 = vpop.eup %3620  ;;  %v1448_v63 = vsel %vm1445_vm8, %v1447_v56, %v1443_v39  ;;  %v5814_v56 = vld [vmem:[#allocation8 + $0x520] sm:$0xff]  ;;  %v5817_v39 = vld [vmem:[#allocation8 + $0x528] sm:$0xff] }
 0x286   :  { %7399 = vst [vmem:[#allocation32_spill] sm:$0xff] %v5790_v19  ;;  %1869 = vmatpush.msra.mxu3 %v5799_v29  ;;  %v5805_v19 = vld [vmem:[#allocation8 + $0x148] sm:$0xff] }
 0x287   :  { %7400 = vst [vmem:[#allocation36_spill] sm:$0xff] %v5793_v36  ;;  %1830 = vmatpush.msrb.mxu1 %v5805_v19  ;;  %v1457_v36 = vmul.f32 %v3621_v38, %v1448_v63  ;;  %1850 = vmatpush.msrb.mxu2 %v5808_v41  ;;  %v5820_v63 = vld [vmem:[#allocation8 + $0x530] sm:$0xff]  ;;  %v5823_v38 = vld [vmem:[#allocation8 + $0x538] sm:$0xff] }
 0x288   :  { %7401 = vst [vmem:[#allocation49_spill] sm:$0xff] %v5796_v32  ;;  %v5811_v32 = vld [vmem:[#allocation8 + $0x158] sm:$0xff] }
 0x289   :  { %7402 = vst [vmem:[#allocation50_spill] sm:$0xff] %v5799_v29  ;;  %1870 = vmatpush.msra.mxu3 %v5811_v32  ;;  %v1632_v29 = vrot.slane %v1457_v36, 2  ;;  %v5826_v36 = vld [vmem:[#allocation8 + $0x4e0] sm:$0xff] }
 0x28a   :  { %7403 = vst [vmem:[#allocation40_spill] sm:$0xff] %v5814_v56 }
 0x28b   :  { %1650 = vmatmul.f32.vlgmr.msra.gmra.mxu0 %v1632_v29  ;;  %1670 = vmatmul.f32.vlgmr.msra.gmra.mxu1 %v1632_v29  ;;  %7404 = vst [vmem:[#allocation39_spill] sm:$0xff] %v5817_v39 }
 0x28c   :  { %1690 = vmatmul.f32.vlgmr.msra.gmra.mxu2 %v1632_v29  ;;  %1710 = vmatmul.f32.vlgmr.msrb.gmra.mxu3 %v1632_v29  ;;  %7405 = vst [vmem:[#allocation53_spill] sm:$0xff] %v5820_v63  ;;  %v5829_v29 = vld [vmem:[#allocation8 + $0x4e8] sm:$0xff] }
 0x28d   :  { %1945 = vmatpush.msra.mxu0 %v5814_v56  ;;  %1965 = vmatpush.msra.mxu1 %v5817_v39  ;;  %7406 = vst [vmem:[#allocation54_spill] sm:$0xff] %v5823_v38  ;;  %v5832_v56 = vld [vmem:[#allocation8 + $0x4f0] sm:$0xff]  ;;  %v5835_v39 = vld [vmem:[#allocation8 + $0x4f8] sm:$0xff] }
 0x28e   :  { %1985 = vmatpush.msra.mxu2 %v5820_v63  ;;  %2005 = vmatpush.msrb.mxu3 %v5823_v38  ;;  %7407 = vst [vmem:[#allocation44_spill] sm:$0xff] %v5826_v36  ;;  %v5838_v63 = vld [vmem:[#allocation8 + $0x4a0] sm:$0xff]  ;;  %v5841_v38 = vld [vmem:[#allocation8 + $0x4a8] sm:$0xff] }
 0x28f   :  { %1946 = vmatpush.msra.mxu0 %v5826_v36  ;;  %7408 = vst [vmem:[#allocation43_spill] sm:$0xff] %v5829_v29  ;;  %1966 = vmatpush.msra.mxu1 %v5829_v29  ;;  %v5844_v36 = vld [vmem:[#allocation8 + $0x4b0] sm:$0xff]  ;;  %v5847_v29 = vld [vmem:[#allocation8 + $0x4b8] sm:$0xff] }
 0x290   :  { %7409 = vst [vmem:[#allocation57_spill] sm:$0xff] %v5832_v56  ;;  %1986 = vmatpush.msra.mxu2 %v5832_v56  ;;  %2006 = vmatpush.msrb.mxu3 %v5835_v39  ;;  %v5850_v56 = vld [vmem:[#allocation8 + $0x460] sm:$0xff] }
 0x291   :  { %7410 = vst [vmem:[#allocation58_spill] sm:$0xff] %v5835_v39  ;;  %1947 = vmatpush.msra.mxu0 %v5838_v63  ;;  %1967 = vmatpush.msra.mxu1 %v5841_v38  ;;  %v5853_v39 = vld [vmem:[#allocation8 + $0x468] sm:$0xff] }
 0x292   :  { %7411 = vst [vmem:[#allocation48_spill] sm:$0xff] %v5838_v63  ;;  %1987 = vmatpush.msra.mxu2 %v5844_v36  ;;  %2007 = vmatpush.msrb.mxu3 %v5847_v29  ;;  %v5856_v63 = vld [vmem:[#allocation8 + $0x470] sm:$0xff] }
 0x293   :  { %7412 = vst [vmem:[#allocation47_spill] sm:$0xff] %v5841_v38  ;;  %1948 = vmatpush.msra.mxu0 %v5850_v56  ;;  %1968 = vmatpush.msra.mxu1 %v5853_v39  ;;  %v5859_v38 = vld [vmem:[#allocation8 + $0x478] sm:$0xff] }
 0x294   :  { %7413 = vst [vmem:[#allocation61_spill] sm:$0xff] %v5844_v36  ;;  %1988 = vmatpush.msra.mxu2 %v5856_v63  ;;  %2008 = vmatpush.msrb.mxu3 %v5859_v38  ;;  %v5862_v36 = vld [vmem:[#allocation8 + $0x420] sm:$0xff] }
 0x295   :  { %7414 = vst [vmem:[#allocation62_spill] sm:$0xff] %v5847_v29  ;;  %1949 = vmatpush.msra.mxu0 %v5862_v36  ;;  %v5865_v29 = vld [vmem:[#allocation8 + $0x428] sm:$0xff] }
 0x296   :  { %7415 = vst [vmem:[#allocation52_spill] sm:$0xff] %v5850_v56  ;;  %1969 = vmatpush.msra.mxu1 %v5865_v29  ;;  %v5868_v56 = vld [vmem:[#allocation8 + $0x430] sm:$0xff] }
 0x297   :  { %7416 = vst [vmem:[#allocation51_spill] sm:$0xff] %v5853_v39  ;;  %1989 = vmatpush.msra.mxu2 %v5868_v56  ;;  %v5871_v39 = vld [vmem:[#allocation8 + $0x438] sm:$0xff] }
 0x298   :  { %7417 = vst [vmem:[#allocation65_spill] sm:$0xff] %v5856_v63  ;;  %2009 = vmatpush.msrb.mxu3 %v5871_v39  ;;  %v5874_v63 = vld [vmem:[#allocation8 + $0x3e0] sm:$0xff] }
 0x299   :  { %7418 = vst [vmem:[#allocation66_spill] sm:$0xff] %v5859_v38  ;;  %1950 = vmatpush.msra.mxu0 %v5874_v63  ;;  %v5877_v38 = vld [vmem:[#allocation8 + $0x3e8] sm:$0xff] }
 0x29a   :  { %7419 = vst [vmem:[#allocation56_spill] sm:$0xff] %v5862_v36  ;;  %1970 = vmatpush.msra.mxu1 %v5877_v38  ;;  %v5880_v36 = vld [vmem:[#allocation8 + $0x3f0] sm:$0xff] }
 0x29b   :  { %7420 = vst [vmem:[#allocation55_spill] sm:$0xff] %v5865_v29  ;;  %1990 = vmatpush.msra.mxu2 %v5880_v36  ;;  %v5883_v29 = vld [vmem:[#allocation8 + $0x3f8] sm:$0xff] }
 0x29c   :  { %7421 = vst [vmem:[#allocation69_spill] sm:$0xff] %v5868_v56  ;;  %2010 = vmatpush.msrb.mxu3 %v5883_v29  ;;  %v5886_v56 = vld [vmem:[#allocation8 + $0x3a0] sm:$0xff] }
 0x29d   :  { %7422 = vst [vmem:[#allocation70_spill] sm:$0xff] %v5871_v39  ;;  %1951 = vmatpush.msra.mxu0 %v5886_v56  ;;  %v5889_v39 = vld [vmem:[#allocation8 + $0x3a8] sm:$0xff] }
 0x29e   :  { %7423 = vst [vmem:[#allocation60_spill] sm:$0xff] %v5874_v63  ;;  %1971 = vmatpush.msra.mxu1 %v5889_v39  ;;  %v5892_v63 = vld [vmem:[#allocation8 + $0x3b0] sm:$0xff] }
 0x29f   :  { %7424 = vst [vmem:[#allocation59_spill] sm:$0xff] %v5877_v38  ;;  %1991 = vmatpush.msra.mxu2 %v5892_v63  ;;  %v5895_v38 = vld [vmem:[#allocation8 + $0x3b8] sm:$0xff]  ;;  %1952 = vmatpush.msra.mxu0 %v5470_v34  ;;  %v5916_v34 = vld [vmem:[#allocation8 + $0x2f0] sm:$0xff] }
 0x2a0   :  { %7425 = vst [vmem:[#allocation73_spill] sm:$0xff] %v5880_v36  ;;  %2011 = vmatpush.msrb.mxu3 %v5895_v38  ;;  %1972 = vmatpush.msra.mxu1 %v5473_v21  ;;  %v5919_v21 = vld [vmem:[#allocation8 + $0x2f8] sm:$0xff] }
 0x2a1   :  { %7426 = vst [vmem:[#allocation74_spill] sm:$0xff] %v5883_v29  ;;  %v5900_v29 = vld [vmem:[#allocation8 + $0x370] sm:$0xff]  ;;  %1953 = vmatpush.msra.mxu0 %v5478_v44 }
 0x2a2   :  { %7427 = vst [vmem:[#allocation64_spill] sm:$0xff] %v5886_v56  ;;  %1992 = vmatpush.msra.mxu2 %v5900_v29  ;;  %v5903_v56 = vld [vmem:[#allocation8 + $0x378] sm:$0xff]  ;;  %1973 = vmatpush.msra.mxu1 %v5481_v62  ;;  %v5924_v44 = vld [vmem:[#allocation8 + $0x2b0] sm:$0xff] }
 0x2a3   :  { %7428 = vst [vmem:[#allocation63_spill] sm:$0xff] %v5889_v39  ;;  %2012 = vmatpush.msrb.mxu3 %v5903_v56  ;;  %1954 = vmatpush.msra.mxu0 %v5486_v1  ;;  %v5927_v62 = vld [vmem:[#allocation8 + $0x2b8] sm:$0xff]  ;;  %v5932_v1 = vld [vmem:[#allocation8 + $0x270] sm:$0xff]  ;;  %v1463_v39 = vld [vmem:[#allocation2 + $0x70] sm:$0x3] }
 0x2a4   :  { %7429 = vst [vmem:[#allocation68_spill] sm:$0xff] %v5892_v63  ;;  %v5908_v63 = vld [vmem:[#allocation8 + $0x330] sm:$0xff]  ;;  %1974 = vmatpush.msra.mxu1 %v5489_v7  ;;  %v5935_v7 = vld [vmem:[#allocation8 + $0x278] sm:$0xff] }
 0x2a5   :  { %7430 = vst [vmem:[#allocation67_spill] sm:$0xff] %v5895_v38  ;;  %1993 = vmatpush.msra.mxu2 %v5908_v63  ;;  %v5911_v38 = vld [vmem:[#allocation8 + $0x338] sm:$0xff]  ;;  %1955 = vmatpush.msra.mxu0 %v5494_v57  ;;  %v5940_v57 = vld [vmem:[#allocation8 + $0x230] sm:$0xff] }
 0x2a6   :  { %7431 = vst [vmem:[#allocation79_spill] sm:$0xff] %v5900_v29  ;;  %2013 = vmatpush.msrb.mxu3 %v5911_v38  ;;  %1975 = vmatpush.msra.mxu1 %v5497_v15  ;;  %v5943_v15 = vld [vmem:[#allocation8 + $0x238] sm:$0xff] }
 0x2a7   :  { %7432 = vst [vmem:[#allocation72_spill] sm:$0xff] %v5903_v56  ;;  %1994 = vmatpush.msra.mxu2 %v5916_v34  ;;  %1956 = vmatpush.msra.mxu0 %v5502_v42  ;;  %v5948_v42 = vld [vmem:[#allocation8 + $0x1f0] sm:$0xff] }
 0x2a8   :  { %7433 = vst [vmem:[#allocation71_spill] sm:$0xff] %v5908_v63  ;;  %2014 = vmatpush.msrb.mxu3 %v5919_v21  ;;  %1976 = vmatpush.msra.mxu1 %v5505_v59  ;;  %v5951_v59 = vld [vmem:[#allocation8 + $0x1f8] sm:$0xff] }
 0x2a9   :  { %7434 = vst [vmem:[#allocation76_spill] sm:$0xff] %v5911_v38  ;;  %1995 = vmatpush.msra.mxu2 %v5924_v44  ;;  %1957 = vmatpush.msra.mxu0 %v5510_v3  ;;  %v5957_v3 = vld [vmem:[#allocation8 + $0x1b8] sm:$0xff] }
 0x2aa   :  { %7435 = vst [vmem:[#allocation75_spill] sm:$0xff] %v5916_v34  ;;  %2015 = vmatpush.msrb.mxu3 %v5927_v62  ;;  %1977 = vmatpush.msra.mxu1 %v5513_v23 }
 0x2ab   :  { %7436 = vst [vmem:[#allocation78_spill] sm:$0xff] %v5919_v21  ;;  %1996 = vmatpush.msra.mxu2 %v5932_v1  ;;  %1958 = vmatpush.msra.mxu0 %v5518_v40 }
 0x2ac   :  { %7437 = vst [vmem:[#allocation77_spill] sm:$0xff] %v5924_v44  ;;  %2016 = vmatpush.msrb.mxu3 %v5935_v7  ;;  %1978 = vmatpush.msra.mxu1 %v5521_v61 }
 0x2ad   :  { %7438 = vst [vmem:[#allocation80_spill] sm:$0xff] %v5927_v62  ;;  %1997 = vmatpush.msra.mxu2 %v5940_v57  ;;  %1959 = vmatpush.msra.mxu0 %v5526_v49 }
 0x2ae   :  { %7439 = vst [vmem:[#allocation81_spill] sm:$0xff] %v5932_v1  ;;  %2017 = vmatpush.msrb.mxu3 %v5943_v15  ;;  %1979 = vmatpush.msra.mxu1 %v5529_v33  ;;  %v1459_v33 = vld [vmem:[#allocation2] sm:$0xc0] }
 0x2af   :  { %7440 = vst [vmem:[#allocation82_spill] sm:$0xff] %v5935_v7  ;;  %1998 = vmatpush.msra.mxu2 %v5948_v42  ;;  %1960 = vmatpush.msra.mxu0 %v5536_v52  ;;  %v1461_v7 = vld [vmem:[#allocation2 + $0x18] sm:$0xc0] }
 0x2b0   :  { %7441 = vst [vmem:[#allocation83_spill] sm:$0xff] %v5940_v57  ;;  %2018 = vmatpush.msrb.mxu3 %v5951_v59  ;;  %1980 = vmatpush.msra.mxu1 %v5539_v30 }
 0x2b1   :  { %7442 = vst [vmem:[#allocation84_spill] sm:$0xff] %v5943_v15  ;;  %1999 = vmatpush.msra.mxu2 %v5532_v50 }
 0x2b2   :  { %7443 = vst [vmem:[#allocation85_spill] sm:$0xff] %v5948_v42  ;;  %2019 = vmatpush.msrb.mxu3 %v5957_v3 }
 0x2b3   :  { %7444 = vst [vmem:[#allocation86_spill] sm:$0xff] %v5951_v59  ;;  %2000 = vmatpush.msra.mxu2 %v5542_v18  ;;  %v1458_v59 = vld [vmem:[#allocation2 + $0x30] sm:$0xc0] }
 0x2b4   :  { %7445 = vst [vmem:[#allocation87_spill] sm:$0xff] %v5957_v3  ;;  %2020 = vmatpush.msrb.mxu3 %v5545_v54 }
 0x2d9   :  { %v1486_v23 = vpop.f32.mrf.mxu0  ;;  %v1506_v40 = vpop.f32.mrf.mxu1 }
 0x2da   :  { %v1553_v61 = vrot.slane %v1486_v23, 2  ;;  %v1554_v49 = vrot.slane %v1506_v40, 2 }
 0x2dc   :  { %v1561_v42 = vadd.f32 %v1553_v61, %v1458_v59  ;;  %v1562_v50 = vadd.f32 %v1554_v49, %v1459_v33  ;;  %v1460_v61 = vld [vmem:[#allocation2 + $0x58] sm:$0xc0] }
 0x2de   :  { %v3475_v15 = vmul.f32 -1.442695, %v1561_v42  ;;  %v3476_v57 = vmul.f32 -1.442695, %v1562_v50 }
 0x2e0   :  { %3622 = vpow2.f32 %v3475_v15  ;;  %v1546_v3 = vpop.f32.mrf.mxu3  ;;  %v1526_v23 = vpop.f32.mrf.mxu2 }
 0x2e1   :  { %3624 = vpow2.f32 %v3476_v57  ;;  %v1556_v52 = vrot.slane %v1546_v3, 2  ;;  %v1555_v40 = vrot.slane %v1526_v23, 2 }
 0x2e3   :  { %v1564_v30 = vadd.f32 %v1556_v52, %v1461_v7  ;;  %v1563_v15 = vadd.f32 %v1555_v40, %v1460_v61 }
 0x2e5   :  { %v3477_v1 = vmul.f32 -1.442695, %v1564_v30 }
 0x2e6   :  { %v3623_v18 = vpop.eup %3622 }
 0x2e7   :  { %v3625_v62 = vpop.eup %3624  ;;  %v1568_v54 = vadd.f32 1.0, %v3623_v18  ;;  %3626 = vpow2.f32 %v3477_v1 }
 0x2e8   :  { %v1587_v44 = vadd.f32 1.0, %v3625_v62 }
 0x2e9   :  { %3628 = vrcp.f32 %v1568_v54  ;;  %v1580_v52 = vand.u32 2147483648, %v1568_v54  ;;  %v1578_v62 = vand.u32 2147483647, %v1568_v54  ;;  %vm1574_vm11 = vweird.f32 %v1568_v54 }
 0x2ea   :  { %3630 = vrcp.f32 %v1587_v44  ;;  %v1599_v30 = vand.u32 2147483648, %v1587_v44  ;;  %v1597_v23 = vand.u32 2147483647, %v1587_v44  ;;  %vm1593_vm12 = vweird.f32 %v1587_v44 }
 0x2eb   :  { %v1581_v40 = vor.u32 1.1754944e-38, %v1580_v52  ;;  %vm1579_vm15 = vcmp.eq.f32.partialorder %v1578_v62, 8.507059e+37  ;;  %v1462_v52 = vld [vmem:[#allocation2 + $0x60] sm:$0x3] }
 0x2ec   :  { %vm1598_vm0 = vcmp.eq.f32.partialorder %v1597_v23, 8.507059e+37  ;;  %v1465_v23 = vld [vmem:[#allocation2 + $0x28] sm:$0x3] }
 0x2ed   :  { %v3627_v59 = vpop.eup %3626 }
 0x2ee   :  { %v1607_v42 = vadd.f32 1.0, %v3627_v59 }
 0x2ef   :  { %v3629_v49 = vpop.eup %3628 }
 0x2f0   :  { %v3631_v33 = vpop.eup %3630  ;;  %v1570_v57 = vmul.f32 %v3629_v49, %v1568_v54  ;;  %3632 = vrcp.f32 %v1607_v42  ;;  %vm1575_vm9 = vweird.f32 %v3629_v49  ;;  %vm1613_vm2 = vweird.f32 %v1607_v42 }
 0x2f1   :  { %v1589_v3 = vmul.f32 %v3631_v33, %v1587_v44  ;;  %3634 = vtanh.f32 %v1563_v15  ;;  %vm1594_vm10 = vweird.f32 %v3631_v33  ;;  %vm1576_vm13 = vmor %vm1574_vm11, %vm1575_vm9 }
 0x2f2   :  { %v1571_v7 = vsub.f32 1.0, %v1570_v57  ;;  %v1624_v57 = vrot.slane %v5549_v31, 6  ;;  %vm1595_vm14 = vmor %vm1593_vm12, %vm1594_vm10 }
 0x2f3   :  { %v1590_v50 = vsub.f32 1.0, %v1589_v3  ;;  %v1600_v3 = vor.u32 1.1754944e-38, %v1599_v30  ;;  %v1619_v30 = vand.u32 2147483648, %v1607_v42 }
 0x2f4   :  { %v1572_v1 = vmul.f32 %v3629_v49, %v1571_v7 }
 0x2f5   :  { %v1591_v18 = vmul.f32 %v3631_v33, %v1590_v50 }
 0x2f6   :  { %v3633_v21 = vpop.eup %3632  ;;  %v1573_v34 = vadd.f32 %v3629_v49, %v1572_v1 }
 0x2f7   :  { %v1592_v59 = vadd.f32 %v3631_v33, %v1591_v18  ;;  %v1609_v61 = vmul.f32 %v3633_v21, %v1607_v42  ;;  %v3635_v7 = vpop.eup %3634  ;;  %vm1614_vm1 = vweird.f32 %v3633_v21 }
 0x2f8   :  { %v1577_v15 = vsel %vm1576_vm13, %v3629_v49, %v1573_v34  ;;  %vm1615_vm3 = vmor %vm1613_vm2, %vm1614_vm1 }
 0x2f9   :  { %v1582_v38 = vsel %vm1579_vm15, %v1581_v40, %v1577_v15  ;;  %v1596_v63 = vsel %vm1595_vm14, %v3631_v33, %v1592_v59  ;;  %v1610_v50 = vsub.f32 1.0, %v1609_v61  ;;  %v1617_v33 = vand.u32 2147483647, %v1607_v42 }
 0x2fa   :  { %v1601_v56 = vsel %vm1598_vm0, %v1600_v3, %v1596_v63  ;;  %v1627_v29 = vmul.f32 %v3635_v7, %v1582_v38  ;;  %v1620_v38 = vor.u32 1.1754944e-38, %v1619_v30 }
 0x2fb   :  { %v1626_v1 = vmul.f32 %v1624_v57, %v1601_v56  ;;  %v1611_v54 = vmul.f32 %v3633_v21, %v1610_v50  ;;  %vm1618_vm4 = vcmp.eq.f32.partialorder %v1617_v33, 8.507059e+37  ;;  %v7454_v33 = vld [vmem:[#allocation21_spill] sm:$0xff] }
 0x2fd   :  { %v5965_v44 = vadd.f32 %v1627_v29, %v1626_v1  ;;  %v1612_v31 = vadd.f32 %v3633_v21, %v1611_v54  ;;  %v7451_v1 = vld [vmem:[#allocation26_spill] sm:$0xff] }
 0x2ff   :  { %3636 = vtanh.f32 %v5965_v44  ;;  %v1616_v56 = vsel %vm1615_vm3, %v3633_v21, %v1612_v31  ;;  %v7453_v31 = vld [vmem:[#allocation17_spill] sm:$0xff] }
 0x300   :  { %v1621_v59 = vsel %vm1618_vm4, %v1620_v38, %v1616_v56  ;;  %v1777_v38 = vrot.slane %v5737_v46, 2 }
 0x305   :  { %v3637_v29 = vpop.eup %3636 }
 0x306   :  { %v1630_v57 = vmul.f32 %v3637_v29, %v1621_v59  ;;  %v7456_v29 = vld [vmem:[#allocation31_spill] sm:$0xff] }
 0x308   :  { %v1651_v18 = vpop.f32.mrf.mxu0  ;;  %v1671_v36 = vpop.f32.mrf.mxu1  ;;  %v1793_v15 = vrot.slane %v1630_v57, 6 }
 0x309   :  { %v1714_v34 = vadd.f32 %v1651_v18, %v1462_v52  ;;  %v1715_v49 = vadd.f32 %v1671_v36, %v1463_v39  ;;  %v7452_v18 = vld [vmem:[#allocation27_spill] sm:$0xff] }
 0x30a   :  { %1811 = vmatmul.f32.vlgmr.msrb.gmra.mxu0 %v1793_v15  ;;  %1831 = vmatmul.f32.vlgmr.msrb.gmra.mxu1 %v1793_v15 }
 0x30b   :  { %v3478_v62 = vmul.f32 -1.442695, %v1714_v34  ;;  %v3479_v63 = vmul.f32 -1.442695, %v1715_v49  ;;  %1851 = vmatmul.f32.vlgmr.msrb.gmra.mxu2 %v1793_v15  ;;  %1871 = vmatmul.f32.vlgmr.msra.gmra.mxu3 %v1793_v15  ;;  %v7459_v15 = vld [vmem:[#allocation34_spill] sm:$0xff] }
 0x30c   :  { %2115 = vmatpush.msrb.mxu0 %v5554_v47  ;;  %2135 = vmatpush.msrb.mxu1 %v5557_v51  ;;  %v1464_v47 = vld [vmem:[#allocation2 + $0x78] sm:$0x3] }
 0x30d   :  { %3638 = vpow2.f32 %v3478_v62  ;;  %2155 = vmatpush.msrb.mxu2 %v5562_v0  ;;  %2175 = vmatpush.msra.mxu3 %v5565_v48  ;;  %v7455_v62 = vld [vmem:[#allocation30_spill] sm:$0xff] }
 0x30e   :  { %3640 = vpow2.f32 %v3479_v63  ;;  %2116 = vmatpush.msrb.mxu0 %v5569_v45  ;;  %2136 = vmatpush.msrb.mxu1 %v5572_v4 }
 0x30f   :  { %v1711_v40 = vpop.f32.mrf.mxu3  ;;  %v1691_v42 = vpop.f32.mrf.mxu2  ;;  %2156 = vmatpush.msrb.mxu2 %v5576_v2  ;;  %2176 = vmatpush.msra.mxu3 %v5579_v5 }
 0x310   :  { %v1717_v61 = vadd.f32 %v1711_v40, %v1465_v23  ;;  %2117 = vmatpush.msrb.mxu0 %v5582_v8  ;;  %2137 = vmatpush.msrb.mxu1 %v5585_v9  ;;  %v1716_v48 = vadd.f32 %v1691_v42, %v1464_v47  ;;  %v7457_v23 = vld [vmem:[#allocation19_spill] sm:$0xff]  ;;  %v7466_v42 = vld [vmem:[#allocation42_spill] sm:$0xff]  ;;  %v7467_v47 = vld [vmem:[#allocation28_spill] sm:$0xff] }
 0x311   :  { %2157 = vmatpush.msrb.mxu2 %v5588_v13  ;;  %2177 = vmatpush.msra.mxu3 %v5591_v35  ;;  %v7446_v13 = vld [vmem:[#allocation18_spill] sm:$0xff] }
 0x312   :  { %v3480_v3 = vmul.f32 -1.442695, %v1717_v61  ;;  %2118 = vmatpush.msrb.mxu0 %v5594_v25  ;;  %2138 = vmatpush.msrb.mxu1 %v5597_v28  ;;  %v7447_v35 = vld [vmem:[#allocation22_spill] sm:$0xff] }
 0x313   :  { %v3639_v39 = vpop.eup %3638  ;;  %2158 = vmatpush.msrb.mxu2 %v5602_v22  ;;  %2178 = vmatpush.msra.mxu3 %v5605_v12  ;;  %v7448_v12 = vld [vmem:[#allocation23_spill] sm:$0xff] }
 0x314   :  { %v3641_v36 = vpop.eup %3640  ;;  %v5968_v7 = vadd.f32 1.0, %v3639_v39  ;;  %3642 = vpow2.f32 %v3480_v3  ;;  %2119 = vmatpush.msrb.mxu0 %v5610_v53  ;;  %2139 = vmatpush.msrb.mxu1 %v5613_v55  ;;  %v7449_v53 = vld [vmem:[#allocation16_spill] sm:$0xff]  ;;  %v7458_v3 = vld [vmem:[#allocation25_spill] sm:$0xff] }
 0x315   :  { %v5970_v21 = vadd.f32 1.0, %v3641_v36  ;;  %2159 = vmatpush.msrb.mxu2 %v5621_v26  ;;  %2179 = vmatpush.msra.mxu3 %v5624_v16  ;;  %v7450_v16 = vld [vmem:[#allocation20_spill] sm:$0xff] }
 0x316   :  { %3644 = vrcp.f32 %v5968_v7  ;;  %v1733_v9 = vand.u32 2147483648, %v5968_v7  ;;  %2120 = vmatpush.msrb.mxu0 %v7446_v13  ;;  %2140 = vmatpush.msrb.mxu1 %v7447_v35  ;;  %v1731_v22 = vand.u32 2147483647, %v5968_v7  ;;  %vm1727_vm7 = vweird.f32 %v5968_v7  ;;  %v7473_v13 = vld [vmem:[#allocation49_spill] sm:$0xff]  ;;  %v7474_v35 = vld [vmem:[#allocation50_spill] sm:$0xff] }
 0x317   :  { %3646 = vrcp.f32 %v5970_v21  ;;  %v1752_v25 = vand.u32 2147483648, %v5970_v21  ;;  %2160 = vmatpush.msrb.mxu2 %v7448_v12  ;;  %2180 = vmatpush.msra.mxu3 %v7449_v53  ;;  %v1750_v26 = vand.u32 2147483647, %v5970_v21  ;;  %vm1746_vm8 = vweird.f32 %v5970_v21  ;;  %v7482_v12 = vld [vmem:[#allocation58_spill] sm:$0xff]  ;;  %v7483_v53 = vld [vmem:[#allocation48_spill] sm:$0xff] }
 0x318   :  { %2121 = vmatpush.msrb.mxu0 %v7450_v16  ;;  %2141 = vmatpush.msrb.mxu1 %v7451_v1  ;;  %v1734_v34 = vor.u32 1.1754944e-38, %v1733_v9  ;;  %vm1732_vm11 = vcmp.eq.f32.partialorder %v1731_v22, 8.507059e+37  ;;  %v7479_v22 = vld [vmem:[#allocation44_spill] sm:$0xff]  ;;  %v7488_v16 = vld [vmem:[#allocation51_spill] sm:$0xff]  ;;  %v7489_v1 = vld [vmem:[#allocation65_spill] sm:$0xff] }
 0x319   :  { %2161 = vmatpush.msrb.mxu2 %v7452_v18  ;;  %2181 = vmatpush.msra.mxu3 %v7453_v31  ;;  %v1753_v63 = vor.u32 1.1754944e-38, %v1752_v25  ;;  %vm1751_vm12 = vcmp.eq.f32.partialorder %v1750_v26, 8.507059e+37  ;;  %v7477_v25 = vld [vmem:[#allocation53_spill] sm:$0xff]  ;;  %v7487_v26 = vld [vmem:[#allocation52_spill] sm:$0xff]  ;;  %v7492_v18 = vld [vmem:[#allocation55_spill] sm:$0xff] }
 0x31a   :  { %v3643_v50 = vpop.eup %3642  ;;  %2122 = vmatpush.msrb.mxu0 %v7454_v33  ;;  %2142 = vmatpush.msrb.mxu1 %v7455_v62  ;;  %v7493_v31 = vld [vmem:[#allocation69_spill] sm:$0xff]  ;;  %v7498_v62 = vld [vmem:[#allocation74_spill] sm:$0xff] }
 0x31b   :  { %v5984_v51 = vadd.f32 1.0, %v3643_v50  ;;  %2162 = vmatpush.msrb.mxu2 %v7456_v29  ;;  %2182 = vmatpush.msra.mxu3 %v7457_v23  ;;  %v7497_v33 = vld [vmem:[#allocation73_spill] sm:$0xff]  ;;  %v7502_v29 = vld [vmem:[#allocation67_spill] sm:$0xff] }
 0x31c   :  { %v3645_v0 = vpop.eup %3644  ;;  %2123 = vmatpush.msrb.mxu0 %v7458_v3  ;;  %2143 = vmatpush.msrb.mxu1 %v7459_v15  ;;  %v6094_v23 = vld [vmem:[#allocation8 + $0x360] sm:$0xff]  ;;  %v6105_v3 = vld [vmem:[#allocation8 + $0x328] sm:$0xff] }
 0x31d   :  { %v3647_v45 = vpop.eup %3646  ;;  %v1723_v4 = vmul.f32 %v3645_v0, %v5968_v7  ;;  %3648 = vrcp.f32 %v5984_v51  ;;  %vm1728_vm5 = vweird.f32 %v3645_v0  ;;  %2163 = vmatpush.msrb.mxu2 %v5703_v10  ;;  %2183 = vmatpush.msra.mxu3 %v5706_v24  ;;  %v7460_v24 = vld [vmem:[#allocation35_spill] sm:$0xff]  ;;  %vm1766_vm14 = vweird.f32 %v5984_v51 }
 0x31e   :  { %v1742_v2 = vmul.f32 %v3647_v45, %v5970_v21  ;;  %3650 = vtanh.f32 %v1716_v48  ;;  %vm1747_vm6 = vweird.f32 %v3647_v45  ;;  %vm1729_vm9 = vmor %vm1727_vm7, %vm1728_vm5  ;;  %2124 = vmatpush.msrb.mxu0 %v5712_v11  ;;  %2144 = vmatpush.msrb.mxu1 %v5715_v14  ;;  %v1772_v11 = vand.u32 2147483648, %v5984_v51  ;;  %v7461_v14 = vld [vmem:[#allocation37_spill] sm:$0xff]  ;;  %v7505_v15 = vld [vmem:[#allocation71_spill] sm:$0xff] }
 0x31f   :  { %v1724_v5 = vsub.f32 1.0, %v1723_v4  ;;  %vm1748_vm10 = vmor %vm1746_vm8, %vm1747_vm6  ;;  %2164 = vmatpush.msrb.mxu2 %v5718_v17  ;;  %2184 = vmatpush.msra.mxu3 %v5721_v37  ;;  %v7462_v17 = vld [vmem:[#allocation38_spill] sm:$0xff]  ;;  %v1770_v37 = vand.u32 2147483647, %v5984_v51 }
 0x320   :  { %v1743_v8 = vsub.f32 1.0, %v1742_v2  ;;  %2125 = vmatpush.msrb.mxu0 %v5725_v27  ;;  %2145 = vmatpush.msrb.mxu1 %v5728_v6  ;;  %v7463_v27 = vld [vmem:[#allocation24_spill] sm:$0xff]  ;;  %v7464_v6 = vld [vmem:[#allocation29_spill] sm:$0xff]  ;;  %v1773_v48 = vor.u32 1.1754944e-38, %v1772_v11 }
 0x321   :  { %v1725_v28 = vmul.f32 %v3645_v0, %v1724_v5  ;;  %2165 = vmatpush.msrb.mxu2 %v5731_v20  ;;  %2185 = vmatpush.msra.mxu3 %v7460_v24  ;;  %v7465_v20 = vld [vmem:[#allocation41_spill] sm:$0xff]  ;;  %vm1771_vm0 = vcmp.eq.f32.partialorder %v1770_v37, 8.507059e+37  ;;  %v7471_v5 = vld [vmem:[#allocation32_spill] sm:$0xff]  ;;  %v6118_v24 = vld [vmem:[#allocation8 + $0x2a0] sm:$0xff] }
 0x322   :  { %v1744_v55 = vmul.f32 %v3647_v45, %v1743_v8  ;;  %2126 = vmatpush.msrb.mxu0 %v7461_v14  ;;  %2146 = vmatpush.msrb.mxu1 %v7462_v17  ;;  %v7472_v8 = vld [vmem:[#allocation36_spill] sm:$0xff]  ;;  %v7509_v14 = vld [vmem:[#allocation77_spill] sm:$0xff]  ;;  %v6126_v37 = vld [vmem:[#allocation8 + $0x260] sm:$0xff] }
 0x323   :  { %v6009_v54 = vpop.eup %3648  ;;  %v1726_v52 = vadd.f32 %v3645_v0, %v1725_v28  ;;  %2166 = vmatpush.msrb.mxu2 %v7463_v27  ;;  %2186 = vmatpush.msra.mxu3 %v7464_v6  ;;  %v7478_v28 = vld [vmem:[#allocation54_spill] sm:$0xff]  ;;  %v6121_v11 = vld [vmem:[#allocation8 + $0x2a8] sm:$0xff]  ;;  %v7511_v6 = vld [vmem:[#allocation81_spill] sm:$0xff] }
 0x324   :  { %v1745_v49 = vadd.f32 %v3647_v45, %v1744_v55  ;;  %v1762_v30 = vmul.f32 %v6009_v54, %v5984_v51  ;;  %v3651_v40 = vpop.eup %3650  ;;  %vm1767_vm13 = vweird.f32 %v6009_v54  ;;  %2127 = vmatpush.msrb.mxu0 %v7465_v20  ;;  %2147 = vmatpush.msrb.mxu1 %v7466_v42  ;;  %v7470_v51 = vld [vmem:[#allocation46_spill] sm:$0xff]  ;;  %v7510_v17 = vld [vmem:[#allocation80_spill] sm:$0xff] }
 0x325   :  { %v1730_v56 = vsel %vm1729_vm9, %v3645_v0, %v1726_v52  ;;  %vm1768_vm15 = vmor %vm1766_vm14, %vm1767_vm13  ;;  %2167 = vmatpush.msrb.mxu2 %v7467_v47  ;;  %v7468_v0 = vld [vmem:[#allocation33_spill] sm:$0xff]  ;;  %v7486_v55 = vld [vmem:[#allocation62_spill] sm:$0xff] }
 0x326   :  { %v1735_v59 = vsel %vm1732_vm11, %v1734_v34, %v1730_v56  ;;  %v1749_v61 = vsel %vm1748_vm10, %v3647_v45, %v1745_v49  ;;  %v1763_v57 = vsub.f32 1.0, %v1762_v30  ;;  %2187 = vmatpush.msra.mxu3 %v7468_v0  ;;  %v7469_v45 = vld [vmem:[#allocation45_spill] sm:$0xff]  ;;  %2148 = vmatpush.msrb.mxu1 %v5778_v43  ;;  %v7476_v43 = vld [vmem:[#allocation39_spill] sm:$0xff]  ;;  %v7491_v52 = vld [vmem:[#allocation56_spill] sm:$0xff] }
 0x327   :  { %v1754_v39 = vsel %vm1751_vm12, %v1753_v63, %v1749_v61  ;;  %v1780_v36 = vmul.f32 %v3651_v40, %v1735_v59  ;;  %2128 = vmatpush.msrb.mxu0 %v7469_v45  ;;  %2168 = vmatpush.msrb.mxu2 %v5784_v60  ;;  %v7475_v60 = vld [vmem:[#allocation40_spill] sm:$0xff]  ;;  %v7494_v34 = vld [vmem:[#allocation70_spill] sm:$0xff]  ;;  %v7496_v30 = vld [vmem:[#allocation59_spill] sm:$0xff] }
 0x328   :  { %v1779_v46 = vmul.f32 %v1777_v38, %v1754_v39  ;;  %v1764_v7 = vmul.f32 %v6009_v54, %v1763_v57  ;;  %2188 = vmatpush.msra.mxu3 %v7470_v51  ;;  %2149 = vmatpush.msrb.mxu1 %v7472_v8  ;;  %v7495_v49 = vld [vmem:[#allocation60_spill] sm:$0xff]  ;;  %v7500_v56 = vld [vmem:[#allocation63_spill] sm:$0xff]  ;;  %v7512_v20 = vld [vmem:[#allocation82_spill] sm:$0xff] }
 0x329   :  { %2129 = vmatpush.msrb.mxu0 %v7471_v5  ;;  %2169 = vmatpush.msrb.mxu2 %v7473_v13  ;;  %v7499_v63 = vld [vmem:[#allocation64_spill] sm:$0xff]  ;;  %v7503_v59 = vld [vmem:[#allocation79_spill] sm:$0xff]  ;;  %v7515_v51 = vld [vmem:[#allocation85_spill] sm:$0xff] }
 0x32a   :  { %v6033_v21 = vadd.f32 %v1780_v36, %v1779_v46  ;;  %v1765_v10 = vadd.f32 %v6009_v54, %v1764_v7  ;;  %2189 = vmatpush.msra.mxu3 %v7474_v35  ;;  %2150 = vmatpush.msrb.mxu1 %v5805_v19  ;;  %v7481_v19 = vld [vmem:[#allocation57_spill] sm:$0xff]  ;;  %v7501_v38 = vld [vmem:[#allocation68_spill] sm:$0xff]  ;;  %v6102_v57 = vld [vmem:[#allocation8 + $0x320] sm:$0xff] }
 0x32b   :  { %2130 = vmatpush.msrb.mxu0 %v5802_v58  ;;  %2170 = vmatpush.msrb.mxu2 %v5808_v41  ;;  %v7480_v58 = vld [vmem:[#allocation43_spill] sm:$0xff]  ;;  %v7504_v61 = vld [vmem:[#allocation72_spill] sm:$0xff] }
 0x32c   :  { %3652 = vtanh.f32 %v6033_v21  ;;  %v1769_v50 = vsel %vm1768_vm15, %v6009_v54, %v1765_v10  ;;  %2190 = vmatpush.msra.mxu3 %v5811_v32  ;;  %v7484_v41 = vld [vmem:[#allocation47_spill] sm:$0xff]  ;;  %v7485_v32 = vld [vmem:[#allocation61_spill] sm:$0xff]  ;;  %v7490_v54 = vld [vmem:[#allocation66_spill] sm:$0xff] }
 0x32d   :  { %v1774_v2 = vsel %vm1771_vm0, %v1773_v48, %v1769_v50  ;;  %v6097_v40 = vld [vmem:[#allocation8 + $0x368] sm:$0xff]  ;;  %v6110_v36 = vld [vmem:[#allocation8 + $0x2e0] sm:$0xff]  ;;  %v6156_v8 = vld [vmem:[#allocation8 + $0x1b0] sm:$0xff] }
 0x32e   :  { %v7506_v39 = vld [vmem:[#allocation76_spill] sm:$0xff]  ;;  %v7507_v7 = vld [vmem:[#allocation75_spill] sm:$0xff]  ;;  %v7508_v10 = vld [vmem:[#allocation78_spill] sm:$0xff] }
 0x32f   :  { %v6113_v46 = vld [vmem:[#allocation8 + $0x2e8] sm:$0xff]  ;;  %v6134_v42 = vld [vmem:[#allocation8 + $0x220] sm:$0xff] }
 0x330   :  { %v6129_v27 = vld [vmem:[#allocation8 + $0x268] sm:$0xff]  ;;  %v6142_v48 = vld [vmem:[#allocation8 + $0x1e0] sm:$0xff] }
 0x331   :  { %v6137_v50 = vld [vmem:[#allocation8 + $0x228] sm:$0xff]  ;;  %v6160_v13 = vld [vmem:[#allocation8 + $0x160] sm:$0xff] }
 0x332   :  { %v3653_v4 = vpop.eup %3652  ;;  %v7513_v47 = vld [vmem:[#allocation83_spill] sm:$0xff]  ;;  %v7514_v0 = vld [vmem:[#allocation84_spill] sm:$0xff] }
 0x333   :  { %v1783_v9 = vmul.f32 %v3653_v4, %v1774_v2  ;;  %v6145_v45 = vld [vmem:[#allocation8 + $0x1e8] sm:$0xff]  ;;  %v7516_v4 = vld [vmem:[#allocation86_spill] sm:$0xff] }
 0x334   :  { %v6150_v2 = vld [vmem:[#allocation8 + $0x1a0] sm:$0xff]  ;;  %v6153_v5 = vld [vmem:[#allocation8 + $0x1a8] sm:$0xff] }
 0x335   :  { %1961 = vmatmul.f32.vlgmr.msra.gmra.mxu0 %v1783_v9  ;;  %1981 = vmatmul.f32.vlgmr.msra.gmra.mxu1 %v1783_v9  ;;  %v6163_v35 = vld [vmem:[#allocation8 + $0x168] sm:$0xff] }
 0x336   :  { %2001 = vmatmul.f32.vlgmr.msra.gmra.mxu2 %v1783_v9  ;;  %2021 = vmatmul.f32.vlgmr.msrb.gmra.mxu3 %v1783_v9  ;;  %v7517_v9 = vld [vmem:[#allocation87_spill] sm:$0xff] }
 0x337   :  { %2280 = vmatpush.msra.mxu0 %v7475_v60  ;;  %2300 = vmatpush.msra.mxu1 %v7476_v43  ;;  %v6166_v60 = vld [vmem:[#allocation8 + $0x170] sm:$0xff]  ;;  %v6169_v43 = vld [vmem:[#allocation8 + $0x178] sm:$0xff] }
 0x338   :  { %2320 = vmatpush.msra.mxu2 %v7477_v25  ;;  %2340 = vmatpush.msrb.mxu3 %v7478_v28  ;;  %v1784_v25 = vld [vmem:[#allocation2 + $0x40] sm:$0x3] }
 0x339   :  { %2281 = vmatpush.msra.mxu0 %v7479_v22  ;;  %2301 = vmatpush.msra.mxu1 %v7480_v58  ;;  %v1785_v22 = vld [vmem:[#allocation2 + $0x20] sm:$0x3] }
 0x33a   :  { %2321 = vmatpush.msra.mxu2 %v7481_v19  ;;  %2341 = vmatpush.msrb.mxu3 %v7482_v12 }
 0x33b   :  { %2282 = vmatpush.msra.mxu0 %v7483_v53  ;;  %2302 = vmatpush.msra.mxu1 %v7484_v41 }
 0x33c   :  { %2322 = vmatpush.msra.mxu2 %v7485_v32  ;;  %2342 = vmatpush.msrb.mxu3 %v7486_v55  ;;  %v1787_v32 = vld [vmem:[#allocation2 + $0x38] sm:$0x3] }
 0x33d   :  { %2283 = vmatpush.msra.mxu0 %v7487_v26  ;;  %2303 = vmatpush.msra.mxu1 %v7488_v16 }
 0x33e   :  { %2323 = vmatpush.msra.mxu2 %v7489_v1  ;;  %2343 = vmatpush.msrb.mxu3 %v7490_v54 }
 0x33f   :  { %2284 = vmatpush.msra.mxu0 %v7491_v52  ;;  %2304 = vmatpush.msra.mxu1 %v7492_v18 }
 0x340   :  { %2324 = vmatpush.msra.mxu2 %v7493_v31  ;;  %2344 = vmatpush.msrb.mxu3 %v7494_v34 }
 0x341   :  { %2285 = vmatpush.msra.mxu0 %v7495_v49  ;;  %2305 = vmatpush.msra.mxu1 %v7496_v30  ;;  %v1786_v49 = vld [vmem:[#allocation2 + $0x10] sm:$0x3] }
 0x342   :  { %2325 = vmatpush.msra.mxu2 %v7497_v33  ;;  %2345 = vmatpush.msrb.mxu3 %v7498_v62 }
 0x343   :  { %2286 = vmatpush.msra.mxu0 %v7499_v63  ;;  %2306 = vmatpush.msra.mxu1 %v7500_v56 }
 0x344   :  { %2326 = vmatpush.msra.mxu2 %v7501_v38  ;;  %2346 = vmatpush.msrb.mxu3 %v7502_v29 }
 0x345   :  { %2287 = vmatpush.msra.mxu0 %v6094_v23  ;;  %2307 = vmatpush.msra.mxu1 %v6097_v40 }
 0x346   :  { %2327 = vmatpush.msra.mxu2 %v7503_v59  ;;  %2347 = vmatpush.msrb.mxu3 %v7504_v61 }
 0x347   :  { %2288 = vmatpush.msra.mxu0 %v6102_v57  ;;  %2308 = vmatpush.msra.mxu1 %v6105_v3 }
 0x348   :  { %2328 = vmatpush.msra.mxu2 %v7505_v15  ;;  %2348 = vmatpush.msrb.mxu3 %v7506_v39 }
 0x349   :  { %2289 = vmatpush.msra.mxu0 %v6110_v36  ;;  %2309 = vmatpush.msra.mxu1 %v6113_v46 }
 0x34a   :  { %2329 = vmatpush.msra.mxu2 %v7507_v7  ;;  %2349 = vmatpush.msrb.mxu3 %v7508_v10 }
 0x34b   :  { %2290 = vmatpush.msra.mxu0 %v6118_v24  ;;  %2310 = vmatpush.msra.mxu1 %v6121_v11 }
 0x34c   :  { %2330 = vmatpush.msra.mxu2 %v7509_v14  ;;  %2350 = vmatpush.msrb.mxu3 %v7510_v17 }
 0x34d   :  { %2291 = vmatpush.msra.mxu0 %v6126_v37  ;;  %2311 = vmatpush.msra.mxu1 %v6129_v27 }
 0x34e   :  { %2331 = vmatpush.msra.mxu2 %v7511_v6  ;;  %2351 = vmatpush.msrb.mxu3 %v7512_v20 }
 0x34f   :  { %2292 = vmatpush.msra.mxu0 %v6134_v42  ;;  %2312 = vmatpush.msra.mxu1 %v6137_v50 }
 0x350   :  { %2332 = vmatpush.msra.mxu2 %v7513_v47  ;;  %2352 = vmatpush.msrb.mxu3 %v7514_v0 }
 0x351   :  { %2293 = vmatpush.msra.mxu0 %v6142_v48  ;;  %2313 = vmatpush.msra.mxu1 %v6145_v45 }
 0x352   :  { %2333 = vmatpush.msra.mxu2 %v7515_v51  ;;  %2353 = vmatpush.msrb.mxu3 %v7516_v4 }
 0x353   :  { %2294 = vmatpush.msra.mxu0 %v6150_v2  ;;  %2314 = vmatpush.msra.mxu1 %v6153_v5 }
 0x354   :  { %2334 = vmatpush.msra.mxu2 %v6156_v8  ;;  %2354 = vmatpush.msrb.mxu3 %v7517_v9  ;;  %v1938_v9 = vrot.slane %v5965_v44, 6 }
 0x355   :  { %2295 = vmatpush.msra.mxu0 %v6160_v13  ;;  %2315 = vmatpush.msra.mxu1 %v6163_v35 }
 0x356   :  { %2335 = vmatpush.msra.mxu2 %v6166_v60  ;;  %2355 = vmatpush.msrb.mxu3 %v6169_v43 }
 0x387   :  { %v1812_v28 = vpop.f32.mrf.mxu0  ;;  %v1832_v58 = vpop.f32.mrf.mxu1 }
 0x388   :  { %v1875_v19 = vadd.f32 %v1812_v28, %v1784_v25  ;;  %v1876_v12 = vadd.f32 %v1832_v58, %v1785_v22 }
 0x38a   :  { %v3481_v53 = vmul.f32 -1.442695, %v1875_v19  ;;  %v3482_v41 = vmul.f32 -1.442695, %v1876_v12 }
 0x38c   :  { %3654 = vpow2.f32 %v3481_v53 }
 0x38d   :  { %3656 = vpow2.f32 %v3482_v41 }
 0x38e   :  { %v1872_v55 = vpop.f32.mrf.mxu3  ;;  %v1852_v31 = vpop.f32.mrf.mxu2 }
 0x38f   :  { %v1878_v26 = vadd.f32 %v1872_v55, %v1787_v32  ;;  %v1877_v62 = vadd.f32 %v1852_v31, %v1786_v49 }
 0x391   :  { %v3483_v16 = vmul.f32 -1.442695, %v1878_v26 }
 0x392   :  { %v3655_v1 = vpop.eup %3654 }
 0x393   :  { %v3657_v54 = vpop.eup %3656  ;;  %v1882_v52 = vadd.f32 1.0, %v3655_v1  ;;  %3658 = vpow2.f32 %v3483_v16 }
 0x394   :  { %v1901_v18 = vadd.f32 1.0, %v3657_v54  ;;  %v1788_v54 = vld [vmem:[#allocation2 + $0x50] sm:$0xc0] }
 0x395   :  { %3660 = vrcp.f32 %v1882_v52  ;;  %v1894_v61 = vand.u32 2147483648, %v1882_v52  ;;  %v1892_v7 = vand.u32 2147483647, %v1882_v52  ;;  %vm1888_vm3 = vweird.f32 %v1882_v52 }
 0x396   :  { %3662 = vrcp.f32 %v1901_v18  ;;  %v1913_v15 = vand.u32 2147483648, %v1901_v18  ;;  %v1911_v14 = vand.u32 2147483647, %v1901_v18  ;;  %vm1907_vm4 = vweird.f32 %v1901_v18 }
 0x397   :  { %v1895_v20 = vor.u32 1.1754944e-38, %v1894_v61  ;;  %vm1893_vm7 = vcmp.eq.f32.partialorder %v1892_v7, 8.507059e+37  ;;  %v1791_v61 = vld [vmem:[#allocation2 + $0x48] sm:$0xc0] }
 0x398   :  { %v1914_v51 = vor.u32 1.1754944e-38, %v1913_v15  ;;  %vm1912_vm8 = vcmp.eq.f32.partialorder %v1911_v14, 8.507059e+37 }
 0x399   :  { %v3659_v34 = vpop.eup %3658 }
 0x39a   :  { %v6172_v30 = vadd.f32 1.0, %v3659_v34 }
 0x39b   :  { %v3661_v33 = vpop.eup %3660 }
 0x39c   :  { %v3663_v63 = vpop.eup %3662  ;;  %v1884_v56 = vmul.f32 %v3661_v33, %v1882_v52  ;;  %3664 = vrcp.f32 %v6172_v30  ;;  %vm1889_vm1 = vweird.f32 %v3661_v33  ;;  %v1789_v52 = vld [vmem:[#allocation2 + $0x68] sm:$0xc0]  ;;  %v1933_v34 = vand.u32 2147483648, %v6172_v30 }
 0x39d   :  { %v1903_v38 = vmul.f32 %v3663_v63, %v1901_v18  ;;  %3666 = vtanh.f32 %v1877_v62  ;;  %vm1908_vm2 = vweird.f32 %v3663_v63  ;;  %vm1890_vm5 = vmor %vm1888_vm3, %vm1889_vm1  ;;  %vm1927_vm10 = vweird.f32 %v6172_v30 }
 0x39e   :  { %v1885_v29 = vsub.f32 1.0, %v1884_v56  ;;  %vm1909_vm6 = vmor %vm1907_vm4, %vm1908_vm2  ;;  %v1931_v49 = vand.u32 2147483647, %v6172_v30 }
 0x39f   :  { %v1904_v59 = vsub.f32 1.0, %v1903_v38  ;;  %v1934_v38 = vor.u32 1.1754944e-38, %v1933_v34  ;;  %v6241_v34 = vld [vmem:[#allocation8 + $0x400] sm:$0xff] }
 0x3a0   :  { %v1886_v39 = vmul.f32 %v3661_v33, %v1885_v29  ;;  %vm1932_vm12 = vcmp.eq.f32.partialorder %v1931_v49, 8.507059e+37  ;;  %v6244_v49 = vld [vmem:[#allocation8 + $0x408] sm:$0xff] }
 0x3a1   :  { %v1905_v10 = vmul.f32 %v3663_v63, %v1904_v59 }
 0x3a2   :  { %v3665_v17 = vpop.eup %3664  ;;  %v1887_v6 = vadd.f32 %v3661_v33, %v1886_v39 }
 0x3a3   :  { %v1906_v47 = vadd.f32 %v3663_v63, %v1905_v10  ;;  %v1923_v0 = vmul.f32 %v3665_v17, %v6172_v30  ;;  %v3667_v25 = vpop.eup %3666  ;;  %vm1928_vm9 = vweird.f32 %v3665_v17 }
 0x3a4   :  { %v1891_v4 = vsel %vm1890_vm5, %v3661_v33, %v1887_v6  ;;  %vm1929_vm11 = vmor %vm1927_vm10, %vm1928_vm9 }
 0x3a5   :  { %v1896_v28 = vsel %vm1893_vm7, %v1895_v20, %v1891_v4  ;;  %v1910_v22 = vsel %vm1909_vm6, %v3663_v63, %v1906_v47  ;;  %v1924_v58 = vsub.f32 1.0, %v1923_v0  ;;  %v6188_v20 = vld [vmem:[#allocation8 + $0x508] sm:$0xff]  ;;  %v6196_v4 = vld [vmem:[#allocation8 + $0x518] sm:$0xff] }
 0x3a6   :  { %v1915_v19 = vsel %vm1912_vm8, %v1914_v51, %v1910_v22  ;;  %v1941_v12 = vmul.f32 %v3667_v25, %v1896_v28  ;;  %v6193_v51 = vld [vmem:[#allocation8 + $0x510] sm:$0xff]  ;;  %v6203_v25 = vld [vmem:[#allocation8 + $0x4c8] sm:$0xff]  ;;  %v6210_v22 = vld [vmem:[#allocation8 + $0x4d8] sm:$0xff] }
 0x3a7   :  { %v1940_v53 = vmul.f32 %v1938_v9, %v1915_v19  ;;  %v1925_v41 = vmul.f32 %v3665_v17, %v1924_v58  ;;  %v6200_v9 = vld [vmem:[#allocation8 + $0x4c0] sm:$0xff]  ;;  %v6207_v28 = vld [vmem:[#allocation8 + $0x4d0] sm:$0xff] }
 0x3a8   :  { %v6213_v19 = vld [vmem:[#allocation8 + $0x480] sm:$0xff] }
 0x3a9   :  { %v6177_v26 = vadd.f32 %v1941_v12, %v1940_v53  ;;  %v1926_v18 = vadd.f32 %v3665_v17, %v1925_v41  ;;  %v6216_v12 = vld [vmem:[#allocation8 + $0x488] sm:$0xff]  ;;  %v6219_v53 = vld [vmem:[#allocation8 + $0x490] sm:$0xff]  ;;  %v6222_v41 = vld [vmem:[#allocation8 + $0x498] sm:$0xff] }
 0x3ab   :  { %3668 = vtanh.f32 %v6177_v26  ;;  %v1930_v63 = vsel %vm1929_vm11, %v3665_v17, %v1926_v18  ;;  %v6185_v17 = vld [vmem:[#allocation8 + $0x500] sm:$0xff]  ;;  %v6236_v18 = vld [vmem:[#allocation8 + $0x458] sm:$0xff] }
 0x3ac   :  { %v1935_v15 = vsel %vm1932_vm12, %v1934_v38, %v1930_v63  ;;  %v6252_v63 = vld [vmem:[#allocation8 + $0x410] sm:$0xff] }
 0x3b1   :  { %v3669_v59 = vpop.eup %3668 }
 0x3b2   :  { %v1962_v32 = vpop.f32.mrf.mxu0  ;;  %v1982_v55 = vpop.f32.mrf.mxu1  ;;  %v1944_v7 = vmul.f32 %v3669_v59, %v1935_v15  ;;  %v6263_v59 = vld [vmem:[#allocation8 + $0x3c8] sm:$0xff]  ;;  %v6266_v15 = vld [vmem:[#allocation8 + $0x3d0] sm:$0xff] }
 0x3b3   :  { %v2029_v16 = vrot.slane %v1962_v32, 2  ;;  %v2030_v1 = vrot.slane %v1982_v55, 2  ;;  %v6225_v55 = vld [vmem:[#allocation8 + $0x440] sm:$0xff]  ;;  %7519 = vst [vmem:[#allocation22_spill] sm:$0xff] %v6263_v59 }
 0x3b4   :  { %2131 = vmatmul.f32.vlgmr.msrb.gmra.mxu0 %v1944_v7  ;;  %2151 = vmatmul.f32.vlgmr.msrb.gmra.mxu1 %v1944_v7  ;;  %7520 = vst [vmem:[#allocation23_spill] sm:$0xff] %v6266_v15 }
 0x3b5   :  { %v2037_v44 = vadd.f32 %v2029_v16, %v1788_v54  ;;  %v2038_v31 = vadd.f32 %v2030_v1, %v1789_v52  ;;  %2171 = vmatmul.f32.vlgmr.msrb.gmra.mxu2 %v1944_v7  ;;  %2191 = vmatmul.f32.vlgmr.msra.gmra.mxu3 %v1944_v7  ;;  %v6228_v16 = vld [vmem:[#allocation8 + $0x448] sm:$0xff]  ;;  %v1790_v1 = vld [vmem:[#allocation2 + $0x8] sm:$0xc0]  ;;  %v6233_v52 = vld [vmem:[#allocation8 + $0x450] sm:$0xff] }
 0x3b6   :  { %2453 = vmatpush.msrb.mxu0 %v6185_v17  ;;  %2473 = vmatpush.msrb.mxu1 %v6188_v20 }
 0x3b7   :  { %v3484_v33 = vmul.f32 -1.442695, %v2037_v44  ;;  %v3485_v62 = vmul.f32 -1.442695, %v2038_v31  ;;  %2493 = vmatpush.msrb.mxu2 %v6193_v51  ;;  %2513 = vmatpush.msra.mxu3 %v6196_v4 }
 0x3b8   :  { %2454 = vmatpush.msrb.mxu0 %v6200_v9  ;;  %2474 = vmatpush.msrb.mxu1 %v6203_v25 }
 0x3b9   :  { %3670 = vpow2.f32 %v3484_v33  ;;  %v2022_v56 = vpop.f32.mrf.mxu3  ;;  %v2002_v0 = vpop.f32.mrf.mxu2  ;;  %2494 = vmatpush.msrb.mxu2 %v6207_v28  ;;  %2514 = vmatpush.msra.mxu3 %v6210_v22 }
 0x3ba   :  { %3672 = vpow2.f32 %v3485_v62  ;;  %v2032_v29 = vrot.slane %v2022_v56, 2  ;;  %v2031_v58 = vrot.slane %v2002_v0, 2  ;;  %2455 = vmatpush.msrb.mxu0 %v6213_v19  ;;  %2475 = vmatpush.msrb.mxu1 %v6216_v12  ;;  %v6255_v56 = vld [vmem:[#allocation8 + $0x418] sm:$0xff] }
 0x3bb   :  { %2495 = vmatpush.msrb.mxu2 %v6219_v53  ;;  %2515 = vmatpush.msra.mxu3 %v6222_v41 }
 0x3bc   :  { %v2040_v39 = vadd.f32 %v2032_v29, %v1791_v61  ;;  %2456 = vmatpush.msrb.mxu0 %v6225_v55  ;;  %2476 = vmatpush.msrb.mxu1 %v6228_v16  ;;  %v2039_v31 = vadd.f32 %v2031_v58, %v1790_v1  ;;  %v6260_v29 = vld [vmem:[#allocation8 + $0x3c0] sm:$0xff]  ;;  %v6283_v1 = vld [vmem:[#allocation8 + $0x390] sm:$0xff] }
 0x3bd   :  { %2496 = vmatpush.msrb.mxu2 %v6233_v52  ;;  %2516 = vmatpush.msra.mxu3 %v6236_v18  ;;  %7518 = vst [vmem:[#allocation18_spill] sm:$0xff] %v6260_v29 }
 0x3be   :  { %v3486_v10 = vmul.f32 -1.442695, %v2040_v39  ;;  %2457 = vmatpush.msrb.mxu0 %v6241_v34  ;;  %2477 = vmatpush.msrb.mxu1 %v6244_v49  ;;  %v6269_v39 = vld [vmem:[#allocation8 + $0x3d8] sm:$0xff]  ;;  %7524 = vst [vmem:[#allocation27_spill] sm:$0xff] %v6283_v1 }
 0x3bf   :  { %v3671_v14 = vpop.eup %3670  ;;  %2497 = vmatpush.msrb.mxu2 %v6252_v63  ;;  %2517 = vmatpush.msra.mxu3 %v6255_v56  ;;  %7521 = vst [vmem:[#allocation16_spill] sm:$0xff] %v6269_v39 }
 0x3c0   :  { %v3673_v30 = vpop.eup %3672  ;;  %v6183_v6 = vadd.f32 1.0, %v3671_v14  ;;  %3674 = vpow2.f32 %v3486_v10  ;;  %2458 = vmatpush.msrb.mxu0 %v6260_v29  ;;  %2478 = vmatpush.msrb.mxu1 %v6263_v59  ;;  %v6273_v14 = vld [vmem:[#allocation8 + $0x380] sm:$0xff] }
 0x3c1   :  { %v6191_v47 = vadd.f32 1.0, %v3673_v30  ;;  %2498 = vmatpush.msrb.mxu2 %v6266_v15  ;;  %2518 = vmatpush.msra.mxu3 %v6269_v39  ;;  %7522 = vst [vmem:[#allocation20_spill] sm:$0xff] %v6273_v14  ;;  %v6276_v30 = vld [vmem:[#allocation8 + $0x388] sm:$0xff]  ;;  %v6318_v39 = vld [vmem:[#allocation8 + $0x300] sm:$0xff]  ;;  %v6334_v15 = vld [vmem:[#allocation8 + $0x310] sm:$0xff] }
 0x3c2   :  { %3676 = vrcp.f32 %v6183_v6  ;;  %v2056_v10 = vand.u32 2147483648, %v6183_v6  ;;  %2459 = vmatpush.msrb.mxu0 %v6273_v14  ;;  %7523 = vst [vmem:[#allocation26_spill] sm:$0xff] %v6276_v30  ;;  %2479 = vmatpush.msrb.mxu1 %v6276_v30  ;;  %v6292_v30 = vld [vmem:[#allocation8 + $0x340] sm:$0xff]  ;;  %vm2050_vm15 = vweird.f32 %v6183_v6 }
 0x3c3   :  { %3678 = vrcp.f32 %v6191_v47  ;;  %v2075_v0 = vand.u32 2147483648, %v6191_v47  ;;  %2499 = vmatpush.msrb.mxu2 %v6283_v1  ;;  %7526 = vst [vmem:[#allocation21_spill] sm:$0xff] %v6292_v30  ;;  %vm2069_vm0 = vweird.f32 %v6191_v47  ;;  %v6343_v29 = vld [vmem:[#allocation8 + $0x2c0] sm:$0xff] }
 0x3c4   :  { %2460 = vmatpush.msrb.mxu0 %v6292_v30  ;;  %v2057_v30 = vor.u32 1.1754944e-38, %v2056_v10  ;;  %7532 = vst [vmem:[#allocation25_spill] sm:$0xff] %v6318_v39 }
 0x3c5   :  { %v2076_v10 = vor.u32 1.1754944e-38, %v2075_v0 }
 0x3c6   :  { %v3675_v32 = vpop.eup %3674  ;;  %2461 = vmatpush.msrb.mxu0 %v6318_v39  ;;  %v6337_v39 = vld [vmem:[#allocation8 + $0x318] sm:$0xff] }
 0x3c7   :  { %v6231_v54 = vadd.f32 1.0, %v3675_v32  ;;  %v2054_v32 = vand.u32 2147483647, %v6183_v6 }
 0x3c8   :  { %v6239_v44 = vpop.eup %3676  ;;  %2462 = vmatpush.msrb.mxu0 %v6343_v29 }
 0x3c9   :  { %v6247_v33 = vpop.eup %3678  ;;  %v2046_v62 = vmul.f32 %v6239_v44, %v6183_v6  ;;  %3680 = vrcp.f32 %v6231_v54  ;;  %vm2051_vm13 = vweird.f32 %v6239_v44  ;;  %vm2055_vm3 = vcmp.eq.f32.partialorder %v2054_v32, 8.507059e+37 }
 0x3ca   :  { %v2065_v38 = vmul.f32 %v6247_v33, %v6191_v47  ;;  %3682 = vtanh.f32 %v2039_v31  ;;  %v6286_v31 = vld [vmem:[#allocation8 + $0x398] sm:$0xff]  ;;  %vm2070_vm14 = vweird.f32 %v6247_v33  ;;  %vm6311_vm1 = vmor %vm2050_vm15, %vm2051_vm13  ;;  %vm2089_vm6 = vweird.f32 %v6231_v54 }
 0x3cb   :  { %v2047_v61 = vsub.f32 1.0, %v2046_v62  ;;  %7525 = vst [vmem:[#allocation17_spill] sm:$0xff] %v6286_v31  ;;  %2519 = vmatpush.msra.mxu3 %v6286_v31  ;;  %v6302_v31 = vld [vmem:[#allocation8 + $0x350] sm:$0xff]  ;;  %vm6327_vm2 = vmor %vm2069_vm0, %vm2070_vm14 }
 0x3cc   :  { %v2066_v7 = vsub.f32 1.0, %v2065_v38  ;;  %v2073_v38 = vand.u32 2147483647, %v6191_v47  ;;  %7528 = vst [vmem:[#allocation31_spill] sm:$0xff] %v6302_v31  ;;  %2500 = vmatpush.msrb.mxu2 %v6302_v31  ;;  %v6321_v31 = vld [vmem:[#allocation8 + $0x308] sm:$0xff]  ;;  %v2100_v47 = vrot.slane %v6033_v21, 2 }
 0x3cd   :  { %v2048_v58 = vmul.f32 %v6239_v44, %v2047_v61  ;;  %v6295_v61 = vld [vmem:[#allocation8 + $0x348] sm:$0xff]  ;;  %7533 = vst [vmem:[#allocation34_spill] sm:$0xff] %v6321_v31 }
 0x3ce   :  { %v2067_v62 = vmul.f32 %v6247_v33, %v2066_v7  ;;  %7527 = vst [vmem:[#allocation30_spill] sm:$0xff] %v6295_v61  ;;  %2480 = vmatpush.msrb.mxu1 %v6295_v61  ;;  %v6305_v7 = vld [vmem:[#allocation8 + $0x358] sm:$0xff]  ;;  %2501 = vmatpush.msrb.mxu2 %v6334_v15  ;;  %vm2074_vm4 = vcmp.eq.f32.partialorder %v2073_v38, 8.507059e+37  ;;  %v6349_v61 = vld [vmem:[#allocation8 + $0x2d0] sm:$0xff] }
 0x3cf   :  { %v6298_v14 = vpop.eup %3680  ;;  %v2049_v1 = vadd.f32 %v6239_v44, %v2048_v58  ;;  %7529 = vst [vmem:[#allocation19_spill] sm:$0xff] %v6305_v7  ;;  %2520 = vmatpush.msra.mxu3 %v6305_v7  ;;  %v6356_v7 = vld [vmem:[#allocation8 + $0x280] sm:$0xff] }
 0x3d0   :  { %v2068_v58 = vadd.f32 %v6247_v33, %v2067_v62  ;;  %v2085_v6 = vmul.f32 %v6298_v14, %v6231_v54  ;;  %2481 = vmatpush.msrb.mxu1 %v6321_v31  ;;  %v3683_v21 = vpop.eup %3682  ;;  %2502 = vmatpush.msrb.mxu2 %v6349_v61  ;;  %vm2090_vm5 = vweird.f32 %v6298_v14 }
 0x3d1   :  { %v2053_v62 = vsel %vm6311_vm1, %v6239_v44, %v2049_v1  ;;  %2521 = vmatpush.msra.mxu3 %v6337_v39  ;;  %v6346_v44 = vld [vmem:[#allocation8 + $0x2c8] sm:$0xff]  ;;  %2463 = vmatpush.msrb.mxu0 %v6356_v7  ;;  %vm6402_vm7 = vmor %vm2089_vm6, %vm2090_vm5 }
 0x3d2   :  { %v2058_v31 = vsel %vm2055_vm3, %v2057_v30, %v2053_v62  ;;  %v2072_v59 = vsel %vm6327_vm2, %v6247_v33, %v2068_v58  ;;  %v2086_v0 = vsub.f32 1.0, %v2085_v6  ;;  %2482 = vmatpush.msrb.mxu1 %v6346_v44  ;;  %v6352_v30 = vld [vmem:[#allocation8 + $0x2d8] sm:$0xff]  ;;  %v6359_v58 = vld [vmem:[#allocation8 + $0x288] sm:$0xff] }
 0x3d3   :  { %v2077_v32 = vsel %vm2074_vm4, %v2076_v10, %v2072_v59  ;;  %v2103_v1 = vmul.f32 %v3683_v21, %v2058_v31  ;;  %2522 = vmatpush.msra.mxu3 %v6352_v30  ;;  %v6362_v59 = vld [vmem:[#allocation8 + $0x290] sm:$0xff]  ;;  %v6365_v31 = vld [vmem:[#allocation8 + $0x298] sm:$0xff]  ;;  %v6373_v10 = vld [vmem:[#allocation8 + $0x248] sm:$0xff] }
 0x3d4   :  { %v2102_v33 = vmul.f32 %v2100_v47, %v2077_v32  ;;  %v2087_v38 = vmul.f32 %v6298_v14, %v2086_v0  ;;  %2483 = vmatpush.msrb.mxu1 %v6359_v58  ;;  %2503 = vmatpush.msrb.mxu2 %v6362_v59  ;;  %7536 = vst [vmem:[#allocation35_spill] sm:$0xff] %v6365_v31  ;;  %v6370_v47 = vld [vmem:[#allocation8 + $0x240] sm:$0xff]  ;;  %v6378_v21 = vld [vmem:[#allocation8 + $0x250] sm:$0xff]  ;;  %v6381_v0 = vld [vmem:[#allocation8 + $0x258] sm:$0xff]  ;;  %v2095_v32 = vand.u32 2147483648, %v6231_v54 }
 0x3d5   :  { %2523 = vmatpush.msra.mxu3 %v6365_v31  ;;  %7537 = vst [vmem:[#allocation37_spill] sm:$0xff] %v6370_v47  ;;  %2464 = vmatpush.msrb.mxu0 %v6370_v47  ;;  %v6421_v31 = vld [vmem:[#allocation8 + $0x180] sm:$0xff] }
 0x3d6   :  { %v6368_v6 = vadd.f32 %v2103_v1, %v2102_v33  ;;  %7538 = vst [vmem:[#allocation38_spill] sm:$0xff] %v6373_v10  ;;  %2484 = vmatpush.msrb.mxu1 %v6373_v10  ;;  %v2088_v62 = vadd.f32 %v6298_v14, %v2087_v38  ;;  %2504 = vmatpush.msrb.mxu2 %v6378_v21  ;;  %v6386_v1 = vld [vmem:[#allocation8 + $0x200] sm:$0xff]  ;;  %v6389_v33 = vld [vmem:[#allocation8 + $0x208] sm:$0xff]  ;;  %v2093_v38 = vand.u32 2147483647, %v6231_v54  ;;  %v2096_v47 = vor.u32 1.1754944e-38, %v2095_v32 }
 0x3d7   :  { %7539 = vst [vmem:[#allocation24_spill] sm:$0xff] %v6378_v21  ;;  %2524 = vmatpush.msra.mxu3 %v6381_v0  ;;  %2465 = vmatpush.msrb.mxu0 %v6386_v1  ;;  %v6394_v21 = vld [vmem:[#allocation8 + $0x210] sm:$0xff]  ;;  %v6406_v10 = vld [vmem:[#allocation8 + $0x1c0] sm:$0xff] }
 0x3d8   :  { %7540 = vst [vmem:[#allocation29_spill] sm:$0xff] %v6381_v0  ;;  %3684 = vtanh.f32 %v6368_v6  ;;  %2485 = vmatpush.msrb.mxu1 %v6389_v33  ;;  %2505 = vmatpush.msrb.mxu2 %v6394_v21  ;;  %v6397_v0 = vld [vmem:[#allocation8 + $0x218] sm:$0xff]  ;;  %v2092_v54 = vsel %vm6402_vm7, %v6298_v14, %v2088_v62  ;;  %vm2094_vm8 = vcmp.eq.f32.partialorder %v2093_v38, 8.507059e+37  ;;  %v6433_v32 = vld [vmem:[#allocation8 + $0x140] sm:$0xff]  ;;  %v6439_v38 = vld [vmem:[#allocation8 + $0x150] sm:$0xff] }
 0x3d9   :  { %7541 = vst [vmem:[#allocation41_spill] sm:$0xff] %v6386_v1  ;;  %2525 = vmatpush.msra.mxu3 %v6397_v0  ;;  %2466 = vmatpush.msrb.mxu0 %v6406_v10  ;;  %v6427_v1 = vld [vmem:[#allocation8 + $0x190] sm:$0xff]  ;;  %v6430_v14 = vld [vmem:[#allocation8 + $0x198] sm:$0xff] }
 0x3da   :  { %7542 = vst [vmem:[#allocation42_spill] sm:$0xff] %v6389_v33  ;;  %v6409_v33 = vld [vmem:[#allocation8 + $0x1c8] sm:$0xff] }
 0x3db   :  { %7543 = vst [vmem:[#allocation28_spill] sm:$0xff] %v6394_v21  ;;  %2486 = vmatpush.msrb.mxu1 %v6409_v33  ;;  %v6415_v21 = vld [vmem:[#allocation8 + $0x1d0] sm:$0xff]  ;;  %2467 = vmatpush.msrb.mxu0 %v6421_v31 }
 0x3dc   :  { %7544 = vst [vmem:[#allocation33_spill] sm:$0xff] %v6397_v0  ;;  %2506 = vmatpush.msrb.mxu2 %v6415_v21  ;;  %v6418_v0 = vld [vmem:[#allocation8 + $0x1d8] sm:$0xff] }
 0x3dd   :  { %7547 = vst [vmem:[#allocation45_spill] sm:$0xff] %v6406_v10  ;;  %2526 = vmatpush.msra.mxu3 %v6418_v0  ;;  %v6424_v10 = vld [vmem:[#allocation8 + $0x188] sm:$0xff]  ;;  %2468 = vmatpush.msrb.mxu0 %v6433_v32 }
 0x3de   :  { %7548 = vst [vmem:[#allocation46_spill] sm:$0xff] %v6418_v0  ;;  %2487 = vmatpush.msrb.mxu1 %v6424_v10  ;;  %2507 = vmatpush.msrb.mxu2 %v6427_v1  ;;  %v3685_v62 = vpop.eup %3684  ;;  %v2097_v0 = vsel %vm2094_vm8, %v2096_v47, %v2092_v54  ;;  %v6445_v47 = vld [vmem:[#allocation8 + $0x520] sm:$0xff]  ;;  %v6448_v54 = vld [vmem:[#allocation8 + $0x528] sm:$0xff] }
 0x3df   :  { %7549 = vst [vmem:[#allocation32_spill] sm:$0xff] %v6421_v31  ;;  %2527 = vmatpush.msra.mxu3 %v6430_v14  ;;  %v6436_v31 = vld [vmem:[#allocation8 + $0x148] sm:$0xff] }
 0x3e0   :  { %7550 = vst [vmem:[#allocation36_spill] sm:$0xff] %v6424_v10  ;;  %2488 = vmatpush.msrb.mxu1 %v6436_v31  ;;  %v2106_v10 = vmul.f32 %v3685_v62, %v2097_v0  ;;  %2508 = vmatpush.msrb.mxu2 %v6439_v38  ;;  %v6451_v0 = vld [vmem:[#allocation8 + $0x530] sm:$0xff]  ;;  %v6454_v62 = vld [vmem:[#allocation8 + $0x538] sm:$0xff] }
 0x3e1   :  { %7551 = vst [vmem:[#allocation49_spill] sm:$0xff] %v6427_v1  ;;  %v6442_v1 = vld [vmem:[#allocation8 + $0x158] sm:$0xff] }
 0x3e2   :  { %7552 = vst [vmem:[#allocation50_spill] sm:$0xff] %v6430_v14  ;;  %2528 = vmatpush.msra.mxu3 %v6442_v1  ;;  %v2278_v14 = vrot.slane %v2106_v10, 6  ;;  %v6457_v10 = vld [vmem:[#allocation8 + $0x4e0] sm:$0xff] }
 0x3e3   :  { %7553 = vst [vmem:[#allocation40_spill] sm:$0xff] %v6445_v47 }
 0x3e4   :  { %2296 = vmatmul.f32.vlgmr.msra.gmra.mxu0 %v2278_v14  ;;  %2316 = vmatmul.f32.vlgmr.msra.gmra.mxu1 %v2278_v14  ;;  %7554 = vst [vmem:[#allocation39_spill] sm:$0xff] %v6448_v54 }
 0x3e5   :  { %2336 = vmatmul.f32.vlgmr.msra.gmra.mxu2 %v2278_v14  ;;  %2356 = vmatmul.f32.vlgmr.msrb.gmra.mxu3 %v2278_v14  ;;  %7555 = vst [vmem:[#allocation53_spill] sm:$0xff] %v6451_v0  ;;  %v6460_v14 = vld [vmem:[#allocation8 + $0x4e8] sm:$0xff] }
 0x3e6   :  { %2618 = vmatpush.msra.mxu0 %v6445_v47  ;;  %2638 = vmatpush.msra.mxu1 %v6448_v54  ;;  %7556 = vst [vmem:[#allocation54_spill] sm:$0xff] %v6454_v62  ;;  %v6463_v47 = vld [vmem:[#allocation8 + $0x4f0] sm:$0xff]  ;;  %v6466_v54 = vld [vmem:[#allocation8 + $0x4f8] sm:$0xff] }
 0x3e7   :  { %2658 = vmatpush.msra.mxu2 %v6451_v0  ;;  %2678 = vmatpush.msrb.mxu3 %v6454_v62  ;;  %7557 = vst [vmem:[#allocation44_spill] sm:$0xff] %v6457_v10  ;;  %v6469_v0 = vld [vmem:[#allocation8 + $0x4a0] sm:$0xff]  ;;  %v6472_v62 = vld [vmem:[#allocation8 + $0x4a8] sm:$0xff] }
 0x3e8   :  { %2619 = vmatpush.msra.mxu0 %v6457_v10  ;;  %7558 = vst [vmem:[#allocation43_spill] sm:$0xff] %v6460_v14  ;;  %2639 = vmatpush.msra.mxu1 %v6460_v14  ;;  %v6475_v10 = vld [vmem:[#allocation8 + $0x4b0] sm:$0xff]  ;;  %v6478_v14 = vld [vmem:[#allocation8 + $0x4b8] sm:$0xff] }
 0x3e9   :  { %7559 = vst [vmem:[#allocation57_spill] sm:$0xff] %v6463_v47  ;;  %2659 = vmatpush.msra.mxu2 %v6463_v47  ;;  %2679 = vmatpush.msrb.mxu3 %v6466_v54  ;;  %v6481_v47 = vld [vmem:[#allocation8 + $0x460] sm:$0xff] }
 0x3ea   :  { %7560 = vst [vmem:[#allocation58_spill] sm:$0xff] %v6466_v54  ;;  %2620 = vmatpush.msra.mxu0 %v6469_v0  ;;  %2640 = vmatpush.msra.mxu1 %v6472_v62  ;;  %v6484_v54 = vld [vmem:[#allocation8 + $0x468] sm:$0xff] }
 0x3eb   :  { %7561 = vst [vmem:[#allocation48_spill] sm:$0xff] %v6469_v0  ;;  %2660 = vmatpush.msra.mxu2 %v6475_v10  ;;  %2680 = vmatpush.msrb.mxu3 %v6478_v14  ;;  %v6487_v0 = vld [vmem:[#allocation8 + $0x470] sm:$0xff] }
 0x3ec   :  { %7562 = vst [vmem:[#allocation47_spill] sm:$0xff] %v6472_v62  ;;  %2621 = vmatpush.msra.mxu0 %v6481_v47  ;;  %2641 = vmatpush.msra.mxu1 %v6484_v54  ;;  %v6490_v62 = vld [vmem:[#allocation8 + $0x478] sm:$0xff] }
 0x3ed   :  { %7563 = vst [vmem:[#allocation61_spill] sm:$0xff] %v6475_v10  ;;  %2661 = vmatpush.msra.mxu2 %v6487_v0  ;;  %2681 = vmatpush.msrb.mxu3 %v6490_v62  ;;  %v6493_v10 = vld [vmem:[#allocation8 + $0x420] sm:$0xff] }
 0x3ee   :  { %7564 = vst [vmem:[#allocation62_spill] sm:$0xff] %v6478_v14  ;;  %2622 = vmatpush.msra.mxu0 %v6493_v10  ;;  %v6496_v14 = vld [vmem:[#allocation8 + $0x428] sm:$0xff] }
 0x3ef   :  { %7565 = vst [vmem:[#allocation52_spill] sm:$0xff] %v6481_v47  ;;  %2642 = vmatpush.msra.mxu1 %v6496_v14  ;;  %v6499_v47 = vld [vmem:[#allocation8 + $0x430] sm:$0xff] }
 0x3f0   :  { %7566 = vst [vmem:[#allocation51_spill] sm:$0xff] %v6484_v54  ;;  %2662 = vmatpush.msra.mxu2 %v6499_v47  ;;  %v6502_v54 = vld [vmem:[#allocation8 + $0x438] sm:$0xff] }
 0x3f1   :  { %7567 = vst [vmem:[#allocation65_spill] sm:$0xff] %v6487_v0  ;;  %2682 = vmatpush.msrb.mxu3 %v6502_v54  ;;  %v6505_v0 = vld [vmem:[#allocation8 + $0x3e0] sm:$0xff] }
 0x3f2   :  { %7568 = vst [vmem:[#allocation66_spill] sm:$0xff] %v6490_v62  ;;  %2623 = vmatpush.msra.mxu0 %v6505_v0  ;;  %v6508_v62 = vld [vmem:[#allocation8 + $0x3e8] sm:$0xff] }
 0x3f3   :  { %7569 = vst [vmem:[#allocation56_spill] sm:$0xff] %v6493_v10  ;;  %2643 = vmatpush.msra.mxu1 %v6508_v62  ;;  %v6511_v10 = vld [vmem:[#allocation8 + $0x3f0] sm:$0xff] }
 0x3f4   :  { %7570 = vst [vmem:[#allocation55_spill] sm:$0xff] %v6496_v14  ;;  %2663 = vmatpush.msra.mxu2 %v6511_v10  ;;  %v6514_v14 = vld [vmem:[#allocation8 + $0x3f8] sm:$0xff] }
 0x3f5   :  { %7571 = vst [vmem:[#allocation69_spill] sm:$0xff] %v6499_v47  ;;  %2683 = vmatpush.msrb.mxu3 %v6514_v14  ;;  %v6517_v47 = vld [vmem:[#allocation8 + $0x3a0] sm:$0xff] }
 0x3f6   :  { %7572 = vst [vmem:[#allocation70_spill] sm:$0xff] %v6502_v54  ;;  %2624 = vmatpush.msra.mxu0 %v6517_v47  ;;  %v6520_v54 = vld [vmem:[#allocation8 + $0x3a8] sm:$0xff] }
 0x3f7   :  { %7573 = vst [vmem:[#allocation60_spill] sm:$0xff] %v6505_v0  ;;  %2644 = vmatpush.msra.mxu1 %v6520_v54  ;;  %v6523_v0 = vld [vmem:[#allocation8 + $0x3b0] sm:$0xff] }
 0x3f8   :  { %7574 = vst [vmem:[#allocation59_spill] sm:$0xff] %v6508_v62  ;;  %2664 = vmatpush.msra.mxu2 %v6523_v0  ;;  %v6526_v62 = vld [vmem:[#allocation8 + $0x3b8] sm:$0xff]  ;;  %2625 = vmatpush.msra.mxu0 %v6094_v23  ;;  %v6547_v23 = vld [vmem:[#allocation8 + $0x2f0] sm:$0xff] }
 0x3f9   :  { %7575 = vst [vmem:[#allocation73_spill] sm:$0xff] %v6514_v14  ;;  %2684 = vmatpush.msrb.mxu3 %v6526_v62  ;;  %2645 = vmatpush.msra.mxu1 %v6097_v40  ;;  %v6531_v14 = vld [vmem:[#allocation8 + $0x370] sm:$0xff]  ;;  %v6550_v40 = vld [vmem:[#allocation8 + $0x2f8] sm:$0xff] }
 0x3fa   :  { %7576 = vst [vmem:[#allocation74_spill] sm:$0xff] %v6517_v47  ;;  %2665 = vmatpush.msra.mxu2 %v6531_v14  ;;  %v6534_v47 = vld [vmem:[#allocation8 + $0x378] sm:$0xff]  ;;  %2626 = vmatpush.msra.mxu0 %v6102_v57  ;;  %v6555_v57 = vld [vmem:[#allocation8 + $0x2b0] sm:$0xff] }
 0x3fb   :  { %7577 = vst [vmem:[#allocation64_spill] sm:$0xff] %v6520_v54  ;;  %2685 = vmatpush.msrb.mxu3 %v6534_v47  ;;  %2646 = vmatpush.msra.mxu1 %v6105_v3  ;;  %v6558_v3 = vld [vmem:[#allocation8 + $0x2b8] sm:$0xff] }
 0x3fc   :  { %7578 = vst [vmem:[#allocation63_spill] sm:$0xff] %v6523_v0  ;;  %v6539_v0 = vld [vmem:[#allocation8 + $0x330] sm:$0xff]  ;;  %2627 = vmatpush.msra.mxu0 %v6110_v36 }
 0x3fd   :  { %7579 = vst [vmem:[#allocation68_spill] sm:$0xff] %v6526_v62  ;;  %2666 = vmatpush.msra.mxu2 %v6539_v0  ;;  %v6542_v62 = vld [vmem:[#allocation8 + $0x338] sm:$0xff]  ;;  %2647 = vmatpush.msra.mxu1 %v6113_v46  ;;  %v6563_v36 = vld [vmem:[#allocation8 + $0x270] sm:$0xff] }
 0x3fe   :  { %7580 = vst [vmem:[#allocation67_spill] sm:$0xff] %v6531_v14  ;;  %2686 = vmatpush.msrb.mxu3 %v6542_v62  ;;  %2628 = vmatpush.msra.mxu0 %v6118_v24  ;;  %v6566_v46 = vld [vmem:[#allocation8 + $0x278] sm:$0xff]  ;;  %v6571_v24 = vld [vmem:[#allocation8 + $0x230] sm:$0xff] }
 0x3ff   :  { %7581 = vst [vmem:[#allocation79_spill] sm:$0xff] %v6534_v47  ;;  %2667 = vmatpush.msra.mxu2 %v6547_v23  ;;  %2648 = vmatpush.msra.mxu1 %v6121_v11  ;;  %v6574_v11 = vld [vmem:[#allocation8 + $0x238] sm:$0xff] }
 0x400   :  { %7582 = vst [vmem:[#allocation72_spill] sm:$0xff] %v6539_v0  ;;  %2687 = vmatpush.msrb.mxu3 %v6550_v40  ;;  %2629 = vmatpush.msra.mxu0 %v6126_v37  ;;  %v6579_v37 = vld [vmem:[#allocation8 + $0x1f0] sm:$0xff] }
 0x401   :  { %7583 = vst [vmem:[#allocation71_spill] sm:$0xff] %v6542_v62  ;;  %2668 = vmatpush.msra.mxu2 %v6555_v57  ;;  %2649 = vmatpush.msra.mxu1 %v6129_v27  ;;  %v6582_v27 = vld [vmem:[#allocation8 + $0x1f8] sm:$0xff] }
 0x402   :  { %7584 = vst [vmem:[#allocation76_spill] sm:$0xff] %v6547_v23  ;;  %2688 = vmatpush.msrb.mxu3 %v6558_v3  ;;  %2630 = vmatpush.msra.mxu0 %v6134_v42  ;;  %v6588_v42 = vld [vmem:[#allocation8 + $0x1b8] sm:$0xff] }
 0x403   :  { %7585 = vst [vmem:[#allocation75_spill] sm:$0xff] %v6550_v40  ;;  %2669 = vmatpush.msra.mxu2 %v6563_v36  ;;  %2650 = vmatpush.msra.mxu1 %v6137_v50 }
 0x404   :  { %7586 = vst [vmem:[#allocation78_spill] sm:$0xff] %v6555_v57  ;;  %2689 = vmatpush.msrb.mxu3 %v6566_v46  ;;  %2631 = vmatpush.msra.mxu0 %v6142_v48 }
 0x405   :  { %7587 = vst [vmem:[#allocation77_spill] sm:$0xff] %v6558_v3  ;;  %2670 = vmatpush.msra.mxu2 %v6571_v24  ;;  %2651 = vmatpush.msra.mxu1 %v6145_v45 }
 0x406   :  { %7588 = vst [vmem:[#allocation80_spill] sm:$0xff] %v6563_v36  ;;  %2690 = vmatpush.msrb.mxu3 %v6574_v11  ;;  %2632 = vmatpush.msra.mxu0 %v6150_v2 }
 0x407   :  { %7589 = vst [vmem:[#allocation81_spill] sm:$0xff] %v6566_v46  ;;  %2671 = vmatpush.msra.mxu2 %v6579_v37  ;;  %2652 = vmatpush.msra.mxu1 %v6153_v5  ;;  %v2108_v5 = vld [vmem:[#allocation2 + $0x20] sm:$0xc]  ;;  %v2110_v46 = vld [vmem:[#allocation2 + $0x38] sm:$0xc] }
 0x408   :  { %7590 = vst [vmem:[#allocation82_spill] sm:$0xff] %v6571_v24  ;;  %2691 = vmatpush.msrb.mxu3 %v6582_v27  ;;  %2633 = vmatpush.msra.mxu0 %v6160_v13 }
 0x409   :  { %7591 = vst [vmem:[#allocation83_spill] sm:$0xff] %v6574_v11  ;;  %2672 = vmatpush.msra.mxu2 %v6156_v8  ;;  %2653 = vmatpush.msra.mxu1 %v6163_v35 }
 0x40a   :  { %7592 = vst [vmem:[#allocation84_spill] sm:$0xff] %v6579_v37  ;;  %2692 = vmatpush.msrb.mxu3 %v6588_v42 }
 0x40b   :  { %7593 = vst [vmem:[#allocation85_spill] sm:$0xff] %v6582_v27  ;;  %2673 = vmatpush.msra.mxu2 %v6166_v60  ;;  %v2107_v27 = vld [vmem:[#allocation2 + $0x40] sm:$0xc] }
 0x40c   :  { %7594 = vst [vmem:[#allocation86_spill] sm:$0xff] %v6588_v42  ;;  %2693 = vmatpush.msrb.mxu3 %v6169_v43 }
 0x431   :  { %v2132_v50 = vpop.f32.mrf.mxu0  ;;  %v2152_v48 = vpop.f32.mrf.mxu1 }
 0x432   :  { %v2199_v45 = vrot.slane %v2132_v50, 6  ;;  %v2200_v2 = vrot.slane %v2152_v48, 6 }
 0x434   :  { %v2207_v37 = vadd.f32 %v2199_v45, %v2107_v27  ;;  %v2208_v8 = vadd.f32 %v2200_v2, %v2108_v5  ;;  %v2109_v45 = vld [vmem:[#allocation2 + $0x10] sm:$0xc] }
 0x436   :  { %v3487_v11 = vmul.f32 -1.442695, %v2207_v37  ;;  %v3488_v24 = vmul.f32 -1.442695, %v2208_v8 }
 0x438   :  { %3686 = vpow2.f32 %v3487_v11  ;;  %v2192_v42 = vpop.f32.mrf.mxu3  ;;  %v2172_v50 = vpop.f32.mrf.mxu2 }
 0x439   :  { %3688 = vpow2.f32 %v3488_v24  ;;  %v2202_v13 = vrot.slane %v2192_v42, 6  ;;  %v2201_v48 = vrot.slane %v2172_v50, 6 }
 0x43b   :  { %v2210_v35 = vadd.f32 %v2202_v13, %v2110_v46  ;;  %v2209_v11 = vadd.f32 %v2201_v48, %v2109_v45 }
 0x43d   :  { %v3489_v36 = vmul.f32 -1.442695, %v2210_v35 }
 0x43e   :  { %v3687_v60 = vpop.eup %3686 }
 0x43f   :  { %v3689_v3 = vpop.eup %3688  ;;  %v2214_v43 = vadd.f32 1.0, %v3687_v60  ;;  %3690 = vpow2.f32 %v3489_v36 }
 0x440   :  { %v2233_v57 = vadd.f32 1.0, %v3689_v3 }
 0x441   :  { %3692 = vrcp.f32 %v2214_v43  ;;  %v2226_v13 = vand.u32 2147483648, %v2214_v43  ;;  %v2224_v3 = vand.u32 2147483647, %v2214_v43  ;;  %vm2220_vm11 = vweird.f32 %v2214_v43 }
 0x442   :  { %3694 = vrcp.f32 %v2233_v57  ;;  %v2245_v35 = vand.u32 2147483648, %v2233_v57  ;;  %v2243_v50 = vand.u32 2147483647, %v2233_v57  ;;  %vm2239_vm12 = vweird.f32 %v2233_v57 }
 0x443   :  { %v2227_v48 = vor.u32 1.1754944e-38, %v2226_v13  ;;  %vm2225_vm15 = vcmp.eq.f32.partialorder %v2224_v3, 8.507059e+37  ;;  %v2112_v3 = vld [vmem:[#allocation2 + $0x68] sm:$0x30] }
 0x444   :  { %vm2244_vm0 = vcmp.eq.f32.partialorder %v2243_v50, 8.507059e+37 }
 0x445   :  { %v3691_v27 = vpop.eup %3690 }
 0x446   :  { %v2253_v37 = vadd.f32 1.0, %v3691_v27 }
 0x447   :  { %v3693_v2 = vpop.eup %3692 }
 0x448   :  { %v3695_v5 = vpop.eup %3694  ;;  %v2216_v24 = vmul.f32 %v3693_v2, %v2214_v43  ;;  %3696 = vrcp.f32 %v2253_v37  ;;  %vm2221_vm9 = vweird.f32 %v3693_v2  ;;  %vm2259_vm2 = vweird.f32 %v2253_v37 }
 0x449   :  { %v2235_v42 = vmul.f32 %v3695_v5, %v2233_v57  ;;  %3698 = vtanh.f32 %v2209_v11  ;;  %vm2240_vm10 = vweird.f32 %v3695_v5  ;;  %vm2222_vm13 = vmor %vm2220_vm11, %vm2221_vm9 }
 0x44a   :  { %v2217_v46 = vsub.f32 1.0, %v2216_v24  ;;  %v2270_v24 = vrot.slane %v6177_v26, 6  ;;  %vm2241_vm14 = vmor %vm2239_vm12, %vm2240_vm10 }
 0x44b   :  { %v2236_v8 = vsub.f32 1.0, %v2235_v42  ;;  %v2246_v42 = vor.u32 1.1754944e-38, %v2245_v35  ;;  %v2111_v35 = vld [vmem:[#allocation2 + $0x50] sm:$0x30] }
 0x44c   :  { %v2218_v36 = vmul.f32 %v3693_v2, %v2217_v46 }
 0x44d   :  { %v2237_v60 = vmul.f32 %v3695_v5, %v2236_v8 }
 0x44e   :  { %v3697_v40 = vpop.eup %3696  ;;  %v2219_v23 = vadd.f32 %v3693_v2, %v2218_v36 }
 0x44f   :  { %v2238_v27 = vadd.f32 %v3695_v5, %v2237_v60  ;;  %v2255_v45 = vmul.f32 %v3697_v40, %v2253_v37  ;;  %v3699_v46 = vpop.eup %3698  ;;  %vm2260_vm1 = vweird.f32 %v3697_v40 }
 0x450   :  { %v2223_v11 = vsel %vm2222_vm13, %v3693_v2, %v2219_v23  ;;  %v2265_v2 = vand.u32 2147483648, %v2253_v37  ;;  %vm2261_vm3 = vmor %vm2259_vm2, %vm2260_vm1 }
 0x451   :  { %v2228_v62 = vsel %vm2225_vm15, %v2227_v48, %v2223_v11  ;;  %v2242_v0 = vsel %vm2241_vm14, %v3695_v5, %v2238_v27  ;;  %v2256_v8 = vsub.f32 1.0, %v2255_v45  ;;  %v2263_v5 = vand.u32 2147483647, %v2253_v37 }
 0x452   :  { %v2247_v47 = vsel %vm2244_vm0, %v2246_v42, %v2242_v0  ;;  %v2273_v14 = vmul.f32 %v3699_v46, %v2228_v62  ;;  %v2266_v48 = vor.u32 1.1754944e-38, %v2265_v2  ;;  %v2114_v46 = vld [vmem:[#allocation2 + $0x48] sm:$0x30]  ;;  %v7602_v2 = vld [vmem:[#allocation17_spill] sm:$0xff] }
 0x453   :  { %v2272_v36 = vmul.f32 %v2270_v24, %v2247_v47  ;;  %v2257_v43 = vmul.f32 %v3697_v40, %v2256_v8  ;;  %vm2264_vm4 = vcmp.eq.f32.partialorder %v2263_v5, 8.507059e+37  ;;  %v7603_v5 = vld [vmem:[#allocation21_spill] sm:$0xff] }
 0x455   :  { %v6596_v57 = vadd.f32 %v2273_v14, %v2272_v36  ;;  %v2258_v54 = vadd.f32 %v3697_v40, %v2257_v43 }
 0x457   :  { %3700 = vtanh.f32 %v6596_v57  ;;  %v2262_v47 = vsel %vm2261_vm3, %v3697_v40, %v2258_v54 }
 0x458   :  { %v2267_v24 = vsel %vm2264_vm4, %v2266_v48, %v2262_v47 }
 0x45d   :  { %v3701_v27 = vpop.eup %3700 }
 0x45e   :  { %v2276_v11 = vmul.f32 %v3701_v27, %v2267_v24  ;;  %v7607_v24 = vld [vmem:[#allocation25_spill] sm:$0xff] }
 0x460   :  { %v2451_v36 = vrot.slane %v2276_v11, 2  ;;  %v2435_v11 = vrot.slane %v6368_v6, 2 }
 0x461   :  { %v2297_v13 = vpop.f32.mrf.mxu0  ;;  %v2317_v60 = vpop.f32.mrf.mxu1 }
 0x462   :  { %v2364_v26 = vrot.slane %v2297_v13, 4  ;;  %v2365_v23 = vrot.slane %v2317_v60, 4  ;;  %2469 = vmatmul.f32.vlgmr.msrb.gmra.mxu0 %v2451_v36  ;;  %2489 = vmatmul.f32.vlgmr.msrb.gmra.mxu1 %v2451_v36 }
 0x463   :  { %2509 = vmatmul.f32.vlgmr.msrb.gmra.mxu2 %v2451_v36  ;;  %2529 = vmatmul.f32.vlgmr.msra.gmra.mxu3 %v2451_v36 }
 0x464   :  { %v2372_v50 = vadd.f32 %v2364_v26, %v2111_v35  ;;  %v2373_v0 = vadd.f32 %v2365_v23, %v2112_v3  ;;  %2791 = vmatpush.msrb.mxu0 %v6185_v17  ;;  %2811 = vmatpush.msrb.mxu1 %v6188_v20  ;;  %v7601_v23 = vld [vmem:[#allocation27_spill] sm:$0xff] }
 0x465   :  { %2831 = vmatpush.msrb.mxu2 %v6193_v51  ;;  %2851 = vmatpush.msra.mxu3 %v6196_v4  ;;  %v2113_v51 = vld [vmem:[#allocation2 + $0x8] sm:$0x30] }
 0x466   :  { %v3490_v62 = vmul.f32 -1.442695, %v2372_v50  ;;  %v3491_v14 = vmul.f32 -1.442695, %v2373_v0  ;;  %2792 = vmatpush.msrb.mxu0 %v6200_v9  ;;  %2812 = vmatpush.msrb.mxu1 %v6203_v25  ;;  %v7604_v50 = vld [vmem:[#allocation30_spill] sm:$0xff] }
 0x467   :  { %2832 = vmatpush.msrb.mxu2 %v6207_v28  ;;  %2852 = vmatpush.msra.mxu3 %v6210_v22 }
 0x468   :  { %3702 = vpow2.f32 %v3490_v62  ;;  %v2357_v45 = vpop.f32.mrf.mxu3  ;;  %v2337_v60 = vpop.f32.mrf.mxu2  ;;  %2793 = vmatpush.msrb.mxu0 %v6213_v19  ;;  %2813 = vmatpush.msrb.mxu1 %v6216_v12  ;;  %v7595_v12 = vld [vmem:[#allocation18_spill] sm:$0xff]  ;;  %v7605_v62 = vld [vmem:[#allocation31_spill] sm:$0xff] }
 0x469   :  { %3704 = vpow2.f32 %v3491_v14  ;;  %v2367_v42 = vrot.slane %v2357_v45, 4  ;;  %v2366_v17 = vrot.slane %v2337_v60, 4  ;;  %2833 = vmatpush.msrb.mxu2 %v6219_v53  ;;  %2853 = vmatpush.msra.mxu3 %v6222_v41  ;;  %v7596_v53 = vld [vmem:[#allocation22_spill] sm:$0xff]  ;;  %v7606_v14 = vld [vmem:[#allocation19_spill] sm:$0xff] }
 0x46a   :  { %2794 = vmatpush.msrb.mxu0 %v6225_v55  ;;  %2814 = vmatpush.msrb.mxu1 %v6228_v16  ;;  %v7597_v55 = vld [vmem:[#allocation23_spill] sm:$0xff]  ;;  %v7598_v16 = vld [vmem:[#allocation16_spill] sm:$0xff]  ;;  %v7611_v60 = vld [vmem:[#allocation38_spill] sm:$0xff] }
 0x46b   :  { %v2375_v8 = vadd.f32 %v2367_v42, %v2114_v46  ;;  %2834 = vmatpush.msrb.mxu2 %v6233_v52  ;;  %2854 = vmatpush.msra.mxu3 %v6236_v18  ;;  %v2374_v25 = vadd.f32 %v2366_v17, %v2113_v51  ;;  %v7608_v42 = vld [vmem:[#allocation34_spill] sm:$0xff]  ;;  %v7613_v17 = vld [vmem:[#allocation29_spill] sm:$0xff]  ;;  %v7616_v51 = vld [vmem:[#allocation28_spill] sm:$0xff] }
 0x46c   :  { %2795 = vmatpush.msrb.mxu0 %v6241_v34  ;;  %2815 = vmatpush.msrb.mxu1 %v6244_v49  ;;  %v7599_v34 = vld [vmem:[#allocation20_spill] sm:$0xff]  ;;  %v7600_v49 = vld [vmem:[#allocation26_spill] sm:$0xff] }
 0x46d   :  { %v3492_v43 = vmul.f32 -1.442695, %v2375_v8  ;;  %2835 = vmatpush.msrb.mxu2 %v6252_v63  ;;  %2855 = vmatpush.msra.mxu3 %v6255_v56 }
 0x46e   :  { %v3703_v37 = vpop.eup %3702  ;;  %2796 = vmatpush.msrb.mxu0 %v7595_v12  ;;  %2816 = vmatpush.msrb.mxu1 %v7596_v53  ;;  %v7620_v12 = vld [vmem:[#allocation32_spill] sm:$0xff] }
 0x46f   :  { %v3705_v54 = vpop.eup %3704  ;;  %v6599_v40 = vadd.f32 1.0, %v3703_v37  ;;  %3706 = vpow2.f32 %v3492_v43  ;;  %2836 = vmatpush.msrb.mxu2 %v7597_v55  ;;  %2856 = vmatpush.msra.mxu3 %v7598_v16  ;;  %v7621_v53 = vld [vmem:[#allocation36_spill] sm:$0xff] }
 0x470   :  { %v6603_v13 = vadd.f32 1.0, %v3705_v54  ;;  %2797 = vmatpush.msrb.mxu0 %v7599_v34  ;;  %2817 = vmatpush.msrb.mxu1 %v7600_v49  ;;  %v7626_v34 = vld [vmem:[#allocation53_spill] sm:$0xff]  ;;  %v7627_v49 = vld [vmem:[#allocation54_spill] sm:$0xff] }
 0x471   :  { %3708 = vrcp.f32 %v6599_v40  ;;  %v2391_v18 = vand.u32 2147483648, %v6599_v40  ;;  %v2389_v26 = vand.u32 2147483647, %v6599_v40  ;;  %2837 = vmatpush.msrb.mxu2 %v7601_v23  ;;  %2857 = vmatpush.msra.mxu3 %v7602_v2  ;;  %vm2385_vm7 = vweird.f32 %v6599_v40  ;;  %v7635_v23 = vld [vmem:[#allocation62_spill] sm:$0xff]  ;;  %v7636_v2 = vld [vmem:[#allocation52_spill] sm:$0xff] }
 0x472   :  { %3710 = vrcp.f32 %v6603_v13  ;;  %v2410_v63 = vand.u32 2147483648, %v6603_v13  ;;  %v2408_v3 = vand.u32 2147483647, %v6603_v13  ;;  %2798 = vmatpush.msrb.mxu0 %v7603_v5  ;;  %2818 = vmatpush.msrb.mxu1 %v7604_v50  ;;  %vm2404_vm8 = vweird.f32 %v6603_v13  ;;  %v7639_v5 = vld [vmem:[#allocation66_spill] sm:$0xff]  ;;  %v7640_v50 = vld [vmem:[#allocation56_spill] sm:$0xff] }
 0x473   :  { %2838 = vmatpush.msrb.mxu2 %v7605_v62  ;;  %2858 = vmatpush.msra.mxu3 %v7606_v14  ;;  %v2392_v48 = vor.u32 1.1754944e-38, %v2391_v18  ;;  %vm2390_vm11 = vcmp.eq.f32.partialorder %v2389_v26, 8.507059e+37  ;;  %v7625_v18 = vld [vmem:[#allocation39_spill] sm:$0xff]  ;;  %v7634_v26 = vld [vmem:[#allocation61_spill] sm:$0xff]  ;;  %v7643_v62 = vld [vmem:[#allocation70_spill] sm:$0xff] }
 0x474   :  { %2799 = vmatpush.msrb.mxu0 %v7607_v24  ;;  %2819 = vmatpush.msrb.mxu1 %v7608_v42  ;;  %v2411_v46 = vor.u32 1.1754944e-38, %v2410_v63  ;;  %vm2409_vm12 = vcmp.eq.f32.partialorder %v2408_v3, 8.507059e+37  ;;  %v7632_v63 = vld [vmem:[#allocation48_spill] sm:$0xff]  ;;  %v7638_v3 = vld [vmem:[#allocation65_spill] sm:$0xff]  ;;  %v7649_v42 = vld [vmem:[#allocation63_spill] sm:$0xff] }
 0x475   :  { %v3707_v20 = vpop.eup %3706  ;;  %2839 = vmatpush.msrb.mxu2 %v6334_v15  ;;  %2859 = vmatpush.msra.mxu3 %v6337_v39  ;;  %v7609_v39 = vld [vmem:[#allocation35_spill] sm:$0xff]  ;;  %v7644_v14 = vld [vmem:[#allocation60_spill] sm:$0xff] }
 0x476   :  { %v6619_v4 = vadd.f32 1.0, %v3707_v20  ;;  %2800 = vmatpush.msrb.mxu0 %v6343_v29  ;;  %2820 = vmatpush.msrb.mxu1 %v6346_v44  ;;  %v7610_v44 = vld [vmem:[#allocation37_spill] sm:$0xff]  ;;  %v7648_v24 = vld [vmem:[#allocation64_spill] sm:$0xff] }
 0x477   :  { %v3709_v9 = vpop.eup %3708  ;;  %2840 = vmatpush.msrb.mxu2 %v6349_v61  ;;  %2860 = vmatpush.msra.mxu3 %v6352_v30  ;;  %v7612_v30 = vld [vmem:[#allocation24_spill] sm:$0xff] }
 0x478   :  { %v3711_v28 = vpop.eup %3710  ;;  %v2381_v22 = vmul.f32 %v3709_v9, %v6599_v40  ;;  %3712 = vrcp.f32 %v6619_v4  ;;  %vm2386_vm5 = vweird.f32 %v3709_v9  ;;  %2801 = vmatpush.msrb.mxu0 %v6356_v7  ;;  %2821 = vmatpush.msrb.mxu1 %v6359_v58  ;;  %v2430_v7 = vand.u32 2147483648, %v6619_v4  ;;  %v7614_v58 = vld [vmem:[#allocation41_spill] sm:$0xff] }
 0x479   :  { %v2400_v19 = vmul.f32 %v3711_v28, %v6603_v13  ;;  %3714 = vtanh.f32 %v2374_v25  ;;  %vm2405_vm6 = vweird.f32 %v3711_v28  ;;  %vm2387_vm9 = vmor %vm2385_vm7, %vm2386_vm5  ;;  %2841 = vmatpush.msrb.mxu2 %v6362_v59  ;;  %2861 = vmatpush.msra.mxu3 %v7609_v39  ;;  %v7615_v59 = vld [vmem:[#allocation42_spill] sm:$0xff]  ;;  %vm2424_vm14 = vweird.f32 %v6619_v4  ;;  %v7618_v25 = vld [vmem:[#allocation45_spill] sm:$0xff] }
 0x47a   :  { %v2382_v41 = vsub.f32 1.0, %v2381_v22  ;;  %vm2406_vm10 = vmor %vm2404_vm8, %vm2405_vm6  ;;  %2802 = vmatpush.msrb.mxu0 %v7610_v44  ;;  %2822 = vmatpush.msrb.mxu1 %v7611_v60  ;;  %v2428_v20 = vand.u32 2147483647, %v6619_v4  ;;  %v7619_v22 = vld [vmem:[#allocation46_spill] sm:$0xff]  ;;  %v7656_v39 = vld [vmem:[#allocation75_spill] sm:$0xff] }
 0x47b   :  { %v2401_v52 = vsub.f32 1.0, %v2400_v19  ;;  %2842 = vmatpush.msrb.mxu2 %v7612_v30  ;;  %2862 = vmatpush.msra.mxu3 %v7613_v17  ;;  %v2431_v19 = vor.u32 1.1754944e-38, %v2430_v7  ;;  %v4161_v44 = vld [vmem:[#allocation8 + $0x2a0] sm:$0xff]  ;;  %v4162_v60 = vld [vmem:[#allocation8 + $0x2a8] sm:$0xff]  ;;  %v7658_v30 = vld [vmem:[#allocation77_spill] sm:$0xff] }
 0x47c   :  { %v2383_v56 = vmul.f32 %v3709_v9, %v2382_v41  ;;  %2803 = vmatpush.msrb.mxu0 %v7614_v58  ;;  %2823 = vmatpush.msrb.mxu1 %v7615_v59  ;;  %vm2429_vm0 = vcmp.eq.f32.partialorder %v2428_v20, 8.507059e+37  ;;  %v7623_v41 = vld [vmem:[#allocation50_spill] sm:$0xff]  ;;  %v4164_v7 = vld [vmem:[#allocation8 + $0x268] sm:$0xff]  ;;  %v7660_v59 = vld [vmem:[#allocation81_spill] sm:$0xff] }
 0x47d   :  { %v2402_v35 = vmul.f32 %v3711_v28, %v2401_v52  ;;  %2843 = vmatpush.msrb.mxu2 %v7616_v51  ;;  %v7624_v52 = vld [vmem:[#allocation40_spill] sm:$0xff]  ;;  %v4163_v17 = vld [vmem:[#allocation8 + $0x260] sm:$0xff] }
 0x47e   :  { %v6644_v0 = vpop.eup %3712  ;;  %v2384_v47 = vadd.f32 %v3709_v9, %v2383_v56  ;;  %2804 = vmatpush.msrb.mxu0 %v7618_v25  ;;  %2824 = vmatpush.msrb.mxu1 %v6409_v33  ;;  %v7633_v56 = vld [vmem:[#allocation47_spill] sm:$0xff]  ;;  %v7659_v58 = vld [vmem:[#allocation80_spill] sm:$0xff] }
 0x47f   :  { %v2403_v27 = vadd.f32 %v3711_v28, %v2402_v35  ;;  %v2420_v45 = vmul.f32 %v6644_v0, %v6619_v4  ;;  %v3715_v36 = vpop.eup %3714  ;;  %vm2425_vm13 = vweird.f32 %v6644_v0  ;;  %2844 = vmatpush.msrb.mxu2 %v6415_v21  ;;  %v7622_v4 = vld [vmem:[#allocation49_spill] sm:$0xff]  ;;  %v7637_v35 = vld [vmem:[#allocation51_spill] sm:$0xff] }
 0x480   :  { %v2388_v8 = vsel %vm2387_vm9, %v3709_v9, %v2384_v47  ;;  %v7617_v9 = vld [vmem:[#allocation33_spill] sm:$0xff]  ;;  %vm2426_vm15 = vmor %vm2424_vm14, %vm2425_vm13  ;;  %2805 = vmatpush.msrb.mxu0 %v7620_v12  ;;  %2825 = vmatpush.msrb.mxu1 %v7621_v53  ;;  %v4165_v20 = vld [vmem:[#allocation8 + $0x220] sm:$0xff] }
 0x481   :  { %v2393_v43 = vsel %vm2390_vm11, %v2392_v48, %v2388_v8  ;;  %v2407_v37 = vsel %vm2406_vm10, %v3711_v28, %v2403_v27  ;;  %v2421_v54 = vsub.f32 1.0, %v2420_v45  ;;  %2863 = vmatpush.msra.mxu3 %v7617_v9  ;;  %2845 = vmatpush.msrb.mxu2 %v7622_v4  ;;  %v7642_v47 = vld [vmem:[#allocation69_spill] sm:$0xff]  ;;  %v7645_v48 = vld [vmem:[#allocation59_spill] sm:$0xff]  ;;  %v7647_v45 = vld [vmem:[#allocation74_spill] sm:$0xff] }
 0x482   :  { %v2412_v40 = vsel %vm2409_vm12, %v2411_v46, %v2407_v37  ;;  %v2438_v6 = vmul.f32 %v3715_v36, %v2393_v43  ;;  %2806 = vmatpush.msrb.mxu0 %v6433_v32  ;;  %2826 = vmatpush.msrb.mxu1 %v6436_v31  ;;  %v7628_v32 = vld [vmem:[#allocation44_spill] sm:$0xff]  ;;  %v7629_v31 = vld [vmem:[#allocation43_spill] sm:$0xff]  ;;  %v7646_v27 = vld [vmem:[#allocation73_spill] sm:$0xff] }
 0x483   :  { %v2437_v13 = vmul.f32 %v2435_v11, %v2412_v40  ;;  %v2422_v15 = vmul.f32 %v6644_v0, %v2421_v54  ;;  %2864 = vmatpush.msra.mxu3 %v7619_v22  ;;  %2846 = vmatpush.msrb.mxu2 %v6439_v38  ;;  %v7630_v38 = vld [vmem:[#allocation57_spill] sm:$0xff]  ;;  %v7650_v11 = vld [vmem:[#allocation68_spill] sm:$0xff]  ;;  %v4155_v46 = vld [vmem:[#allocation8 + $0x360] sm:$0xff] }
 0x484   :  { %v4156_v8 = vld [vmem:[#allocation8 + $0x368] sm:$0xff]  ;;  %v4157_v37 = vld [vmem:[#allocation8 + $0x320] sm:$0xff]  ;;  %v7664_v12 = vld [vmem:[#allocation85_spill] sm:$0xff] }
 0x485   :  { %v6668_v29 = vadd.f32 %v2438_v6, %v2437_v13  ;;  %v2423_v61 = vadd.f32 %v6644_v0, %v2422_v15  ;;  %2865 = vmatpush.msra.mxu3 %v7623_v41  ;;  %v7651_v36 = vld [vmem:[#allocation67_spill] sm:$0xff]  ;;  %v7653_v54 = vld [vmem:[#allocation72_spill] sm:$0xff]  ;;  %v7661_v9 = vld [vmem:[#allocation82_spill] sm:$0xff] }
 0x486   :  { %v7652_v43 = vld [vmem:[#allocation79_spill] sm:$0xff]  ;;  %v7655_v15 = vld [vmem:[#allocation76_spill] sm:$0xff] }
 0x487   :  { %3716 = vtanh.f32 %v6668_v29  ;;  %v2427_v28 = vsel %vm2426_vm15, %v6644_v0, %v2423_v61  ;;  %2866 = vmatpush.msra.mxu3 %v6442_v1  ;;  %v7631_v1 = vld [vmem:[#allocation58_spill] sm:$0xff]  ;;  %v7641_v0 = vld [vmem:[#allocation55_spill] sm:$0xff]  ;;  %v4171_v41 = vld [vmem:[#allocation8 + $0x1b0] sm:$0xff] }
 0x488   :  { %v2432_v16 = vsel %vm2429_vm0, %v2431_v19, %v2427_v28  ;;  %v7654_v40 = vld [vmem:[#allocation71_spill] sm:$0xff]  ;;  %v7657_v61 = vld [vmem:[#allocation78_spill] sm:$0xff]  ;;  %v7663_v19 = vld [vmem:[#allocation84_spill] sm:$0xff] }
 0x489   :  { %v4159_v6 = vld [vmem:[#allocation8 + $0x2e0] sm:$0xff]  ;;  %v4160_v13 = vld [vmem:[#allocation8 + $0x2e8] sm:$0xff] }
 0x48a   :  { %v4166_v51 = vld [vmem:[#allocation8 + $0x228] sm:$0xff]  ;;  %v4167_v28 = vld [vmem:[#allocation8 + $0x1e0] sm:$0xff] }
 0x48b   :  { %v7662_v25 = vld [vmem:[#allocation83_spill] sm:$0xff] }
 0x48c   :  { %v4168_v22 = vld [vmem:[#allocation8 + $0x1e8] sm:$0xff]  ;;  %v4169_v53 = vld [vmem:[#allocation8 + $0x1a0] sm:$0xff] }
 0x48d   :  { %v3717_v55 = vpop.eup %3716  ;;  %v4170_v4 = vld [vmem:[#allocation8 + $0x1a8] sm:$0xff] }
 0x48e   :  { %v2441_v33 = vmul.f32 %v3717_v55, %v2432_v16  ;;  %v7665_v55 = vld [vmem:[#allocation86_spill] sm:$0xff] }
 0x48f   :  { %v4172_v16 = vld [vmem:[#allocation8 + $0x160] sm:$0xff] }
 0x490   :  { %v2616_v21 = vrot.slane %v2441_v33, 4  ;;  %v4173_v33 = vld [vmem:[#allocation8 + $0x168] sm:$0xff] }
 0x492   :  { %2634 = vmatmul.f32.vlgmr.msra.gmra.mxu0 %v2616_v21  ;;  %2654 = vmatmul.f32.vlgmr.msra.gmra.mxu1 %v2616_v21 }
 0x493   :  { %2674 = vmatmul.f32.vlgmr.msra.gmra.mxu2 %v2616_v21  ;;  %2694 = vmatmul.f32.vlgmr.msrb.gmra.mxu3 %v2616_v21  ;;  %v4174_v21 = vld [vmem:[#allocation8 + $0x170] sm:$0xff] }
 0x494   :  { %2956 = vmatpush.msra.mxu0 %v7624_v52  ;;  %2976 = vmatpush.msra.mxu1 %v7625_v18  ;;  %v4175_v52 = vld [vmem:[#allocation8 + $0x178] sm:$0xff] }
 0x495   :  { %2996 = vmatpush.msra.mxu2 %v7626_v34  ;;  %3016 = vmatpush.msrb.mxu3 %v7627_v49 }
 0x496   :  { %2957 = vmatpush.msra.mxu0 %v7628_v32  ;;  %2977 = vmatpush.msra.mxu1 %v7629_v31  ;;  %v2442_v31 = vld [vmem:[#allocation2 + $0x40] sm:$0x30] }
 0x497   :  { %2997 = vmatpush.msra.mxu2 %v7630_v38  ;;  %3017 = vmatpush.msrb.mxu3 %v7631_v1  ;;  %v2443_v38 = vld [vmem:[#allocation2 + $0x20] sm:$0x30] }
 0x498   :  { %2958 = vmatpush.msra.mxu0 %v7632_v63  ;;  %2978 = vmatpush.msra.mxu1 %v7633_v56 }
 0x499   :  { %2998 = vmatpush.msra.mxu2 %v7634_v26  ;;  %3018 = vmatpush.msrb.mxu3 %v7635_v23 }
 0x49a   :  { %2959 = vmatpush.msra.mxu0 %v7636_v2  ;;  %2979 = vmatpush.msra.mxu1 %v7637_v35  ;;  %v2445_v35 = vld [vmem:[#allocation2 + $0x38] sm:$0x30] }
 0x49b   :  { %2999 = vmatpush.msra.mxu2 %v7638_v3  ;;  %3019 = vmatpush.msrb.mxu3 %v7639_v5 }
 0x49c   :  { %2960 = vmatpush.msra.mxu0 %v7640_v50  ;;  %2980 = vmatpush.msra.mxu1 %v7641_v0 }
 0x49d   :  { %3000 = vmatpush.msra.mxu2 %v7642_v47  ;;  %3020 = vmatpush.msrb.mxu3 %v7643_v62 }
 0x49e   :  { %2961 = vmatpush.msra.mxu0 %v7644_v14  ;;  %2981 = vmatpush.msra.mxu1 %v7645_v48 }
 0x49f   :  { %3001 = vmatpush.msra.mxu2 %v6511_v10  ;;  %3021 = vmatpush.msrb.mxu3 %v7646_v27  ;;  %v4158_v10 = vld [vmem:[#allocation8 + $0x328] sm:$0xff] }
 0x4a0   :  { %2962 = vmatpush.msra.mxu0 %v7647_v45  ;;  %2982 = vmatpush.msra.mxu1 %v7648_v24  ;;  %v2444_v45 = vld [vmem:[#allocation2 + $0x10] sm:$0x30] }
 0x4a1   :  { %3002 = vmatpush.msra.mxu2 %v7649_v42  ;;  %3022 = vmatpush.msrb.mxu3 %v7650_v11 }
 0x4a2   :  { %2963 = vmatpush.msra.mxu0 %v4155_v46  ;;  %2983 = vmatpush.msra.mxu1 %v4156_v8 }
 0x4a3   :  { %3003 = vmatpush.msra.mxu2 %v7651_v36  ;;  %3023 = vmatpush.msrb.mxu3 %v7652_v43 }
 0x4a4   :  { %2964 = vmatpush.msra.mxu0 %v4157_v37  ;;  %2984 = vmatpush.msra.mxu1 %v4158_v10 }
 0x4a5   :  { %3004 = vmatpush.msra.mxu2 %v7653_v54  ;;  %3024 = vmatpush.msrb.mxu3 %v7654_v40 }
 0x4a6   :  { %2965 = vmatpush.msra.mxu0 %v4159_v6  ;;  %2985 = vmatpush.msra.mxu1 %v4160_v13 }
 0x4a7   :  { %3005 = vmatpush.msra.mxu2 %v7655_v15  ;;  %3025 = vmatpush.msrb.mxu3 %v7656_v39 }
 0x4a8   :  { %2966 = vmatpush.msra.mxu0 %v4161_v44  ;;  %2986 = vmatpush.msra.mxu1 %v4162_v60 }
 0x4a9   :  { %3006 = vmatpush.msra.mxu2 %v7657_v61  ;;  %3026 = vmatpush.msrb.mxu3 %v7658_v30 }
 0x4aa   :  { %2967 = vmatpush.msra.mxu0 %v4163_v17  ;;  %2987 = vmatpush.msra.mxu1 %v4164_v7  ;;  %v2608_v17 = vrot.slane %v6596_v57, 6 }
 0x4ab   :  { %3007 = vmatpush.msra.mxu2 %v7659_v58  ;;  %3027 = vmatpush.msrb.mxu3 %v7660_v59 }
 0x4ac   :  { %2968 = vmatpush.msra.mxu0 %v4165_v20  ;;  %2988 = vmatpush.msra.mxu1 %v4166_v51 }
 0x4ad   :  { %3008 = vmatpush.msra.mxu2 %v7661_v9  ;;  %3028 = vmatpush.msrb.mxu3 %v7662_v25 }
 0x4ae   :  { %2969 = vmatpush.msra.mxu0 %v4167_v28  ;;  %2989 = vmatpush.msra.mxu1 %v4168_v22 }
 0x4af   :  { %3009 = vmatpush.msra.mxu2 %v7663_v19  ;;  %3029 = vmatpush.msrb.mxu3 %v7664_v12 }
 0x4b0   :  { %2970 = vmatpush.msra.mxu0 %v4169_v53  ;;  %2990 = vmatpush.msra.mxu1 %v4170_v4 }
 0x4b1   :  { %3010 = vmatpush.msra.mxu2 %v4171_v41  ;;  %3030 = vmatpush.msrb.mxu3 %v7665_v55 }
 0x4b2   :  { %2971 = vmatpush.msra.mxu0 %v4172_v16  ;;  %2991 = vmatpush.msra.mxu1 %v4173_v33  ;;  %v2446_v33 = vld [vmem:[#allocation2 + $0x50] sm:$0xc] }
 0x4b3   :  { %3011 = vmatpush.msra.mxu2 %v4174_v21  ;;  %3031 = vmatpush.msrb.mxu3 %v4175_v52  ;;  %v2447_v21 = vld [vmem:[#allocation2 + $0x68] sm:$0xc] }
 0x4df   :  { %v2470_v18 = vpop.f32.mrf.mxu0  ;;  %v2490_v34 = vpop.f32.mrf.mxu1 }
 0x4e0   :  { %v2537_v49 = vrot.slane %v2470_v18, 4  ;;  %v2538_v32 = vrot.slane %v2490_v34, 4 }
 0x4e2   :  { %v2545_v1 = vadd.f32 %v2537_v49, %v2442_v31  ;;  %v2546_v63 = vadd.f32 %v2538_v32, %v2443_v38 }
 0x4e4   :  { %v3493_v56 = vmul.f32 -1.442695, %v2545_v1  ;;  %v3494_v26 = vmul.f32 -1.442695, %v2546_v63 }
 0x4e6   :  { %3718 = vpow2.f32 %v3493_v56  ;;  %v2530_v23 = vpop.f32.mrf.mxu3  ;;  %v2510_v14 = vpop.f32.mrf.mxu2 }
 0x4e7   :  { %3720 = vpow2.f32 %v3494_v26  ;;  %v2540_v2 = vrot.slane %v2530_v23, 4  ;;  %v2539_v48 = vrot.slane %v2510_v14, 4 }
 0x4e9   :  { %v2548_v3 = vadd.f32 %v2540_v2, %v2445_v35  ;;  %v2547_v11 = vadd.f32 %v2539_v48, %v2444_v45  ;;  %v2449_v2 = vld [vmem:[#allocation2 + $0x48] sm:$0xc] }
 0x4ea   :  { %v2448_v45 = vld [vmem:[#allocation2 + $0x8] sm:$0xc] }
 0x4eb   :  { %v3495_v5 = vmul.f32 -1.442695, %v2548_v3 }
 0x4ec   :  { %v3719_v50 = vpop.eup %3718 }
 0x4ed   :  { %v3721_v0 = vpop.eup %3720  ;;  %v2552_v47 = vadd.f32 1.0, %v3719_v50  ;;  %3722 = vpow2.f32 %v3495_v5 }
 0x4ee   :  { %v2571_v62 = vadd.f32 1.0, %v3721_v0 }
 0x4ef   :  { %3724 = vrcp.f32 %v2552_v47  ;;  %v2564_v10 = vand.u32 2147483648, %v2552_v47  ;;  %v2562_v6 = vand.u32 2147483647, %v2552_v47  ;;  %vm2558_vm3 = vweird.f32 %v2552_v47 }
 0x4f0   :  { %3726 = vrcp.f32 %v2571_v62  ;;  %v2583_v54 = vand.u32 2147483648, %v2571_v62  ;;  %v2581_v15 = vand.u32 2147483647, %v2571_v62  ;;  %vm2577_vm4 = vweird.f32 %v2571_v62 }
 0x4f1   :  { %v2565_v60 = vor.u32 1.1754944e-38, %v2564_v10  ;;  %vm2563_vm7 = vcmp.eq.f32.partialorder %v2562_v6, 8.507059e+37 }
 0x4f2   :  { %v2584_v7 = vor.u32 1.1754944e-38, %v2583_v54  ;;  %vm2582_vm8 = vcmp.eq.f32.partialorder %v2581_v15, 8.507059e+37 }
 0x4f3   :  { %v3723_v27 = vpop.eup %3722 }
 0x4f4   :  { %v2591_v24 = vadd.f32 1.0, %v3723_v27 }
 0x4f5   :  { %v3725_v42 = vpop.eup %3724 }
 0x4f6   :  { %v3727_v46 = vpop.eup %3726  ;;  %v2554_v8 = vmul.f32 %v3725_v42, %v2552_v47  ;;  %3728 = vrcp.f32 %v2591_v24  ;;  %vm2559_vm1 = vweird.f32 %v3725_v42  ;;  %v2603_v16 = vand.u32 2147483648, %v2591_v24 }
 0x4f7   :  { %v2573_v36 = vmul.f32 %v3727_v46, %v2571_v62  ;;  %3730 = vtanh.f32 %v2547_v11  ;;  %vm2578_vm2 = vweird.f32 %v3727_v46  ;;  %vm2560_vm5 = vmor %vm2558_vm3, %vm2559_vm1  ;;  %vm2597_vm10 = vweird.f32 %v2591_v24 }
 0x4f8   :  { %v2555_v43 = vsub.f32 1.0, %v2554_v8  ;;  %vm2579_vm6 = vmor %vm2577_vm4, %vm2578_vm2  ;;  %v2601_v52 = vand.u32 2147483647, %v2591_v24  ;;  %v2604_v38 = vor.u32 1.1754944e-38, %v2603_v16 }
 0x4f9   :  { %v2574_v37 = vsub.f32 1.0, %v2573_v36 }
 0x4fa   :  { %v2556_v40 = vmul.f32 %v3725_v42, %v2555_v43  ;;  %vm2602_vm12 = vcmp.eq.f32.partialorder %v2601_v52, 8.507059e+37 }
 0x4fb   :  { %v2575_v13 = vmul.f32 %v3727_v46, %v2574_v37 }
 0x4fc   :  { %v3729_v39 = vpop.eup %3728  ;;  %v2557_v44 = vadd.f32 %v3725_v42, %v2556_v40 }
 0x4fd   :  { %v2576_v61 = vadd.f32 %v3727_v46, %v2575_v13  ;;  %v2593_v30 = vmul.f32 %v3729_v39, %v2591_v24  ;;  %v3731_v59 = vpop.eup %3730  ;;  %vm2598_vm9 = vweird.f32 %v3729_v39 }
 0x4fe   :  { %v2561_v58 = vsel %vm2560_vm5, %v3725_v42, %v2557_v44  ;;  %vm2599_vm11 = vmor %vm2597_vm10, %vm2598_vm9 }
 0x4ff   :  { %v2566_v20 = vsel %vm2563_vm7, %v2565_v60, %v2561_v58  ;;  %v2580_v51 = vsel %vm2579_vm6, %v3727_v46, %v2576_v61  ;;  %v2594_v9 = vsub.f32 1.0, %v2593_v30 }
 0x500   :  { %v2585_v25 = vsel %vm2582_vm8, %v2584_v7, %v2580_v51  ;;  %v2611_v28 = vmul.f32 %v3731_v59, %v2566_v20 }
 0x501   :  { %v2610_v22 = vmul.f32 %v2608_v17, %v2585_v25  ;;  %v2595_v19 = vmul.f32 %v3729_v39, %v2594_v9  ;;  %v2773_v17 = vrot.slane %v6668_v29, 2 }
 0x503   :  { %v6741_v12 = vadd.f32 %v2611_v28, %v2610_v22  ;;  %v2596_v41 = vadd.f32 %v3729_v39, %v2595_v19 }
 0x505   :  { %3732 = vtanh.f32 %v6741_v12  ;;  %v2600_v49 = vsel %vm2599_vm11, %v3729_v39, %v2596_v41 }
 0x506   :  { %v2605_v56 = vsel %vm2602_vm12, %v2604_v38, %v2600_v49  ;;  %v3119_v49 = vld [vmem:[#allocation9 + $0x68] sm:$0xff]  ;;  %v3116_v38 = vld [vmem:[#allocation9 + $0x50] sm:$0xff] }
 0x50b   :  { %v3733_v1 = vpop.eup %3732 }
 0x50c   :  { %v2614_v23 = vmul.f32 %v3733_v1, %v2605_v56  ;;  %v3115_v1 = vld [vmem:[#allocation9 + $0x48] sm:$0xff] }
 0x50e   :  { %v2789_v3 = vrot.slane %v2614_v23, 4 }
 0x50f   :  { %v2635_v53 = vpop.f32.mrf.mxu0  ;;  %v2655_v4 = vpop.f32.mrf.mxu1 }
 0x510   :  { %v2702_v57 = vrot.slane %v2635_v53, 6  ;;  %v2703_v55 = vrot.slane %v2655_v4, 6  ;;  %2807 = vmatmul.f32.vlgmr.msrb.gmra.mxu0 %v2789_v3  ;;  %2827 = vmatmul.f32.vlgmr.msrb.gmra.mxu1 %v2789_v3 }
 0x511   :  { %2847 = vmatmul.f32.vlgmr.msrb.gmra.mxu2 %v2789_v3  ;;  %2867 = vmatmul.f32.vlgmr.msra.gmra.mxu3 %v2789_v3  ;;  %v2781_v3 = vld [vmem:[#allocation2 + $0x20] sm:$0xc0] }
 0x512   :  { %v2710_v18 = vadd.f32 %v2702_v57, %v2446_v33  ;;  %v2711_v34 = vadd.f32 %v2703_v55, %v2447_v21 }
 0x514   :  { %v3496_v32 = vmul.f32 -1.442695, %v2710_v18  ;;  %v3497_v31 = vmul.f32 -1.442695, %v2711_v34  ;;  %v3121_v18 = vld [vmem:[#allocation9 + $0x78] sm:$0xff]  ;;  %v3120_v34 = vld [vmem:[#allocation9 + $0x70] sm:$0xff] }
 0x515   :  { %3161 = vmatpush.msrb.mxu1 %v3121_v18 }
 0x516   :  { %3734 = vpow2.f32 %v3496_v32  ;;  %v2695_v63 = vpop.f32.mrf.mxu3  ;;  %v2675_v14 = vpop.f32.mrf.mxu2  ;;  %v3118_v32 = vld [vmem:[#allocation9 + $0x60] sm:$0xff] }
 0x517   :  { %3736 = vpow2.f32 %v3497_v31  ;;  %v2705_v26 = vrot.slane %v2695_v63, 6  ;;  %v2704_v48 = vrot.slane %v2675_v14, 6  ;;  %3162 = vmatpush.msrb.mxu1 %v3120_v34  ;;  %v3117_v31 = vld [vmem:[#allocation9 + $0x58] sm:$0xff]  ;;  %v3112_v14 = vld [vmem:[#allocation9 + $0x30] sm:$0xff] }
 0x519   :  { %v2713_v35 = vadd.f32 %v2705_v26, %v2449_v2  ;;  %v2712_v11 = vadd.f32 %v2704_v48, %v2448_v45  ;;  %3163 = vmatpush.msrb.mxu1 %v3119_v49  ;;  %v3114_v2 = vld [vmem:[#allocation9 + $0x40] sm:$0xff]  ;;  %v3131_v49 = vld [vmem:[#allocation9 + $0xc8] sm:$0xff] }
 0x51b   :  { %v3498_v5 = vmul.f32 -1.442695, %v2713_v35  ;;  %3164 = vmatpush.msrb.mxu1 %v3118_v32  ;;  %v2780_v35 = vld [vmem:[#allocation2 + $0x40] sm:$0xc0]  ;;  %v2946_v32 = vrot.slane %v6741_v12, 6 }
 0x51c   :  { %v3735_v50 = vpop.eup %3734 }
 0x51d   :  { %v3737_v0 = vpop.eup %3736  ;;  %v2717_v47 = vadd.f32 1.0, %v3735_v50  ;;  %3738 = vpow2.f32 %v3498_v5  ;;  %3165 = vmatpush.msrb.mxu1 %v3117_v31 }
 0x51e   :  { %v2736_v62 = vadd.f32 1.0, %v3737_v0  ;;  %v3113_v0 = vld [vmem:[#allocation9 + $0x38] sm:$0xff] }
 0x51f   :  { %3740 = vrcp.f32 %v2717_v47  ;;  %v2729_v10 = vand.u32 2147483648, %v2717_v47  ;;  %v2727_v6 = vand.u32 2147483647, %v2717_v47  ;;  %vm2723_vm15 = vweird.f32 %v2717_v47  ;;  %3166 = vmatpush.msrb.mxu1 %v3116_v38 }
 0x520   :  { %3742 = vrcp.f32 %v2736_v62  ;;  %v2748_v54 = vand.u32 2147483648, %v2736_v62  ;;  %v2746_v15 = vand.u32 2147483647, %v2736_v62  ;;  %vm2742_vm0 = vweird.f32 %v2736_v62 }
 0x521   :  { %v2730_v60 = vor.u32 1.1754944e-38, %v2729_v10  ;;  %vm2728_vm3 = vcmp.eq.f32.partialorder %v2727_v6, 8.507059e+37  ;;  %3167 = vmatpush.msrb.mxu1 %v3115_v1  ;;  %v3107_v6 = vld [vmem:[#allocation9 + $0x8] sm:$0xff] }
 0x522   :  { %v2749_v7 = vor.u32 1.1754944e-38, %v2748_v54  ;;  %vm2747_vm4 = vcmp.eq.f32.partialorder %v2746_v15, 8.507059e+37 }
 0x523   :  { %v3739_v27 = vpop.eup %3738  ;;  %3168 = vmatpush.msrb.mxu1 %v3114_v2 }
 0x524   :  { %v2756_v24 = vadd.f32 1.0, %v3739_v27  ;;  %v3111_v27 = vld [vmem:[#allocation9 + $0x28] sm:$0xff] }
 0x525   :  { %v3741_v42 = vpop.eup %3740  ;;  %3169 = vmatpush.msrb.mxu1 %v3113_v0  ;;  %v3128_v0 = vld [vmem:[#allocation9 + $0xb0] sm:$0xff] }
 0x526   :  { %v3743_v46 = vpop.eup %3742  ;;  %v2719_v8 = vmul.f32 %v3741_v42, %v2717_v47  ;;  %3744 = vrcp.f32 %v2756_v24  ;;  %vm2724_vm13 = vweird.f32 %v3741_v42  ;;  %v2768_v29 = vand.u32 2147483648, %v2756_v24 }
 0x527   :  { %v2738_v36 = vmul.f32 %v3743_v46, %v2736_v62  ;;  %3746 = vtanh.f32 %v2712_v11  ;;  %vm2743_vm14 = vweird.f32 %v3743_v46  ;;  %vm2725_vm1 = vmor %vm2723_vm15, %vm2724_vm13  ;;  %vm2762_vm6 = vweird.f32 %v2756_v24  ;;  %3170 = vmatpush.msrb.mxu1 %v3112_v14  ;;  %v2785_v14 = vld [vmem:[#allocation2 + $0x68] sm:$0x3] }
 0x528   :  { %v2720_v43 = vsub.f32 1.0, %v2719_v8  ;;  %vm2744_vm2 = vmor %vm2742_vm0, %vm2743_vm14  ;;  %v2766_v41 = vand.u32 2147483647, %v2756_v24  ;;  %v2769_v55 = vor.u32 1.1754944e-38, %v2768_v29 }
 0x529   :  { %v2739_v37 = vsub.f32 1.0, %v2738_v36  ;;  %3171 = vmatpush.msrb.mxu1 %v3111_v27 }
 0x52a   :  { %v2721_v40 = vmul.f32 %v3741_v42, %v2720_v43  ;;  %vm2767_vm8 = vcmp.eq.f32.partialorder %v2766_v41, 8.507059e+37  ;;  %v3108_v43 = vld [vmem:[#allocation9 + $0x10] sm:$0xff] }
 0x52b   :  { %v2740_v13 = vmul.f32 %v3743_v46, %v2739_v37 }
 0x52c   :  { %v3745_v39 = vpop.eup %3744  ;;  %v2722_v44 = vadd.f32 %v3741_v42, %v2721_v40 }
 0x52d   :  { %v2741_v61 = vadd.f32 %v3743_v46, %v2740_v13  ;;  %v2758_v30 = vmul.f32 %v3745_v39, %v2756_v24  ;;  %v3747_v59 = vpop.eup %3746  ;;  %vm2763_vm5 = vweird.f32 %v3745_v39  ;;  %v2783_v24 = vld [vmem:[#allocation2 + $0x38] sm:$0xc0]  ;;  %v3106_v13 = vld [vmem:[#allocation9] sm:$0xff] }
 0x52e   :  { %v2726_v58 = vsel %vm2725_vm1, %v3741_v42, %v2722_v44  ;;  %vm2764_vm7 = vmor %vm2762_vm6, %vm2763_vm5  ;;  %v3110_v42 = vld [vmem:[#allocation9 + $0x20] sm:$0xff] }
 0x52f   :  { %v2731_v20 = vsel %vm2728_vm3, %v2730_v60, %v2726_v58  ;;  %v2745_v51 = vsel %vm2744_vm2, %v3743_v46, %v2741_v61  ;;  %v2759_v9 = vsub.f32 1.0, %v2758_v30  ;;  %3172 = vmatpush.msrb.mxu1 %v3110_v42  ;;  %v3109_v46 = vld [vmem:[#allocation9 + $0x18] sm:$0xff]  ;;  %v3136_v60 = vld [vmem:[#allocation9 + $0xf0] sm:$0xff]  ;;  %v2782_v61 = vld [vmem:[#allocation2 + $0x10] sm:$0xc0] }
 0x530   :  { %v2750_v25 = vsel %vm2747_vm4, %v2749_v7, %v2745_v51  ;;  %v2776_v28 = vmul.f32 %v3747_v59, %v2731_v20  ;;  %v3135_v58 = vld [vmem:[#allocation9 + $0xe8] sm:$0xff] }
 0x531   :  { %v2775_v22 = vmul.f32 %v2773_v17, %v2750_v25  ;;  %v2760_v19 = vmul.f32 %v3745_v39, %v2759_v9  ;;  %3173 = vmatpush.msrb.mxu1 %v3109_v46  ;;  %v3134_v9 = vld [vmem:[#allocation9 + $0xe0] sm:$0xff] }
 0x533   :  { %v6745_v53 = vadd.f32 %v2776_v28, %v2775_v22  ;;  %v2761_v4 = vadd.f32 %v3745_v39, %v2760_v19  ;;  %3174 = vmatpush.msrb.mxu1 %v3108_v43  ;;  %v3133_v19 = vld [vmem:[#allocation9 + $0xd8] sm:$0xff]  ;;  %v3126_v43 = vld [vmem:[#allocation9 + $0xa0] sm:$0xff] }
 0x535   :  { %3748 = vtanh.f32 %v6745_v53  ;;  %v2765_v57 = vsel %vm2764_vm7, %v3745_v39, %v2761_v4  ;;  %3175 = vmatpush.msrb.mxu1 %v3107_v6  ;;  %v3137_v39 = vld [vmem:[#allocation9 + $0xf8] sm:$0xff] }
 0x536   :  { %v2770_v33 = vsel %vm2767_vm8, %v2769_v55, %v2765_v57  ;;  %3138 = vmatpush.msrb.mxu0 %v3137_v39 }
 0x537   :  { %3176 = vmatpush.msrb.mxu1 %v3106_v13  ;;  %v2787_v13 = vld [vmem:[#allocation2 + $0x48] sm:$0x3] }
 0x538   :  { %3139 = vmatpush.msrb.mxu0 %v3136_v60 }
 0x53a   :  { %3140 = vmatpush.msrb.mxu0 %v3135_v58 }
 0x53b   :  { %v3749_v16 = vpop.eup %3748 }
 0x53c   :  { %v2779_v21 = vmul.f32 %v3749_v16, %v2770_v33  ;;  %3141 = vmatpush.msrb.mxu0 %v3134_v9  ;;  %v3132_v16 = vld [vmem:[#allocation9 + $0xd0] sm:$0xff]  ;;  %v3203_v9 = vld [vmem:[#allocation9 + $0x178] sm:$0xff] }
 0x53d   :  { %3204 = vmatpush.msrb.mxu2 %v3203_v9  ;;  %v3188_v9 = vld [vmem:[#allocation9 + $0x100] sm:$0xff] }
 0x53e   :  { %v2954_v52 = vrot.slane %v2779_v21, 2  ;;  %3142 = vmatpush.msrb.mxu0 %v3133_v19  ;;  %v3200_v19 = vld [vmem:[#allocation9 + $0x160] sm:$0xff] }
 0x540   :  { %2972 = vmatmul.f32.vlgmr.msra.gmra.mxu0 %v2954_v52  ;;  %2992 = vmatmul.f32.vlgmr.msra.gmra.mxu1 %v2954_v52 }
 0x541   :  { %3012 = vmatmul.f32.vlgmr.msra.gmra.mxu2 %v2954_v52  ;;  %3032 = vmatmul.f32.vlgmr.msrb.gmra.mxu3 %v2954_v52 }
 0x542   :  { %3143 = vmatpush.msrb.mxu0 %v3132_v16 }
 0x544   :  { %3144 = vmatpush.msrb.mxu0 %v3131_v49  ;;  %v3197_v49 = vld [vmem:[#allocation9 + $0x148] sm:$0xff] }
 0x58d   :  { %v2808_v63 = vpop.f32.mrf.mxu0  ;;  %v2828_v56 = vpop.f32.mrf.mxu1 }
 0x58e   :  { %v2875_v26 = vrot.slane %v2808_v63, 2  ;;  %v2876_v23 = vrot.slane %v2828_v56, 2 }
 0x590   :  { %v2883_v5 = vadd.f32 %v2875_v26, %v2780_v35  ;;  %v2884_v50 = vadd.f32 %v2876_v23, %v2781_v3  ;;  %v3130_v23 = vld [vmem:[#allocation9 + $0xc0] sm:$0xff] }
 0x591   :  { %3145 = vmatpush.msrb.mxu0 %v3130_v23 }
 0x592   :  { %v3499_v47 = vmul.f32 -1.442695, %v2883_v5  ;;  %v3500_v62 = vmul.f32 -1.442695, %v2884_v50  ;;  %v3129_v50 = vld [vmem:[#allocation9 + $0xb8] sm:$0xff] }
 0x593   :  { %3146 = vmatpush.msrb.mxu0 %v3129_v50 }
 0x594   :  { %3750 = vpow2.f32 %v3499_v47  ;;  %v2868_v48 = vpop.f32.mrf.mxu3  ;;  %v2848_v40 = vpop.f32.mrf.mxu2  ;;  %v2784_v47 = vld [vmem:[#allocation2 + $0x50] sm:$0x3] }
 0x595   :  { %3752 = vpow2.f32 %v3500_v62  ;;  %v2878_v45 = vrot.slane %v2868_v48, 2  ;;  %v2877_v15 = vrot.slane %v2848_v40, 2  ;;  %3147 = vmatpush.msrb.mxu0 %v3128_v0  ;;  %v3124_v40 = vld [vmem:[#allocation9 + $0x90] sm:$0xff] }
 0x597   :  { %v2886_v11 = vadd.f32 %v2878_v45, %v2783_v24  ;;  %v2885_v7 = vadd.f32 %v2877_v15, %v2782_v61 }
 0x599   :  { %v3501_v8 = vmul.f32 -1.442695, %v2886_v11  ;;  %v3127_v11 = vld [vmem:[#allocation9 + $0xa8] sm:$0xff] }
 0x59a   :  { %v3751_v36 = vpop.eup %3750  ;;  %3148 = vmatpush.msrb.mxu0 %v3127_v11 }
 0x59b   :  { %v3753_v37 = vpop.eup %3752  ;;  %v2890_v10 = vadd.f32 1.0, %v3751_v36  ;;  %3754 = vpow2.f32 %v3501_v8 }
 0x59c   :  { %v2909_v54 = vadd.f32 1.0, %v3753_v37  ;;  %3149 = vmatpush.msrb.mxu0 %v3126_v43 }
 0x59d   :  { %3756 = vrcp.f32 %v2890_v10  ;;  %v2902_v22 = vand.u32 2147483648, %v2890_v10  ;;  %v2900_v41 = vand.u32 2147483647, %v2890_v10  ;;  %vm2896_vm11 = vweird.f32 %v2890_v10 }
 0x59e   :  { %3758 = vrcp.f32 %v2909_v54  ;;  %v2921_v4 = vand.u32 2147483648, %v2909_v54  ;;  %v2919_v55 = vand.u32 2147483647, %v2909_v54  ;;  %vm2915_vm12 = vweird.f32 %v2909_v54 }
 0x59f   :  { %v2903_v52 = vor.u32 1.1754944e-38, %v2902_v22  ;;  %vm2901_vm15 = vcmp.eq.f32.partialorder %v2900_v41, 8.507059e+37 }
 0x5a0   :  { %v2922_v31 = vor.u32 1.1754944e-38, %v2921_v4  ;;  %vm2920_vm0 = vcmp.eq.f32.partialorder %v2919_v55, 8.507059e+37 }
 0x5a1   :  { %v3755_v44 = vpop.eup %3754 }
 0x5a2   :  { %v6748_v30 = vadd.f32 1.0, %v3755_v44  ;;  %v3123_v44 = vld [vmem:[#allocation9 + $0x88] sm:$0xff] }
 0x5a3   :  { %v3757_v17 = vpop.eup %3756 }
 0x5a4   :  { %v3759_v59 = vpop.eup %3758  ;;  %v2892_v20 = vmul.f32 %v3757_v17, %v2890_v10  ;;  %3760 = vrcp.f32 %v6748_v30  ;;  %vm2897_vm9 = vweird.f32 %v3757_v17  ;;  %v2941_v42 = vand.u32 2147483648, %v6748_v30  ;;  %v3125_v10 = vld [vmem:[#allocation9 + $0x98] sm:$0xff] }
 0x5a5   :  { %v2911_v51 = vmul.f32 %v3759_v59, %v2909_v54  ;;  %3762 = vtanh.f32 %v2885_v7  ;;  %vm2916_vm10 = vweird.f32 %v3759_v59  ;;  %vm2898_vm13 = vmor %vm2896_vm11, %vm2897_vm9  ;;  %vm2935_vm2 = vweird.f32 %v6748_v30  ;;  %3150 = vmatpush.msrb.mxu0 %v3125_v10 }
 0x5a6   :  { %v2893_v25 = vsub.f32 1.0, %v2892_v20  ;;  %vm2917_vm14 = vmor %vm2915_vm12, %vm2916_vm10  ;;  %v2939_v46 = vand.u32 2147483647, %v6748_v30  ;;  %v2942_v54 = vor.u32 1.1754944e-38, %v2941_v42 }
 0x5a7   :  { %v2912_v28 = vsub.f32 1.0, %v2911_v51  ;;  %3151 = vmatpush.msrb.mxu0 %v3124_v40 }
 0x5a8   :  { %v2894_v29 = vmul.f32 %v3757_v17, %v2893_v25  ;;  %vm2940_vm4 = vcmp.eq.f32.partialorder %v2939_v46, 8.507059e+37  ;;  %v3202_v25 = vld [vmem:[#allocation9 + $0x170] sm:$0xff] }
 0x5a9   :  { %v2913_v57 = vmul.f32 %v3759_v59, %v2912_v28  ;;  %3152 = vmatpush.msrb.mxu0 %v3123_v44  ;;  %v3201_v28 = vld [vmem:[#allocation9 + $0x168] sm:$0xff]  ;;  %3205 = vmatpush.msrb.mxu2 %v3202_v25  ;;  %v6764_v25 = vld [vmem:[#allocation6] sm:$0xff] }
 0x5aa   :  { %v6751_v33 = vpop.eup %3760  ;;  %v2895_v21 = vadd.f32 %v3757_v17, %v2894_v29  ;;  %v2786_v29 = vld [vmem:[#allocation2 + $0x8] sm:$0x3]  ;;  %v3193_v44 = vld [vmem:[#allocation9 + $0x128] sm:$0xff] }
 0x5ab   :  { %v2914_v18 = vadd.f32 %v3759_v59, %v2913_v57  ;;  %v2931_v34 = vmul.f32 %v6751_v33, %v6748_v30  ;;  %v3763_v1 = vpop.eup %3762  ;;  %vm2936_vm1 = vweird.f32 %v6751_v33  ;;  %v3122_v30 = vld [vmem:[#allocation9 + $0x80] sm:$0xff]  ;;  %3206 = vmatpush.msrb.mxu2 %v3201_v28  ;;  %v3199_v57 = vld [vmem:[#allocation9 + $0x158] sm:$0xff] }
 0x5ac   :  { %v2899_v38 = vsel %vm2898_vm13, %v3757_v17, %v2895_v21  ;;  %vm2937_vm3 = vmor %vm2935_vm2, %vm2936_vm1  ;;  %3153 = vmatpush.msrb.mxu0 %v3122_v30  ;;  %v3245_v30 = vld [vmem:[#allocation9 + $0x1e0] sm:$0xff]  ;;  %vm3312_vm1 = vcmask 130112   ;;  %vm3317_vm2 = vcmask 1041409  }
 0x5ad   :  { %v2904_v63 = vsel %vm2901_vm15, %v2903_v52, %v2899_v38  ;;  %v2918_v56 = vsel %vm2917_vm14, %v3759_v59, %v2914_v18  ;;  %v2932_v26 = vsub.f32 1.0, %v2931_v34  ;;  %3207 = vmatpush.msrb.mxu2 %v3200_v19  ;;  %v3198_v52 = vld [vmem:[#allocation9 + $0x150] sm:$0xff]  ;;  %v3241_v28 = vld [vmem:[#allocation9 + $0x1c0] sm:$0xff] }
 0x5ae   :  { %v2923_v2 = vsel %vm2920_vm0, %v2922_v31, %v2918_v56  ;;  %v2949_v35 = vmul.f32 %v3763_v1, %v2904_v63  ;;  %v3196_v56 = vld [vmem:[#allocation9 + $0x140] sm:$0xff]  ;;  %v3239_v19 = vld [vmem:[#allocation9 + $0x1b0] sm:$0xff] }
 0x5af   :  { %v2948_v3 = vmul.f32 %v2946_v32, %v2923_v2  ;;  %v2933_v5 = vmul.f32 %v6751_v33, %v2932_v26  ;;  %3208 = vmatpush.msrb.mxu2 %v3199_v57  ;;  %v3236_v57 = vld [vmem:[#allocation9 + $0x198] sm:$0xff] }
 0x5b1   :  { %v2950_v12 = vadd.f32 %v2949_v35, %v2948_v3  ;;  %v2934_v27 = vadd.f32 %v6751_v33, %v2933_v5  ;;  %3209 = vmatpush.msrb.mxu2 %v3198_v52  ;;  %v6773_v52 = vld [vmem:[#allocation6 + $0x18] sm:$0xff] }
 0x5b3   :  { %3764 = vtanh.f32 %v2950_v12  ;;  %v2938_v37 = vsel %vm2937_vm3, %v6751_v33, %v2934_v27  ;;  %3210 = vmatpush.msrb.mxu2 %v3197_v49  ;;  %vm3320_vm3 = vcmask 123904  }
 0x5b4   :  { %v2943_v39 = vsel %vm2940_vm4, %v2942_v54, %v2938_v37 }
 0x5b5   :  { %3211 = vmatpush.msrb.mxu2 %v3196_v56 }
 0x5b9   :  { %v3765_v6 = vpop.eup %3764 }
 0x5ba   :  { %v2952_v61 = vmul.f32 %v3765_v6, %v2943_v39  ;;  %v3195_v6 = vld [vmem:[#allocation9 + $0x138] sm:$0xff]  ;;  %v3247_v39 = vld [vmem:[#allocation9 + $0x1f0] sm:$0xff] }
 0x5bb   :  { %3212 = vmatpush.msrb.mxu2 %v3195_v6 }
 0x5bc   :  { %v3159_v7 = vrot.slane %v2952_v61, 6  ;;  %v3192_v61 = vld [vmem:[#allocation9 + $0x120] sm:$0xff] }
 0x5bd   :  { %v2973_v62 = vpop.f32.mrf.mxu0  ;;  %v2993_v48 = vpop.f32.mrf.mxu1 }
 0x5be   :  { %v3036_v45 = vadd.f32 %v2973_v62, %v2784_v47  ;;  %v3037_v24 = vadd.f32 %v2993_v48, %v2785_v14  ;;  %3177 = vmatmul.f32.vlgmr.msrb.gmra.mxu1 %v3159_v7  ;;  %v3099_v47 = vrot.slane %v6745_v53, 2  ;;  %v3244_v7 = vld [vmem:[#allocation9 + $0x1d8] sm:$0xff] }
 0x5c0   :  { %v3502_v8 = vmul.f32 -1.442695, %v3036_v45  ;;  %v3503_v36 = vmul.f32 -1.442695, %v3037_v24 }
 0x5c2   :  { %3766 = vpow2.f32 %v3502_v8 }
 0x5c3   :  { %3768 = vpow2.f32 %v3503_v36 }
 0x5c4   :  { %v3033_v15 = vpop.f32.mrf.mxu3  ;;  %v3013_v22 = vpop.f32.mrf.mxu2 }
 0x5c5   :  { %v3039_v60 = vadd.f32 %v3033_v15, %v2787_v13  ;;  %v3038_v16 = vadd.f32 %v3013_v22, %v2786_v29  ;;  %v3194_v13 = vld [vmem:[#allocation9 + $0x130] sm:$0xff]  ;;  %v3248_v15 = vld [vmem:[#allocation9 + $0x1f8] sm:$0xff]  ;;  %v6767_v29 = vld [vmem:[#allocation6 + $0x8] sm:$0xff] }
 0x5c6   :  { %3249 = vmatpush.msra.mxu3 %v3248_v15  ;;  %3213 = vmatpush.msrb.mxu2 %v3194_v13  ;;  %v3240_v22 = vld [vmem:[#allocation9 + $0x1b8] sm:$0xff] }
 0x5c7   :  { %v3504_v17 = vmul.f32 -1.442695, %v3039_v60  ;;  %v3246_v60 = vld [vmem:[#allocation9 + $0x1e8] sm:$0xff] }
 0x5c8   :  { %v3767_v58 = vpop.eup %3766  ;;  %3250 = vmatpush.msra.mxu3 %v3247_v39  ;;  %3214 = vmatpush.msrb.mxu2 %v3193_v44 }
 0x5c9   :  { %v3769_v59 = vpop.eup %3768  ;;  %v3043_v20 = vadd.f32 1.0, %v3767_v58  ;;  %3770 = vpow2.f32 %v3504_v17  ;;  %v3191_v17 = vld [vmem:[#allocation9 + $0x118] sm:$0xff]  ;;  %v3190_v58 = vld [vmem:[#allocation9 + $0x110] sm:$0xff] }
 0x5ca   :  { %v3062_v51 = vadd.f32 1.0, %v3769_v59  ;;  %3251 = vmatpush.msra.mxu3 %v3246_v60  ;;  %3215 = vmatpush.msrb.mxu2 %v3192_v61  ;;  %v3243_v59 = vld [vmem:[#allocation9 + $0x1d0] sm:$0xff] }
 0x5cb   :  { %3772 = vrcp.f32 %v3043_v20  ;;  %v3055_v31 = vand.u32 2147483648, %v3043_v20  ;;  %v3053_v63 = vand.u32 2147483647, %v3043_v20  ;;  %vm3049_vm7 = vweird.f32 %v3043_v20 }
 0x5cc   :  { %3774 = vrcp.f32 %v3062_v51  ;;  %v3074_v38 = vand.u32 2147483648, %v3062_v51  ;;  %v3072_v23 = vand.u32 2147483647, %v3062_v51  ;;  %vm3068_vm8 = vweird.f32 %v3062_v51  ;;  %3252 = vmatpush.msra.mxu3 %v3245_v30  ;;  %3216 = vmatpush.msrb.mxu2 %v3191_v17 }
 0x5cd   :  { %v3056_v3 = vor.u32 1.1754944e-38, %v3055_v31  ;;  %vm3054_vm11 = vcmp.eq.f32.partialorder %v3053_v63, 8.507059e+37 }
 0x5ce   :  { %v3075_v12 = vor.u32 1.1754944e-38, %v3074_v38  ;;  %vm3073_vm12 = vcmp.eq.f32.partialorder %v3072_v23, 8.507059e+37  ;;  %3253 = vmatpush.msra.mxu3 %v3244_v7  ;;  %3217 = vmatpush.msrb.mxu2 %v3190_v58  ;;  %v4313_v58 = vmov 0  }
 0x5cf   :  { %v3771_v4 = vpop.eup %3770  ;;  %3522 = vset.pattern.permute.xlu1 %v4313_v58  ;;  %3521 = vset.pattern.permute.xlu0 %v4313_v58 }
 0x5d0   :  { %v3082_v41 = vadd.f32 1.0, %v3771_v4  ;;  %3254 = vmatpush.msra.mxu3 %v3243_v59  ;;  %v3238_v4 = vld [vmem:[#allocation9 + $0x1a8] sm:$0xff]  ;;  %3520 = vset.pattern.permute.xlu2 %v4313_v58 }
 0x5d1   :  { %v3773_v55 = vpop.eup %3772 }
 0x5d2   :  { %v3775_v33 = vpop.eup %3774  ;;  %v3045_v21 = vmul.f32 %v3773_v55, %v3043_v20  ;;  %3776 = vrcp.f32 %v3082_v41  ;;  %vm3050_vm5 = vweird.f32 %v3773_v55  ;;  %v3094_v36 = vand.u32 2147483648, %v3082_v41  ;;  %v3189_v20 = vld [vmem:[#allocation9 + $0x108] sm:$0xff] }
 0x5d3   :  { %v3064_v18 = vmul.f32 %v3775_v33, %v3062_v51  ;;  %3778 = vtanh.f32 %v3038_v16  ;;  %vm3069_vm6 = vweird.f32 %v3775_v33  ;;  %vm3051_vm9 = vmor %vm3049_vm7, %vm3050_vm5  ;;  %vm3088_vm14 = vweird.f32 %v3082_v41  ;;  %v3242_v51 = vld [vmem:[#allocation9 + $0x1c8] sm:$0xff]  ;;  %3218 = vmatpush.msrb.mxu2 %v3189_v20  ;;  %v6770_v16 = vld [vmem:[#allocation6 + $0x10] sm:$0xff] }
 0x5d4   :  { %v3046_v34 = vsub.f32 1.0, %v3045_v21  ;;  %vm3070_vm10 = vmor %vm3068_vm8, %vm3069_vm6  ;;  %v3092_v43 = vand.u32 2147483647, %v3082_v41  ;;  %v3095_v10 = vor.u32 1.1754944e-38, %v3094_v36  ;;  %3255 = vmatpush.msra.mxu3 %v3242_v51  ;;  %v3233_v21 = vld [vmem:[#allocation9 + $0x180] sm:$0xff] }
 0x5d5   :  { %v3065_v32 = vsub.f32 1.0, %v3064_v18  ;;  %3219 = vmatpush.msrb.mxu2 %v3188_v9  ;;  %v3523_v18 = vld [vmem:[#allocation9 + $0x200] ss:$0 sm:$0xff] }
 0x5d6   :  { %v3047_v1 = vmul.f32 %v3773_v55, %v3046_v34  ;;  %vm3093_vm0 = vcmp.eq.f32.partialorder %v3092_v43, 8.507059e+37  ;;  %3220 = vmatmul.f32.vlgmr.msrb.gmra.mxu2 %v6764_v25  ;;  %3256 = vmatpush.msra.mxu3 %v3241_v28 }
 0x5d7   :  { %v3066_v26 = vmul.f32 %v3775_v33, %v3065_v32 }
 0x5d8   :  { %v3777_v2 = vpop.eup %3776  ;;  %v3048_v35 = vadd.f32 %v3773_v55, %v3047_v1  ;;  %3257 = vmatpush.msra.mxu3 %v3240_v22 }
 0x5d9   :  { %v3067_v5 = vadd.f32 %v3775_v33, %v3066_v26  ;;  %v3084_v50 = vmul.f32 %v3777_v2, %v3082_v41  ;;  %v3779_v62 = vpop.eup %3778  ;;  %vm3089_vm13 = vweird.f32 %v3777_v2  ;;  %v3237_v41 = vld [vmem:[#allocation9 + $0x1a0] sm:$0xff] }
 0x5da   :  { %v3052_v0 = vsel %vm3051_vm9, %v3773_v55, %v3048_v35  ;;  %vm3090_vm15 = vmor %vm3088_vm14, %vm3089_vm13  ;;  %3258 = vmatpush.msra.mxu3 %v3239_v19  ;;  %v3235_v55 = vld [vmem:[#allocation9 + $0x190] sm:$0xff] }
 0x5db   :  { %v3057_v14 = vsel %vm3054_vm11, %v3056_v3, %v3052_v0  ;;  %v3071_v48 = vsel %vm3070_vm10, %v3775_v33, %v3067_v5  ;;  %v3085_v27 = vsub.f32 1.0, %v3084_v50  ;;  %v3234_v33 = vld [vmem:[#allocation9 + $0x188] sm:$0xff] }
 0x5dc   :  { %v3076_v45 = vsel %vm3073_vm12, %v3075_v12, %v3071_v48  ;;  %v3102_v24 = vmul.f32 %v3779_v62, %v3057_v14  ;;  %3259 = vmatpush.msra.mxu3 %v3238_v4 }
 0x5dd   :  { %v3101_v42 = vmul.f32 %v3099_v47, %v3076_v45  ;;  %v3086_v11 = vmul.f32 %v3777_v2, %v3085_v27  ;;  %v3525_v47 = vld [vmem:[#allocation9 + $0x202] ss:$0 sm:$0xff] }
 0x5de   :  { %3223 = vmatmul.f32.gmra.mxu2 %v6767_v29  ;;  %3260 = vmatpush.msra.mxu3 %v3237_v41 }
 0x5df   :  { %v3103_v46 = vadd.f32 %v3102_v24, %v3101_v42  ;;  %v3087_v8 = vadd.f32 %v3777_v2, %v3086_v11 }
 0x5e0   :  { %3261 = vmatpush.msra.mxu3 %v3236_v57 }
 0x5e1   :  { %3780 = vtanh.f32 %v3103_v46  ;;  %v3091_v37 = vsel %vm3090_vm15, %v3777_v2, %v3087_v8  ;;  %v3524_v2 = vld [vmem:[#allocation9 + $0x201] ss:$0 sm:$0xff] }
 0x5e2   :  { %v3096_v54 = vsel %vm3093_vm0, %v3095_v10, %v3091_v37  ;;  %3262 = vmatpush.msra.mxu3 %v3235_v55  ;;  %v3307_v37 = vlaneseq }
 0x5e4   :  { %3263 = vmatpush.msra.mxu3 %v3234_v33 }
 0x5e6   :  { %3226 = vmatmul.f32.gmra.mxu2 %v6770_v16  ;;  %3264 = vmatpush.msra.mxu3 %v3233_v21 }
 0x5e7   :  { %v3781_v53 = vpop.eup %3780 }
 0x5e8   :  { %v3105_v40 = vmul.f32 %v3781_v53, %v3096_v54  ;;  %v3308_v54 = vand.u32 127, %v3307_v37 }
 0x5ea   :  { %3154 = vmatmul.f32.vlgmr.msrb.gmra.mxu0 %v3105_v40  ;;  %v3310_v40 = vadd.s32 4294967288, %v3308_v54 }
 0x5ee   :  { %3229 = vmatmul.f32.gmra.mxu2 %v6773_v52 }
 0x63b   :  { %v3178_v34 = vpop.f32.mrf.mxu1 }
 0x659   :  { %v3221_v38 = vpop.f32.mrf.mxu2 }
 0x661   :  { %v3224_v1 = vpop.f32.mrf.mxu2 }
 0x667   :  { %v3155_v49 = vpop.f32.mrf.mxu0 }
 0x668   :  { %v3179_v32 = vadd.f32 %v3178_v34, %v3155_v49 }
 0x669   :  { %v3227_v63 = vpop.f32.mrf.mxu2 }
 0x66a   :  { %v6776_v31 = vadd.f32 %v3523_v18, %v3179_v32 }
 0x66c   :  { %3265 = vmatmul.f32.vlgmr.msra.gmra.mxu3 %v6776_v31 }
 0x671   :  { %v3230_v5 = vpop.f32.mrf.mxu2 }
 0x6ef   :  { %v3266_v56 = vpop.f32.mrf.mxu3 }
 0x6f0   :  { %v3270_v26 = vrot.slane %v3266_v56, 1  ;;  %v3271_v23 = vperm.slane %v3266_v56, 0 }
 0x6f2   :  { %v3272_v35 = vperm.slane %v3270_v26, 0  ;;  %v3275_v3 = vadd.f32 %v3271_v23, %v3221_v38  ;;  %v3276_v50 = vadd.f32 %v3271_v23, %v3224_v1 }
 0x6f4   :  { %v3277_v12 = vadd.f32 %v3272_v35, %v3227_v63  ;;  %v3281_v0 = vadd.f32 %v3524_v2, %v3275_v3  ;;  %v3278_v62 = vadd.f32 %v3272_v35, %v3230_v5  ;;  %v3282_v24 = vadd.f32 %v3524_v2, %v3276_v50 }
 0x6f6   :  { %v3285_v14 = vmax.f32 %v3281_v0, 0.0  ;;  %v3283_v48 = vadd.f32 %v3524_v2, %v3277_v12  ;;  %v3284_v42 = vadd.f32 %v3524_v2, %v3278_v62  ;;  %v3286_v46 = vmax.f32 %v3282_v24, 0.0 }
 0x6f8   :  { %v3291_v27 = vmul.f32 %v3525_v47, %v3285_v14  ;;  %v3287_v45 = vmax.f32 %v3283_v48, 0.0  ;;  %v3288_v8 = vmax.f32 %v3284_v42, 0.0  ;;  %v3292_v36 = vmul.f32 %v3525_v47, %v3286_v46 }
 0x6fa   :  { %3295 = vadd.xlane.f32.xlu0 %v3291_v27  ;;  %v3293_v11 = vmul.f32 %v3525_v47, %v3287_v45  ;;  %v3294_v43 = vmul.f32 %v3525_v47, %v3288_v8 }
 0x6fc   :  { %3299 = vadd.xlane.f32.xlu1 %v3293_v11 }
 0x702   :  { %3297 = vadd.xlane.f32.xlu0 %v3292_v36 }
 0x704   :  { %3301 = vadd.xlane.f32.xlu1 %v3294_v43 }
 0x76d   :  { %v3296_v10 = vpop.xlane.xlu0 %3295 }
 0x76e   :  { %v3309_v39 = vperm.slane %v3296_v10, %v3308_v54 }
 0x76f   :  { %v3300_v53 = vpop.xlane.xlu1 %3299 }
 0x770   :  { %v3314_v44 = vperm.slane %v3300_v53, %v3308_v54 }
 0x775   :  { %v3298_v6 = vpop.xlane.xlu0 %3297 }
 0x776   :  { %v3311_v13 = vperm.slane %v3298_v6, %v3310_v40 }
 0x777   :  { %v3302_v15 = vpop.xlane.xlu1 %3301 }
 0x778   :  { %v3315_v60 = vperm.slane %v3302_v15, %v3310_v40  ;;  %v3313_v61 = vsel %vm3312_vm1, %v3311_v13, %v3309_v39 }
 0x77a   :  { %v3316_v30 = vsel %vm3312_vm1, %v3315_v60, %v3314_v44 }
 0x77b   :  { %v3318_v17 = vsel %vm3317_vm2, %v3316_v30, %v3313_v61 }
 0x77c   :  { %v3321_v7 = vsel %vm3320_vm3, %v3318_v17, -inf }
 0x77d   :  { %3322 = vmax.xlane.f32.xlu2 %v3321_v7 }
 0x7f0   :  { %v3323_v59 = vpop.xlane.xlu2 %3322 }
 0x7f1   :  { %v3325_v20 = vperm.slane %v3323_v59, 0  ;;  %v3326_v51 = vperm.slane %v3323_v59, 1 }
 0x7f3   :  { %v3329_v9 = vsub.f32 %v3296_v10, %v3325_v20  ;;  %v3330_v28 = vsub.f32 %v3298_v6, %v3325_v20  ;;  %v3331_v22 = vsub.f32 %v3300_v53, %v3326_v51  ;;  %v3332_v57 = vsub.f32 %v3302_v15, %v3326_v51 }
 0x7f5   :  { %v3333_v19 = vmul.f32 1.442695, %v3329_v9  ;;  %v3335_v4 = vmul.f32 1.442695, %v3330_v28  ;;  %v3337_v41 = vmul.f32 1.442695, %v3331_v22 }
 0x7f6   :  { %v3339_v55 = vmul.f32 1.442695, %v3332_v57 }
 0x7f7   :  { %3782 = vpow2.f32 %v3333_v19 }
 0x7f8   :  { %3784 = vpow2.f32 %v3335_v4 }
 0x7f9   :  { %3786 = vpow2.f32 %v3337_v41 }
 0x7fa   :  { %3788 = vpow2.f32 %v3339_v55 }
 0x7fd   :  { %v3783_v33 = vpop.eup %3782 }
 0x7fe   :  { %v3785_v21 = vpop.eup %3784  ;;  %3346 = vperm.xlu2 %3520, %v3783_v33  }
 0x7ff   :  { %v3787_v18 = vpop.eup %3786  ;;  %3349 = vperm.xlu0 %3521, %v3785_v21  }
 0x800   :  { %3352 = vperm.xlu1 %3522, %v3787_v18   ;;  %v3789_v34 = vpop.eup %3788 }
 0x806   :  { %3355 = vperm.xlu2 %3520, %v3789_v34  }
 0x858   :  { %v3347_v49 = vpop.permute.xlu2 %3346 }
 0x859   :  { %v3357_v1 = vperm.slane %v3347_v49, %v3308_v54 }
 0x860   :  { %v3356_v32 = vpop.permute.xlu2 %3355 }
 0x861   :  { %v3361_v26 = vperm.slane %v3356_v32, %v3310_v40 }
 0x871   :  { %v3350_v38 = vpop.permute.xlu0 %3349 }
 0x872   :  { %v3353_v63 = vpop.permute.xlu1 %3352  ;;  %v3358_v56 = vperm.slane %v3350_v38, %v3310_v40 }
 0x873   :  { %v3360_v23 = vperm.slane %v3353_v63, %v3308_v54 }
 0x874   :  { %v3359_v2 = vsel %vm3312_vm1, %v3358_v56, %v3357_v1 }
 0x875   :  { %v3362_v35 = vsel %vm3312_vm1, %v3361_v26, %v3360_v23 }
 0x876   :  { %v3363_v3 = vsel %vm3317_vm2, %v3362_v35, %v3359_v2 }
 0x877   :  { %v3365_v5 = vsel %vm3320_vm3, %v3363_v3, 0.0 }
 0x878   :  { %3366 = vadd.xlane.f32.xlu2 %v3365_v5 }
 0x8eb   :  { %v3367_v50 = vpop.xlane.xlu2 %3366 }
 0x8ec   :  { %3790 = vrcp.f32 %v3367_v50 }
 0x8f2   :  { %v3791_v12 = vpop.eup %3790 }
 0x8f3   :  { %v3371_v0 = vperm.slane %v3791_v12, 1  ;;  %v3370_v47 = vperm.slane %v3791_v12, 0 }
 0x8f5   :  { %v3376_v62 = vmul.f32 %v3787_v18, %v3371_v0  ;;  %v3374_v14 = vmul.f32 %v3783_v33, %v3370_v47  ;;  %v3375_v48 = vmul.f32 %v3785_v21, %v3370_v47  ;;  %v3377_v27 = vmul.f32 %v3789_v34, %v3371_v0 }
 0x8f7   :  { %3390 = vperm.xlu0 %3521, %v3376_v62   ;;  %3380 = vperm.xlu1 %3522, %v3374_v14  }
 0x8ff   :  { %3385 = vperm.xlu1 %3522, %v3375_v48  }
 0x907   :  { %3395 = vperm.xlu1 %3522, %v3377_v27  }
 0x969   :  { %v3381_v45 = vpop.permute.xlu1 %3380  ;;  %v3391_v36 = vpop.permute.xlu0 %3390 }
 0x96a   :  { %v3398_v42 = vmul.f32 %v3381_v45, %v6764_v25  ;;  %v3400_v10 = vmul.f32 %v3391_v36, %v6770_v16 }
 0x971   :  { %v3386_v24 = vpop.permute.xlu1 %3385 }
 0x972   :  { %v3399_v11 = vmul.f32 %v3386_v24, %v6767_v29 }
 0x974   :  { %v3402_v46 = vadd.f32 %v3399_v11, %v3398_v42 }
 0x976   :  { %v3403_v8 = vrot.slane %v3402_v46, 4 }
 0x978   :  { %v3404_v43 = vadd.f32 %v3403_v8, %v3402_v46 }
 0x979   :  { %v3396_v37 = vpop.permute.xlu1 %3395 }
 0x97a   :  { %v3401_v53 = vmul.f32 %v3396_v37, %v6773_v52  ;;  %v3405_v54 = vrot.slane %v3404_v43, 2 }
 0x97c   :  { %v3409_v40 = vadd.f32 %v3401_v53, %v3400_v10  ;;  %v3406_v13 = vadd.f32 %v3405_v54, %v3404_v43 }
 0x97e   :  { %v3410_v6 = vrot.slane %v3409_v40, 4  ;;  %v3407_v44 = vrot.slane %v3406_v13, 1 }
 0x980   :  { %v3411_v15 = vadd.f32 %v3410_v6, %v3409_v40  ;;  %v3408_v61 = vadd.f32 %v3407_v44, %v3406_v13 }
 0x982   :  { %v3412_v39 = vrot.slane %v3411_v15, 2 }
 0x984   :  { %v3413_v60 = vadd.f32 %v3412_v39, %v3411_v15 }
 0x986   :  { %v3414_v25 = vrot.slane %v3413_v60, 1 }
 0x988   :  { %v3415_v29 = vadd.f32 %v3414_v25, %v3413_v60 }
 0x98a   :  { %v3418_v16 = vsel %vm3317_vm2, %v3415_v29, %v3408_v61 }
 0x98b   :  { %v3420_v52 = vadd.f32 %v3418_v16, %v6776_v31 }
 0x98d   :  { %3421 = vst [vmem:[#allocation11] sm:$0x3] %v3420_v52 }
 0x98e   :  { %3432 = dma.vmem_to_hbm [thread:$0]  %s3428_s3, 32, %s3430_s13, [#allocation5]  }
 0x98f   :  { %4302 = dma.done.wait [#allocation5], 32  }
 0x990   :  { %4303 = vsyncadd [#allocation5], 4294967264 }
 0x991   :  { %3437 = vsyncpa [#allocation4], 1 }
 0x992   :  { %3438 = vsyncpa [#allocation7], 1 }
 0x993   :  { %3439 = vsyncpa [#allocation10], 1 }
 0x994   :  { %3440 = vsyncpa [#allocation5], 1 }

</bundles_post_ra>
